<compile_context>
chip_gen: v5e
topology: v5e:2x2
jax: 0.10.0
libtpu: 0.0.40
codegen_flags: <defaults>
</compile_context>

<pallas_src>
import functools

import jax
import jax.numpy as jnp
from jax import lax
from jax.experimental import pallas as pl
from jax.experimental.pallas import tpu as pltpu


# ---------------------------------------------------------------------------
# helpers
# ---------------------------------------------------------------------------
def _round_up(x, m):
    return ((x + m - 1) // m) * m


def _vmem_budget_bytes():
    """Per-kernel scoped-VMEM budget derived from the device.
    v7x: 64 MiB -> ~48 MiB; v5e/v6e: 128 MiB -> ~96 MiB; fallback 48 MiB."""
    try:
        cap = pltpu.get_tpu_info().vmem_capacity_bytes
    except Exception:
        cap = 64 * 1024 * 1024
    return max(32 * 1024 * 1024, int(cap * 3 // 4))


def _compiler_params(semantics, footprint_bytes, budget):
    return pltpu.CompilerParams(
        dimension_semantics=semantics,
        vmem_limit_bytes=int(min(budget, max(4 * footprint_bytes, 16 * 1024 * 1024))))


# ---------------------------------------------------------------------------
# Generic tiled (rows, K) @ (K, N) + bias kernel — used for:
#   * hoisted encoder/decoder input-gate projections (all timesteps at once)
#   * the decoder vocab projection
# Grid order = (N-tiles OUTER, row-tiles INNER): the weight tile's block index is constant
# along the inner axis, so each weight column tile is DMA'd from HBM exactly once while the
# (much smaller) activation tiles are streamed.
# ---------------------------------------------------------------------------
def matmul_bias_kernel(x_ref, w_ref, b_ref, o_ref):
    o_ref[...] = (jnp.dot(x_ref[...], w_ref[...],
                          preferred_element_type=jnp.float32)
                  + b_ref[...]).astype(o_ref.dtype)


def _matmul_bias(x, w, b, *, budget):
    rows, K = x.shape
    K2, N = w.shape
    assert K == K2 and N % 128 == 0
    # Largest lane tile dividing N (256-multiples fill the v6e/v7x 256-wide MXU).
    tn = 512 if N % 512 == 0 else (256 if N % 256 == 0 else 128)
    tm = min(512, _round_up(rows, 8))

    def footprint(tm_, tn_):  # double-buffered f32 tiles (x, w, b, out)
        return 2 * 4 * (tm_ * K + K * tn_ + tn_ + tm_ * tn_)

    # Fit tiles to the device VMEM budget (v7x has half the VMEM of v5e/v6e).
    while footprint(tm, tn) > (budget * 3) // 5 and tn > 128:
        tn //= 2
    while footprint(tm, tn) > (budget * 3) // 5 and tm > 8:
        tm = _round_up(tm // 2, 8)
    rows_pad = _round_up(rows, tm)
    xp = jnp.pad(x, ((0, rows_pad - rows), (0, 0)))

    out = pl.pallas_call(
        matmul_bias_kernel,
        out_shape=jax.ShapeDtypeStruct((rows_pad, N), jnp.float32),
        grid=(N // tn, rows_pad // tm),                 # row tiles innermost -> weight reuse
        in_specs=[pl.BlockSpec((tm, K), lambda j, i: (i, 0)),
                  pl.BlockSpec((K, tn), lambda j, i: (0, j)),   # constant over inner axis
                  pl.BlockSpec((1, tn), lambda j, i: (0, j))],
        out_specs=pl.BlockSpec((tm, tn), lambda j, i: (i, j)),  # lane-dense stores
        compiler_params=_compiler_params(("parallel", "parallel"),
                                         footprint(tm, tn), budget),
    )(xp, w, b)
    return out[:rows]


# ---------------------------------------------------------------------------
# One GRU step.  gi already contains x @ W_ih + (b_ih + b_hh folded for r/z, b_ih for n).
# bh_ref carries only b_hh_n (it is scaled by r).  PyTorch gate order: r, z, n.
# Elementwise math stays f32 (v5e VPU/EUP have no bf16).
# ---------------------------------------------------------------------------
def _gru_recur(gi, h, wh_ref, bh_ref, Hp):
    gh = jnp.dot(h, wh_ref[...], preferred_element_type=jnp.float32) + bh_ref[...]
    r = jax.nn.sigmoid(gi[:, :Hp] + gh[:, :Hp])
    z = jax.nn.sigmoid(gi[:, Hp:2 * Hp] + gh[:, Hp:2 * Hp])
    n = jnp.tanh(gi[:, 2 * Hp:] + r * gh[:, 2 * Hp:])
    return (1.0 - z) * n + z * h


# ---------------------------------------------------------------------------
# Encoder: one direction of the GRU, T-chunked.  The (B,Hp) output block is revisited at
# every grid step so it stays VMEM-resident and acts as the recurrence carry (written back
# to HBM once at the end).  Length masking implements pack_padded_sequence semantics.
# ---------------------------------------------------------------------------
def encoder_dir_kernel(len_ref, gi_ref, wh_ref, bh_ref, h_ref, *, reverse):
    Tc = gi_ref.shape[0]
    Bp, Hp = h_ref.shape
    k = pl.program_id(0)
    nk = pl.num_programs(0)

    @pl.when(k == 0)
    def _():
        h_ref[...] = jnp.zeros_like(h_ref)

    chunk = (nk - 1 - k) if reverse else k
    base = chunk * Tc
    # Hoisted once per chunk (JAX does not CSE broadcast_in_dim inside the unrolled loop).
    lens_b = jnp.broadcast_to(len_ref[...], (Bp, Hp))

    def body(s, h):
        t = (Tc - 1 - s) if reverse else s
        h_new = _gru_recur(gi_ref[t], h, wh_ref, bh_ref, Hp)
        return jnp.where(lens_b > base + t, h_new, h)       # update only inside valid range

    # Full unroll only over the small chunk (== partial unroll of the full sequence).
    h_ref[...] = lax.fori_loop(0, Tc, body, h_ref[...], unroll=True)


def _encoder_direction(gi_enc, lens, wh, bh, *, Tc, reverse, col_block, budget):
    T_pad, Bp, _ = gi_enc.shape
    Hp = wh.shape[0]
    nk = T_pad // Tc
    if reverse:
        gi_map = lambda k: (nk - 1 - k, 0, col_block)        # reversed chunk walk
    else:
        gi_map = lambda k: (k, 0, col_block)
    footprint = 4 * (2 * Tc * Bp * 3 * Hp + Hp * 3 * Hp + 3 * Hp + Bp * Hp + Bp)
    return pl.pallas_call(
        functools.partial(encoder_dir_kernel, reverse=reverse),
        out_shape=jax.ShapeDtypeStruct((Bp, Hp), jnp.float32),
        grid=(nk,),
        in_specs=[pl.BlockSpec((Bp, 1), lambda k: (0, 0)),            # lengths (resident)
                  pl.BlockSpec((Tc, Bp, 3 * Hp), gi_map),             # gi chunk (streamed)
                  pl.BlockSpec((Hp, 3 * Hp), lambda k: (0, 0)),       # W_hh (resident)
                  pl.BlockSpec((1, 3 * Hp), lambda k: (0, 0))],       # b_hh_n (resident)
        out_specs=pl.BlockSpec((Bp, Hp), lambda k: (0, 0)),           # revisited carry
        compiler_params=_compiler_params(("arbitrary",), footprint, budget),
    )(lens, gi_enc, wh, bh)


# ---------------------------------------------------------------------------
# Decoder recurrence, T-chunked: consumes gi chunks, emits per-step hidden chunks
# (streamed back to HBM through the out BlockSpec); the carry lives in VMEM scratch,
# which persists across grid steps.
# ---------------------------------------------------------------------------
def decoder_recurrence_kernel(gi_ref, h0_ref, wh_ref, bh_ref, hseq_ref, h_sc):
    Tc = gi_ref.shape[0]
    Hp = h_sc.shape[-1]
    k = pl.program_id(0)

    @pl.when(k == 0)
    def _():
        h_sc[...] = h0_ref[...]

    def body(t, h):
        h_new = _gru_recur(gi_ref[t], h, wh_ref, bh_ref, Hp)
        hseq_ref[t] = h_new
        return h_new

    h_sc[...] = lax.fori_loop(0, Tc, body, h_sc[...], unroll=True)


def _decoder_hidden_seq(gi_dec, h0, wh, bh, *, Tc, budget):
    T_pad, Bp, N3 = gi_dec.shape
    Hp = h0.shape[-1]
    nk = T_pad // Tc
    footprint = 4 * (2 * Tc * Bp * N3 + 2 * Tc * Bp * Hp + Hp * N3 + N3 + 2 * Bp * Hp)
    return pl.pallas_call(
        decoder_recurrence_kernel,
        out_shape=jax.ShapeDtypeStruct((T_pad, Bp, Hp), jnp.float32),
        grid=(nk,),
        in_specs=[pl.BlockSpec((Tc, Bp, N3), lambda k: (k, 0, 0)),    # gi chunk (streamed)
                  pl.BlockSpec((Bp, Hp), lambda k: (0, 0)),           # h0 (resident)
                  pl.BlockSpec((Hp, N3), lambda k: (0, 0)),           # W_hh (resident)
                  pl.BlockSpec((1, N3), lambda k: (0, 0))],           # b_hh_n (resident)
        out_specs=pl.BlockSpec((Tc, Bp, Hp), lambda k: (k, 0, 0)),    # hseq chunk (streamed)
        scratch_shapes=[pltpu.VMEM((Bp, Hp), jnp.float32)],           # carry across chunks
        compiler_params=_compiler_params(("arbitrary",), footprint, budget),
    )(gi_dec, h0, wh, bh)


# ---------------------------------------------------------------------------
# Forward pass (wrapper)
# ---------------------------------------------------------------------------
@functools.partial(jax.jit, static_argnames=("vocab", "t_chunk"))
def seq2seq_forward(kparams, src, src_len, tgt, tgt_len, *, vocab, t_chunk=8):
    del tgt_len  # unused by the PyTorch module's forward
    emb = kparams["emb"]                                   # (V, Ep), ReLU pre-applied
    Ep = emb.shape[-1]
    Hp = kparams["enc"]["whf"].shape[0]
    B, T_src = src.shape
    _, T_tgt = tgt.shape
    budget = _vmem_budget_bytes()

    # Pad batch to a sublane multiple so recurrence matmuls / blocks are aligned.
    Bp = _round_up(B, 8)
    srcp = jnp.pad(src, ((0, Bp - B), (0, 0)))
    tgtp = jnp.pad(tgt, ((0, Bp - B), (0, 0)))
    lens = jnp.pad(src_len.astype(jnp.int32), (0, Bp - B)).reshape(Bp, 1)

    # ---- Encoder: hoisted fused input projection (fwd|bwd gates) over all timesteps ----
    x = emb[srcp.T].reshape(T_src * Bp, Ep)
    gi_enc = _matmul_bias(x, kparams["enc"]["wi"], kparams["enc"]["bi"], budget=budget)
    Tsp = _round_up(T_src, t_chunk)
    gi_enc = jnp.pad(gi_enc.reshape(T_src, Bp, 6 * Hp),
                     ((0, Tsp - T_src), (0, 0), (0, 0)))

    # Two independent chunked/pipelined passes (fwd + bwd) over the same gi slab.
    hf = _encoder_direction(gi_enc, lens, kparams["enc"]["whf"], kparams["enc"]["bhf"],
                            Tc=t_chunk, reverse=False, col_block=0, budget=budget)
    hb = _encoder_direction(gi_enc, lens, kparams["enc"]["whb"], kparams["enc"]["bhb"],
                            Tc=t_chunk, reverse=True, col_block=1, budget=budget)
    hidden = 0.5 * (hf + hb)                               # hidden.mean(dim=0)

    # ---- Decoder recurrence ----
    y = emb[tgtp.T].reshape(T_tgt * Bp, Ep)
    gi_dec = _matmul_bias(y, kparams["dec"]["wi"], kparams["dec"]["bi"], budget=budget)
    Ttp = _round_up(T_tgt, t_chunk)
    gi_dec = jnp.pad(gi_dec.reshape(T_tgt, Bp, 3 * Hp),
                     ((0, Ttp - T_tgt), (0, 0), (0, 0)))
    hseq = _decoder_hidden_seq(gi_dec, hidden, kparams["dec"]["wh"], kparams["dec"]["bh"],
                               Tc=t_chunk, budget=budget)  # (Ttp, Bp, Hp)

    # ---- Vocab projection (weight-reuse grid order, lane-dense tiles) ----
    h_rows = hseq[:T_tgt].reshape(T_tgt * Bp, Hp).astype(kparams["dec"]["wout"].dtype)
    logits = _matmul_bias(h_rows, kparams["dec"]["wout"], kparams["dec"]["bout"],
                          budget=budget)
    logits = logits.reshape(T_tgt, Bp, -1)[:, :B, :vocab]
    return jnp.transpose(logits, (1, 0, 2))                # (B, T_tgt, V)


# ---------------------------------------------------------------------------
# Parameter preparation: fuse gates, fold r/z biases, pad lane dims.
# Padded hidden lanes stay exactly 0 through the recurrence (r=z=0.5, n=0, h0=0).
# ---------------------------------------------------------------------------
def prepare_kernel_params(p, lane=128, vocab_lane=256, matmul_dtype=jnp.float32):
    V, E = p["embedding"].shape
    H = p["enc"]["whf"].shape[-1]
    Ep, Hp = _round_up(E, lane), _round_up(H, lane)
    Vp = _round_up(V, vocab_lane)            # 256-multiple -> 256-wide MXU tiles on v6e/v7x

    def padw(w, rp, cp):
        return jnp.pad(w, ((0, rp - w.shape[0]), (0, cp - w.shape[1])))

    def padb(b, cp):
        return jnp.pad(b, ((0, cp - b.shape[0]),))

    def fuse_dir(wi, wh, bi, bh):
        # wi: (3,E,H), wh: (3,H,H), bi/bh: (3,H); gate order r, z, n
        wi_f = jnp.concatenate([padw(wi[g], Ep, Hp) for g in range(3)], axis=1)  # (Ep,3Hp)
        wh_f = jnp.concatenate([padw(wh[g], Hp, Hp) for g in range(3)], axis=1)  # (Hp,3Hp)
        bi_f = jnp.concatenate([padb(bi[0] + bh[0], Hp),      # fold r biases
                                padb(bi[1] + bh[1], Hp),      # fold z biases
                                padb(bi[2], Hp)])             # keep b_ih_n here
        bh_f = jnp.concatenate([jnp.zeros((2 * Hp,), jnp.float32),
                                padb(bh[2], Hp)])             # only b_hh_n (scaled by r)
        return (wi_f.astype(matmul_dtype), wh_f,
                bi_f.reshape(1, -1), bh_f.reshape(1, -1))

    e, d = p["enc"], p["dec"]
    wif, whf, bif, bhf = fuse_dir(e["wif"], e["whf"], e["bif"], e["bhf"])
    wib, whb, bib, bhb = fuse_dir(e["wib"], e["whb"], e["bib"], e["bhb"])
    wid, whd, bid, bhd = fuse_dir(d["wi"], d["wh"], d["bi"], d["bh"])

    return {
        # ReLU folded into the embedding table (gather commutes with elementwise ReLU)
        "emb": jnp.pad(jnp.maximum(p["embedding"], 0.0),
                       ((0, 0), (0, Ep - E))).astype(matmul_dtype),
        "enc": {
            "wi": jnp.concatenate([wif, wib], axis=1),        # (Ep, 6Hp)  [fwd | bwd]
            "bi": jnp.concatenate([bif, bib], axis=1),        # (1, 6Hp)
            "whf": whf, "bhf": bhf, "whb": whb, "bhb": bhb,   # (Hp,3Hp) / (1,3Hp)
        },
        "dec": {
            "wi": wid, "bi": bid, "wh": whd, "bh": bhd,
            "wout": padw(d["wout"], Hp, Vp).astype(matmul_dtype),  # (Hp, Vp)
            "bout": padb(d["bout"], Vp).reshape(1, -1),            # (1, Vp)
        },
    }


# ---------------------------------------------------------------------------
# Pure-JAX reference (same math, python time loop) for correctness check
# ---------------------------------------------------------------------------
def _gru_step_ref(x_t, h, wi, wh, bi, bh):
    r = jax.nn.sigmoid(x_t @ wi[0] + bi[0] + h @ wh[0] + bh[0])
    z = jax.nn.sigmoid(x_t @ wi[1] + bi[1] + h @ wh[1] + bh[1])
    n = jnp.tanh(x_t @ wi[2] + bi[2] + r * (h @ wh[2] + bh[2]))
    return (1.0 - z) * n + z * h


def _ref_forward(params, src, src_len, tgt):
    emb = params["embedding"]
    enc, dec = params["enc"], params["dec"]
    x = jnp.maximum(emb[src.T], 0.0)
    T, B, _ = x.shape
    H = enc["whf"].shape[-1]
    lens = src_len.astype(jnp.int32)
    hf = jnp.zeros((B, H), jnp.float32)
    hb = jnp.zeros((B, H), jnp.float32)
    for t in range(T):
        hn = _gru_step_ref(x[t], hf, enc["wif"], enc["whf"], enc["bif"], enc["bhf"])
        hf = jnp.where((lens > t)[:, None], hn, hf)
    for t in range(T - 1, -1, -1):
        hn = _gru_step_ref(x[t], hb, enc["wib"], enc["whb"], enc["bib"], enc["bhb"])
        hb = jnp.where((lens > t)[:, None], hn, hb)
    h = 0.5 * (hf + hb)
    y = jnp.maximum(emb[tgt.T], 0.0)
    outs = []
    for t in range(y.shape[0]):
        h = _gru_step_ref(y[t], h, dec["wi"], dec["wh"], dec["bi"], dec["bh"])
        outs.append(h @ dec["wout"] + dec["bout"])
    return jnp.transpose(jnp.stack(outs), (1, 0, 2))


# ---------------------------------------------------------------------------
def init_params(key, V, E, H):
    ks = jax.random.split(key, 15)
    s = 0.1
    nrm = lambda k, shape: jax.random.normal(k, shape, jnp.float32) * s
    return {
        "embedding": nrm(ks[0], (V, E)),
        "enc": {
            "wif": nrm(ks[1], (3, E, H)), "whf": nrm(ks[2], (3, H, H)),
            "bif": nrm(ks[3], (3, H)), "bhf": nrm(ks[4], (3, H)),
            "wib": nrm(ks[5], (3, E, H)), "whb": nrm(ks[6], (3, H, H)),
            "bib": nrm(ks[7], (3, H)), "bhb": nrm(ks[8], (3, H)),
        },
        "dec": {
            "wi": nrm(ks[9], (3, E, H)), "wh": nrm(ks[10], (3, H, H)),
            "bi": nrm(ks[11], (3, H)), "bh": nrm(ks[12], (3, H)),
            "wout": nrm(ks[13], (H, V)), "bout": nrm(ks[14], (V,)),
        },
    }


if __name__ == "__main__":
    V, E, H = 64, 32, 32          # vocab, emb_dim == enc_hid_dim == dec_hid_dim
    B, T_src, T_tgt = 2, 8, 6

    key = jax.random.PRNGKey(0)
    kparam_key, ksrc, ktgt = jax.random.split(key, 3)
    params = init_params(kparam_key, V, E, H)
    kparams = prepare_kernel_params(params)

    src = jax.random.randint(ksrc, (B, T_src), 0, V, dtype=jnp.int32)
    tgt = jax.random.randint(ktgt, (B, T_tgt), 0, V, dtype=jnp.int32)
    src_len = jnp.array([T_src, 5], dtype=jnp.int32)
    tgt_len = jnp.array([T_tgt, 4], dtype=jnp.int32)   # unused by the module's forward

    out = seq2seq_forward(kparams, src, src_len, tgt, tgt_len, vocab=V, t_chunk=8)
    out = jax.block_until_ready(out)

    assert out.shape == (B, T_tgt, V), out.shape
    ref = _ref_forward(params, src, src_len, tgt)
    err = float(jnp.max(jnp.abs(out - ref)))
    assert jnp.allclose(out, ref, atol=5e-3, rtol=5e-3), err

    print("KERNEL_OK")
</pallas_src>

<mosaic_0001>
module attributes {stable_mosaic.version = 11 : i64} {
  func.func @matmul_bias_kernel(%arg0: i32, %arg1: i32, %arg2: memref<64x128xf32, #tpu.memory_space<vmem>>, %arg3: memref<128x256xf32, #tpu.memory_space<vmem>>, %arg4: memref<1x256xf32, #tpu.memory_space<vmem>>, %arg5: memref<64x256xf32, #tpu.memory_space<vmem>>) attributes {dimension_semantics = [#tpu.dimension_semantics<parallel>, #tpu.dimension_semantics<parallel>], iteration_bounds = array<i64: 3, 1>, scalar_prefetch = 0 : i64, scratch_operands = 0 : i64, tpu.core_type = #tpu.core_type<tc>, window_params = [{transform_indices = @transform_0, window_bounds = array<i64: 64, 128>}, {transform_indices = @transform_1, window_bounds = array<i64: 128, 256>}, {transform_indices = @transform_2, window_bounds = array<i64: 1, 256>}, {transform_indices = @transform_3, window_bounds = array<i64: 64, 256>}]} {
    %c0 = arith.constant 0 : index
    %c0_0 = arith.constant 0 : index
    %0 = vector.load %arg2[%c0, %c0_0] : memref<64x128xf32, #tpu.memory_space<vmem>>, vector<64x128xf32>
    %c0_1 = arith.constant 0 : index
    %c0_2 = arith.constant 0 : index
    %1 = vector.load %arg3[%c0_1, %c0_2] : memref<128x256xf32, #tpu.memory_space<vmem>>, vector<128x256xf32>
    %cst = arith.constant dense<0.000000e+00> : vector<64x256xf32>
    %2 = tpu.matmul %0, %1, %cst {dimension_numbers = #tpu.dot_dimension_numbers<[1], [0], [0], [1], [0, 0, 1, 1], [], []>} : vector<64x128xf32>, vector<128x256xf32>, vector<64x256xf32> -> vector<64x256xf32>
    %c0_3 = arith.constant 0 : index
    %c0_4 = arith.constant 0 : index
    %3 = vector.load %arg4[%c0_3, %c0_4] : memref<1x256xf32, #tpu.memory_space<vmem>>, vector<1x256xf32>
    %4 = vector.broadcast %3 : vector<1x256xf32> to vector<64x256xf32>
    %5 = arith.addf %2, %4 : vector<64x256xf32>
    %c0_5 = arith.constant 0 : index
    %c0_6 = arith.constant 0 : index
    %6 = vector.load %arg5[%c0_5, %c0_6] : memref<64x256xf32, #tpu.memory_space<vmem>>, vector<64x256xf32>
    tpu.vector_store %arg5[%c0_5, %c0_6], %5 {strides = array<i32>} : memref<64x256xf32, #tpu.memory_space<vmem>>, vector<64x256xf32>,
    return
  }
  func.func @transform_0(%arg0: i32, %arg1: i32) -> (i32, i32) {
    %c0_i32 = arith.constant 0 : i32
    %c0_i32_0 = arith.constant 0 : i32
    return %arg1, %c0_i32 : i32, i32
  }
  func.func @transform_1(%arg0: i32, %arg1: i32) -> (i32, i32) {
    %c0_i32 = arith.constant 0 : i32
    %c0_i32_0 = arith.constant 0 : i32
    return %c0_i32, %arg0 : i32, i32
  }
  func.func @transform_2(%arg0: i32, %arg1: i32) -> (i32, i32) {
    %c0_i32 = arith.constant 0 : i32
    %c0_i32_0 = arith.constant 0 : i32
    return %c0_i32, %arg0 : i32, i32
  }
  func.func @transform_3(%arg0: i32, %arg1: i32) -> (i32, i32) {
    %c0_i32 = arith.constant 0 : i32
    return %arg1, %arg0 : i32, i32
  }
}

module attributes {stable_mosaic.version = 11 : i64} {
  func.func @encoder_dir_kernel(%arg0: i32, %arg1: memref<8x1xi32, #tpu.memory_space<vmem>>, %arg2: memref<8x8x384xf32, #tpu.memory_space<vmem>>, %arg3: memref<128x384xf32, #tpu.memory_space<vmem>>, %arg4: memref<1x384xf32, #tpu.memory_space<vmem>>, %arg5: memref<8x128xf32, #tpu.memory_space<vmem>>) attributes {dimension_semantics = [#tpu.dimension_semantics<arbitrary>], iteration_bounds = array<i64: 1>, scalar_prefetch = 0 : i64, scratch_operands = 0 : i64, tpu.core_type = #tpu.core_type<tc>, window_params = [{pipeline_mode = #tpu.pipeline_mode<synchronous>, transform_indices = @transform_0, window_bounds = array<i64: 8, 1>}, {transform_indices = @transform_1, window_bounds = array<i64: 8, 8, 384>}, {pipeline_mode = #tpu.pipeline_mode<synchronous>, transform_indices = @transform_2, window_bounds = array<i64: 128, 384>}, {pipeline_mode = #tpu.pipeline_mode<synchronous>, transform_indices = @transform_3, window_bounds = array<i64: 1, 384>}, {pipeline_mode = #tpu.pipeline_mode<synchronous>, transform_indices = @transform_4, window_bounds = array<i64: 8, 128>}]} {
    %c0_i32 = arith.constant 0 : i32
    %0 = arith.cmpi eq, %arg0, %c0_i32 : i32
    %1 = arith.extui %0 : i1 to i32
    %c0_i32_0 = arith.constant 0 : i32
    %2 = arith.cmpi ne, %1, %c0_i32_0 : i32
    scf.if %2 {
      %cst_96 = arith.constant 0.000000e+00 : f32
      %322 = vector.broadcast %cst_96 : f32 to vector<8x128xf32>
      %c0_97 = arith.constant 0 : index
      %c0_98 = arith.constant 0 : index
      %323 = vector.load %arg5[%c0_97, %c0_98] : memref<8x128xf32, #tpu.memory_space<vmem>>, vector<8x128xf32>
      tpu.vector_store %arg5[%c0_97, %c0_98], %322 {strides = array<i32>} : memref<8x128xf32, #tpu.memory_space<vmem>>, vector<8x128xf32>,
    } else {
    }
    %c0_i32_1 = arith.constant 0 : i32
    %3 = arith.subi %c0_i32_1, %arg0 : i32
    %c8_i32 = arith.constant 8 : i32
    %4 = arith.muli %3, %c8_i32 : i32
    %c0 = arith.constant 0 : index
    %c0_2 = arith.constant 0 : index
    %5 = vector.load %arg1[%c0, %c0_2] : memref<8x1xi32, #tpu.memory_space<vmem>>, vector<8x1xi32>
    %6 = vector.shape_cast %5 : vector<8x1xi32> to vector<8x1xi32>
    %7 = vector.broadcast %6 : vector<8x1xi32> to vector<8x128xi32>
    %c0_3 = arith.constant 0 : index
    %c0_4 = arith.constant 0 : index
    %8 = vector.load %arg5[%c0_3, %c0_4] : memref<8x128xf32, #tpu.memory_space<vmem>>, vector<8x128xf32>
    %c0_i32_5 = arith.constant 0 : i32
    %c7_i32 = arith.constant 7 : i32
    %9 = arith.subi %c7_i32, %c0_i32_5 : i32
    %10 = arith.index_cast %9 : i32 to index
    %c0_6 = arith.constant 0 : index
    %c0_7 = arith.constant 0 : index
    %11 = vector.load %arg2[%10, %c0_6, %c0_7] : memref<8x8x384xf32, #tpu.memory_space<vmem>>, vector<1x8x384xf32>
    %12 = vector.shape_cast %11 : vector<1x8x384xf32> to vector<8x384xf32>
    %c0_8 = arith.constant 0 : index
    %c0_9 = arith.constant 0 : index
    %13 = vector.load %arg3[%c0_8, %c0_9] : memref<128x384xf32, #tpu.memory_space<vmem>>, vector<128x384xf32>
    %cst = arith.constant dense<0.000000e+00> : vector<8x384xf32>
    %14 = tpu.matmul %8, %13, %cst {dimension_numbers = #tpu.dot_dimension_numbers<[1], [0], [0], [1], [0, 0, 1, 1], [], []>} : vector<8x128xf32>, vector<128x384xf32>, vector<8x384xf32> -> vector<8x384xf32>
    %c0_10 = arith.constant 0 : index
    %c0_11 = arith.constant 0 : index
    %15 = vector.load %arg4[%c0_10, %c0_11] : memref<1x384xf32, #tpu.memory_space<vmem>>, vector<1x384xf32>
    %16 = vector.broadcast %15 : vector<1x384xf32> to vector<8x384xf32>
    %17 = arith.addf %14, %16 : vector<8x384xf32>
    %18 = vector.extract_strided_slice %12 {offsets = [0, 0], sizes = [8, 128], strides = [1, 1]} : vector<8x384xf32> to vector<8x128xf32>
    %19 = vector.extract_strided_slice %17 {offsets = [0, 0], sizes = [8, 128], strides = [1, 1]} : vector<8x384xf32> to vector<8x128xf32>
    %20 = arith.addf %18, %19 : vector<8x128xf32>
    %21 = arith.negf %20 : vector<8x128xf32>
    %22 = math.exp %21 : vector<8x128xf32>
    %cst_12 = arith.constant 1.000000e+00 : f32
    %23 = vector.broadcast %cst_12 : f32 to vector<8x128xf32>
    %24 = arith.addf %23, %22 : vector<8x128xf32>
    %25 = arith.divf %23, %24 : vector<8x128xf32>
    %26 = vector.extract_strided_slice %12 {offsets = [0, 128], sizes = [8, 128], strides = [1, 1]} : vector<8x384xf32> to vector<8x128xf32>
    %27 = vector.extract_strided_slice %17 {offsets = [0, 128], sizes = [8, 128], strides = [1, 1]} : vector<8x384xf32> to vector<8x128xf32>
    %28 = arith.addf %26, %27 : vector<8x128xf32>
    %29 = arith.negf %28 : vector<8x128xf32>
    %30 = math.exp %29 : vector<8x128xf32>
    %cst_13 = arith.constant 1.000000e+00 : f32
    %31 = vector.broadcast %cst_13 : f32 to vector<8x128xf32>
    %32 = arith.addf %31, %30 : vector<8x128xf32>
    %33 = arith.divf %31, %32 : vector<8x128xf32>
    %34 = vector.extract_strided_slice %12 {offsets = [0, 256], sizes = [8, 128], strides = [1, 1]} : vector<8x384xf32> to vector<8x128xf32>
    %35 = vector.extract_strided_slice %17 {offsets = [0, 256], sizes = [8, 128], strides = [1, 1]} : vector<8x384xf32> to vector<8x128xf32>
    %36 = arith.mulf %25, %35 : vector<8x128xf32>
    %37 = arith.addf %34, %36 : vector<8x128xf32>
    %38 = math.tanh %37 : vector<8x128xf32>
    %cst_14 = arith.constant 1.000000e+00 : f32
    %39 = vector.broadcast %cst_14 : f32 to vector<8x128xf32>
    %40 = arith.subf %39, %33 : vector<8x128xf32>
    %41 = arith.mulf %40, %38 : vector<8x128xf32>
    %42 = arith.mulf %33, %8 : vector<8x128xf32>
    %43 = arith.addf %41, %42 : vector<8x128xf32>
    %44 = arith.addi %4, %9 : i32
    %45 = vector.broadcast %44 : i32 to vector<8x128xi32>
    %46 = arith.cmpi sgt, %7, %45 : vector<8x128xi32>
    %47 = arith.select %46, %43, %8 : vector<8x128xi1>, vector<8x128xf32>
    %c1_i32 = arith.constant 1 : i32
    %c7_i32_15 = arith.constant 7 : i32
    %48 = arith.subi %c7_i32_15, %c1_i32 : i32
    %49 = arith.index_cast %48 : i32 to index
    %c0_16 = arith.constant 0 : index
    %c0_17 = arith.constant 0 : index
    %50 = vector.load %arg2[%49, %c0_16, %c0_17] : memref<8x8x384xf32, #tpu.memory_space<vmem>>, vector<1x8x384xf32>
    %51 = vector.shape_cast %50 : vector<1x8x384xf32> to vector<8x384xf32>
    %c0_18 = arith.constant 0 : index
    %c0_19 = arith.constant 0 : index
    %52 = vector.load %arg3[%c0_18, %c0_19] : memref<128x384xf32, #tpu.memory_space<vmem>>, vector<128x384xf32>
    %cst_20 = arith.constant dense<0.000000e+00> : vector<8x384xf32>
    %53 = tpu.matmul %47, %52, %cst_20 {dimension_numbers = #tpu.dot_dimension_numbers<[1], [0], [0], [1], [0, 0, 1, 1], [], []>} : vector<8x128xf32>, vector<128x384xf32>, vector<8x384xf32> -> vector<8x384xf32>
    %c0_21 = arith.constant 0 : index
    %c0_22 = arith.constant 0 : index
    %54 = vector.load %arg4[%c0_21, %c0_22] : memref<1x384xf32, #tpu.memory_space<vmem>>, vector<1x384xf32>
    %55 = vector.broadcast %54 : vector<1x384xf32> to vector<8x384xf32>
    %56 = arith.addf %53, %55 : vector<8x384xf32>
    %57 = vector.extract_strided_slice %51 {offsets = [0, 0], sizes = [8, 128], strides = [1, 1]} : vector<8x384xf32> to vector<8x128xf32>
    %58 = vector.extract_strided_slice %56 {offsets = [0, 0], sizes = [8, 128], strides = [1, 1]} : vector<8x384xf32> to vector<8x128xf32>
    %59 = arith.addf %57, %58 : vector<8x128xf32>
    %60 = arith.negf %59 : vector<8x128xf32>
    %61 = math.exp %60 : vector<8x128xf32>
    %cst_23 = arith.constant 1.000000e+00 : f32
    %62 = vector.broadcast %cst_23 : f32 to vector<8x128xf32>
    %63 = arith.addf %62, %61 : vector<8x128xf32>
    %64 = arith.divf %62, %63 : vector<8x128xf32>
    %65 = vector.extract_strided_slice %51 {offsets = [0, 128], sizes = [8, 128], strides = [1, 1]} : vector<8x384xf32> to vector<8x128xf32>
    %66 = vector.extract_strided_slice %56 {offsets = [0, 128], sizes = [8, 128], strides = [1, 1]} : vector<8x384xf32> to vector<8x128xf32>
    %67 = arith.addf %65, %66 : vector<8x128xf32>
    %68 = arith.negf %67 : vector<8x128xf32>
    %69 = math.exp %68 : vector<8x128xf32>
    %cst_24 = arith.constant 1.000000e+00 : f32
    %70 = vector.broadcast %cst_24 : f32 to vector<8x128xf32>
    %71 = arith.addf %70, %69 : vector<8x128xf32>
    %72 = arith.divf %70, %71 : vector<8x128xf32>
    %73 = vector.extract_strided_slice %51 {offsets = [0, 256], sizes = [8, 128], strides = [1, 1]} : vector<8x384xf32> to vector<8x128xf32>
    %74 = vector.extract_strided_slice %56 {offsets = [0, 256], sizes = [8, 128], strides = [1, 1]} : vector<8x384xf32> to vector<8x128xf32>
    %75 = arith.mulf %64, %74 : vector<8x128xf32>
    %76 = arith.addf %73, %75 : vector<8x128xf32>
    %77 = math.tanh %76 : vector<8x128xf32>
    %cst_25 = arith.constant 1.000000e+00 : f32
    %78 = vector.broadcast %cst_25 : f32 to vector<8x128xf32>
    %79 = arith.subf %78, %72 : vector<8x128xf32>
    %80 = arith.mulf %79, %77 : vector<8x128xf32>
    %81 = arith.mulf %72, %47 : vector<8x128xf32>
    %82 = arith.addf %80, %81 : vector<8x128xf32>
    %83 = arith.addi %4, %48 : i32
    %84 = vector.broadcast %83 : i32 to vector<8x128xi32>
    %85 = arith.cmpi sgt, %7, %84 : vector<8x128xi32>
    %86 = arith.select %85, %82, %47 : vector<8x128xi1>, vector<8x128xf32>
    %c2_i32 = arith.constant 2 : i32
    %c7_i32_26 = arith.constant 7 : i32
    %87 = arith.subi %c7_i32_26, %c2_i32 : i32
    %88 = arith.index_cast %87 : i32 to index
    %c0_27 = arith.constant 0 : index
    %c0_28 = arith.constant 0 : index
    %89 = vector.load %arg2[%88, %c0_27, %c0_28] : memref<8x8x384xf32, #tpu.memory_space<vmem>>, vector<1x8x384xf32>
    %90 = vector.shape_cast %89 : vector<1x8x384xf32> to vector<8x384xf32>
    %c0_29 = arith.constant 0 : index
    %c0_30 = arith.constant 0 : index
    %91 = vector.load %arg3[%c0_29, %c0_30] : memref<128x384xf32, #tpu.memory_space<vmem>>, vector<128x384xf32>
    %cst_31 = arith.constant dense<0.000000e+00> : vector<8x384xf32>
    %92 = tpu.matmul %86, %91, %cst_31 {dimension_numbers = #tpu.dot_dimension_numbers<[1], [0], [0], [1], [0, 0, 1, 1], [], []>} : vector<8x128xf32>, vector<128x384xf32>, vector<8x384xf32> -> vector<8x384xf32>
    %c0_32 = arith.constant 0 : index
    %c0_33 = arith.constant 0 : index
    %93 = vector.load %arg4[%c0_32, %c0_33] : memref<1x384xf32, #tpu.memory_space<vmem>>, vector<1x384xf32>
    %94 = vector.broadcast %93 : vector<1x384xf32> to vector<8x384xf32>
    %95 = arith.addf %92, %94 : vector<8x384xf32>
    %96 = vector.extract_strided_slice %90 {offsets = [0, 0], sizes = [8, 128], strides = [1, 1]} : vector<8x384xf32> to vector<8x128xf32>
    %97 = vector.extract_strided_slice %95 {offsets = [0, 0], sizes = [8, 128], strides = [1, 1]} : vector<8x384xf32> to vector<8x128xf32>
    %98 = arith.addf %96, %97 : vector<8x128xf32>
    %99 = arith.negf %98 : vector<8x128xf32>
    %100 = math.exp %99 : vector<8x128xf32>
    %cst_34 = arith.constant 1.000000e+00 : f32
    %101 = vector.broadcast %cst_34 : f32 to vector<8x128xf32>
    %102 = arith.addf %101, %100 : vector<8x128xf32>
    %103 = arith.divf %101, %102 : vector<8x128xf32>
    %104 = vector.extract_strided_slice %90 {offsets = [0, 128], sizes = [8, 128], strides = [1, 1]} : vector<8x384xf32> to vector<8x128xf32>
    %105 = vector.extract_strided_slice %95 {offsets = [0, 128], sizes = [8, 128], strides = [1, 1]} : vector<8x384xf32> to vector<8x128xf32>
    %106 = arith.addf %104, %105 : vector<8x128xf32>
    %107 = arith.negf %106 : vector<8x128xf32>
    %108 = math.exp %107 : vector<8x128xf32>
    %cst_35 = arith.constant 1.000000e+00 : f32
    %109 = vector.broadcast %cst_35 : f32 to vector<8x128xf32>
    %110 = arith.addf %109, %108 : vector<8x128xf32>
    %111 = arith.divf %109, %110 : vector<8x128xf32>
    %112 = vector.extract_strided_slice %90 {offsets = [0, 256], sizes = [8, 128], strides = [1, 1]} : vector<8x384xf32> to vector<8x128xf32>
    %113 = vector.extract_strided_slice %95 {offsets = [0, 256], sizes = [8, 128], strides = [1, 1]} : vector<8x384xf32> to vector<8x128xf32>
    %114 = arith.mulf %103, %113 : vector<8x128xf32>
    %115 = arith.addf %112, %114 : vector<8x128xf32>
    %116 = math.tanh %115 : vector<8x128xf32>
    %cst_36 = arith.constant 1.000000e+00 : f32
    %117 = vector.broadcast %cst_36 : f32 to vector<8x128xf32>
    %118 = arith.subf %117, %111 : vector<8x128xf32>
    %119 = arith.mulf %118, %116 : vector<8x128xf32>
    %120 = arith.mulf %111, %86 : vector<8x128xf32>
    %121 = arith.addf %119, %120 : vector<8x128xf32>
    %122 = arith.addi %4, %87 : i32
    %123 = vector.broadcast %122 : i32 to vector<8x128xi32>
    %124 = arith.cmpi sgt, %7, %123 : vector<8x128xi32>
    %125 = arith.select %124, %121, %86 : vector<8x128xi1>, vector<8x128xf32>
    %c3_i32 = arith.constant 3 : i32
    %c7_i32_37 = arith.constant 7 : i32
    %126 = arith.subi %c7_i32_37, %c3_i32 : i32
    %127 = arith.index_cast %126 : i32 to index
    %c0_38 = arith.constant 0 : index
    %c0_39 = arith.constant 0 : index
    %128 = vector.load %arg2[%127, %c0_38, %c0_39] : memref<8x8x384xf32, #tpu.memory_space<vmem>>, vector<1x8x384xf32>
    %129 = vector.shape_cast %128 : vector<1x8x384xf32> to vector<8x384xf32>
    %c0_40 = arith.constant 0 : index
    %c0_41 = arith.constant 0 : index
    %130 = vector.load %arg3[%c0_40, %c0_41] : memref<128x384xf32, #tpu.memory_space<vmem>>, vector<128x384xf32>
    %cst_42 = arith.constant dense<0.000000e+00> : vector<8x384xf32>
    %131 = tpu.matmul %125, %130, %cst_42 {dimension_numbers = #tpu.dot_dimension_numbers<[1], [0], [0], [1], [0, 0, 1, 1], [], []>} : vector<8x128xf32>, vector<128x384xf32>, vector<8x384xf32> -> vector<8x384xf32>
    %c0_43 = arith.constant 0 : index
    %c0_44 = arith.constant 0 : index
    %132 = vector.load %arg4[%c0_43, %c0_44] : memref<1x384xf32, #tpu.memory_space<vmem>>, vector<1x384xf32>
    %133 = vector.broadcast %132 : vector<1x384xf32> to vector<8x384xf32>
    %134 = arith.addf %131, %133 : vector<8x384xf32>
    %135 = vector.extract_strided_slice %129 {offsets = [0, 0], sizes = [8, 128], strides = [1, 1]} : vector<8x384xf32> to vector<8x128xf32>
    %136 = vector.extract_strided_slice %134 {offsets = [0, 0], sizes = [8, 128], strides = [1, 1]} : vector<8x384xf32> to vector<8x128xf32>
    %137 = arith.addf %135, %136 : vector<8x128xf32>
    %138 = arith.negf %137 : vector<8x128xf32>
    %139 = math.exp %138 : vector<8x128xf32>
    %cst_45 = arith.constant 1.000000e+00 : f32
    %140 = vector.broadcast %cst_45 : f32 to vector<8x128xf32>
    %141 = arith.addf %140, %139 : vector<8x128xf32>
    %142 = arith.divf %140, %141 : vector<8x128xf32>
    %143 = vector.extract_strided_slice %129 {offsets = [0, 128], sizes = [8, 128], strides = [1, 1]} : vector<8x384xf32> to vector<8x128xf32>
    %144 = vector.extract_strided_slice %134 {offsets = [0, 128], sizes = [8, 128], strides = [1, 1]} : vector<8x384xf32> to vector<8x128xf32>
    %145 = arith.addf %143, %144 : vector<8x128xf32>
    %146 = arith.negf %145 : vector<8x128xf32>
    %147 = math.exp %146 : vector<8x128xf32>
    %cst_46 = arith.constant 1.000000e+00 : f32
    %148 = vector.broadcast %cst_46 : f32 to vector<8x128xf32>
    %149 = arith.addf %148, %147 : vector<8x128xf32>
    %150 = arith.divf %148, %149 : vector<8x128xf32>
    %151 = vector.extract_strided_slice %129 {offsets = [0, 256], sizes = [8, 128], strides = [1, 1]} : vector<8x384xf32> to vector<8x128xf32>
    %152 = vector.extract_strided_slice %134 {offsets = [0, 256], sizes = [8, 128], strides = [1, 1]} : vector<8x384xf32> to vector<8x128xf32>
    %153 = arith.mulf %142, %152 : vector<8x128xf32>
    %154 = arith.addf %151, %153 : vector<8x128xf32>
    %155 = math.tanh %154 : vector<8x128xf32>
    %cst_47 = arith.constant 1.000000e+00 : f32
    %156 = vector.broadcast %cst_47 : f32 to vector<8x128xf32>
    %157 = arith.subf %156, %150 : vector<8x128xf32>
    %158 = arith.mulf %157, %155 : vector<8x128xf32>
    %159 = arith.mulf %150, %125 : vector<8x128xf32>
    %160 = arith.addf %158, %159 : vector<8x128xf32>
    %161 = arith.addi %4, %126 : i32
    %162 = vector.broadcast %161 : i32 to vector<8x128xi32>
    %163 = arith.cmpi sgt, %7, %162 : vector<8x128xi32>
    %164 = arith.select %163, %160, %125 : vector<8x128xi1>, vector<8x128xf32>
    %c4_i32 = arith.constant 4 : i32
    %c7_i32_48 = arith.constant 7 : i32
    %165 = arith.subi %c7_i32_48, %c4_i32 : i32
    %166 = arith.index_cast %165 : i32 to index
    %c0_49 = arith.constant 0 : index
    %c0_50 = arith.constant 0 : index
    %167 = vector.load %arg2[%166, %c0_49, %c0_50] : memref<8x8x384xf32, #tpu.memory_space<vmem>>, vector<1x8x384xf32>
    %168 = vector.shape_cast %167 : vector<1x8x384xf32> to vector<8x384xf32>
    %c0_51 = arith.constant 0 : index
    %c0_52 = arith.constant 0 : index
    %169 = vector.load %arg3[%c0_51, %c0_52] : memref<128x384xf32, #tpu.memory_space<vmem>>, vector<128x384xf32>
    %cst_53 = arith.constant dense<0.000000e+00> : vector<8x384xf32>
    %170 = tpu.matmul %164, %169, %cst_53 {dimension_numbers = #tpu.dot_dimension_numbers<[1], [0], [0], [1], [0, 0, 1, 1], [], []>} : vector<8x128xf32>, vector<128x384xf32>, vector<8x384xf32> -> vector<8x384xf32>
    %c0_54 = arith.constant 0 : index
    %c0_55 = arith.constant 0 : index
    %171 = vector.load %arg4[%c0_54, %c0_55] : memref<1x384xf32, #tpu.memory_space<vmem>>, vector<1x384xf32>
    %172 = vector.broadcast %171 : vector<1x384xf32> to vector<8x384xf32>
    %173 = arith.addf %170, %172 : vector<8x384xf32>
    %174 = vector.extract_strided_slice %168 {offsets = [0, 0], sizes = [8, 128], strides = [1, 1]} : vector<8x384xf32> to vector<8x128xf32>
    %175 = vector.extract_strided_slice %173 {offsets = [0, 0], sizes = [8, 128], strides = [1, 1]} : vector<8x384xf32> to vector<8x128xf32>
    %176 = arith.addf %174, %175 : vector<8x128xf32>
    %177 = arith.negf %176 : vector<8x128xf32>
    %178 = math.exp %177 : vector<8x128xf32>
    %cst_56 = arith.constant 1.000000e+00 : f32
    %179 = vector.broadcast %cst_56 : f32 to vector<8x128xf32>
    %180 = arith.addf %179, %178 : vector<8x128xf32>
    %181 = arith.divf %179, %180 : vector<8x128xf32>
    %182 = vector.extract_strided_slice %168 {offsets = [0, 128], sizes = [8, 128], strides = [1, 1]} : vector<8x384xf32> to vector<8x128xf32>
    %183 = vector.extract_strided_slice %173 {offsets = [0, 128], sizes = [8, 128], strides = [1, 1]} : vector<8x384xf32> to vector<8x128xf32>
    %184 = arith.addf %182, %183 : vector<8x128xf32>
    %185 = arith.negf %184 : vector<8x128xf32>
    %186 = math.exp %185 : vector<8x128xf32>
    %cst_57 = arith.constant 1.000000e+00 : f32
    %187 = vector.broadcast %cst_57 : f32 to vector<8x128xf32>
    %188 = arith.addf %187, %186 : vector<8x128xf32>
    %189 = arith.divf %187, %188 : vector<8x128xf32>
    %190 = vector.extract_strided_slice %168 {offsets = [0, 256], sizes = [8, 128], strides = [1, 1]} : vector<8x384xf32> to vector<8x128xf32>
    %191 = vector.extract_strided_slice %173 {offsets = [0, 256], sizes = [8, 128], strides = [1, 1]} : vector<8x384xf32> to vector<8x128xf32>
    %192 = arith.mulf %181, %191 : vector<8x128xf32>
    %193 = arith.addf %190, %192 : vector<8x128xf32>
    %194 = math.tanh %193 : vector<8x128xf32>
    %cst_58 = arith.constant 1.000000e+00 : f32
    %195 = vector.broadcast %cst_58 : f32 to vector<8x128xf32>
    %196 = arith.subf %195, %189 : vector<8x128xf32>
    %197 = arith.mulf %196, %194 : vector<8x128xf32>
    %198 = arith.mulf %189, %164 : vector<8x128xf32>
    %199 = arith.addf %197, %198 : vector<8x128xf32>
    %200 = arith.addi %4, %165 : i32
    %201 = vector.broadcast %200 : i32 to vector<8x128xi32>
    %202 = arith.cmpi sgt, %7, %201 : vector<8x128xi32>
    %203 = arith.select %202, %199, %164 : vector<8x128xi1>, vector<8x128xf32>
    %c5_i32 = arith.constant 5 : i32
    %c7_i32_59 = arith.constant 7 : i32
    %204 = arith.subi %c7_i32_59, %c5_i32 : i32
    %205 = arith.index_cast %204 : i32 to index
    %c0_60 = arith.constant 0 : index
    %c0_61 = arith.constant 0 : index
    %206 = vector.load %arg2[%205, %c0_60, %c0_61] : memref<8x8x384xf32, #tpu.memory_space<vmem>>, vector<1x8x384xf32>
    %207 = vector.shape_cast %206 : vector<1x8x384xf32> to vector<8x384xf32>
    %c0_62 = arith.constant 0 : index
    %c0_63 = arith.constant 0 : index
    %208 = vector.load %arg3[%c0_62, %c0_63] : memref<128x384xf32, #tpu.memory_space<vmem>>, vector<128x384xf32>
    %cst_64 = arith.constant dense<0.000000e+00> : vector<8x384xf32>
    %209 = tpu.matmul %203, %208, %cst_64 {dimension_numbers = #tpu.dot_dimension_numbers<[1], [0], [0], [1], [0, 0, 1, 1], [], []>} : vector<8x128xf32>, vector<128x384xf32>, vector<8x384xf32> -> vector<8x384xf32>
    %c0_65 = arith.constant 0 : index
    %c0_66 = arith.constant 0 : index
    %210 = vector.load %arg4[%c0_65, %c0_66] : memref<1x384xf32, #tpu.memory_space<vmem>>, vector<1x384xf32>
    %211 = vector.broadcast %210 : vector<1x384xf32> to vector<8x384xf32>
    %212 = arith.addf %209, %211 : vector<8x384xf32>
    %213 = vector.extract_strided_slice %207 {offsets = [0, 0], sizes = [8, 128], strides = [1, 1]} : vector<8x384xf32> to vector<8x128xf32>
    %214 = vector.extract_strided_slice %212 {offsets = [0, 0], sizes = [8, 128], strides = [1, 1]} : vector<8x384xf32> to vector<8x128xf32>
    %215 = arith.addf %213, %214 : vector<8x128xf32>
    %216 = arith.negf %215 : vector<8x128xf32>
    %217 = math.exp %216 : vector<8x128xf32>
    %cst_67 = arith.constant 1.000000e+00 : f32
    %218 = vector.broadcast %cst_67 : f32 to vector<8x128xf32>
    %219 = arith.addf %218, %217 : vector<8x128xf32>
    %220 = arith.divf %218, %219 : vector<8x128xf32>
    %221 = vector.extract_strided_slice %207 {offsets = [0, 128], sizes = [8, 128], strides = [1, 1]} : vector<8x384xf32> to vector<8x128xf32>
    %222 = vector.extract_strided_slice %212 {offsets = [0, 128], sizes = [8, 128], strides = [1, 1]} : vector<8x384xf32> to vector<8x128xf32>
    %223 = arith.addf %221, %222 : vector<8x128xf32>
    %224 = arith.negf %223 : vector<8x128xf32>
    %225 = math.exp %224 : vector<8x128xf32>
    %cst_68 = arith.constant 1.000000e+00 : f32
    %226 = vector.broadcast %cst_68 : f32 to vector<8x128xf32>
    %227 = arith.addf %226, %225 : vector<8x128xf32>
    %228 = arith.divf %226, %227 : vector<8x128xf32>
    %229 = vector.extract_strided_slice %207 {offsets = [0, 256], sizes = [8, 128], strides = [1, 1]} : vector<8x384xf32> to vector<8x128xf32>
    %230 = vector.extract_strided_slice %212 {offsets = [0, 256], sizes = [8, 128], strides = [1, 1]} : vector<8x384xf32> to vector<8x128xf32>
    %231 = arith.mulf %220, %230 : vector<8x128xf32>
    %232 = arith.addf %229, %231 : vector<8x128xf32>
    %233 = math.tanh %232 : vector<8x128xf32>
    %cst_69 = arith.constant 1.000000e+00 : f32
    %234 = vector.broadcast %cst_69 : f32 to vector<8x128xf32>
    %235 = arith.subf %234, %228 : vector<8x128xf32>
    %236 = arith.mulf %235, %233 : vector<8x128xf32>
    %237 = arith.mulf %228, %203 : vector<8x128xf32>
    %238 = arith.addf %236, %237 : vector<8x128xf32>
    %239 = arith.addi %4, %204 : i32
    %240 = vector.broadcast %239 : i32 to vector<8x128xi32>
    %241 = arith.cmpi sgt, %7, %240 : vector<8x128xi32>
    %242 = arith.select %241, %238, %203 : vector<8x128xi1>, vector<8x128xf32>
    %c6_i32 = arith.constant 6 : i32
    %c7_i32_70 = arith.constant 7 : i32
    %243 = arith.subi %c7_i32_70, %c6_i32 : i32
    %244 = arith.index_cast %243 : i32 to index
    %c0_71 = arith.constant 0 : index
    %c0_72 = arith.constant 0 : index
    %245 = vector.load %arg2[%244, %c0_71, %c0_72] : memref<8x8x384xf32, #tpu.memory_space<vmem>>, vector<1x8x384xf32>
    %246 = vector.shape_cast %245 : vector<1x8x384xf32> to vector<8x384xf32>
    %c0_73 = arith.constant 0 : index
    %c0_74 = arith.constant 0 : index
    %247 = vector.load %arg3[%c0_73, %c0_74] : memref<128x384xf32, #tpu.memory_space<vmem>>, vector<128x384xf32>
    %cst_75 = arith.constant dense<0.000000e+00> : vector<8x384xf32>
    %248 = tpu.matmul %242, %247, %cst_75 {dimension_numbers = #tpu.dot_dimension_numbers<[1], [0], [0], [1], [0, 0, 1, 1], [], []>} : vector<8x128xf32>, vector<128x384xf32>, vector<8x384xf32> -> vector<8x384xf32>
    %c0_76 = arith.constant 0 : index
    %c0_77 = arith.constant 0 : index
    %249 = vector.load %arg4[%c0_76, %c0_77] : memref<1x384xf32, #tpu.memory_space<vmem>>, vector<1x384xf32>
    %250 = vector.broadcast %249 : vector<1x384xf32> to vector<8x384xf32>
    %251 = arith.addf %248, %250 : vector<8x384xf32>
    %252 = vector.extract_strided_slice %246 {offsets = [0, 0], sizes = [8, 128], strides = [1, 1]} : vector<8x384xf32> to vector<8x128xf32>
    %253 = vector.extract_strided_slice %251 {offsets = [0, 0], sizes = [8, 128], strides = [1, 1]} : vector<8x384xf32> to vector<8x128xf32>
    %254 = arith.addf %252, %253 : vector<8x128xf32>
    %255 = arith.negf %254 : vector<8x128xf32>
    %256 = math.exp %255 : vector<8x128xf32>
    %cst_78 = arith.constant 1.000000e+00 : f32
    %257 = vector.broadcast %cst_78 : f32 to vector<8x128xf32>
    %258 = arith.addf %257, %256 : vector<8x128xf32>
    %259 = arith.divf %257, %258 : vector<8x128xf32>
    %260 = vector.extract_strided_slice %246 {offsets = [0, 128], sizes = [8, 128], strides = [1, 1]} : vector<8x384xf32> to vector<8x128xf32>
    %261 = vector.extract_strided_slice %251 {offsets = [0, 128], sizes = [8, 128], strides = [1, 1]} : vector<8x384xf32> to vector<8x128xf32>
    %262 = arith.addf %260, %261 : vector<8x128xf32>
    %263 = arith.negf %262 : vector<8x128xf32>
    %264 = math.exp %263 : vector<8x128xf32>
    %cst_79 = arith.constant 1.000000e+00 : f32
    %265 = vector.broadcast %cst_79 : f32 to vector<8x128xf32>
    %266 = arith.addf %265, %264 : vector<8x128xf32>
    %267 = arith.divf %265, %266 : vector<8x128xf32>
    %268 = vector.extract_strided_slice %246 {offsets = [0, 256], sizes = [8, 128], strides = [1, 1]} : vector<8x384xf32> to vector<8x128xf32>
    %269 = vector.extract_strided_slice %251 {offsets = [0, 256], sizes = [8, 128], strides = [1, 1]} : vector<8x384xf32> to vector<8x128xf32>
    %270 = arith.mulf %259, %269 : vector<8x128xf32>
    %271 = arith.addf %268, %270 : vector<8x128xf32>
    %272 = math.tanh %271 : vector<8x128xf32>
    %cst_80 = arith.constant 1.000000e+00 : f32
    %273 = vector.broadcast %cst_80 : f32 to vector<8x128xf32>
    %274 = arith.subf %273, %267 : vector<8x128xf32>
    %275 = arith.mulf %274, %272 : vector<8x128xf32>
    %276 = arith.mulf %267, %242 : vector<8x128xf32>
    %277 = arith.addf %275, %276 : vector<8x128xf32>
    %278 = arith.addi %4, %243 : i32
    %279 = vector.broadcast %278 : i32 to vector<8x128xi32>
    %280 = arith.cmpi sgt, %7, %279 : vector<8x128xi32>
    %281 = arith.select %280, %277, %242 : vector<8x128xi1>, vector<8x128xf32>
    %c7_i32_81 = arith.constant 7 : i32
    %c7_i32_82 = arith.constant 7 : i32
    %282 = arith.subi %c7_i32_82, %c7_i32_81 : i32
    %283 = arith.index_cast %282 : i32 to index
    %c0_83 = arith.constant 0 : index
    %c0_84 = arith.constant 0 : index
    %284 = vector.load %arg2[%283, %c0_83, %c0_84] : memref<8x8x384xf32, #tpu.memory_space<vmem>>, vector<1x8x384xf32>
    %285 = vector.shape_cast %284 : vector<1x8x384xf32> to vector<8x384xf32>
    %c0_85 = arith.constant 0 : index
    %c0_86 = arith.constant 0 : index
    %286 = vector.load %arg3[%c0_85, %c0_86] : memref<128x384xf32, #tpu.memory_space<vmem>>, vector<128x384xf32>
    %cst_87 = arith.constant dense<0.000000e+00> : vector<8x384xf32>
    %287 = tpu.matmul %281, %286, %cst_87 {dimension_numbers = #tpu.dot_dimension_numbers<[1], [0], [0], [1], [0, 0, 1, 1], [], []>} : vector<8x128xf32>, vector<128x384xf32>, vector<8x384xf32> -> vector<8x384xf32>
    %c0_88 = arith.constant 0 : index
    %c0_89 = arith.constant 0 : index
    %288 = vector.load %arg4[%c0_88, %c0_89] : memref<1x384xf32, #tpu.memory_space<vmem>>, vector<1x384xf32>
    %289 = vector.broadcast %288 : vector<1x384xf32> to vector<8x384xf32>
    %290 = arith.addf %287, %289 : vector<8x384xf32>
    %291 = vector.extract_strided_slice %285 {offsets = [0, 0], sizes = [8, 128], strides = [1, 1]} : vector<8x384xf32> to vector<8x128xf32>
    %292 = vector.extract_strided_slice %290 {offsets = [0, 0], sizes = [8, 128], strides = [1, 1]} : vector<8x384xf32> to vector<8x128xf32>
    %293 = arith.addf %291, %292 : vector<8x128xf32>
    %294 = arith.negf %293 : vector<8x128xf32>
    %295 = math.exp %294 : vector<8x128xf32>
    %cst_90 = arith.constant 1.000000e+00 : f32
    %296 = vector.broadcast %cst_90 : f32 to vector<8x128xf32>
    %297 = arith.addf %296, %295 : vector<8x128xf32>
    %298 = arith.divf %296, %297 : vector<8x128xf32>
    %299 = vector.extract_strided_slice %285 {offsets = [0, 128], sizes = [8, 128], strides = [1, 1]} : vector<8x384xf32> to vector<8x128xf32>
    %300 = vector.extract_strided_slice %290 {offsets = [0, 128], sizes = [8, 128], strides = [1, 1]} : vector<8x384xf32> to vector<8x128xf32>
    %301 = arith.addf %299, %300 : vector<8x128xf32>
    %302 = arith.negf %301 : vector<8x128xf32>
    %303 = math.exp %302 : vector<8x128xf32>
    %cst_91 = arith.constant 1.000000e+00 : f32
    %304 = vector.broadcast %cst_91 : f32 to vector<8x128xf32>
    %305 = arith.addf %304, %303 : vector<8x128xf32>
    %306 = arith.divf %304, %305 : vector<8x128xf32>
    %307 = vector.extract_strided_slice %285 {offsets = [0, 256], sizes = [8, 128], strides = [1, 1]} : vector<8x384xf32> to vector<8x128xf32>
    %308 = vector.extract_strided_slice %290 {offsets = [0, 256], sizes = [8, 128], strides = [1, 1]} : vector<8x384xf32> to vector<8x128xf32>
    %309 = arith.mulf %298, %308 : vector<8x128xf32>
    %310 = arith.addf %307, %309 : vector<8x128xf32>
    %311 = math.tanh %310 : vector<8x128xf32>
    %cst_92 = arith.constant 1.000000e+00 : f32
    %312 = vector.broadcast %cst_92 : f32 to vector<8x128xf32>
    %313 = arith.subf %312, %306 : vector<8x128xf32>
    %314 = arith.mulf %313, %311 : vector<8x128xf32>
    %315 = arith.mulf %306, %281 : vector<8x128xf32>
    %316 = arith.addf %314, %315 : vector<8x128xf32>
    %317 = arith.addi %4, %282 : i32
    %318 = vector.broadcast %317 : i32 to vector<8x128xi32>
    %319 = arith.cmpi sgt, %7, %318 : vector<8x128xi32>
    %320 = arith.select %319, %316, %281 : vector<8x128xi1>, vector<8x128xf32>
    %c8_i32_93 = arith.constant 8 : i32
    %c0_94 = arith.constant 0 : index
    %c0_95 = arith.constant 0 : index
    %321 = vector.load %arg5[%c0_94, %c0_95] : memref<8x128xf32, #tpu.memory_space<vmem>>, vector<8x128xf32>
    tpu.vector_store %arg5[%c0_94, %c0_95], %320 {strides = array<i32>} : memref<8x128xf32, #tpu.memory_space<vmem>>, vector<8x128xf32>,
    return
  }
  func.func @transform_0(%arg0: i32) -> (i32, i32) {
    %c0_i32 = arith.constant 0 : i32
    %c0_i32_0 = arith.constant 0 : i32
    %c0_i32_1 = arith.constant 0 : i32
    return %c0_i32, %c0_i32_0 : i32, i32
  }
  func.func @transform_1(%arg0: i32) -> (i32, i32, i32) {
    %c0_i32 = arith.constant 0 : i32
    %0 = arith.subi %c0_i32, %arg0 : i32
    %c0_i32_0 = arith.constant 0 : i32
    %c1_i32 = arith.constant 1 : i32
    %c0_i32_1 = arith.constant 0 : i32
    return %0, %c0_i32_0, %c1_i32 : i32, i32, i32
  }
  func.func @transform_2(%arg0: i32) -> (i32, i32) {
    %c0_i32 = arith.constant 0 : i32
    %c0_i32_0 = arith.constant 0 : i32
    %c0_i32_1 = arith.constant 0 : i32
    return %c0_i32, %c0_i32_0 : i32, i32
  }
  func.func @transform_3(%arg0: i32) -> (i32, i32) {
    %c0_i32 = arith.constant 0 : i32
    %c0_i32_0 = arith.constant 0 : i32
    %c0_i32_1 = arith.constant 0 : i32
    return %c0_i32, %c0_i32_0 : i32, i32
  }
  func.func @transform_4(%arg0: i32) -> (i32, i32) {
    %c0_i32 = arith.constant 0 : i32
    %c0_i32_0 = arith.constant 0 : i32
    %c0_i32_1 = arith.constant 0 : i32
    return %c0_i32, %c0_i32_0 : i32, i32
  }
}

module attributes {stable_mosaic.version = 11 : i64} {
  func.func @encoder_dir_kernel(%arg0: i32, %arg1: memref<8x1xi32, #tpu.memory_space<vmem>>, %arg2: memref<8x8x384xf32, #tpu.memory_space<vmem>>, %arg3: memref<128x384xf32, #tpu.memory_space<vmem>>, %arg4: memref<1x384xf32, #tpu.memory_space<vmem>>, %arg5: memref<8x128xf32, #tpu.memory_space<vmem>>) attributes {dimension_semantics = [#tpu.dimension_semantics<arbitrary>], iteration_bounds = array<i64: 1>, scalar_prefetch = 0 : i64, scratch_operands = 0 : i64, tpu.core_type = #tpu.core_type<tc>, window_params = [{pipeline_mode = #tpu.pipeline_mode<synchronous>, transform_indices = @transform_0, window_bounds = array<i64: 8, 1>}, {transform_indices = @transform_1, window_bounds = array<i64: 8, 8, 384>}, {pipeline_mode = #tpu.pipeline_mode<synchronous>, transform_indices = @transform_2, window_bounds = array<i64: 128, 384>}, {pipeline_mode = #tpu.pipeline_mode<synchronous>, transform_indices = @transform_3, window_bounds = array<i64: 1, 384>}, {pipeline_mode = #tpu.pipeline_mode<synchronous>, transform_indices = @transform_4, window_bounds = array<i64: 8, 128>}]} {
    %c0_i32 = arith.constant 0 : i32
    %0 = arith.cmpi eq, %arg0, %c0_i32 : i32
    %1 = arith.extui %0 : i1 to i32
    %c0_i32_0 = arith.constant 0 : i32
    %2 = arith.cmpi ne, %1, %c0_i32_0 : i32
    scf.if %2 {
      %cst_87 = arith.constant 0.000000e+00 : f32
      %313 = vector.broadcast %cst_87 : f32 to vector<8x128xf32>
      %c0_88 = arith.constant 0 : index
      %c0_89 = arith.constant 0 : index
      %314 = vector.load %arg5[%c0_88, %c0_89] : memref<8x128xf32, #tpu.memory_space<vmem>>, vector<8x128xf32>
      tpu.vector_store %arg5[%c0_88, %c0_89], %313 {strides = array<i32>} : memref<8x128xf32, #tpu.memory_space<vmem>>, vector<8x128xf32>,
    } else {
    }
    %c8_i32 = arith.constant 8 : i32
    %3 = arith.muli %arg0, %c8_i32 : i32
    %c0 = arith.constant 0 : index
    %c0_1 = arith.constant 0 : index
    %4 = vector.load %arg1[%c0, %c0_1] : memref<8x1xi32, #tpu.memory_space<vmem>>, vector<8x1xi32>
    %5 = vector.shape_cast %4 : vector<8x1xi32> to vector<8x1xi32>
    %6 = vector.broadcast %5 : vector<8x1xi32> to vector<8x128xi32>
    %c0_2 = arith.constant 0 : index
    %c0_3 = arith.constant 0 : index
    %7 = vector.load %arg5[%c0_2, %c0_3] : memref<8x128xf32, #tpu.memory_space<vmem>>, vector<8x128xf32>
    %c0_i32_4 = arith.constant 0 : i32
    %8 = arith.index_cast %c0_i32_4 : i32 to index
    %c0_5 = arith.constant 0 : index
    %c0_6 = arith.constant 0 : index
    %9 = vector.load %arg2[%8, %c0_5, %c0_6] : memref<8x8x384xf32, #tpu.memory_space<vmem>>, vector<1x8x384xf32>
    %10 = vector.shape_cast %9 : vector<1x8x384xf32> to vector<8x384xf32>
    %c0_7 = arith.constant 0 : index
    %c0_8 = arith.constant 0 : index
    %11 = vector.load %arg3[%c0_7, %c0_8] : memref<128x384xf32, #tpu.memory_space<vmem>>, vector<128x384xf32>
    %cst = arith.constant dense<0.000000e+00> : vector<8x384xf32>
    %12 = tpu.matmul %7, %11, %cst {dimension_numbers = #tpu.dot_dimension_numbers<[1], [0], [0], [1], [0, 0, 1, 1], [], []>} : vector<8x128xf32>, vector<128x384xf32>, vector<8x384xf32> -> vector<8x384xf32>
    %c0_9 = arith.constant 0 : index
    %c0_10 = arith.constant 0 : index
    %13 = vector.load %arg4[%c0_9, %c0_10] : memref<1x384xf32, #tpu.memory_space<vmem>>, vector<1x384xf32>
    %14 = vector.broadcast %13 : vector<1x384xf32> to vector<8x384xf32>
    %15 = arith.addf %12, %14 : vector<8x384xf32>
    %16 = vector.extract_strided_slice %10 {offsets = [0, 0], sizes = [8, 128], strides = [1, 1]} : vector<8x384xf32> to vector<8x128xf32>
    %17 = vector.extract_strided_slice %15 {offsets = [0, 0], sizes = [8, 128], strides = [1, 1]} : vector<8x384xf32> to vector<8x128xf32>
    %18 = arith.addf %16, %17 : vector<8x128xf32>
    %19 = arith.negf %18 : vector<8x128xf32>
    %20 = math.exp %19 : vector<8x128xf32>
    %cst_11 = arith.constant 1.000000e+00 : f32
    %21 = vector.broadcast %cst_11 : f32 to vector<8x128xf32>
    %22 = arith.addf %21, %20 : vector<8x128xf32>
    %23 = arith.divf %21, %22 : vector<8x128xf32>
    %24 = vector.extract_strided_slice %10 {offsets = [0, 128], sizes = [8, 128], strides = [1, 1]} : vector<8x384xf32> to vector<8x128xf32>
    %25 = vector.extract_strided_slice %15 {offsets = [0, 128], sizes = [8, 128], strides = [1, 1]} : vector<8x384xf32> to vector<8x128xf32>
    %26 = arith.addf %24, %25 : vector<8x128xf32>
    %27 = arith.negf %26 : vector<8x128xf32>
    %28 = math.exp %27 : vector<8x128xf32>
    %cst_12 = arith.constant 1.000000e+00 : f32
    %29 = vector.broadcast %cst_12 : f32 to vector<8x128xf32>
    %30 = arith.addf %29, %28 : vector<8x128xf32>
    %31 = arith.divf %29, %30 : vector<8x128xf32>
    %32 = vector.extract_strided_slice %10 {offsets = [0, 256], sizes = [8, 128], strides = [1, 1]} : vector<8x384xf32> to vector<8x128xf32>
    %33 = vector.extract_strided_slice %15 {offsets = [0, 256], sizes = [8, 128], strides = [1, 1]} : vector<8x384xf32> to vector<8x128xf32>
    %34 = arith.mulf %23, %33 : vector<8x128xf32>
    %35 = arith.addf %32, %34 : vector<8x128xf32>
    %36 = math.tanh %35 : vector<8x128xf32>
    %cst_13 = arith.constant 1.000000e+00 : f32
    %37 = vector.broadcast %cst_13 : f32 to vector<8x128xf32>
    %38 = arith.subf %37, %31 : vector<8x128xf32>
    %39 = arith.mulf %38, %36 : vector<8x128xf32>
    %40 = arith.mulf %31, %7 : vector<8x128xf32>
    %41 = arith.addf %39, %40 : vector<8x128xf32>
    %42 = arith.addi %3, %c0_i32_4 : i32
    %43 = vector.broadcast %42 : i32 to vector<8x128xi32>
    %44 = arith.cmpi sgt, %6, %43 : vector<8x128xi32>
    %45 = arith.select %44, %41, %7 : vector<8x128xi1>, vector<8x128xf32>
    %c1_i32 = arith.constant 1 : i32
    %46 = arith.index_cast %c1_i32 : i32 to index
    %c0_14 = arith.constant 0 : index
    %c0_15 = arith.constant 0 : index
    %47 = vector.load %arg2[%46, %c0_14, %c0_15] : memref<8x8x384xf32, #tpu.memory_space<vmem>>, vector<1x8x384xf32>
    %48 = vector.shape_cast %47 : vector<1x8x384xf32> to vector<8x384xf32>
    %c0_16 = arith.constant 0 : index
    %c0_17 = arith.constant 0 : index
    %49 = vector.load %arg3[%c0_16, %c0_17] : memref<128x384xf32, #tpu.memory_space<vmem>>, vector<128x384xf32>
    %cst_18 = arith.constant dense<0.000000e+00> : vector<8x384xf32>
    %50 = tpu.matmul %45, %49, %cst_18 {dimension_numbers = #tpu.dot_dimension_numbers<[1], [0], [0], [1], [0, 0, 1, 1], [], []>} : vector<8x128xf32>, vector<128x384xf32>, vector<8x384xf32> -> vector<8x384xf32>
    %c0_19 = arith.constant 0 : index
    %c0_20 = arith.constant 0 : index
    %51 = vector.load %arg4[%c0_19, %c0_20] : memref<1x384xf32, #tpu.memory_space<vmem>>, vector<1x384xf32>
    %52 = vector.broadcast %51 : vector<1x384xf32> to vector<8x384xf32>
    %53 = arith.addf %50, %52 : vector<8x384xf32>
    %54 = vector.extract_strided_slice %48 {offsets = [0, 0], sizes = [8, 128], strides = [1, 1]} : vector<8x384xf32> to vector<8x128xf32>
    %55 = vector.extract_strided_slice %53 {offsets = [0, 0], sizes = [8, 128], strides = [1, 1]} : vector<8x384xf32> to vector<8x128xf32>
    %56 = arith.addf %54, %55 : vector<8x128xf32>
    %57 = arith.negf %56 : vector<8x128xf32>
    %58 = math.exp %57 : vector<8x128xf32>
    %cst_21 = arith.constant 1.000000e+00 : f32
    %59 = vector.broadcast %cst_21 : f32 to vector<8x128xf32>
    %60 = arith.addf %59, %58 : vector<8x128xf32>
    %61 = arith.divf %59, %60 : vector<8x128xf32>
    %62 = vector.extract_strided_slice %48 {offsets = [0, 128], sizes = [8, 128], strides = [1, 1]} : vector<8x384xf32> to vector<8x128xf32>
    %63 = vector.extract_strided_slice %53 {offsets = [0, 128], sizes = [8, 128], strides = [1, 1]} : vector<8x384xf32> to vector<8x128xf32>
    %64 = arith.addf %62, %63 : vector<8x128xf32>
    %65 = arith.negf %64 : vector<8x128xf32>
    %66 = math.exp %65 : vector<8x128xf32>
    %cst_22 = arith.constant 1.000000e+00 : f32
    %67 = vector.broadcast %cst_22 : f32 to vector<8x128xf32>
    %68 = arith.addf %67, %66 : vector<8x128xf32>
    %69 = arith.divf %67, %68 : vector<8x128xf32>
    %70 = vector.extract_strided_slice %48 {offsets = [0, 256], sizes = [8, 128], strides = [1, 1]} : vector<8x384xf32> to vector<8x128xf32>
    %71 = vector.extract_strided_slice %53 {offsets = [0, 256], sizes = [8, 128], strides = [1, 1]} : vector<8x384xf32> to vector<8x128xf32>
    %72 = arith.mulf %61, %71 : vector<8x128xf32>
    %73 = arith.addf %70, %72 : vector<8x128xf32>
    %74 = math.tanh %73 : vector<8x128xf32>
    %cst_23 = arith.constant 1.000000e+00 : f32
    %75 = vector.broadcast %cst_23 : f32 to vector<8x128xf32>
    %76 = arith.subf %75, %69 : vector<8x128xf32>
    %77 = arith.mulf %76, %74 : vector<8x128xf32>
    %78 = arith.mulf %69, %45 : vector<8x128xf32>
    %79 = arith.addf %77, %78 : vector<8x128xf32>
    %80 = arith.addi %3, %c1_i32 : i32
    %81 = vector.broadcast %80 : i32 to vector<8x128xi32>
    %82 = arith.cmpi sgt, %6, %81 : vector<8x128xi32>
    %83 = arith.select %82, %79, %45 : vector<8x128xi1>, vector<8x128xf32>
    %c2_i32 = arith.constant 2 : i32
    %84 = arith.index_cast %c2_i32 : i32 to index
    %c0_24 = arith.constant 0 : index
    %c0_25 = arith.constant 0 : index
    %85 = vector.load %arg2[%84, %c0_24, %c0_25] : memref<8x8x384xf32, #tpu.memory_space<vmem>>, vector<1x8x384xf32>
    %86 = vector.shape_cast %85 : vector<1x8x384xf32> to vector<8x384xf32>
    %c0_26 = arith.constant 0 : index
    %c0_27 = arith.constant 0 : index
    %87 = vector.load %arg3[%c0_26, %c0_27] : memref<128x384xf32, #tpu.memory_space<vmem>>, vector<128x384xf32>
    %cst_28 = arith.constant dense<0.000000e+00> : vector<8x384xf32>
    %88 = tpu.matmul %83, %87, %cst_28 {dimension_numbers = #tpu.dot_dimension_numbers<[1], [0], [0], [1], [0, 0, 1, 1], [], []>} : vector<8x128xf32>, vector<128x384xf32>, vector<8x384xf32> -> vector<8x384xf32>
    %c0_29 = arith.constant 0 : index
    %c0_30 = arith.constant 0 : index
    %89 = vector.load %arg4[%c0_29, %c0_30] : memref<1x384xf32, #tpu.memory_space<vmem>>, vector<1x384xf32>
    %90 = vector.broadcast %89 : vector<1x384xf32> to vector<8x384xf32>
    %91 = arith.addf %88, %90 : vector<8x384xf32>
    %92 = vector.extract_strided_slice %86 {offsets = [0, 0], sizes = [8, 128], strides = [1, 1]} : vector<8x384xf32> to vector<8x128xf32>
    %93 = vector.extract_strided_slice %91 {offsets = [0, 0], sizes = [8, 128], strides = [1, 1]} : vector<8x384xf32> to vector<8x128xf32>
    %94 = arith.addf %92, %93 : vector<8x128xf32>
    %95 = arith.negf %94 : vector<8x128xf32>
    %96 = math.exp %95 : vector<8x128xf32>
    %cst_31 = arith.constant 1.000000e+00 : f32
    %97 = vector.broadcast %cst_31 : f32 to vector<8x128xf32>
    %98 = arith.addf %97, %96 : vector<8x128xf32>
    %99 = arith.divf %97, %98 : vector<8x128xf32>
    %100 = vector.extract_strided_slice %86 {offsets = [0, 128], sizes = [8, 128], strides = [1, 1]} : vector<8x384xf32> to vector<8x128xf32>
    %101 = vector.extract_strided_slice %91 {offsets = [0, 128], sizes = [8, 128], strides = [1, 1]} : vector<8x384xf32> to vector<8x128xf32>
    %102 = arith.addf %100, %101 : vector<8x128xf32>
    %103 = arith.negf %102 : vector<8x128xf32>
    %104 = math.exp %103 : vector<8x128xf32>
    %cst_32 = arith.constant 1.000000e+00 : f32
    %105 = vector.broadcast %cst_32 : f32 to vector<8x128xf32>
    %106 = arith.addf %105, %104 : vector<8x128xf32>
    %107 = arith.divf %105, %106 : vector<8x128xf32>
    %108 = vector.extract_strided_slice %86 {offsets = [0, 256], sizes = [8, 128], strides = [1, 1]} : vector<8x384xf32> to vector<8x128xf32>
    %109 = vector.extract_strided_slice %91 {offsets = [0, 256], sizes = [8, 128], strides = [1, 1]} : vector<8x384xf32> to vector<8x128xf32>
    %110 = arith.mulf %99, %109 : vector<8x128xf32>
    %111 = arith.addf %108, %110 : vector<8x128xf32>
    %112 = math.tanh %111 : vector<8x128xf32>
    %cst_33 = arith.constant 1.000000e+00 : f32
    %113 = vector.broadcast %cst_33 : f32 to vector<8x128xf32>
    %114 = arith.subf %113, %107 : vector<8x128xf32>
    %115 = arith.mulf %114, %112 : vector<8x128xf32>
    %116 = arith.mulf %107, %83 : vector<8x128xf32>
    %117 = arith.addf %115, %116 : vector<8x128xf32>
    %118 = arith.addi %3, %c2_i32 : i32
    %119 = vector.broadcast %118 : i32 to vector<8x128xi32>
    %120 = arith.cmpi sgt, %6, %119 : vector<8x128xi32>
    %121 = arith.select %120, %117, %83 : vector<8x128xi1>, vector<8x128xf32>
    %c3_i32 = arith.constant 3 : i32
    %122 = arith.index_cast %c3_i32 : i32 to index
    %c0_34 = arith.constant 0 : index
    %c0_35 = arith.constant 0 : index
    %123 = vector.load %arg2[%122, %c0_34, %c0_35] : memref<8x8x384xf32, #tpu.memory_space<vmem>>, vector<1x8x384xf32>
    %124 = vector.shape_cast %123 : vector<1x8x384xf32> to vector<8x384xf32>
    %c0_36 = arith.constant 0 : index
    %c0_37 = arith.constant 0 : index
    %125 = vector.load %arg3[%c0_36, %c0_37] : memref<128x384xf32, #tpu.memory_space<vmem>>, vector<128x384xf32>
    %cst_38 = arith.constant dense<0.000000e+00> : vector<8x384xf32>
    %126 = tpu.matmul %121, %125, %cst_38 {dimension_numbers = #tpu.dot_dimension_numbers<[1], [0], [0], [1], [0, 0, 1, 1], [], []>} : vector<8x128xf32>, vector<128x384xf32>, vector<8x384xf32> -> vector<8x384xf32>
    %c0_39 = arith.constant 0 : index
    %c0_40 = arith.constant 0 : index
    %127 = vector.load %arg4[%c0_39, %c0_40] : memref<1x384xf32, #tpu.memory_space<vmem>>, vector<1x384xf32>
    %128 = vector.broadcast %127 : vector<1x384xf32> to vector<8x384xf32>
    %129 = arith.addf %126, %128 : vector<8x384xf32>
    %130 = vector.extract_strided_slice %124 {offsets = [0, 0], sizes = [8, 128], strides = [1, 1]} : vector<8x384xf32> to vector<8x128xf32>
    %131 = vector.extract_strided_slice %129 {offsets = [0, 0], sizes = [8, 128], strides = [1, 1]} : vector<8x384xf32> to vector<8x128xf32>
    %132 = arith.addf %130, %131 : vector<8x128xf32>
    %133 = arith.negf %132 : vector<8x128xf32>
    %134 = math.exp %133 : vector<8x128xf32>
    %cst_41 = arith.constant 1.000000e+00 : f32
    %135 = vector.broadcast %cst_41 : f32 to vector<8x128xf32>
    %136 = arith.addf %135, %134 : vector<8x128xf32>
    %137 = arith.divf %135, %136 : vector<8x128xf32>
    %138 = vector.extract_strided_slice %124 {offsets = [0, 128], sizes = [8, 128], strides = [1, 1]} : vector<8x384xf32> to vector<8x128xf32>
    %139 = vector.extract_strided_slice %129 {offsets = [0, 128], sizes = [8, 128], strides = [1, 1]} : vector<8x384xf32> to vector<8x128xf32>
    %140 = arith.addf %138, %139 : vector<8x128xf32>
    %141 = arith.negf %140 : vector<8x128xf32>
    %142 = math.exp %141 : vector<8x128xf32>
    %cst_42 = arith.constant 1.000000e+00 : f32
    %143 = vector.broadcast %cst_42 : f32 to vector<8x128xf32>
    %144 = arith.addf %143, %142 : vector<8x128xf32>
    %145 = arith.divf %143, %144 : vector<8x128xf32>
    %146 = vector.extract_strided_slice %124 {offsets = [0, 256], sizes = [8, 128], strides = [1, 1]} : vector<8x384xf32> to vector<8x128xf32>
    %147 = vector.extract_strided_slice %129 {offsets = [0, 256], sizes = [8, 128], strides = [1, 1]} : vector<8x384xf32> to vector<8x128xf32>
    %148 = arith.mulf %137, %147 : vector<8x128xf32>
    %149 = arith.addf %146, %148 : vector<8x128xf32>
    %150 = math.tanh %149 : vector<8x128xf32>
    %cst_43 = arith.constant 1.000000e+00 : f32
    %151 = vector.broadcast %cst_43 : f32 to vector<8x128xf32>
    %152 = arith.subf %151, %145 : vector<8x128xf32>
    %153 = arith.mulf %152, %150 : vector<8x128xf32>
    %154 = arith.mulf %145, %121 : vector<8x128xf32>
    %155 = arith.addf %153, %154 : vector<8x128xf32>
    %156 = arith.addi %3, %c3_i32 : i32
    %157 = vector.broadcast %156 : i32 to vector<8x128xi32>
    %158 = arith.cmpi sgt, %6, %157 : vector<8x128xi32>
    %159 = arith.select %158, %155, %121 : vector<8x128xi1>, vector<8x128xf32>
    %c4_i32 = arith.constant 4 : i32
    %160 = arith.index_cast %c4_i32 : i32 to index
    %c0_44 = arith.constant 0 : index
    %c0_45 = arith.constant 0 : index
    %161 = vector.load %arg2[%160, %c0_44, %c0_45] : memref<8x8x384xf32, #tpu.memory_space<vmem>>, vector<1x8x384xf32>
    %162 = vector.shape_cast %161 : vector<1x8x384xf32> to vector<8x384xf32>
    %c0_46 = arith.constant 0 : index
    %c0_47 = arith.constant 0 : index
    %163 = vector.load %arg3[%c0_46, %c0_47] : memref<128x384xf32, #tpu.memory_space<vmem>>, vector<128x384xf32>
    %cst_48 = arith.constant dense<0.000000e+00> : vector<8x384xf32>
    %164 = tpu.matmul %159, %163, %cst_48 {dimension_numbers = #tpu.dot_dimension_numbers<[1], [0], [0], [1], [0, 0, 1, 1], [], []>} : vector<8x128xf32>, vector<128x384xf32>, vector<8x384xf32> -> vector<8x384xf32>
    %c0_49 = arith.constant 0 : index
    %c0_50 = arith.constant 0 : index
    %165 = vector.load %arg4[%c0_49, %c0_50] : memref<1x384xf32, #tpu.memory_space<vmem>>, vector<1x384xf32>
    %166 = vector.broadcast %165 : vector<1x384xf32> to vector<8x384xf32>
    %167 = arith.addf %164, %166 : vector<8x384xf32>
    %168 = vector.extract_strided_slice %162 {offsets = [0, 0], sizes = [8, 128], strides = [1, 1]} : vector<8x384xf32> to vector<8x128xf32>
    %169 = vector.extract_strided_slice %167 {offsets = [0, 0], sizes = [8, 128], strides = [1, 1]} : vector<8x384xf32> to vector<8x128xf32>
    %170 = arith.addf %168, %169 : vector<8x128xf32>
    %171 = arith.negf %170 : vector<8x128xf32>
    %172 = math.exp %171 : vector<8x128xf32>
    %cst_51 = arith.constant 1.000000e+00 : f32
    %173 = vector.broadcast %cst_51 : f32 to vector<8x128xf32>
    %174 = arith.addf %173, %172 : vector<8x128xf32>
    %175 = arith.divf %173, %174 : vector<8x128xf32>
    %176 = vector.extract_strided_slice %162 {offsets = [0, 128], sizes = [8, 128], strides = [1, 1]} : vector<8x384xf32> to vector<8x128xf32>
    %177 = vector.extract_strided_slice %167 {offsets = [0, 128], sizes = [8, 128], strides = [1, 1]} : vector<8x384xf32> to vector<8x128xf32>
    %178 = arith.addf %176, %177 : vector<8x128xf32>
    %179 = arith.negf %178 : vector<8x128xf32>
    %180 = math.exp %179 : vector<8x128xf32>
    %cst_52 = arith.constant 1.000000e+00 : f32
    %181 = vector.broadcast %cst_52 : f32 to vector<8x128xf32>
    %182 = arith.addf %181, %180 : vector<8x128xf32>
    %183 = arith.divf %181, %182 : vector<8x128xf32>
    %184 = vector.extract_strided_slice %162 {offsets = [0, 256], sizes = [8, 128], strides = [1, 1]} : vector<8x384xf32> to vector<8x128xf32>
    %185 = vector.extract_strided_slice %167 {offsets = [0, 256], sizes = [8, 128], strides = [1, 1]} : vector<8x384xf32> to vector<8x128xf32>
    %186 = arith.mulf %175, %185 : vector<8x128xf32>
    %187 = arith.addf %184, %186 : vector<8x128xf32>
    %188 = math.tanh %187 : vector<8x128xf32>
    %cst_53 = arith.constant 1.000000e+00 : f32
    %189 = vector.broadcast %cst_53 : f32 to vector<8x128xf32>
    %190 = arith.subf %189, %183 : vector<8x128xf32>
    %191 = arith.mulf %190, %188 : vector<8x128xf32>
    %192 = arith.mulf %183, %159 : vector<8x128xf32>
    %193 = arith.addf %191, %192 : vector<8x128xf32>
    %194 = arith.addi %3, %c4_i32 : i32
    %195 = vector.broadcast %194 : i32 to vector<8x128xi32>
    %196 = arith.cmpi sgt, %6, %195 : vector<8x128xi32>
    %197 = arith.select %196, %193, %159 : vector<8x128xi1>, vector<8x128xf32>
    %c5_i32 = arith.constant 5 : i32
    %198 = arith.index_cast %c5_i32 : i32 to index
    %c0_54 = arith.constant 0 : index
    %c0_55 = arith.constant 0 : index
    %199 = vector.load %arg2[%198, %c0_54, %c0_55] : memref<8x8x384xf32, #tpu.memory_space<vmem>>, vector<1x8x384xf32>
    %200 = vector.shape_cast %199 : vector<1x8x384xf32> to vector<8x384xf32>
    %c0_56 = arith.constant 0 : index
    %c0_57 = arith.constant 0 : index
    %201 = vector.load %arg3[%c0_56, %c0_57] : memref<128x384xf32, #tpu.memory_space<vmem>>, vector<128x384xf32>
    %cst_58 = arith.constant dense<0.000000e+00> : vector<8x384xf32>
    %202 = tpu.matmul %197, %201, %cst_58 {dimension_numbers = #tpu.dot_dimension_numbers<[1], [0], [0], [1], [0, 0, 1, 1], [], []>} : vector<8x128xf32>, vector<128x384xf32>, vector<8x384xf32> -> vector<8x384xf32>
    %c0_59 = arith.constant 0 : index
    %c0_60 = arith.constant 0 : index
    %203 = vector.load %arg4[%c0_59, %c0_60] : memref<1x384xf32, #tpu.memory_space<vmem>>, vector<1x384xf32>
    %204 = vector.broadcast %203 : vector<1x384xf32> to vector<8x384xf32>
    %205 = arith.addf %202, %204 : vector<8x384xf32>
    %206 = vector.extract_strided_slice %200 {offsets = [0, 0], sizes = [8, 128], strides = [1, 1]} : vector<8x384xf32> to vector<8x128xf32>
    %207 = vector.extract_strided_slice %205 {offsets = [0, 0], sizes = [8, 128], strides = [1, 1]} : vector<8x384xf32> to vector<8x128xf32>
    %208 = arith.addf %206, %207 : vector<8x128xf32>
    %209 = arith.negf %208 : vector<8x128xf32>
    %210 = math.exp %209 : vector<8x128xf32>
    %cst_61 = arith.constant 1.000000e+00 : f32
    %211 = vector.broadcast %cst_61 : f32 to vector<8x128xf32>
    %212 = arith.addf %211, %210 : vector<8x128xf32>
    %213 = arith.divf %211, %212 : vector<8x128xf32>
    %214 = vector.extract_strided_slice %200 {offsets = [0, 128], sizes = [8, 128], strides = [1, 1]} : vector<8x384xf32> to vector<8x128xf32>
    %215 = vector.extract_strided_slice %205 {offsets = [0, 128], sizes = [8, 128], strides = [1, 1]} : vector<8x384xf32> to vector<8x128xf32>
    %216 = arith.addf %214, %215 : vector<8x128xf32>
    %217 = arith.negf %216 : vector<8x128xf32>
    %218 = math.exp %217 : vector<8x128xf32>
    %cst_62 = arith.constant 1.000000e+00 : f32
    %219 = vector.broadcast %cst_62 : f32 to vector<8x128xf32>
    %220 = arith.addf %219, %218 : vector<8x128xf32>
    %221 = arith.divf %219, %220 : vector<8x128xf32>
    %222 = vector.extract_strided_slice %200 {offsets = [0, 256], sizes = [8, 128], strides = [1, 1]} : vector<8x384xf32> to vector<8x128xf32>
    %223 = vector.extract_strided_slice %205 {offsets = [0, 256], sizes = [8, 128], strides = [1, 1]} : vector<8x384xf32> to vector<8x128xf32>
    %224 = arith.mulf %213, %223 : vector<8x128xf32>
    %225 = arith.addf %222, %224 : vector<8x128xf32>
    %226 = math.tanh %225 : vector<8x128xf32>
    %cst_63 = arith.constant 1.000000e+00 : f32
    %227 = vector.broadcast %cst_63 : f32 to vector<8x128xf32>
    %228 = arith.subf %227, %221 : vector<8x128xf32>
    %229 = arith.mulf %228, %226 : vector<8x128xf32>
    %230 = arith.mulf %221, %197 : vector<8x128xf32>
    %231 = arith.addf %229, %230 : vector<8x128xf32>
    %232 = arith.addi %3, %c5_i32 : i32
    %233 = vector.broadcast %232 : i32 to vector<8x128xi32>
    %234 = arith.cmpi sgt, %6, %233 : vector<8x128xi32>
    %235 = arith.select %234, %231, %197 : vector<8x128xi1>, vector<8x128xf32>
    %c6_i32 = arith.constant 6 : i32
    %236 = arith.index_cast %c6_i32 : i32 to index
    %c0_64 = arith.constant 0 : index
    %c0_65 = arith.constant 0 : index
    %237 = vector.load %arg2[%236, %c0_64, %c0_65] : memref<8x8x384xf32, #tpu.memory_space<vmem>>, vector<1x8x384xf32>
    %238 = vector.shape_cast %237 : vector<1x8x384xf32> to vector<8x384xf32>
    %c0_66 = arith.constant 0 : index
    %c0_67 = arith.constant 0 : index
    %239 = vector.load %arg3[%c0_66, %c0_67] : memref<128x384xf32, #tpu.memory_space<vmem>>, vector<128x384xf32>
    %cst_68 = arith.constant dense<0.000000e+00> : vector<8x384xf32>
    %240 = tpu.matmul %235, %239, %cst_68 {dimension_numbers = #tpu.dot_dimension_numbers<[1], [0], [0], [1], [0, 0, 1, 1], [], []>} : vector<8x128xf32>, vector<128x384xf32>, vector<8x384xf32> -> vector<8x384xf32>
    %c0_69 = arith.constant 0 : index
    %c0_70 = arith.constant 0 : index
    %241 = vector.load %arg4[%c0_69, %c0_70] : memref<1x384xf32, #tpu.memory_space<vmem>>, vector<1x384xf32>
    %242 = vector.broadcast %241 : vector<1x384xf32> to vector<8x384xf32>
    %243 = arith.addf %240, %242 : vector<8x384xf32>
    %244 = vector.extract_strided_slice %238 {offsets = [0, 0], sizes = [8, 128], strides = [1, 1]} : vector<8x384xf32> to vector<8x128xf32>
    %245 = vector.extract_strided_slice %243 {offsets = [0, 0], sizes = [8, 128], strides = [1, 1]} : vector<8x384xf32> to vector<8x128xf32>
    %246 = arith.addf %244, %245 : vector<8x128xf32>
    %247 = arith.negf %246 : vector<8x128xf32>
    %248 = math.exp %247 : vector<8x128xf32>
    %cst_71 = arith.constant 1.000000e+00 : f32
    %249 = vector.broadcast %cst_71 : f32 to vector<8x128xf32>
    %250 = arith.addf %249, %248 : vector<8x128xf32>
    %251 = arith.divf %249, %250 : vector<8x128xf32>
    %252 = vector.extract_strided_slice %238 {offsets = [0, 128], sizes = [8, 128], strides = [1, 1]} : vector<8x384xf32> to vector<8x128xf32>
    %253 = vector.extract_strided_slice %243 {offsets = [0, 128], sizes = [8, 128], strides = [1, 1]} : vector<8x384xf32> to vector<8x128xf32>
    %254 = arith.addf %252, %253 : vector<8x128xf32>
    %255 = arith.negf %254 : vector<8x128xf32>
    %256 = math.exp %255 : vector<8x128xf32>
    %cst_72 = arith.constant 1.000000e+00 : f32
    %257 = vector.broadcast %cst_72 : f32 to vector<8x128xf32>
    %258 = arith.addf %257, %256 : vector<8x128xf32>
    %259 = arith.divf %257, %258 : vector<8x128xf32>
    %260 = vector.extract_strided_slice %238 {offsets = [0, 256], sizes = [8, 128], strides = [1, 1]} : vector<8x384xf32> to vector<8x128xf32>
    %261 = vector.extract_strided_slice %243 {offsets = [0, 256], sizes = [8, 128], strides = [1, 1]} : vector<8x384xf32> to vector<8x128xf32>
    %262 = arith.mulf %251, %261 : vector<8x128xf32>
    %263 = arith.addf %260, %262 : vector<8x128xf32>
    %264 = math.tanh %263 : vector<8x128xf32>
    %cst_73 = arith.constant 1.000000e+00 : f32
    %265 = vector.broadcast %cst_73 : f32 to vector<8x128xf32>
    %266 = arith.subf %265, %259 : vector<8x128xf32>
    %267 = arith.mulf %266, %264 : vector<8x128xf32>
    %268 = arith.mulf %259, %235 : vector<8x128xf32>
    %269 = arith.addf %267, %268 : vector<8x128xf32>
    %270 = arith.addi %3, %c6_i32 : i32
    %271 = vector.broadcast %270 : i32 to vector<8x128xi32>
    %272 = arith.cmpi sgt, %6, %271 : vector<8x128xi32>
    %273 = arith.select %272, %269, %235 : vector<8x128xi1>, vector<8x128xf32>
    %c7_i32 = arith.constant 7 : i32
    %274 = arith.index_cast %c7_i32 : i32 to index
    %c0_74 = arith.constant 0 : index
    %c0_75 = arith.constant 0 : index
    %275 = vector.load %arg2[%274, %c0_74, %c0_75] : memref<8x8x384xf32, #tpu.memory_space<vmem>>, vector<1x8x384xf32>
    %276 = vector.shape_cast %275 : vector<1x8x384xf32> to vector<8x384xf32>
    %c0_76 = arith.constant 0 : index
    %c0_77 = arith.constant 0 : index
    %277 = vector.load %arg3[%c0_76, %c0_77] : memref<128x384xf32, #tpu.memory_space<vmem>>, vector<128x384xf32>
    %cst_78 = arith.constant dense<0.000000e+00> : vector<8x384xf32>
    %278 = tpu.matmul %273, %277, %cst_78 {dimension_numbers = #tpu.dot_dimension_numbers<[1], [0], [0], [1], [0, 0, 1, 1], [], []>} : vector<8x128xf32>, vector<128x384xf32>, vector<8x384xf32> -> vector<8x384xf32>
    %c0_79 = arith.constant 0 : index
    %c0_80 = arith.constant 0 : index
    %279 = vector.load %arg4[%c0_79, %c0_80] : memref<1x384xf32, #tpu.memory_space<vmem>>, vector<1x384xf32>
    %280 = vector.broadcast %279 : vector<1x384xf32> to vector<8x384xf32>
    %281 = arith.addf %278, %280 : vector<8x384xf32>
    %282 = vector.extract_strided_slice %276 {offsets = [0, 0], sizes = [8, 128], strides = [1, 1]} : vector<8x384xf32> to vector<8x128xf32>
    %283 = vector.extract_strided_slice %281 {offsets = [0, 0], sizes = [8, 128], strides = [1, 1]} : vector<8x384xf32> to vector<8x128xf32>
    %284 = arith.addf %282, %283 : vector<8x128xf32>
    %285 = arith.negf %284 : vector<8x128xf32>
    %286 = math.exp %285 : vector<8x128xf32>
    %cst_81 = arith.constant 1.000000e+00 : f32
    %287 = vector.broadcast %cst_81 : f32 to vector<8x128xf32>
    %288 = arith.addf %287, %286 : vector<8x128xf32>
    %289 = arith.divf %287, %288 : vector<8x128xf32>
    %290 = vector.extract_strided_slice %276 {offsets = [0, 128], sizes = [8, 128], strides = [1, 1]} : vector<8x384xf32> to vector<8x128xf32>
    %291 = vector.extract_strided_slice %281 {offsets = [0, 128], sizes = [8, 128], strides = [1, 1]} : vector<8x384xf32> to vector<8x128xf32>
    %292 = arith.addf %290, %291 : vector<8x128xf32>
    %293 = arith.negf %292 : vector<8x128xf32>
    %294 = math.exp %293 : vector<8x128xf32>
    %cst_82 = arith.constant 1.000000e+00 : f32
    %295 = vector.broadcast %cst_82 : f32 to vector<8x128xf32>
    %296 = arith.addf %295, %294 : vector<8x128xf32>
    %297 = arith.divf %295, %296 : vector<8x128xf32>
    %298 = vector.extract_strided_slice %276 {offsets = [0, 256], sizes = [8, 128], strides = [1, 1]} : vector<8x384xf32> to vector<8x128xf32>
    %299 = vector.extract_strided_slice %281 {offsets = [0, 256], sizes = [8, 128], strides = [1, 1]} : vector<8x384xf32> to vector<8x128xf32>
    %300 = arith.mulf %289, %299 : vector<8x128xf32>
    %301 = arith.addf %298, %300 : vector<8x128xf32>
    %302 = math.tanh %301 : vector<8x128xf32>
    %cst_83 = arith.constant 1.000000e+00 : f32
    %303 = vector.broadcast %cst_83 : f32 to vector<8x128xf32>
    %304 = arith.subf %303, %297 : vector<8x128xf32>
    %305 = arith.mulf %304, %302 : vector<8x128xf32>
    %306 = arith.mulf %297, %273 : vector<8x128xf32>
    %307 = arith.addf %305, %306 : vector<8x128xf32>
    %308 = arith.addi %3, %c7_i32 : i32
    %309 = vector.broadcast %308 : i32 to vector<8x128xi32>
    %310 = arith.cmpi sgt, %6, %309 : vector<8x128xi32>
    %311 = arith.select %310, %307, %273 : vector<8x128xi1>, vector<8x128xf32>
    %c8_i32_84 = arith.constant 8 : i32
    %c0_85 = arith.constant 0 : index
    %c0_86 = arith.constant 0 : index
    %312 = vector.load %arg5[%c0_85, %c0_86] : memref<8x128xf32, #tpu.memory_space<vmem>>, vector<8x128xf32>
    tpu.vector_store %arg5[%c0_85, %c0_86], %311 {strides = array<i32>} : memref<8x128xf32, #tpu.memory_space<vmem>>, vector<8x128xf32>,
    return
  }
  func.func @transform_0(%arg0: i32) -> (i32, i32) {
    %c0_i32 = arith.constant 0 : i32
    %c0_i32_0 = arith.constant 0 : i32
    %c0_i32_1 = arith.constant 0 : i32
    return %c0_i32, %c0_i32_0 : i32, i32
  }
  func.func @transform_1(%arg0: i32) -> (i32, i32, i32) {
    %c0_i32 = arith.constant 0 : i32
    %c0_i32_0 = arith.constant 0 : i32
    %c0_i32_1 = arith.constant 0 : i32
    return %arg0, %c0_i32, %c0_i32_0 : i32, i32, i32
  }
  func.func @transform_2(%arg0: i32) -> (i32, i32) {
    %c0_i32 = arith.constant 0 : i32
    %c0_i32_0 = arith.constant 0 : i32
    %c0_i32_1 = arith.constant 0 : i32
    return %c0_i32, %c0_i32_0 : i32, i32
  }
  func.func @transform_3(%arg0: i32) -> (i32, i32) {
    %c0_i32 = arith.constant 0 : i32
    %c0_i32_0 = arith.constant 0 : i32
    %c0_i32_1 = arith.constant 0 : i32
    return %c0_i32, %c0_i32_0 : i32, i32
  }
  func.func @transform_4(%arg0: i32) -> (i32, i32) {
    %c0_i32 = arith.constant 0 : i32
    %c0_i32_0 = arith.constant 0 : i32
    %c0_i32_1 = arith.constant 0 : i32
    return %c0_i32, %c0_i32_0 : i32, i32
  }
}

module attributes {stable_mosaic.version = 11 : i64} {
  func.func @matmul_bias_kernel(%arg0: i32, %arg1: i32, %arg2: memref<48x128xf32, #tpu.memory_space<vmem>>, %arg3: memref<128x128xf32, #tpu.memory_space<vmem>>, %arg4: memref<1x128xf32, #tpu.memory_space<vmem>>, %arg5: memref<48x128xf32, #tpu.memory_space<vmem>>) attributes {dimension_semantics = [#tpu.dimension_semantics<parallel>, #tpu.dimension_semantics<parallel>], iteration_bounds = array<i64: 3, 1>, scalar_prefetch = 0 : i64, scratch_operands = 0 : i64, tpu.core_type = #tpu.core_type<tc>, window_params = [{transform_indices = @transform_0, window_bounds = array<i64: 48, 128>}, {transform_indices = @transform_1, window_bounds = array<i64: 128, 128>}, {transform_indices = @transform_2, window_bounds = array<i64: 1, 128>}, {transform_indices = @transform_3, window_bounds = array<i64: 48, 128>}]} {
    %c0 = arith.constant 0 : index
    %c0_0 = arith.constant 0 : index
    %0 = vector.load %arg2[%c0, %c0_0] : memref<48x128xf32, #tpu.memory_space<vmem>>, vector<48x128xf32>
    %c0_1 = arith.constant 0 : index
    %c0_2 = arith.constant 0 : index
    %1 = vector.load %arg3[%c0_1, %c0_2] : memref<128x128xf32, #tpu.memory_space<vmem>>, vector<128x128xf32>
    %cst = arith.constant dense<0.000000e+00> : vector<48x128xf32>
    %2 = tpu.matmul %0, %1, %cst {dimension_numbers = #tpu.dot_dimension_numbers<[1], [0], [0], [1], [0, 0, 1, 1], [], []>} : vector<48x128xf32>, vector<128x128xf32>, vector<48x128xf32> -> vector<48x128xf32>
    %c0_3 = arith.constant 0 : index
    %c0_4 = arith.constant 0 : index
    %3 = vector.load %arg4[%c0_3, %c0_4] : memref<1x128xf32, #tpu.memory_space<vmem>>, vector<1x128xf32>
    %4 = vector.broadcast %3 : vector<1x128xf32> to vector<48x128xf32>
    %5 = arith.addf %2, %4 : vector<48x128xf32>
    %c0_5 = arith.constant 0 : index
    %c0_6 = arith.constant 0 : index
    %6 = vector.load %arg5[%c0_5, %c0_6] : memref<48x128xf32, #tpu.memory_space<vmem>>, vector<48x128xf32>
    tpu.vector_store %arg5[%c0_5, %c0_6], %5 {strides = array<i32>} : memref<48x128xf32, #tpu.memory_space<vmem>>, vector<48x128xf32>,
    return
  }
  func.func @transform_0(%arg0: i32, %arg1: i32) -> (i32, i32) {
    %c0_i32 = arith.constant 0 : i32
    %c0_i32_0 = arith.constant 0 : i32
    return %arg1, %c0_i32 : i32, i32
  }
  func.func @transform_1(%arg0: i32, %arg1: i32) -> (i32, i32) {
    %c0_i32 = arith.constant 0 : i32
    %c0_i32_0 = arith.constant 0 : i32
    return %c0_i32, %arg0 : i32, i32
  }
  func.func @transform_2(%arg0: i32, %arg1: i32) -> (i32, i32) {
    %c0_i32 = arith.constant 0 : i32
    %c0_i32_0 = arith.constant 0 : i32
    return %c0_i32, %arg0 : i32, i32
  }
  func.func @transform_3(%arg0: i32, %arg1: i32) -> (i32, i32) {
    %c0_i32 = arith.constant 0 : i32
    return %arg1, %arg0 : i32, i32
  }
}

module attributes {stable_mosaic.version = 11 : i64} {
  func.func @decoder_recurrence_kernel(%arg0: i32, %arg1: memref<8x8x384xf32, #tpu.memory_space<vmem>>, %arg2: memref<8x128xf32, #tpu.memory_space<vmem>>, %arg3: memref<128x384xf32, #tpu.memory_space<vmem>>, %arg4: memref<1x384xf32, #tpu.memory_space<vmem>>, %arg5: memref<8x8x128xf32, #tpu.memory_space<vmem>>, %arg6: memref<8x128xf32, #tpu.memory_space<vmem>>) attributes {dimension_semantics = [#tpu.dimension_semantics<arbitrary>], iteration_bounds = array<i64: 1>, scalar_prefetch = 0 : i64, scratch_operands = 1 : i64, tpu.core_type = #tpu.core_type<tc>, window_params = [{transform_indices = @transform_0, window_bounds = array<i64: 8, 8, 384>}, {pipeline_mode = #tpu.pipeline_mode<synchronous>, transform_indices = @transform_1, window_bounds = array<i64: 8, 128>}, {pipeline_mode = #tpu.pipeline_mode<synchronous>, transform_indices = @transform_2, window_bounds = array<i64: 128, 384>}, {pipeline_mode = #tpu.pipeline_mode<synchronous>, transform_indices = @transform_3, window_bounds = array<i64: 1, 384>}, {transform_indices = @transform_4, window_bounds = array<i64: 8, 8, 128>}]} {
    %c0_i32 = arith.constant 0 : i32
    %0 = arith.cmpi eq, %arg0, %c0_i32 : i32
    %1 = arith.extui %0 : i1 to i32
    %c0_i32_0 = arith.constant 0 : i32
    %2 = arith.cmpi ne, %1, %c0_i32_0 : i32
    scf.if %2 {
      %c0_100 = arith.constant 0 : index
      %c0_101 = arith.constant 0 : index
      %309 = vector.load %arg2[%c0_100, %c0_101] : memref<8x128xf32, #tpu.memory_space<vmem>>, vector<8x128xf32>
      %c0_102 = arith.constant 0 : index
      %c0_103 = arith.constant 0 : index
      %310 = vector.load %arg6[%c0_102, %c0_103] : memref<8x128xf32, #tpu.memory_space<vmem>>, vector<8x128xf32>
      tpu.vector_store %arg6[%c0_102, %c0_103], %309 {strides = array<i32>} : memref<8x128xf32, #tpu.memory_space<vmem>>, vector<8x128xf32>,
    } else {
    }
    %c0 = arith.constant 0 : index
    %c0_1 = arith.constant 0 : index
    %3 = vector.load %arg6[%c0, %c0_1] : memref<8x128xf32, #tpu.memory_space<vmem>>, vector<8x128xf32>
    %c0_i32_2 = arith.constant 0 : i32
    %4 = arith.index_cast %c0_i32_2 : i32 to index
    %c0_3 = arith.constant 0 : index
    %c0_4 = arith.constant 0 : index
    %5 = vector.load %arg1[%4, %c0_3, %c0_4] : memref<8x8x384xf32, #tpu.memory_space<vmem>>, vector<1x8x384xf32>
    %6 = vector.shape_cast %5 : vector<1x8x384xf32> to vector<8x384xf32>
    %c0_5 = arith.constant 0 : index
    %c0_6 = arith.constant 0 : index
    %7 = vector.load %arg3[%c0_5, %c0_6] : memref<128x384xf32, #tpu.memory_space<vmem>>, vector<128x384xf32>
    %cst = arith.constant dense<0.000000e+00> : vector<8x384xf32>
    %8 = tpu.matmul %3, %7, %cst {dimension_numbers = #tpu.dot_dimension_numbers<[1], [0], [0], [1], [0, 0, 1, 1], [], []>} : vector<8x128xf32>, vector<128x384xf32>, vector<8x384xf32> -> vector<8x384xf32>
    %c0_7 = arith.constant 0 : index
    %c0_8 = arith.constant 0 : index
    %9 = vector.load %arg4[%c0_7, %c0_8] : memref<1x384xf32, #tpu.memory_space<vmem>>, vector<1x384xf32>
    %10 = vector.broadcast %9 : vector<1x384xf32> to vector<8x384xf32>
    %11 = arith.addf %8, %10 : vector<8x384xf32>
    %12 = vector.extract_strided_slice %6 {offsets = [0, 0], sizes = [8, 128], strides = [1, 1]} : vector<8x384xf32> to vector<8x128xf32>
    %13 = vector.extract_strided_slice %11 {offsets = [0, 0], sizes = [8, 128], strides = [1, 1]} : vector<8x384xf32> to vector<8x128xf32>
    %14 = arith.addf %12, %13 : vector<8x128xf32>
    %15 = arith.negf %14 : vector<8x128xf32>
    %16 = math.exp %15 : vector<8x128xf32>
    %cst_9 = arith.constant 1.000000e+00 : f32
    %17 = vector.broadcast %cst_9 : f32 to vector<8x128xf32>
    %18 = arith.addf %17, %16 : vector<8x128xf32>
    %19 = arith.divf %17, %18 : vector<8x128xf32>
    %20 = vector.extract_strided_slice %6 {offsets = [0, 128], sizes = [8, 128], strides = [1, 1]} : vector<8x384xf32> to vector<8x128xf32>
    %21 = vector.extract_strided_slice %11 {offsets = [0, 128], sizes = [8, 128], strides = [1, 1]} : vector<8x384xf32> to vector<8x128xf32>
    %22 = arith.addf %20, %21 : vector<8x128xf32>
    %23 = arith.negf %22 : vector<8x128xf32>
    %24 = math.exp %23 : vector<8x128xf32>
    %cst_10 = arith.constant 1.000000e+00 : f32
    %25 = vector.broadcast %cst_10 : f32 to vector<8x128xf32>
    %26 = arith.addf %25, %24 : vector<8x128xf32>
    %27 = arith.divf %25, %26 : vector<8x128xf32>
    %28 = vector.extract_strided_slice %6 {offsets = [0, 256], sizes = [8, 128], strides = [1, 1]} : vector<8x384xf32> to vector<8x128xf32>
    %29 = vector.extract_strided_slice %11 {offsets = [0, 256], sizes = [8, 128], strides = [1, 1]} : vector<8x384xf32> to vector<8x128xf32>
    %30 = arith.mulf %19, %29 : vector<8x128xf32>
    %31 = arith.addf %28, %30 : vector<8x128xf32>
    %32 = math.tanh %31 : vector<8x128xf32>
    %cst_11 = arith.constant 1.000000e+00 : f32
    %33 = vector.broadcast %cst_11 : f32 to vector<8x128xf32>
    %34 = arith.subf %33, %27 : vector<8x128xf32>
    %35 = arith.mulf %34, %32 : vector<8x128xf32>
    %36 = arith.mulf %27, %3 : vector<8x128xf32>
    %37 = arith.addf %35, %36 : vector<8x128xf32>
    %38 = arith.index_cast %c0_i32_2 : i32 to index
    %c0_12 = arith.constant 0 : index
    %c0_13 = arith.constant 0 : index
    %39 = vector.load %arg5[%38, %c0_12, %c0_13] : memref<8x8x128xf32, #tpu.memory_space<vmem>>, vector<1x8x128xf32>
    %40 = vector.shape_cast %39 : vector<1x8x128xf32> to vector<8x128xf32>
    %41 = vector.shape_cast %37 : vector<8x128xf32> to vector<1x8x128xf32>
    tpu.vector_store %arg5[%38, %c0_12, %c0_13], %41 {strides = array<i32>} : memref<8x8x128xf32, #tpu.memory_space<vmem>>, vector<1x8x128xf32>,
    %c1_i32 = arith.constant 1 : i32
    %42 = arith.index_cast %c1_i32 : i32 to index
    %c0_14 = arith.constant 0 : index
    %c0_15 = arith.constant 0 : index
    %43 = vector.load %arg1[%42, %c0_14, %c0_15] : memref<8x8x384xf32, #tpu.memory_space<vmem>>, vector<1x8x384xf32>
    %44 = vector.shape_cast %43 : vector<1x8x384xf32> to vector<8x384xf32>
    %c0_16 = arith.constant 0 : index
    %c0_17 = arith.constant 0 : index
    %45 = vector.load %arg3[%c0_16, %c0_17] : memref<128x384xf32, #tpu.memory_space<vmem>>, vector<128x384xf32>
    %cst_18 = arith.constant dense<0.000000e+00> : vector<8x384xf32>
    %46 = tpu.matmul %37, %45, %cst_18 {dimension_numbers = #tpu.dot_dimension_numbers<[1], [0], [0], [1], [0, 0, 1, 1], [], []>} : vector<8x128xf32>, vector<128x384xf32>, vector<8x384xf32> -> vector<8x384xf32>
    %c0_19 = arith.constant 0 : index
    %c0_20 = arith.constant 0 : index
    %47 = vector.load %arg4[%c0_19, %c0_20] : memref<1x384xf32, #tpu.memory_space<vmem>>, vector<1x384xf32>
    %48 = vector.broadcast %47 : vector<1x384xf32> to vector<8x384xf32>
    %49 = arith.addf %46, %48 : vector<8x384xf32>
    %50 = vector.extract_strided_slice %44 {offsets = [0, 0], sizes = [8, 128], strides = [1, 1]} : vector<8x384xf32> to vector<8x128xf32>
    %51 = vector.extract_strided_slice %49 {offsets = [0, 0], sizes = [8, 128], strides = [1, 1]} : vector<8x384xf32> to vector<8x128xf32>
    %52 = arith.addf %50, %51 : vector<8x128xf32>
    %53 = arith.negf %52 : vector<8x128xf32>
    %54 = math.exp %53 : vector<8x128xf32>
    %cst_21 = arith.constant 1.000000e+00 : f32
    %55 = vector.broadcast %cst_21 : f32 to vector<8x128xf32>
    %56 = arith.addf %55, %54 : vector<8x128xf32>
    %57 = arith.divf %55, %56 : vector<8x128xf32>
    %58 = vector.extract_strided_slice %44 {offsets = [0, 128], sizes = [8, 128], strides = [1, 1]} : vector<8x384xf32> to vector<8x128xf32>
    %59 = vector.extract_strided_slice %49 {offsets = [0, 128], sizes = [8, 128], strides = [1, 1]} : vector<8x384xf32> to vector<8x128xf32>
    %60 = arith.addf %58, %59 : vector<8x128xf32>
    %61 = arith.negf %60 : vector<8x128xf32>
    %62 = math.exp %61 : vector<8x128xf32>
    %cst_22 = arith.constant 1.000000e+00 : f32
    %63 = vector.broadcast %cst_22 : f32 to vector<8x128xf32>
    %64 = arith.addf %63, %62 : vector<8x128xf32>
    %65 = arith.divf %63, %64 : vector<8x128xf32>
    %66 = vector.extract_strided_slice %44 {offsets = [0, 256], sizes = [8, 128], strides = [1, 1]} : vector<8x384xf32> to vector<8x128xf32>
    %67 = vector.extract_strided_slice %49 {offsets = [0, 256], sizes = [8, 128], strides = [1, 1]} : vector<8x384xf32> to vector<8x128xf32>
    %68 = arith.mulf %57, %67 : vector<8x128xf32>
    %69 = arith.addf %66, %68 : vector<8x128xf32>
    %70 = math.tanh %69 : vector<8x128xf32>
    %cst_23 = arith.constant 1.000000e+00 : f32
    %71 = vector.broadcast %cst_23 : f32 to vector<8x128xf32>
    %72 = arith.subf %71, %65 : vector<8x128xf32>
    %73 = arith.mulf %72, %70 : vector<8x128xf32>
    %74 = arith.mulf %65, %37 : vector<8x128xf32>
    %75 = arith.addf %73, %74 : vector<8x128xf32>
    %76 = arith.index_cast %c1_i32 : i32 to index
    %c0_24 = arith.constant 0 : index
    %c0_25 = arith.constant 0 : index
    %77 = vector.load %arg5[%76, %c0_24, %c0_25] : memref<8x8x128xf32, #tpu.memory_space<vmem>>, vector<1x8x128xf32>
    %78 = vector.shape_cast %77 : vector<1x8x128xf32> to vector<8x128xf32>
    %79 = vector.shape_cast %75 : vector<8x128xf32> to vector<1x8x128xf32>
    tpu.vector_store %arg5[%76, %c0_24, %c0_25], %79 {strides = array<i32>} : memref<8x8x128xf32, #tpu.memory_space<vmem>>, vector<1x8x128xf32>,
    %c2_i32 = arith.constant 2 : i32
    %80 = arith.index_cast %c2_i32 : i32 to index
    %c0_26 = arith.constant 0 : index
    %c0_27 = arith.constant 0 : index
    %81 = vector.load %arg1[%80, %c0_26, %c0_27] : memref<8x8x384xf32, #tpu.memory_space<vmem>>, vector<1x8x384xf32>
    %82 = vector.shape_cast %81 : vector<1x8x384xf32> to vector<8x384xf32>
    %c0_28 = arith.constant 0 : index
    %c0_29 = arith.constant 0 : index
    %83 = vector.load %arg3[%c0_28, %c0_29] : memref<128x384xf32, #tpu.memory_space<vmem>>, vector<128x384xf32>
    %cst_30 = arith.constant dense<0.000000e+00> : vector<8x384xf32>
    %84 = tpu.matmul %75, %83, %cst_30 {dimension_numbers = #tpu.dot_dimension_numbers<[1], [0], [0], [1], [0, 0, 1, 1], [], []>} : vector<8x128xf32>, vector<128x384xf32>, vector<8x384xf32> -> vector<8x384xf32>
    %c0_31 = arith.constant 0 : index
    %c0_32 = arith.constant 0 : index
    %85 = vector.load %arg4[%c0_31, %c0_32] : memref<1x384xf32, #tpu.memory_space<vmem>>, vector<1x384xf32>
    %86 = vector.broadcast %85 : vector<1x384xf32> to vector<8x384xf32>
    %87 = arith.addf %84, %86 : vector<8x384xf32>
    %88 = vector.extract_strided_slice %82 {offsets = [0, 0], sizes = [8, 128], strides = [1, 1]} : vector<8x384xf32> to vector<8x128xf32>
    %89 = vector.extract_strided_slice %87 {offsets = [0, 0], sizes = [8, 128], strides = [1, 1]} : vector<8x384xf32> to vector<8x128xf32>
    %90 = arith.addf %88, %89 : vector<8x128xf32>
    %91 = arith.negf %90 : vector<8x128xf32>
    %92 = math.exp %91 : vector<8x128xf32>
    %cst_33 = arith.constant 1.000000e+00 : f32
    %93 = vector.broadcast %cst_33 : f32 to vector<8x128xf32>
    %94 = arith.addf %93, %92 : vector<8x128xf32>
    %95 = arith.divf %93, %94 : vector<8x128xf32>
    %96 = vector.extract_strided_slice %82 {offsets = [0, 128], sizes = [8, 128], strides = [1, 1]} : vector<8x384xf32> to vector<8x128xf32>
    %97 = vector.extract_strided_slice %87 {offsets = [0, 128], sizes = [8, 128], strides = [1, 1]} : vector<8x384xf32> to vector<8x128xf32>
    %98 = arith.addf %96, %97 : vector<8x128xf32>
    %99 = arith.negf %98 : vector<8x128xf32>
    %100 = math.exp %99 : vector<8x128xf32>
    %cst_34 = arith.constant 1.000000e+00 : f32
    %101 = vector.broadcast %cst_34 : f32 to vector<8x128xf32>
    %102 = arith.addf %101, %100 : vector<8x128xf32>
    %103 = arith.divf %101, %102 : vector<8x128xf32>
    %104 = vector.extract_strided_slice %82 {offsets = [0, 256], sizes = [8, 128], strides = [1, 1]} : vector<8x384xf32> to vector<8x128xf32>
    %105 = vector.extract_strided_slice %87 {offsets = [0, 256], sizes = [8, 128], strides = [1, 1]} : vector<8x384xf32> to vector<8x128xf32>
    %106 = arith.mulf %95, %105 : vector<8x128xf32>
    %107 = arith.addf %104, %106 : vector<8x128xf32>
    %108 = math.tanh %107 : vector<8x128xf32>
    %cst_35 = arith.constant 1.000000e+00 : f32
    %109 = vector.broadcast %cst_35 : f32 to vector<8x128xf32>
    %110 = arith.subf %109, %103 : vector<8x128xf32>
    %111 = arith.mulf %110, %108 : vector<8x128xf32>
    %112 = arith.mulf %103, %75 : vector<8x128xf32>
    %113 = arith.addf %111, %112 : vector<8x128xf32>
    %114 = arith.index_cast %c2_i32 : i32 to index
    %c0_36 = arith.constant 0 : index
    %c0_37 = arith.constant 0 : index
    %115 = vector.load %arg5[%114, %c0_36, %c0_37] : memref<8x8x128xf32, #tpu.memory_space<vmem>>, vector<1x8x128xf32>
    %116 = vector.shape_cast %115 : vector<1x8x128xf32> to vector<8x128xf32>
    %117 = vector.shape_cast %113 : vector<8x128xf32> to vector<1x8x128xf32>
    tpu.vector_store %arg5[%114, %c0_36, %c0_37], %117 {strides = array<i32>} : memref<8x8x128xf32, #tpu.memory_space<vmem>>, vector<1x8x128xf32>,
    %c3_i32 = arith.constant 3 : i32
    %118 = arith.index_cast %c3_i32 : i32 to index
    %c0_38 = arith.constant 0 : index
    %c0_39 = arith.constant 0 : index
    %119 = vector.load %arg1[%118, %c0_38, %c0_39] : memref<8x8x384xf32, #tpu.memory_space<vmem>>, vector<1x8x384xf32>
    %120 = vector.shape_cast %119 : vector<1x8x384xf32> to vector<8x384xf32>
    %c0_40 = arith.constant 0 : index
    %c0_41 = arith.constant 0 : index
    %121 = vector.load %arg3[%c0_40, %c0_41] : memref<128x384xf32, #tpu.memory_space<vmem>>, vector<128x384xf32>
    %cst_42 = arith.constant dense<0.000000e+00> : vector<8x384xf32>
    %122 = tpu.matmul %113, %121, %cst_42 {dimension_numbers = #tpu.dot_dimension_numbers<[1], [0], [0], [1], [0, 0, 1, 1], [], []>} : vector<8x128xf32>, vector<128x384xf32>, vector<8x384xf32> -> vector<8x384xf32>
    %c0_43 = arith.constant 0 : index
    %c0_44 = arith.constant 0 : index
    %123 = vector.load %arg4[%c0_43, %c0_44] : memref<1x384xf32, #tpu.memory_space<vmem>>, vector<1x384xf32>
    %124 = vector.broadcast %123 : vector<1x384xf32> to vector<8x384xf32>
    %125 = arith.addf %122, %124 : vector<8x384xf32>
    %126 = vector.extract_strided_slice %120 {offsets = [0, 0], sizes = [8, 128], strides = [1, 1]} : vector<8x384xf32> to vector<8x128xf32>
    %127 = vector.extract_strided_slice %125 {offsets = [0, 0], sizes = [8, 128], strides = [1, 1]} : vector<8x384xf32> to vector<8x128xf32>
    %128 = arith.addf %126, %127 : vector<8x128xf32>
    %129 = arith.negf %128 : vector<8x128xf32>
    %130 = math.exp %129 : vector<8x128xf32>
    %cst_45 = arith.constant 1.000000e+00 : f32
    %131 = vector.broadcast %cst_45 : f32 to vector<8x128xf32>
    %132 = arith.addf %131, %130 : vector<8x128xf32>
    %133 = arith.divf %131, %132 : vector<8x128xf32>
    %134 = vector.extract_strided_slice %120 {offsets = [0, 128], sizes = [8, 128], strides = [1, 1]} : vector<8x384xf32> to vector<8x128xf32>
    %135 = vector.extract_strided_slice %125 {offsets = [0, 128], sizes = [8, 128], strides = [1, 1]} : vector<8x384xf32> to vector<8x128xf32>
    %136 = arith.addf %134, %135 : vector<8x128xf32>
    %137 = arith.negf %136 : vector<8x128xf32>
    %138 = math.exp %137 : vector<8x128xf32>
    %cst_46 = arith.constant 1.000000e+00 : f32
    %139 = vector.broadcast %cst_46 : f32 to vector<8x128xf32>
    %140 = arith.addf %139, %138 : vector<8x128xf32>
    %141 = arith.divf %139, %140 : vector<8x128xf32>
    %142 = vector.extract_strided_slice %120 {offsets = [0, 256], sizes = [8, 128], strides = [1, 1]} : vector<8x384xf32> to vector<8x128xf32>
    %143 = vector.extract_strided_slice %125 {offsets = [0, 256], sizes = [8, 128], strides = [1, 1]} : vector<8x384xf32> to vector<8x128xf32>
    %144 = arith.mulf %133, %143 : vector<8x128xf32>
    %145 = arith.addf %142, %144 : vector<8x128xf32>
    %146 = math.tanh %145 : vector<8x128xf32>
    %cst_47 = arith.constant 1.000000e+00 : f32
    %147 = vector.broadcast %cst_47 : f32 to vector<8x128xf32>
    %148 = arith.subf %147, %141 : vector<8x128xf32>
    %149 = arith.mulf %148, %146 : vector<8x128xf32>
    %150 = arith.mulf %141, %113 : vector<8x128xf32>
    %151 = arith.addf %149, %150 : vector<8x128xf32>
    %152 = arith.index_cast %c3_i32 : i32 to index
    %c0_48 = arith.constant 0 : index
    %c0_49 = arith.constant 0 : index
    %153 = vector.load %arg5[%152, %c0_48, %c0_49] : memref<8x8x128xf32, #tpu.memory_space<vmem>>, vector<1x8x128xf32>
    %154 = vector.shape_cast %153 : vector<1x8x128xf32> to vector<8x128xf32>
    %155 = vector.shape_cast %151 : vector<8x128xf32> to vector<1x8x128xf32>
    tpu.vector_store %arg5[%152, %c0_48, %c0_49], %155 {strides = array<i32>} : memref<8x8x128xf32, #tpu.memory_space<vmem>>, vector<1x8x128xf32>,
    %c4_i32 = arith.constant 4 : i32
    %156 = arith.index_cast %c4_i32 : i32 to index
    %c0_50 = arith.constant 0 : index
    %c0_51 = arith.constant 0 : index
    %157 = vector.load %arg1[%156, %c0_50, %c0_51] : memref<8x8x384xf32, #tpu.memory_space<vmem>>, vector<1x8x384xf32>
    %158 = vector.shape_cast %157 : vector<1x8x384xf32> to vector<8x384xf32>
    %c0_52 = arith.constant 0 : index
    %c0_53 = arith.constant 0 : index
    %159 = vector.load %arg3[%c0_52, %c0_53] : memref<128x384xf32, #tpu.memory_space<vmem>>, vector<128x384xf32>
    %cst_54 = arith.constant dense<0.000000e+00> : vector<8x384xf32>
    %160 = tpu.matmul %151, %159, %cst_54 {dimension_numbers = #tpu.dot_dimension_numbers<[1], [0], [0], [1], [0, 0, 1, 1], [], []>} : vector<8x128xf32>, vector<128x384xf32>, vector<8x384xf32> -> vector<8x384xf32>
    %c0_55 = arith.constant 0 : index
    %c0_56 = arith.constant 0 : index
    %161 = vector.load %arg4[%c0_55, %c0_56] : memref<1x384xf32, #tpu.memory_space<vmem>>, vector<1x384xf32>
    %162 = vector.broadcast %161 : vector<1x384xf32> to vector<8x384xf32>
    %163 = arith.addf %160, %162 : vector<8x384xf32>
    %164 = vector.extract_strided_slice %158 {offsets = [0, 0], sizes = [8, 128], strides = [1, 1]} : vector<8x384xf32> to vector<8x128xf32>
    %165 = vector.extract_strided_slice %163 {offsets = [0, 0], sizes = [8, 128], strides = [1, 1]} : vector<8x384xf32> to vector<8x128xf32>
    %166 = arith.addf %164, %165 : vector<8x128xf32>
    %167 = arith.negf %166 : vector<8x128xf32>
    %168 = math.exp %167 : vector<8x128xf32>
    %cst_57 = arith.constant 1.000000e+00 : f32
    %169 = vector.broadcast %cst_57 : f32 to vector<8x128xf32>
    %170 = arith.addf %169, %168 : vector<8x128xf32>
    %171 = arith.divf %169, %170 : vector<8x128xf32>
    %172 = vector.extract_strided_slice %158 {offsets = [0, 128], sizes = [8, 128], strides = [1, 1]} : vector<8x384xf32> to vector<8x128xf32>
    %173 = vector.extract_strided_slice %163 {offsets = [0, 128], sizes = [8, 128], strides = [1, 1]} : vector<8x384xf32> to vector<8x128xf32>
    %174 = arith.addf %172, %173 : vector<8x128xf32>
    %175 = arith.negf %174 : vector<8x128xf32>
    %176 = math.exp %175 : vector<8x128xf32>
    %cst_58 = arith.constant 1.000000e+00 : f32
    %177 = vector.broadcast %cst_58 : f32 to vector<8x128xf32>
    %178 = arith.addf %177, %176 : vector<8x128xf32>
    %179 = arith.divf %177, %178 : vector<8x128xf32>
    %180 = vector.extract_strided_slice %158 {offsets = [0, 256], sizes = [8, 128], strides = [1, 1]} : vector<8x384xf32> to vector<8x128xf32>
    %181 = vector.extract_strided_slice %163 {offsets = [0, 256], sizes = [8, 128], strides = [1, 1]} : vector<8x384xf32> to vector<8x128xf32>
    %182 = arith.mulf %171, %181 : vector<8x128xf32>
    %183 = arith.addf %180, %182 : vector<8x128xf32>
    %184 = math.tanh %183 : vector<8x128xf32>
    %cst_59 = arith.constant 1.000000e+00 : f32
    %185 = vector.broadcast %cst_59 : f32 to vector<8x128xf32>
    %186 = arith.subf %185, %179 : vector<8x128xf32>
    %187 = arith.mulf %186, %184 : vector<8x128xf32>
    %188 = arith.mulf %179, %151 : vector<8x128xf32>
    %189 = arith.addf %187, %188 : vector<8x128xf32>
    %190 = arith.index_cast %c4_i32 : i32 to index
    %c0_60 = arith.constant 0 : index
    %c0_61 = arith.constant 0 : index
    %191 = vector.load %arg5[%190, %c0_60, %c0_61] : memref<8x8x128xf32, #tpu.memory_space<vmem>>, vector<1x8x128xf32>
    %192 = vector.shape_cast %191 : vector<1x8x128xf32> to vector<8x128xf32>
    %193 = vector.shape_cast %189 : vector<8x128xf32> to vector<1x8x128xf32>
    tpu.vector_store %arg5[%190, %c0_60, %c0_61], %193 {strides = array<i32>} : memref<8x8x128xf32, #tpu.memory_space<vmem>>, vector<1x8x128xf32>,
    %c5_i32 = arith.constant 5 : i32
    %194 = arith.index_cast %c5_i32 : i32 to index
    %c0_62 = arith.constant 0 : index
    %c0_63 = arith.constant 0 : index
    %195 = vector.load %arg1[%194, %c0_62, %c0_63] : memref<8x8x384xf32, #tpu.memory_space<vmem>>, vector<1x8x384xf32>
    %196 = vector.shape_cast %195 : vector<1x8x384xf32> to vector<8x384xf32>
    %c0_64 = arith.constant 0 : index
    %c0_65 = arith.constant 0 : index
    %197 = vector.load %arg3[%c0_64, %c0_65] : memref<128x384xf32, #tpu.memory_space<vmem>>, vector<128x384xf32>
    %cst_66 = arith.constant dense<0.000000e+00> : vector<8x384xf32>
    %198 = tpu.matmul %189, %197, %cst_66 {dimension_numbers = #tpu.dot_dimension_numbers<[1], [0], [0], [1], [0, 0, 1, 1], [], []>} : vector<8x128xf32>, vector<128x384xf32>, vector<8x384xf32> -> vector<8x384xf32>
    %c0_67 = arith.constant 0 : index
    %c0_68 = arith.constant 0 : index
    %199 = vector.load %arg4[%c0_67, %c0_68] : memref<1x384xf32, #tpu.memory_space<vmem>>, vector<1x384xf32>
    %200 = vector.broadcast %199 : vector<1x384xf32> to vector<8x384xf32>
    %201 = arith.addf %198, %200 : vector<8x384xf32>
    %202 = vector.extract_strided_slice %196 {offsets = [0, 0], sizes = [8, 128], strides = [1, 1]} : vector<8x384xf32> to vector<8x128xf32>
    %203 = vector.extract_strided_slice %201 {offsets = [0, 0], sizes = [8, 128], strides = [1, 1]} : vector<8x384xf32> to vector<8x128xf32>
    %204 = arith.addf %202, %203 : vector<8x128xf32>
    %205 = arith.negf %204 : vector<8x128xf32>
    %206 = math.exp %205 : vector<8x128xf32>
    %cst_69 = arith.constant 1.000000e+00 : f32
    %207 = vector.broadcast %cst_69 : f32 to vector<8x128xf32>
    %208 = arith.addf %207, %206 : vector<8x128xf32>
    %209 = arith.divf %207, %208 : vector<8x128xf32>
    %210 = vector.extract_strided_slice %196 {offsets = [0, 128], sizes = [8, 128], strides = [1, 1]} : vector<8x384xf32> to vector<8x128xf32>
    %211 = vector.extract_strided_slice %201 {offsets = [0, 128], sizes = [8, 128], strides = [1, 1]} : vector<8x384xf32> to vector<8x128xf32>
    %212 = arith.addf %210, %211 : vector<8x128xf32>
    %213 = arith.negf %212 : vector<8x128xf32>
    %214 = math.exp %213 : vector<8x128xf32>
    %cst_70 = arith.constant 1.000000e+00 : f32
    %215 = vector.broadcast %cst_70 : f32 to vector<8x128xf32>
    %216 = arith.addf %215, %214 : vector<8x128xf32>
    %217 = arith.divf %215, %216 : vector<8x128xf32>
    %218 = vector.extract_strided_slice %196 {offsets = [0, 256], sizes = [8, 128], strides = [1, 1]} : vector<8x384xf32> to vector<8x128xf32>
    %219 = vector.extract_strided_slice %201 {offsets = [0, 256], sizes = [8, 128], strides = [1, 1]} : vector<8x384xf32> to vector<8x128xf32>
    %220 = arith.mulf %209, %219 : vector<8x128xf32>
    %221 = arith.addf %218, %220 : vector<8x128xf32>
    %222 = math.tanh %221 : vector<8x128xf32>
    %cst_71 = arith.constant 1.000000e+00 : f32
    %223 = vector.broadcast %cst_71 : f32 to vector<8x128xf32>
    %224 = arith.subf %223, %217 : vector<8x128xf32>
    %225 = arith.mulf %224, %222 : vector<8x128xf32>
    %226 = arith.mulf %217, %189 : vector<8x128xf32>
    %227 = arith.addf %225, %226 : vector<8x128xf32>
    %228 = arith.index_cast %c5_i32 : i32 to index
    %c0_72 = arith.constant 0 : index
    %c0_73 = arith.constant 0 : index
    %229 = vector.load %arg5[%228, %c0_72, %c0_73] : memref<8x8x128xf32, #tpu.memory_space<vmem>>, vector<1x8x128xf32>
    %230 = vector.shape_cast %229 : vector<1x8x128xf32> to vector<8x128xf32>
    %231 = vector.shape_cast %227 : vector<8x128xf32> to vector<1x8x128xf32>
    tpu.vector_store %arg5[%228, %c0_72, %c0_73], %231 {strides = array<i32>} : memref<8x8x128xf32, #tpu.memory_space<vmem>>, vector<1x8x128xf32>,
    %c6_i32 = arith.constant 6 : i32
    %232 = arith.index_cast %c6_i32 : i32 to index
    %c0_74 = arith.constant 0 : index
    %c0_75 = arith.constant 0 : index
    %233 = vector.load %arg1[%232, %c0_74, %c0_75] : memref<8x8x384xf32, #tpu.memory_space<vmem>>, vector<1x8x384xf32>
    %234 = vector.shape_cast %233 : vector<1x8x384xf32> to vector<8x384xf32>
    %c0_76 = arith.constant 0 : index
    %c0_77 = arith.constant 0 : index
    %235 = vector.load %arg3[%c0_76, %c0_77] : memref<128x384xf32, #tpu.memory_space<vmem>>, vector<128x384xf32>
    %cst_78 = arith.constant dense<0.000000e+00> : vector<8x384xf32>
    %236 = tpu.matmul %227, %235, %cst_78 {dimension_numbers = #tpu.dot_dimension_numbers<[1], [0], [0], [1], [0, 0, 1, 1], [], []>} : vector<8x128xf32>, vector<128x384xf32>, vector<8x384xf32> -> vector<8x384xf32>
    %c0_79 = arith.constant 0 : index
    %c0_80 = arith.constant 0 : index
    %237 = vector.load %arg4[%c0_79, %c0_80] : memref<1x384xf32, #tpu.memory_space<vmem>>, vector<1x384xf32>
    %238 = vector.broadcast %237 : vector<1x384xf32> to vector<8x384xf32>
    %239 = arith.addf %236, %238 : vector<8x384xf32>
    %240 = vector.extract_strided_slice %234 {offsets = [0, 0], sizes = [8, 128], strides = [1, 1]} : vector<8x384xf32> to vector<8x128xf32>
    %241 = vector.extract_strided_slice %239 {offsets = [0, 0], sizes = [8, 128], strides = [1, 1]} : vector<8x384xf32> to vector<8x128xf32>
    %242 = arith.addf %240, %241 : vector<8x128xf32>
    %243 = arith.negf %242 : vector<8x128xf32>
    %244 = math.exp %243 : vector<8x128xf32>
    %cst_81 = arith.constant 1.000000e+00 : f32
    %245 = vector.broadcast %cst_81 : f32 to vector<8x128xf32>
    %246 = arith.addf %245, %244 : vector<8x128xf32>
    %247 = arith.divf %245, %246 : vector<8x128xf32>
    %248 = vector.extract_strided_slice %234 {offsets = [0, 128], sizes = [8, 128], strides = [1, 1]} : vector<8x384xf32> to vector<8x128xf32>
    %249 = vector.extract_strided_slice %239 {offsets = [0, 128], sizes = [8, 128], strides = [1, 1]} : vector<8x384xf32> to vector<8x128xf32>
    %250 = arith.addf %248, %249 : vector<8x128xf32>
    %251 = arith.negf %250 : vector<8x128xf32>
    %252 = math.exp %251 : vector<8x128xf32>
    %cst_82 = arith.constant 1.000000e+00 : f32
    %253 = vector.broadcast %cst_82 : f32 to vector<8x128xf32>
    %254 = arith.addf %253, %252 : vector<8x128xf32>
    %255 = arith.divf %253, %254 : vector<8x128xf32>
    %256 = vector.extract_strided_slice %234 {offsets = [0, 256], sizes = [8, 128], strides = [1, 1]} : vector<8x384xf32> to vector<8x128xf32>
    %257 = vector.extract_strided_slice %239 {offsets = [0, 256], sizes = [8, 128], strides = [1, 1]} : vector<8x384xf32> to vector<8x128xf32>
    %258 = arith.mulf %247, %257 : vector<8x128xf32>
    %259 = arith.addf %256, %258 : vector<8x128xf32>
    %260 = math.tanh %259 : vector<8x128xf32>
    %cst_83 = arith.constant 1.000000e+00 : f32
    %261 = vector.broadcast %cst_83 : f32 to vector<8x128xf32>
    %262 = arith.subf %261, %255 : vector<8x128xf32>
    %263 = arith.mulf %262, %260 : vector<8x128xf32>
    %264 = arith.mulf %255, %227 : vector<8x128xf32>
    %265 = arith.addf %263, %264 : vector<8x128xf32>
    %266 = arith.index_cast %c6_i32 : i32 to index
    %c0_84 = arith.constant 0 : index
    %c0_85 = arith.constant 0 : index
    %267 = vector.load %arg5[%266, %c0_84, %c0_85] : memref<8x8x128xf32, #tpu.memory_space<vmem>>, vector<1x8x128xf32>
    %268 = vector.shape_cast %267 : vector<1x8x128xf32> to vector<8x128xf32>
    %269 = vector.shape_cast %265 : vector<8x128xf32> to vector<1x8x128xf32>
    tpu.vector_store %arg5[%266, %c0_84, %c0_85], %269 {strides = array<i32>} : memref<8x8x128xf32, #tpu.memory_space<vmem>>, vector<1x8x128xf32>,
    %c7_i32 = arith.constant 7 : i32
    %270 = arith.index_cast %c7_i32 : i32 to index
    %c0_86 = arith.constant 0 : index
    %c0_87 = arith.constant 0 : index
    %271 = vector.load %arg1[%270, %c0_86, %c0_87] : memref<8x8x384xf32, #tpu.memory_space<vmem>>, vector<1x8x384xf32>
    %272 = vector.shape_cast %271 : vector<1x8x384xf32> to vector<8x384xf32>
    %c0_88 = arith.constant 0 : index
    %c0_89 = arith.constant 0 : index
    %273 = vector.load %arg3[%c0_88, %c0_89] : memref<128x384xf32, #tpu.memory_space<vmem>>, vector<128x384xf32>
    %cst_90 = arith.constant dense<0.000000e+00> : vector<8x384xf32>
    %274 = tpu.matmul %265, %273, %cst_90 {dimension_numbers = #tpu.dot_dimension_numbers<[1], [0], [0], [1], [0, 0, 1, 1], [], []>} : vector<8x128xf32>, vector<128x384xf32>, vector<8x384xf32> -> vector<8x384xf32>
    %c0_91 = arith.constant 0 : index
    %c0_92 = arith.constant 0 : index
    %275 = vector.load %arg4[%c0_91, %c0_92] : memref<1x384xf32, #tpu.memory_space<vmem>>, vector<1x384xf32>
    %276 = vector.broadcast %275 : vector<1x384xf32> to vector<8x384xf32>
    %277 = arith.addf %274, %276 : vector<8x384xf32>
    %278 = vector.extract_strided_slice %272 {offsets = [0, 0], sizes = [8, 128], strides = [1, 1]} : vector<8x384xf32> to vector<8x128xf32>
    %279 = vector.extract_strided_slice %277 {offsets = [0, 0], sizes = [8, 128], strides = [1, 1]} : vector<8x384xf32> to vector<8x128xf32>
    %280 = arith.addf %278, %279 : vector<8x128xf32>
    %281 = arith.negf %280 : vector<8x128xf32>
    %282 = math.exp %281 : vector<8x128xf32>
    %cst_93 = arith.constant 1.000000e+00 : f32
    %283 = vector.broadcast %cst_93 : f32 to vector<8x128xf32>
    %284 = arith.addf %283, %282 : vector<8x128xf32>
    %285 = arith.divf %283, %284 : vector<8x128xf32>
    %286 = vector.extract_strided_slice %272 {offsets = [0, 128], sizes = [8, 128], strides = [1, 1]} : vector<8x384xf32> to vector<8x128xf32>
    %287 = vector.extract_strided_slice %277 {offsets = [0, 128], sizes = [8, 128], strides = [1, 1]} : vector<8x384xf32> to vector<8x128xf32>
    %288 = arith.addf %286, %287 : vector<8x128xf32>
    %289 = arith.negf %288 : vector<8x128xf32>
    %290 = math.exp %289 : vector<8x128xf32>
    %cst_94 = arith.constant 1.000000e+00 : f32
    %291 = vector.broadcast %cst_94 : f32 to vector<8x128xf32>
    %292 = arith.addf %291, %290 : vector<8x128xf32>
    %293 = arith.divf %291, %292 : vector<8x128xf32>
    %294 = vector.extract_strided_slice %272 {offsets = [0, 256], sizes = [8, 128], strides = [1, 1]} : vector<8x384xf32> to vector<8x128xf32>
    %295 = vector.extract_strided_slice %277 {offsets = [0, 256], sizes = [8, 128], strides = [1, 1]} : vector<8x384xf32> to vector<8x128xf32>
    %296 = arith.mulf %285, %295 : vector<8x128xf32>
    %297 = arith.addf %294, %296 : vector<8x128xf32>
    %298 = math.tanh %297 : vector<8x128xf32>
    %cst_95 = arith.constant 1.000000e+00 : f32
    %299 = vector.broadcast %cst_95 : f32 to vector<8x128xf32>
    %300 = arith.subf %299, %293 : vector<8x128xf32>
    %301 = arith.mulf %300, %298 : vector<8x128xf32>
    %302 = arith.mulf %293, %265 : vector<8x128xf32>
    %303 = arith.addf %301, %302 : vector<8x128xf32>
    %304 = arith.index_cast %c7_i32 : i32 to index
    %c0_96 = arith.constant 0 : index
    %c0_97 = arith.constant 0 : index
    %305 = vector.load %arg5[%304, %c0_96, %c0_97] : memref<8x8x128xf32, #tpu.memory_space<vmem>>, vector<1x8x128xf32>
    %306 = vector.shape_cast %305 : vector<1x8x128xf32> to vector<8x128xf32>
    %307 = vector.shape_cast %303 : vector<8x128xf32> to vector<1x8x128xf32>
    tpu.vector_store %arg5[%304, %c0_96, %c0_97], %307 {strides = array<i32>} : memref<8x8x128xf32, #tpu.memory_space<vmem>>, vector<1x8x128xf32>,
    %c8_i32 = arith.constant 8 : i32
    %c0_98 = arith.constant 0 : index
    %c0_99 = arith.constant 0 : index
    %308 = vector.load %arg6[%c0_98, %c0_99] : memref<8x128xf32, #tpu.memory_space<vmem>>, vector<8x128xf32>
    tpu.vector_store %arg6[%c0_98, %c0_99], %303 {strides = array<i32>} : memref<8x128xf32, #tpu.memory_space<vmem>>, vector<8x128xf32>,
    return
  }
  func.func @transform_0(%arg0: i32) -> (i32, i32, i32) {
    %c0_i32 = arith.constant 0 : i32
    %c0_i32_0 = arith.constant 0 : i32
    %c0_i32_1 = arith.constant 0 : i32
    return %arg0, %c0_i32, %c0_i32_0 : i32, i32, i32
  }
  func.func @transform_1(%arg0: i32) -> (i32, i32) {
    %c0_i32 = arith.constant 0 : i32
    %c0_i32_0 = arith.constant 0 : i32
    %c0_i32_1 = arith.constant 0 : i32
    return %c0_i32, %c0_i32_0 : i32, i32
  }
  func.func @transform_2(%arg0: i32) -> (i32, i32) {
    %c0_i32 = arith.constant 0 : i32
    %c0_i32_0 = arith.constant 0 : i32
    %c0_i32_1 = arith.constant 0 : i32
    return %c0_i32, %c0_i32_0 : i32, i32
  }
  func.func @transform_3(%arg0: i32) -> (i32, i32) {
    %c0_i32 = arith.constant 0 : i32
    %c0_i32_0 = arith.constant 0 : i32
    %c0_i32_1 = arith.constant 0 : i32
    return %c0_i32, %c0_i32_0 : i32, i32
  }
  func.func @transform_4(%arg0: i32) -> (i32, i32, i32) {
    %c0_i32 = arith.constant 0 : i32
    %c0_i32_0 = arith.constant 0 : i32
    %c0_i32_1 = arith.constant 0 : i32
    return %arg0, %c0_i32, %c0_i32_0 : i32, i32, i32
  }
}

module attributes {stable_mosaic.version = 11 : i64} {
  func.func @matmul_bias_kernel(%arg0: i32, %arg1: i32, %arg2: memref<48x128xf32, #tpu.memory_space<vmem>>, %arg3: memref<128x256xf32, #tpu.memory_space<vmem>>, %arg4: memref<1x256xf32, #tpu.memory_space<vmem>>, %arg5: memref<48x256xf32, #tpu.memory_space<vmem>>) attributes {dimension_semantics = [#tpu.dimension_semantics<parallel>, #tpu.dimension_semantics<parallel>], iteration_bounds = array<i64: 1, 1>, scalar_prefetch = 0 : i64, scratch_operands = 0 : i64, tpu.core_type = #tpu.core_type<tc>, window_params = [{transform_indices = @transform_0, window_bounds = array<i64: 48, 128>}, {transform_indices = @transform_1, window_bounds = array<i64: 128, 256>}, {transform_indices = @transform_2, window_bounds = array<i64: 1, 256>}, {transform_indices = @transform_3, window_bounds = array<i64: 48, 256>}]} {
    %c0 = arith.constant 0 : index
    %c0_0 = arith.constant 0 : index
    %0 = vector.load %arg2[%c0, %c0_0] : memref<48x128xf32, #tpu.memory_space<vmem>>, vector<48x128xf32>
    %c0_1 = arith.constant 0 : index
    %c0_2 = arith.constant 0 : index
    %1 = vector.load %arg3[%c0_1, %c0_2] : memref<128x256xf32, #tpu.memory_space<vmem>>, vector<128x256xf32>
    %cst = arith.constant dense<0.000000e+00> : vector<48x256xf32>
    %2 = tpu.matmul %0, %1, %cst {dimension_numbers = #tpu.dot_dimension_numbers<[1], [0], [0], [1], [0, 0, 1, 1], [], []>} : vector<48x128xf32>, vector<128x256xf32>, vector<48x256xf32> -> vector<48x256xf32>
    %c0_3 = arith.constant 0 : index
    %c0_4 = arith.constant 0 : index
    %3 = vector.load %arg4[%c0_3, %c0_4] : memref<1x256xf32, #tpu.memory_space<vmem>>, vector<1x256xf32>
    %4 = vector.broadcast %3 : vector<1x256xf32> to vector<48x256xf32>
    %5 = arith.addf %2, %4 : vector<48x256xf32>
    %c0_5 = arith.constant 0 : index
    %c0_6 = arith.constant 0 : index
    %6 = vector.load %arg5[%c0_5, %c0_6] : memref<48x256xf32, #tpu.memory_space<vmem>>, vector<48x256xf32>
    tpu.vector_store %arg5[%c0_5, %c0_6], %5 {strides = array<i32>} : memref<48x256xf32, #tpu.memory_space<vmem>>, vector<48x256xf32>,
    return
  }
  func.func @transform_0(%arg0: i32, %arg1: i32) -> (i32, i32) {
    %c0_i32 = arith.constant 0 : i32
    %c0_i32_0 = arith.constant 0 : i32
    return %arg1, %c0_i32 : i32, i32
  }
  func.func @transform_1(%arg0: i32, %arg1: i32) -> (i32, i32) {
    %c0_i32 = arith.constant 0 : i32
    %c0_i32_0 = arith.constant 0 : i32
    return %c0_i32, %arg0 : i32, i32
  }
  func.func @transform_2(%arg0: i32, %arg1: i32) -> (i32, i32) {
    %c0_i32 = arith.constant 0 : i32
    %c0_i32_0 = arith.constant 0 : i32
    return %c0_i32, %arg0 : i32, i32
  }
  func.func @transform_3(%arg0: i32, %arg1: i32) -> (i32, i32) {
    %c0_i32 = arith.constant 0 : i32
    return %arg1, %arg0 : i32, i32
  }
}

</mosaic_0001>

<bundles_post_ra>
// kernel: seq2seq_forward.6
= control target key start
LH: loop header
LB: loop body
LE: loop exit
PB: predicated region body
PF: predicated region fallthrough
CT: control target
= control target key end

     0   :  { %8 = vsyncpa [#allocation3], 0  ;;  %s954_s0 = inlined_call_operand.vmem [shape: f32[64,128], index: 0, kind: input, shape index: {}]   ;;  %s955_s1 = inlined_call_operand.hbm [shape: f32[128,768], index: 1, kind: input, shape index: {}]   ;;  %s956_s2 = inlined_call_operand.vmem [shape: f32[1,768], index: 2, kind: input, shape index: {}]   ;;  %s957_s3 = inlined_call_operand.vmem [shape: f32[64,768], index: 3, kind: output, shape index: {}]  }
   0x1   :  { %10 = vsyncpa [#allocation3 + $0x1], 0  ;;  %s760_s12 = smov 0   ;;  %s762_s13 = smov 0  }
   0x2   :  { %s764_s14 = smov 0   ;;  %s766_s15 = smov 0  }
   0x3   :  { %s768_s16 = smov 0   ;;  %s770_s17 = smov 0  }
   0x4 LB: > { %s546_s18 = sadd.s32 4294967295, %s735_s17   ;;  %s28_s19 = sadd.s32 1, %s731_s16  ;;  %s735_s17 = sphi %s770_s17, %s16_s17   ;;  %s731_s16 = sphi %s768_s16, %s965_s16   ;;  %s727_s15 = sphi %s766_s15, %s964_s15   ;;  %s723_s14 = sphi %s764_s14, %s963_s14   ;;  %s719_s13 = sphi %s762_s13, %s962_s13   ;;  %s715_s12 = sphi %s760_s12, %s961_s12  }
   0x5   : > { %p30_p0 = scmp.ge.s32.totalorder %s28_s19, 3  ;;  %s61_s20 = sadd.s32 1, %s723_s14 }
   0x6   : > { %p68_p1 = scmp.ne.s32.totalorder %s723_s14, %s719_s13  ;;  %p69_p2 = scmp.eq.s32.totalorder %s735_s17, 0 }
   0x7   : > { %s967_s19 = smov (%p30_p0, %s28_s19), 0  ;;  %p74_p4 = scmp.ne.s32.totalorder %s719_s13, %s715_s12 }
   0x8   : > { %p796_p3 = por %p69_p2, %p68_p1  ;;  %s58_s22 = ssub.s32 %s731_s16, %s967_s19 }
   0x9   : > { %p75_p5 = scmp.eq.s32.totalorder %s546_s18, 0  ;;  %p59_p6 = scmp.eq.s32.totalorder %s58_s22, 0 }
   0xa   : > { %p126_p7 = scmp.eq.s32.totalorder %s546_s18, 2  ;;  %p603_p10 = scmp.lt.s32.totalorder %s735_s17, 3 }
   0xb   : > { %p803_p8 = por %p75_p5, %p74_p4  ;;  %s161_s26 = sand.u32 1, %s723_s14  }
   0xc   : > { %s808_s24 = scalar_select %p59_p6, %s723_s14, %s61_s20  }
   0xd   : > { %p810_p9 = por %p126_p7, %p68_p1  ;;  %s563_s27 = sshll.u32 %s731_s16, 4 }
   0xe   : > { %s551_s28 = sshll.u32 %s161_s26, 8  ;;  %s170_s4 = scalar_lea.hbm %s955_s1, %s563_s27 }
   0xf   : > { %s171_s5 = sshll.u32 %s170_s4, 4  ;;  %s165_s6 = scalar_lea.vmem [#allocation2], %s551_s28  ;;  %s172_s5 = int_to_ptr.hbm [resolvable:$true] %s171_s5 }
  0x10   : > { %s173_s7 = sshll.u32 %s165_s6, 4  ;;  %p600_p11 = pnand %p603_p10, %p796_p3  ;;  %s174_s7 = int_to_ptr.vmem [resolvable:$true] %s173_s7 }
  0x11   : > { %p554_p12 = scmp.ge.s32.totalorder %s735_s17, 1  ;;  %s162_s8 = scalar_lea.sflag [#allocation3], %s161_s26 }
  0x12   : > { %s737_s9 = smov 768   ;;  %s738_s10 = smov 256  }
  0x13   : > { %s739_s11 = smov 16   ;;  %p189_p13 = scmp.lt.s32.totalorder %s735_s17, 4 }
  0x14   : > { %602 = dma.hbm_to_vmem [thread:$0]  (!%p600_p11), %s172_s5, 4096, %s174_s7, %s162_s8, %s737_s9, %s738_s10, %s739_s11  }
  0x15   : > { %p190_p0 = pnand %p554_p12, %p189_p13 }
  0x16   : > { %s825_s12 = sand.u32 (!%p190_p0), 1, %s719_s13  }
  0x17   : > { %193 = sbr.rel (%p190_p0) target bundleno = 229 (0xe5), region = 32  ;;  %s555_s18 = sshll.u32 (!%p190_p0), %s825_s12, 8 }
  0x18   : > { %s196_s20 = scalar_lea.sflag (!%p190_p0), [#allocation3], %s825_s12  ;;  %s829_s22 = scalar_lea.vmem (!%p190_p0), [#allocation2], %s555_s18 }
  0x1c   : > { %710 = dma.done.wait (%p803_p8), %s196_s20, 4096  }
  0x1d   : > { %712 = vsyncadd (%p803_p8), %s196_s20, 4294963200  ;;  %v283_v0 = vld [vmem:[%s829_s22 + $0xf0] sm:$0xff]  ;;  %v284_v1 = vld [vmem:[%s829_s22 + $0xf8] sm:$0xff]  ;;  %s557_s20 = sshll.u32 %s727_s15, 1  ;;  %s556_s26 = sshll.u32 %s825_s12, 7 }
  0x1e   : > { %v281_v2 = vld [vmem:[%s829_s22 + $0xe0] sm:$0xff]  ;;  %565 = vmatpush.msra.mxu2 %v283_v0  ;;  %581 = vmatpush.msra.mxu3 %v284_v1  ;;  %v282_v3 = vld [vmem:[%s829_s22 + $0xe8] sm:$0xff]  ;;  %v279_v4 = vld [vmem:[%s829_s22 + $0xd0] sm:$0xff]  ;;  %p239_p1 = scmp.lt.s32.totalorder %s557_s20, 5  ;;  %s896_s27 = scalar_lea.vmem [#allocation4], %s556_s26 }
  0x1f   : > { %v280_v5 = vld [vmem:[%s829_s22 + $0xd8] sm:$0xff]  ;;  %291 = vmatpush.msra.mxu0 %v283_v0  ;;  %332 = vmatpush.msra.mxu1 %v284_v1  ;;  %v277_v6 = vld [vmem:[%s829_s22 + $0xc0] sm:$0xff]  ;;  %v278_v7 = vld [vmem:[%s829_s22 + $0xc8] sm:$0xff]  ;;  %s564_s12 = sshll.u32 (%p810_p9), %s727_s15, 4 }
  0x20   : > { %566 = vmatpush.msra.mxu2 %v281_v2  ;;  %582 = vmatpush.msra.mxu3 %v282_v3  ;;  %v275_v8 = vld [vmem:[%s829_s22 + $0xb0] sm:$0xff]  ;;  %v276_v9 = vld [vmem:[%s829_s22 + $0xb8] sm:$0xff]  ;;  %v273_v10 = vld [vmem:[%s829_s22 + $0xa0] sm:$0xff]  ;;  %s969_s20 = smov (!%p239_p1, %s557_s20), 5  ;;  %s401_s30 = scalar_lea.vmem (%p810_p9), %s957_s3, %s564_s12 }
  0x21   : > { %292 = vmatpush.msra.mxu0 %v281_v2  ;;  %333 = vmatpush.msra.mxu1 %v282_v3  ;;  %v274_v11 = vld [vmem:[%s829_s22 + $0xa8] sm:$0xff]  ;;  %v271_v12 = vld [vmem:[%s829_s22 + $0x90] sm:$0xff]  ;;  %v272_v13 = vld [vmem:[%s829_s22 + $0x98] sm:$0xff]  ;;  %s241_s23 = scalar_lea.vmem %s956_s2, %s969_s20 }
  0x22   : > { %567 = vmatpush.msra.mxu2 %v279_v4  ;;  %583 = vmatpush.msra.mxu3 %v280_v5  ;;  %v269_v14 = vld [vmem:[%s829_s22 + $0x80] sm:$0xff]  ;;  %v270_v15 = vld [vmem:[%s829_s22 + $0x88] sm:$0xff]  ;;  %v267_v16 = vld [vmem:[%s829_s22 + $0x70] sm:$0xff] }
  0x23   : > { %293 = vmatpush.msra.mxu0 %v279_v4  ;;  %334 = vmatpush.msra.mxu1 %v280_v5  ;;  %v268_v17 = vld [vmem:[%s829_s22 + $0x78] sm:$0xff]  ;;  %v265_v18 = vld [vmem:[%s829_s22 + $0x60] sm:$0xff]  ;;  %v266_v19 = vld [vmem:[%s829_s22 + $0x68] sm:$0xff] }
  0x24   : > { %568 = vmatpush.msra.mxu2 %v277_v6  ;;  %584 = vmatpush.msra.mxu3 %v278_v7  ;;  %v263_v20 = vld [vmem:[%s829_s22 + $0x50] sm:$0xff]  ;;  %v264_v21 = vld [vmem:[%s829_s22 + $0x58] sm:$0xff]  ;;  %v261_v22 = vld [vmem:[%s829_s22 + $0x40] sm:$0xff] }
  0x25   : > { %294 = vmatpush.msra.mxu0 %v277_v6  ;;  %335 = vmatpush.msra.mxu1 %v278_v7  ;;  %v262_v23 = vld [vmem:[%s829_s22 + $0x48] sm:$0xff]  ;;  %v259_v24 = vld [vmem:[%s829_s22 + $0x30] sm:$0xff]  ;;  %v260_v25 = vld [vmem:[%s829_s22 + $0x38] sm:$0xff] }
  0x26   : > { %569 = vmatpush.msra.mxu2 %v275_v8  ;;  %585 = vmatpush.msra.mxu3 %v276_v9  ;;  %v257_v26 = vld [vmem:[%s829_s22 + $0x20] sm:$0xff]  ;;  %v258_v27 = vld [vmem:[%s829_s22 + $0x28] sm:$0xff]  ;;  %v255_v28 = vld [vmem:[%s829_s22 + $0x10] sm:$0xff] }
  0x27   : > { %295 = vmatpush.msra.mxu0 %v275_v8  ;;  %336 = vmatpush.msra.mxu1 %v276_v9  ;;  %v256_v29 = vld [vmem:[%s829_s22 + $0x18] sm:$0xff]  ;;  %v253_v30 = vld [vmem:[%s829_s22] sm:$0xff]  ;;  %v254_v31 = vld [vmem:[%s829_s22 + $0x8] sm:$0xff] }
  0x28   : > { %570 = vmatpush.msra.mxu2 %v273_v10  ;;  %586 = vmatpush.msra.mxu3 %v274_v11  ;;  %v249_v32 = vld [vmem:[%s954_s0 + $0x20] sm:$0xff]  ;;  %v250_v34 = vld [vmem:[%s954_s0 + $0x28] sm:$0xff]  ;;  %v251_v36 = vld [vmem:[%s954_s0 + $0x30] sm:$0xff] }
  0x29   : > { %296 = vmatpush.msra.mxu0 %v273_v10  ;;  %337 = vmatpush.msra.mxu1 %v274_v11  ;;  %v245_v33 = vld [vmem:[%s954_s0] sm:$0xff]  ;;  %v246_v35 = vld [vmem:[%s954_s0 + $0x8] sm:$0xff]  ;;  %v247_v37 = vld [vmem:[%s954_s0 + $0x10] sm:$0xff] }
  0x2a   : > { %571 = vmatpush.msra.mxu2 %v271_v12  ;;  %587 = vmatpush.msra.mxu3 %v272_v13  ;;  %v252_v38 = vld [vmem:[%s954_s0 + $0x38] sm:$0xff]  ;;  %v285_v40 = vld [vmem:[%s241_s23] sm:$0x3] }
  0x2b   : > { %297 = vmatpush.msra.mxu0 %v271_v12  ;;  %338 = vmatpush.msra.mxu1 %v272_v13  ;;  %v248_v39 = vld [vmem:[%s954_s0 + $0x18] sm:$0xff]  ;;  %v287_v41 = vperm.slane %v285_v40, 0  ;;  %v288_v42 = vperm.slane %v285_v40, 1 }
  0x2c   : > { %572 = vmatpush.msra.mxu2 %v269_v14  ;;  %588 = vmatpush.msra.mxu3 %v270_v15 }
  0x2d   : > { %298 = vmatpush.msra.mxu0 %v269_v14  ;;  %339 = vmatpush.msra.mxu1 %v270_v15 }
  0x2e   : > { %573 = vmatpush.msra.mxu2 %v267_v16  ;;  %589 = vmatpush.msra.mxu3 %v268_v17 }
  0x2f   : > { %299 = vmatpush.msra.mxu0 %v267_v16  ;;  %340 = vmatpush.msra.mxu1 %v268_v17 }
  0x30   : > { %574 = vmatpush.msra.mxu2 %v265_v18  ;;  %590 = vmatpush.msra.mxu3 %v266_v19 }
  0x31   : > { %300 = vmatpush.msra.mxu0 %v265_v18  ;;  %341 = vmatpush.msra.mxu1 %v266_v19 }
  0x32   : > { %575 = vmatpush.msra.mxu2 %v263_v20  ;;  %591 = vmatpush.msra.mxu3 %v264_v21 }
  0x33   : > { %301 = vmatpush.msra.mxu0 %v263_v20  ;;  %342 = vmatpush.msra.mxu1 %v264_v21 }
  0x34   : > { %576 = vmatpush.msra.mxu2 %v261_v22  ;;  %592 = vmatpush.msra.mxu3 %v262_v23 }
  0x35   : > { %302 = vmatpush.msra.mxu0 %v261_v22  ;;  %343 = vmatpush.msra.mxu1 %v262_v23 }
  0x36   : > { %577 = vmatpush.msra.mxu2 %v259_v24  ;;  %593 = vmatpush.msra.mxu3 %v260_v25 }
  0x37   : > { %303 = vmatpush.msra.mxu0 %v259_v24  ;;  %344 = vmatpush.msra.mxu1 %v260_v25 }
  0x38   : > { %578 = vmatpush.msra.mxu2 %v257_v26  ;;  %594 = vmatpush.msra.mxu3 %v258_v27 }
  0x39   : > { %304 = vmatpush.msra.mxu0 %v257_v26  ;;  %345 = vmatpush.msra.mxu1 %v258_v27 }
  0x3a   : > { %579 = vmatpush.msra.mxu2 %v255_v28  ;;  %595 = vmatpush.msra.mxu3 %v256_v29 }
  0x3b   : > { %305 = vmatpush.msra.mxu0 %v255_v28  ;;  %346 = vmatpush.msra.mxu1 %v256_v29 }
  0x3c   : > { %580 = vmatpush.msra.mxu2 %v253_v30  ;;  %596 = vmatpush.msra.mxu3 %v254_v31 }
  0x3d   : > { %319 = vmatmul.f32.vlgmr.msra.gmra.mxu2 %v249_v32  ;;  %360 = vmatmul.f32.vlgmr.msra.gmra.mxu3 %v249_v32 }
  0x3e   : > { %306 = vmatpush.msra.mxu0 %v253_v30  ;;  %347 = vmatpush.msra.mxu1 %v254_v31 }
  0x3f   : > { %307 = vmatmul.f32.vlgmr.msra.gmra.mxu0 %v245_v33  ;;  %348 = vmatmul.f32.vlgmr.msra.gmra.mxu1 %v245_v33 }
  0x45   : > { %322 = vmatmul.f32.gmra.mxu2 %v250_v34  ;;  %363 = vmatmul.f32.gmra.mxu3 %v250_v34 }
  0x47   : > { %310 = vmatmul.f32.gmra.mxu0 %v246_v35  ;;  %351 = vmatmul.f32.gmra.mxu1 %v246_v35 }
  0x4d   : > { %325 = vmatmul.f32.gmra.mxu2 %v251_v36  ;;  %366 = vmatmul.f32.gmra.mxu3 %v251_v36 }
  0x4f   : > { %313 = vmatmul.f32.gmra.mxu0 %v247_v37  ;;  %354 = vmatmul.f32.gmra.mxu1 %v247_v37 }
  0x55   : > { %328 = vmatmul.f32.gmra.mxu2 %v252_v38  ;;  %369 = vmatmul.f32.gmra.mxu3 %v252_v38 }
  0x57   : > { %316 = vmatmul.f32.gmra.mxu0 %v248_v39  ;;  %357 = vmatmul.f32.gmra.mxu1 %v248_v39 }
  0xbc   : > { %v308_v43 = vpop.f32.mrf.mxu0  ;;  %v349_v44 = vpop.f32.mrf.mxu1 }
  0xbd   : > { %v309_v45 = vadd.f32 %v308_v43, %v287_v41  ;;  %v350_v46 = vadd.f32 %v349_v44, %v288_v42 }
  0xbf   : > { %373 = vst [vmem:[%s896_s27] sm:$0xff] %v309_v45 }
  0xc0   : > { %v320_v47 = vpop.f32.mrf.mxu2  ;;  %374 = vst [vmem:[%s896_s27 + $0x8] sm:$0xff] %v350_v46  ;;  %v361_v48 = vpop.f32.mrf.mxu3 }
  0xc1   : > { %v321_v49 = vadd.f32 %v320_v47, %v287_v41  ;;  %v362_v50 = vadd.f32 %v361_v48, %v288_v42 }
  0xc3   : > { %381 = vst [vmem:[%s896_s27 + $0x40] sm:$0xff] %v321_v49 }
  0xc4   : > { %382 = vst [vmem:[%s896_s27 + $0x48] sm:$0xff] %v362_v50  ;;  %v311_v51 = vpop.f32.mrf.mxu0  ;;  %v352_v52 = vpop.f32.mrf.mxu1 }
  0xc5   : > { %v312_v53 = vadd.f32 %v311_v51, %v287_v41  ;;  %v353_v54 = vadd.f32 %v352_v52, %v288_v42 }
  0xc6   : > { %v414_v11 = vld [vmem:[%s896_s27] sm:$0xff] (%p810_p9) }
  0xc7   : > { %375 = vst [vmem:[%s896_s27 + $0x10] sm:$0xff] %v312_v53  ;;  %v416_v12 = vld [vmem:[%s896_s27 + $0x8] sm:$0xff] (%p810_p9) }
  0xc8   : > { %v323_v55 = vpop.f32.mrf.mxu2  ;;  %376 = vst [vmem:[%s896_s27 + $0x18] sm:$0xff] %v353_v54  ;;  %v364_v56 = vpop.f32.mrf.mxu3 }
  0xc9   : > { %v324_v57 = vadd.f32 %v323_v55, %v287_v41  ;;  %v365_v58 = vadd.f32 %v364_v56, %v288_v42  ;;  %415 = vst [vmem:[%s401_s30] sm:$0xff] (%p810_p9), %v414_v11 }
  0xca   : > { %417 = vst [vmem:[%s401_s30 + $0x8] sm:$0xff] (%p810_p9), %v416_v12  ;;  %v430_v19 = vld [vmem:[%s896_s27 + $0x40] sm:$0xff] (%p810_p9) }
  0xcb   : > { %383 = vst [vmem:[%s896_s27 + $0x50] sm:$0xff] %v324_v57  ;;  %v432_v20 = vld [vmem:[%s896_s27 + $0x48] sm:$0xff] (%p810_p9) }
  0xcc   : > { %384 = vst [vmem:[%s896_s27 + $0x58] sm:$0xff] %v365_v58  ;;  %v314_v59 = vpop.f32.mrf.mxu0  ;;  %v355_v60 = vpop.f32.mrf.mxu1 }
  0xcd   : > { %v315_v61 = vadd.f32 %v314_v59, %v287_v41  ;;  %v356_v62 = vadd.f32 %v355_v60, %v288_v42  ;;  %431 = vst [vmem:[%s401_s30 + $0xc0] sm:$0xff] (%p810_p9), %v430_v19 }
  0xce   : > { %v418_v13 = vld [vmem:[%s896_s27 + $0x10] sm:$0xff] (%p810_p9)  ;;  %433 = vst [vmem:[%s401_s30 + $0xc8] sm:$0xff] (%p810_p9), %v432_v20 }
  0xcf   : > { %377 = vst [vmem:[%s896_s27 + $0x20] sm:$0xff] %v315_v61  ;;  %v420_v14 = vld [vmem:[%s896_s27 + $0x18] sm:$0xff] (%p810_p9) }
  0xd0   : > { %v326_v63 = vpop.f32.mrf.mxu2  ;;  %378 = vst [vmem:[%s896_s27 + $0x28] sm:$0xff] %v356_v62  ;;  %v367_v0 = vpop.f32.mrf.mxu3 }
  0xd1   : > { %v327_v1 = vadd.f32 %v326_v63, %v287_v41  ;;  %v368_v2 = vadd.f32 %v367_v0, %v288_v42  ;;  %419 = vst [vmem:[%s401_s30 + $0x30] sm:$0xff] (%p810_p9), %v418_v13 }
  0xd2   : > { %421 = vst [vmem:[%s401_s30 + $0x38] sm:$0xff] (%p810_p9), %v420_v14  ;;  %v434_v21 = vld [vmem:[%s896_s27 + $0x50] sm:$0xff] (%p810_p9) }
  0xd3   : > { %385 = vst [vmem:[%s896_s27 + $0x60] sm:$0xff] %v327_v1  ;;  %v436_v22 = vld [vmem:[%s896_s27 + $0x58] sm:$0xff] (%p810_p9) }
  0xd4   : > { %386 = vst [vmem:[%s896_s27 + $0x68] sm:$0xff] %v368_v2  ;;  %v317_v3 = vpop.f32.mrf.mxu0  ;;  %v358_v4 = vpop.f32.mrf.mxu1 }
  0xd5   : > { %v318_v5 = vadd.f32 %v317_v3, %v287_v41  ;;  %v359_v6 = vadd.f32 %v358_v4, %v288_v42  ;;  %435 = vst [vmem:[%s401_s30 + $0xf0] sm:$0xff] (%p810_p9), %v434_v21 }
  0xd6   : > { %v422_v15 = vld [vmem:[%s896_s27 + $0x20] sm:$0xff] (%p810_p9)  ;;  %437 = vst [vmem:[%s401_s30 + $0xf8] sm:$0xff] (%p810_p9), %v436_v22 }
  0xd7   : > { %379 = vst [vmem:[%s896_s27 + $0x30] sm:$0xff] %v318_v5  ;;  %v424_v16 = vld [vmem:[%s896_s27 + $0x28] sm:$0xff] (%p810_p9) }
  0xd8   : > { %v329_v7 = vpop.f32.mrf.mxu2  ;;  %380 = vst [vmem:[%s896_s27 + $0x38] sm:$0xff] %v359_v6  ;;  %v370_v8 = vpop.f32.mrf.mxu3  ;;  %395 = sbr.rel (!%p810_p9) target bundleno = 229 (0xe5), region = 40 }
  0xd9   : > { %v330_v9 = vadd.f32 %v329_v7, %v287_v41  ;;  %v371_v10 = vadd.f32 %v370_v8, %v288_v42  ;;  %423 = vst [vmem:[%s401_s30 + $0x60] sm:$0xff] (%p810_p9), %v422_v15 }
  0xda   : > { %425 = vst [vmem:[%s401_s30 + $0x68] sm:$0xff] (%p810_p9), %v424_v16  ;;  %v438_v23 = vld [vmem:[%s896_s27 + $0x60] sm:$0xff] (%p810_p9) }
  0xdb   : > { %387 = vst [vmem:[%s896_s27 + $0x70] sm:$0xff] %v330_v9  ;;  %v440_v24 = vld [vmem:[%s896_s27 + $0x68] sm:$0xff] (%p810_p9) }
  0xdc   : > { %388 = vst [vmem:[%s896_s27 + $0x78] sm:$0xff] %v371_v10 }
  0xdd   : > { %439 = vst [vmem:[%s401_s30 + $0x120] sm:$0xff] %v438_v23 }
  0xde   : > { %v426_v17 = vld [vmem:[%s896_s27 + $0x30] sm:$0xff]  ;;  %441 = vst [vmem:[%s401_s30 + $0x128] sm:$0xff] %v440_v24 }
  0xdf   : > { %v428_v18 = vld [vmem:[%s896_s27 + $0x38] sm:$0xff]  ;;  %427 = vst [vmem:[%s401_s30 + $0x90] sm:$0xff] %v426_v17 }
  0xe0   : > { %429 = vst [vmem:[%s401_s30 + $0x98] sm:$0xff] %v428_v18 }
  0xe2   : > { %v442_v25 = vld [vmem:[%s896_s27 + $0x70] sm:$0xff] }
  0xe3   : > { %v444_v26 = vld [vmem:[%s896_s27 + $0x78] sm:$0xff]  ;;  %443 = vst [vmem:[%s401_s30 + $0x150] sm:$0xff] %v442_v25 }
  0xe4   : > { %445 = vst [vmem:[%s401_s30 + $0x158] sm:$0xff] %v444_v26 }
  0xe5 PF: > { %s16_s17 = sadd.s32 1, %s735_s17   ;;  %s961_s12 = smov %s719_s13 }
  0xe6   : > { %p13_p2 = scmp.ge.s32.totalorder %s16_s17, 5   ;;  %s962_s13 = smov %s723_s14 }
  0xe7   : > { %s963_s14 = smov %s808_s24  ;;  %s964_s15 = smov %s731_s16 }
  0xe8   : > { %s965_s16 = smov %s967_s19  ;;  %15 = sbr.rel (!%p13_p2) target bundleno = 4 (0x4), region = 101 }
  0xed   :  { %461 = vsyncpa [#allocation3], 1 }
  0xee   :  { %463 = vsyncpa [#allocation3 + $0x1], 1 }

// kernel: seq2seq_forward.7
= control target key start
LH: loop header
LB: loop body
LE: loop exit
PB: predicated region body
PF: predicated region fallthrough
CT: control target
= control target key end

     0   :  { %v1226_v19 = vmov 0   ;;  %v1227_v46 = vmov 0.0   ;;  %s2224_s0 = inlined_call_operand.vmem [shape: s32[8,1], index: 0, kind: input, shape index: {}]   ;;  %s2225_s1 = inlined_call_operand.vmem [shape: f32[8,8,768], index: 1, kind: input, shape index: {}]   ;;  %s2226_s2 = inlined_call_operand.vmem [shape: f32[128,384], index: 2, kind: input, shape index: {}]   ;;  %s2227_s3 = inlined_call_operand.vmem [shape: f32[1,384], index: 3, kind: input, shape index: {}]   ;;  %s2228_s4 = inlined_call_operand.vmem [shape: f32[8,128], index: 4, kind: output, shape index: {}]  }
   0x1   :  { %v1256_v0 = vld [vmem:[%s2226_s2 + $0x168] sm:$0xff]  ;;  %v1261_v1 = vld [vmem:[%s2226_s2 + $0x170] sm:$0xff]  ;;  %v1273_v3 = vld [vmem:[%s2226_s2 + $0x158] sm:$0xff]  ;;  %1094 = vset.pattern.permute.xlu0 %v1226_v19 }
   0x2   :  { %v1266_v2 = vld [vmem:[%s2226_s2 + $0x150] sm:$0xff]  ;;  %152 = vmatpush.msra.mxu0 %v1256_v0  ;;  %172 = vmatpush.msra.mxu1 %v1261_v1  ;;  %v1278_v4 = vld [vmem:[%s2226_s2 + $0x138] sm:$0xff]  ;;  %v1283_v5 = vld [vmem:[%s2226_s2 + $0x140] sm:$0xff] }
   0x3   :  { %266 = vmatpush.msra.mxu3 %v1256_v0  ;;  %v1291_v6 = vld [vmem:[%s2226_s2 + $0x120] sm:$0xff]  ;;  %v1296_v7 = vld [vmem:[%s2226_s2 + $0x128] sm:$0xff]  ;;  %v1309_v9 = vld [vmem:[%s2226_s2 + $0x110] sm:$0xff] }
   0x4   :  { %153 = vmatpush.msra.mxu0 %v1266_v2  ;;  %173 = vmatpush.msra.mxu1 %v1273_v3  ;;  %v1304_v8 = vld [vmem:[%s2226_s2 + $0x108] sm:$0xff]  ;;  %v1317_v10 = vld [vmem:[%s2226_s2 + $0xf0] sm:$0xff]  ;;  %v1322_v11 = vld [vmem:[%s2226_s2 + $0xf8] sm:$0xff] }
   0x5   :  { %267 = vmatpush.msra.mxu3 %v1266_v2  ;;  %v1327_v12 = vld [vmem:[%s2226_s2 + $0x178] sm:$0xff]  ;;  %v1335_v13 = vld [vmem:[%s2226_s2 + $0x160] sm:$0xff]  ;;  %v1354_v16 = vld [vmem:[%s2226_s2 + $0x148] sm:$0xff] }
   0x6   :  { %154 = vmatpush.msra.mxu0 %v1278_v4  ;;  %174 = vmatpush.msra.mxu1 %v1283_v5  ;;  %v1340_v14 = vld [vmem:[%s2226_s2 + $0xd8] sm:$0xff]  ;;  %v1345_v15 = vld [vmem:[%s2226_s2 + $0xe0] sm:$0xff]  ;;  %v1364_v18 = vld [vmem:[%s2226_s2 + $0xc8] sm:$0xff] }
   0x7   :  { %268 = vmatpush.msra.mxu3 %v1278_v4  ;;  %192 = vmatpush.msra.mxu2 %v1327_v12  ;;  %v1359_v17 = vld [vmem:[%s2226_s2 + $0xc0] sm:$0xff]  ;;  %v1372_v20 = vld [vmem:[%s2226_s2 + $0x130] sm:$0xff]  ;;  %v1377_v21 = vld [vmem:[%s2226_s2 + $0xa8] sm:$0xff] }
   0x8   :  { %155 = vmatpush.msra.mxu0 %v1291_v6  ;;  %175 = vmatpush.msra.mxu1 %v1296_v7  ;;  %v1382_v22 = vld [vmem:[%s2226_s2 + $0xb0] sm:$0xff]  ;;  %v1391_v23 = vld [vmem:[%s2226_s2 + $0x118] sm:$0xff]  ;;  %v88_v26 = vld [vmem:[%s2224_s0] sm:$0xff] }
   0x9   :  { %269 = vmatpush.msra.mxu3 %v1291_v6  ;;  %193 = vmatpush.msra.mxu2 %v1335_v13  ;;  %v1396_v24 = vld [vmem:[%s2226_s2 + $0x90] sm:$0xff]  ;;  %v1401_v25 = vld [vmem:[%s2226_s2 + $0x98] sm:$0xff]  ;;  %v1413_v27 = vld [vmem:[%s2226_s2 + $0x100] sm:$0xff] }
   0xa   :  { %156 = vmatpush.msra.mxu0 %v1304_v8  ;;  %176 = vmatpush.msra.mxu1 %v1309_v9  ;;  %v1418_v28 = vld [vmem:[%s2226_s2 + $0x78] sm:$0xff]  ;;  %v1423_v29 = vld [vmem:[%s2226_s2 + $0x80] sm:$0xff]  ;;  %v1431_v30 = vld [vmem:[%s2226_s2 + $0xe8] sm:$0xff] }
   0xb   :  { %270 = vmatpush.msra.mxu3 %v1304_v8  ;;  %194 = vmatpush.msra.mxu2 %v1354_v16  ;;  %v1436_v31 = vld [vmem:[%s2226_s2 + $0x60] sm:$0xff]  ;;  %v1441_v32 = vld [vmem:[%s2226_s2 + $0x68] sm:$0xff]  ;;  %v1450_v33 = vld [vmem:[%s2226_s2 + $0xd0] sm:$0xff] }
   0xc   :  { %157 = vmatpush.msra.mxu0 %v1317_v10  ;;  %177 = vmatpush.msra.mxu1 %v1322_v11  ;;  %v1455_v34 = vld [vmem:[%s2226_s2 + $0x48] sm:$0xff]  ;;  %v1460_v35 = vld [vmem:[%s2226_s2 + $0x50] sm:$0xff]  ;;  %v1469_v36 = vld [vmem:[%s2226_s2 + $0xb8] sm:$0xff] }
   0xd   :  { %271 = vmatpush.msra.mxu3 %v1317_v10  ;;  %195 = vmatpush.msra.mxu2 %v1372_v20  ;;  %v1474_v37 = vld [vmem:[%s2226_s2 + $0x30] sm:$0xff]  ;;  %v1479_v38 = vld [vmem:[%s2226_s2 + $0x38] sm:$0xff]  ;;  %v1488_v39 = vld [vmem:[%s2226_s2 + $0xa0] sm:$0xff] }
   0xe   :  { %158 = vmatpush.msra.mxu0 %v1340_v14  ;;  %178 = vmatpush.msra.mxu1 %v1345_v15  ;;  %2249 = vst [vmem:[#allocation3_spill] sm:$0xff] %v1479_v38  ;;  %v1493_v40 = vld [vmem:[%s2226_s2 + $0x18] sm:$0xff]  ;;  %v1498_v41 = vld [vmem:[%s2226_s2 + $0x20] sm:$0xff]  ;;  %v1507_v42 = vld [vmem:[%s2226_s2 + $0x88] sm:$0xff] }
   0xf   :  { %272 = vmatpush.msra.mxu3 %v1340_v14  ;;  %196 = vmatpush.msra.mxu2 %v1391_v23  ;;  %2250 = vst [vmem:[#allocation4_spill] sm:$0xff] %v1493_v40  ;;  %v1512_v43 = vld [vmem:[%s2226_s2] sm:$0xff]  ;;  %v1517_v44 = vld [vmem:[%s2226_s2 + $0x8] sm:$0xff]  ;;  %v1527_v45 = vld [vmem:[%s2226_s2 + $0x70] sm:$0xff] }
  0x10   :  { %159 = vmatpush.msra.mxu0 %v1359_v17  ;;  %179 = vmatpush.msra.mxu1 %v1364_v18  ;;  %2251 = vst [vmem:[#allocation5_spill] sm:$0xff] %v1498_v41  ;;  %v1535_v47 = vld [vmem:[%s2226_s2 + $0x58] sm:$0xff]  ;;  %v1542_v48 = vld [vmem:[%s2226_s2 + $0x40] sm:$0xff]  ;;  %v1551_v49 = vld [vmem:[%s2226_s2 + $0x28] sm:$0xff] }
  0x11   :  { %90 = vperm.xlu0 %1094, %v88_v26   ;;  %197 = vmatpush.msra.mxu2 %v1413_v27  ;;  %2252 = vst [vmem:[#allocation6_spill] sm:$0xff] %v1512_v43  ;;  %v1560_v50 = vld [vmem:[%s2226_s2 + $0x10] sm:$0xff]  ;;  %v144_v51 = vld [vmem:[%s2227_s3] sm:$0x7]  ;;  %v27_v56 = vld [vmem:[%s2225_s1 + $0x8] sm:$0xff] }
  0x12   :  { %160 = vmatpush.msra.mxu0 %v1377_v21  ;;  %180 = vmatpush.msra.mxu1 %v1382_v22  ;;  %2253 = vst [vmem:[#allocation7_spill] sm:$0xff] %v1517_v44  ;;  %v1675_v52 = vperm.slane %v144_v51, 0  ;;  %v1677_v53 = vperm.slane %v144_v51, 1  ;;  %v25_v54 = vld [vmem:[%s2225_s1] sm:$0xff] }
  0x13   :  { %273 = vmatpush.msra.mxu3 %v1359_v17  ;;  %198 = vmatpush.msra.mxu2 %v1431_v30  ;;  %2254 = vst [vmem:[#allocation8_spill] sm:$0xff] %v1551_v49 }
  0x14   :  { %161 = vmatpush.msra.mxu0 %v1396_v24  ;;  %181 = vmatpush.msra.mxu1 %v1401_v25  ;;  %2255 = vst [vmem:[#allocation9_spill] sm:$0xff] %v1560_v50 }
  0x15   :  { %274 = vmatpush.msra.mxu3 %v1377_v21  ;;  %199 = vmatpush.msra.mxu2 %v1450_v33  ;;  %2256 = vst [vmem:[#allocation10_spill] sm:$0xff] %v1675_v52 }
  0x16   :  { %162 = vmatpush.msra.mxu0 %v1418_v28  ;;  %182 = vmatpush.msra.mxu1 %v1423_v29  ;;  %2257 = vst [vmem:[#allocation11_spill] sm:$0xff] %v1677_v53 }
  0x17   :  { %275 = vmatpush.msra.mxu3 %v1396_v24  ;;  %200 = vmatpush.msra.mxu2 %v1469_v36 }
  0x18   :  { %163 = vmatpush.msra.mxu0 %v1436_v31  ;;  %183 = vmatpush.msra.mxu1 %v1441_v32 }
  0x19   :  { %276 = vmatpush.msra.mxu3 %v1418_v28  ;;  %201 = vmatpush.msra.mxu2 %v1488_v39 }
  0x1a   :  { %164 = vmatpush.msra.mxu0 %v1455_v34  ;;  %184 = vmatpush.msra.mxu1 %v1460_v35 }
  0x1b   :  { %277 = vmatpush.msra.mxu3 %v1436_v31  ;;  %202 = vmatpush.msra.mxu2 %v1507_v42 }
  0x1c   :  { %165 = vmatpush.msra.mxu0 %v1474_v37  ;;  %185 = vmatpush.msra.mxu1 %v1479_v38 }
  0x1d   :  { %278 = vmatpush.msra.mxu3 %v1455_v34  ;;  %203 = vmatpush.msra.mxu2 %v1527_v45 }
  0x1e   :  { %166 = vmatpush.msra.mxu0 %v1493_v40  ;;  %186 = vmatpush.msra.mxu1 %v1498_v41 }
  0x1f   :  { %279 = vmatpush.msra.mxu3 %v1474_v37  ;;  %204 = vmatpush.msra.mxu2 %v1535_v47 }
  0x20   :  { %167 = vmatpush.msra.mxu0 %v1512_v43  ;;  %187 = vmatpush.msra.mxu1 %v1517_v44 }
  0x21   :  { %168 = vmatmul.f32.vlgmr.msra.gmra.mxu0 %v1227_v46  ;;  %188 = vmatmul.f32.vlgmr.msra.gmra.mxu1 %v1227_v46 }
  0x22   :  { %286 = vmatpush.msrb.mxu0 %v1261_v1  ;;  %306 = vmatpush.msrb.mxu1 %v1327_v12 }
  0x23   :  { %280 = vmatpush.msra.mxu3 %v1493_v40  ;;  %205 = vmatpush.msra.mxu2 %v1542_v48 }
  0x24   :  { %287 = vmatpush.msrb.mxu0 %v1273_v3  ;;  %307 = vmatpush.msrb.mxu1 %v1335_v13 }
  0x25   :  { %281 = vmatpush.msra.mxu3 %v1512_v43  ;;  %206 = vmatpush.msra.mxu2 %v1551_v49 }
  0x26   :  { %288 = vmatpush.msrb.mxu0 %v1283_v5  ;;  %308 = vmatpush.msrb.mxu1 %v1354_v16 }
  0x27   :  { %401 = vmatpush.msrb.mxu3 %v1261_v1  ;;  %207 = vmatpush.msra.mxu2 %v1560_v50 }
  0x28   :  { %289 = vmatpush.msrb.mxu0 %v1296_v7  ;;  %309 = vmatpush.msrb.mxu1 %v1372_v20 }
  0x29   :  { %208 = vmatmul.f32.vlgmr.msra.gmra.mxu2 %v1227_v46  ;;  %402 = vmatpush.msrb.mxu3 %v1273_v3 }
  0x2a   :  { %290 = vmatpush.msrb.mxu0 %v1309_v9  ;;  %310 = vmatpush.msrb.mxu1 %v1391_v23 }
  0x2b   :  { %381 = vmatpush.msrb.mxu2 %v1256_v0  ;;  %403 = vmatpush.msrb.mxu3 %v1283_v5 }
  0x2c   :  { %291 = vmatpush.msrb.mxu0 %v1322_v11  ;;  %311 = vmatpush.msrb.mxu1 %v1413_v27 }
  0x2d   :  { %382 = vmatpush.msrb.mxu2 %v1266_v2  ;;  %404 = vmatpush.msrb.mxu3 %v1296_v7 }
  0x2e   :  { %292 = vmatpush.msrb.mxu0 %v1345_v15  ;;  %312 = vmatpush.msrb.mxu1 %v1431_v30 }
  0x2f   :  { %383 = vmatpush.msrb.mxu2 %v1278_v4  ;;  %405 = vmatpush.msrb.mxu3 %v1309_v9 }
  0x30   :  { %293 = vmatpush.msrb.mxu0 %v1364_v18  ;;  %313 = vmatpush.msrb.mxu1 %v1450_v33 }
  0x31   :  { %384 = vmatpush.msrb.mxu2 %v1291_v6  ;;  %406 = vmatpush.msrb.mxu3 %v1322_v11 }
  0x32   :  { %294 = vmatpush.msrb.mxu0 %v1382_v22  ;;  %314 = vmatpush.msrb.mxu1 %v1469_v36 }
  0x33   :  { %385 = vmatpush.msrb.mxu2 %v1304_v8  ;;  %407 = vmatpush.msrb.mxu3 %v1345_v15 }
  0x34   :  { %295 = vmatpush.msrb.mxu0 %v1401_v25  ;;  %315 = vmatpush.msrb.mxu1 %v1488_v39 }
  0x35   :  { %386 = vmatpush.msrb.mxu2 %v1317_v10  ;;  %408 = vmatpush.msrb.mxu3 %v1364_v18 }
  0x36   :  { %296 = vmatpush.msrb.mxu0 %v1423_v29  ;;  %316 = vmatpush.msrb.mxu1 %v1507_v42 }
  0x37   :  { %387 = vmatpush.msrb.mxu2 %v1340_v14  ;;  %409 = vmatpush.msrb.mxu3 %v1382_v22 }
  0x38   :  { %297 = vmatpush.msrb.mxu0 %v1441_v32  ;;  %317 = vmatpush.msrb.mxu1 %v1527_v45 }
  0x39   :  { %388 = vmatpush.msrb.mxu2 %v1359_v17  ;;  %410 = vmatpush.msrb.mxu3 %v1401_v25 }
  0x3a   :  { %298 = vmatpush.msrb.mxu0 %v1460_v35  ;;  %318 = vmatpush.msrb.mxu1 %v1535_v47 }
  0x3b   :  { %389 = vmatpush.msrb.mxu2 %v1377_v21  ;;  %411 = vmatpush.msrb.mxu3 %v1423_v29 }
  0x3c   :  { %299 = vmatpush.msrb.mxu0 %v1479_v38  ;;  %319 = vmatpush.msrb.mxu1 %v1542_v48 }
  0x3d   :  { %390 = vmatpush.msrb.mxu2 %v1396_v24  ;;  %412 = vmatpush.msrb.mxu3 %v1441_v32 }
  0x3e   :  { %300 = vmatpush.msrb.mxu0 %v1498_v41  ;;  %320 = vmatpush.msrb.mxu1 %v1551_v49 }
  0x3f   :  { %391 = vmatpush.msrb.mxu2 %v1418_v28  ;;  %413 = vmatpush.msrb.mxu3 %v1460_v35 }
  0x40   :  { %301 = vmatpush.msrb.mxu0 %v1517_v44  ;;  %321 = vmatpush.msrb.mxu1 %v1560_v50 }
  0x41   :  { %392 = vmatpush.msrb.mxu2 %v1436_v31  ;;  %414 = vmatpush.msrb.mxu3 %v1479_v38 }
  0x42   :  { %421 = vmatpush.msra.mxu0 %v1327_v12  ;;  %496 = vmatpush.msra.mxu1 %v1256_v0 }
  0x43   :  { %393 = vmatpush.msrb.mxu2 %v1455_v34  ;;  %415 = vmatpush.msrb.mxu3 %v1498_v41 }
  0x44   :  { %422 = vmatpush.msra.mxu0 %v1335_v13  ;;  %497 = vmatpush.msra.mxu1 %v1266_v2 }
  0x45   :  { %394 = vmatpush.msrb.mxu2 %v1474_v37  ;;  %416 = vmatpush.msrb.mxu3 %v1517_v44 }
  0x46   :  { %423 = vmatpush.msra.mxu0 %v1354_v16  ;;  %498 = vmatpush.msra.mxu1 %v1278_v4 }
  0x47   :  { %395 = vmatpush.msrb.mxu2 %v1493_v40 }
  0x48   :  { %424 = vmatpush.msra.mxu0 %v1372_v20  ;;  %499 = vmatpush.msra.mxu1 %v1291_v6 }
  0x49   :  { %396 = vmatpush.msrb.mxu2 %v1512_v43 }
  0x4a   :  { %425 = vmatpush.msra.mxu0 %v1391_v23  ;;  %500 = vmatpush.msra.mxu1 %v1304_v8 }
  0x4b   :  { %516 = vmatpush.msra.mxu2 %v1261_v1 }
  0x4c   :  { %426 = vmatpush.msra.mxu0 %v1413_v27  ;;  %501 = vmatpush.msra.mxu1 %v1317_v10 }
  0x4d   :  { %517 = vmatpush.msra.mxu2 %v1273_v3 }
  0x4e   :  { %427 = vmatpush.msra.mxu0 %v1431_v30  ;;  %502 = vmatpush.msra.mxu1 %v1340_v14 }
  0x4f   :  { %518 = vmatpush.msra.mxu2 %v1283_v5 }
  0x50   :  { %428 = vmatpush.msra.mxu0 %v1450_v33  ;;  %503 = vmatpush.msra.mxu1 %v1359_v17 }
  0x51   :  { %519 = vmatpush.msra.mxu2 %v1296_v7 }
  0x52   :  { %429 = vmatpush.msra.mxu0 %v1469_v36  ;;  %504 = vmatpush.msra.mxu1 %v1377_v21 }
  0x53   :  { %520 = vmatpush.msra.mxu2 %v1309_v9 }
  0x54   :  { %430 = vmatpush.msra.mxu0 %v1488_v39  ;;  %505 = vmatpush.msra.mxu1 %v1396_v24 }
  0x55   :  { %521 = vmatpush.msra.mxu2 %v1322_v11 }
  0x56   :  { %431 = vmatpush.msra.mxu0 %v1507_v42  ;;  %506 = vmatpush.msra.mxu1 %v1418_v28 }
  0x57   :  { %522 = vmatpush.msra.mxu2 %v1345_v15 }
  0x58   :  { %432 = vmatpush.msra.mxu0 %v1527_v45  ;;  %507 = vmatpush.msra.mxu1 %v1436_v31 }
  0x59   :  { %523 = vmatpush.msra.mxu2 %v1364_v18 }
  0x5a   :  { %433 = vmatpush.msra.mxu0 %v1535_v47  ;;  %508 = vmatpush.msra.mxu1 %v1455_v34 }
  0x5b   :  { %524 = vmatpush.msra.mxu2 %v1382_v22 }
  0x5c   :  { %434 = vmatpush.msra.mxu0 %v1542_v48  ;;  %509 = vmatpush.msra.mxu1 %v1474_v37 }
  0x5d   :  { %525 = vmatpush.msra.mxu2 %v1401_v25 }
  0x5e   :  { %435 = vmatpush.msra.mxu0 %v1551_v49  ;;  %510 = vmatpush.msra.mxu1 %v1493_v40  ;;  %v1687_v49 = vperm.slane %v144_v51, 2 }
  0x5f   :  { %526 = vmatpush.msra.mxu2 %v1423_v29 }
  0x60   :  { %436 = vmatpush.msra.mxu0 %v1560_v50  ;;  %511 = vmatpush.msra.mxu1 %v1512_v43  ;;  %2258 = vst [vmem:[#allocation12_spill] sm:$0xff] %v1687_v49 }
  0x61   :  { %527 = vmatpush.msra.mxu2 %v1441_v32 }
  0x63   :  { %528 = vmatpush.msra.mxu2 %v1460_v35 }
  0x65   :  { %529 = vmatpush.msra.mxu2 %v1479_v38 }
  0x67   :  { %530 = vmatpush.msra.mxu2 %v1498_v41 }
  0x69   :  { %531 = vmatpush.msra.mxu2 %v1517_v44 }
  0x9e   :  { %v169_v55 = vpop.f32.mrf.mxu0  ;;  %v189_v57 = vpop.f32.mrf.mxu1 }
  0x9f   :  { %v170_v58 = vadd.f32 %v169_v55, %v1675_v52  ;;  %v190_v59 = vadd.f32 %v189_v57, %v1677_v53 }
  0xa1   :  { %v212_v60 = vadd.f32 %v170_v58, %v25_v54  ;;  %v232_v61 = vadd.f32 %v190_v59, %v27_v56 }
  0xa3   :  { %v1076_v62 = vmul.f32 -1.442695, %v212_v60  ;;  %v1077_v63 = vmul.f32 -1.442695, %v232_v61 }
  0xa5   :  { %1095 = vpow2.f32 %v1076_v62 }
  0xa6   :  { %1097 = vpow2.f32 %v1077_v63 }
  0xab   :  { %v1096_v19 = vpop.eup %1095 }
  0xac   :  { %v1098_v26 = vpop.eup %1097  ;;  %v216_v46 = vadd.f32 1.0, %v1096_v19  ;;  %v209_v54 = vpop.f32.mrf.mxu2 }
  0xad   :  { %v236_v44 = vadd.f32 1.0, %v1098_v26  ;;  %v210_v61 = vadd.f32 %v209_v54, %v1687_v49 }
  0xae   :  { %1099 = vrcp.f32 %v216_v46  ;;  %v228_v56 = vand.u32 2147483648, %v216_v46  ;;  %v226_v59 = vand.u32 2147483647, %v216_v46  ;;  %vm222_vm1 = vweird.f32 %v216_v46 }
  0xaf   :  { %1101 = vrcp.f32 %v236_v44  ;;  %vm242_vm4 = vweird.f32 %v236_v44  ;;  %v248_v26 = vand.u32 2147483648, %v236_v44  ;;  %v246_v52 = vand.u32 2147483647, %v236_v44 }
  0xb0   :  { %v229_v63 = vor.u32 1.1754944e-38, %v228_v56  ;;  %vm227_vm3 = vcmp.eq.f32.partialorder %v226_v59, 8.507059e+37  ;;  %v1693_v56 = vpop.permute.xlu0 %90 }
  0xb1   :  { %vm247_vm7 = vcmp.eq.f32.partialorder %v246_v52, 8.507059e+37  ;;  %vm260_vm8 = vcmp.gt.s32.totalorder %v1693_v56, 0  ;;  %v2262_v52 = vld [vmem:[#allocation9_spill] sm:$0xff] }
  0xb4   :  { %v1100_v43 = vpop.eup %1099 }
  0xb5   :  { %v1102_v50 = vpop.eup %1101  ;;  %v218_v41 = vmul.f32 %v1100_v43, %v216_v46  ;;  %vm223_vm0 = vweird.f32 %v1100_v43 }
  0xb6   :  { %v238_v40 = vmul.f32 %v1102_v50, %v236_v44  ;;  %vm224_vm2 = vmor %vm222_vm1, %vm223_vm0  ;;  %vm243_vm5 = vweird.f32 %v1102_v50  ;;  %v2259_v44 = vld [vmem:[#allocation8_spill] sm:$0xff]  ;;  %vm375_vm1 = vcmp.gt.s32.totalorder %v1693_v56, 1 }
  0xb7   :  { %v219_v55 = vsub.f32 1.0, %v218_v41  ;;  %vm244_vm6 = vmor %vm242_vm4, %vm243_vm5 }
  0xb8   :  { %v239_v57 = vsub.f32 1.0, %v238_v40  ;;  %v29_v40 = vld [vmem:[%s2225_s1 + $0x10] sm:$0xff] }
  0xb9   :  { %v220_v58 = vmul.f32 %v1100_v43, %v219_v55 }
  0xba   :  { %v240_v60 = vmul.f32 %v1102_v50, %v239_v57 }
  0xbb   :  { %v221_v62 = vadd.f32 %v1100_v43, %v220_v58  ;;  %v249_v58 = vor.u32 1.1754944e-38, %v248_v26 }
  0xbc   :  { %v241_v51 = vadd.f32 %v1102_v50, %v240_v60 }
  0xbd   :  { %v225_v19 = vsel %vm224_vm2, %v1100_v43, %v221_v62 }
  0xbe   :  { %v230_v41 = vsel %vm227_vm3, %v229_v63, %v225_v19  ;;  %v245_v54 = vsel %vm244_vm6, %v1102_v50, %v241_v51  ;;  %v2261_v50 = vld [vmem:[#allocation5_spill] sm:$0xff]  ;;  %v2264_v19 = vld [vmem:[#allocation7_spill] sm:$0xff] }
  0xbf   :  { %v252_v55 = vmul.f32 %v230_v41, %v210_v61  ;;  %v250_v46 = vsel %vm247_vm7, %v249_v58, %v245_v54  ;;  %v2263_v61 = vld [vmem:[#allocation6_spill] sm:$0xff] }
  0xc0   :  { %v255_v43 = vsub.f32 1.0, %v250_v46  ;;  %v257_v49 = vmul.f32 0.0, %v250_v46  ;;  %v2265_v58 = vld [vmem:[#allocation10_spill] sm:$0xff] }
  0xc1   :  { %v253_v57 = vadd.f32 %v252_v55, %v29_v40  ;;  %v33_v40 = vld [vmem:[%s2225_s1 + $0x38] sm:$0xff] }
  0xc3   :  { %1103 = vtanh.f32 %v253_v57  ;;  %v31_v57 = vld [vmem:[%s2225_s1 + $0x30] sm:$0xff] }
  0xc9   :  { %v1104_v59 = vpop.eup %1103 }
  0xca   :  { %v256_v62 = vmul.f32 %v1104_v59, %v255_v43 }
  0xcc   :  { %v258_v63 = vadd.f32 %v257_v49, %v256_v62  ;;  %v2260_v49 = vld [vmem:[#allocation4_spill] sm:$0xff] }
  0xce   :  { %v1696_v60 = vsel %vm260_vm8, %v258_v63, 0.0  ;;  %1223 = vmatmul.msk.f32.vlgmr.msra.gmra.mxu3 %vm260_vm8, %v258_v63  ;;  %1224 = vmatmul.msk.f32.vlgmr.msrb.gmra.mxu0 %vm260_vm8, %v258_v63 }
  0xcf   :  { %1225 = vmatmul.msk.f32.vlgmr.msrb.gmra.mxu1 %vm260_vm8, %v258_v63  ;;  %536 = vmatpush.msra.mxu3 %v1327_v12 }
  0xd0   :  { %611 = vmatpush.msrb.mxu0 %v1256_v0  ;;  %631 = vmatpush.msrb.mxu1 %v1261_v1 }
  0xd1   :  { %537 = vmatpush.msra.mxu3 %v1335_v13 }
  0xd2   :  { %612 = vmatpush.msrb.mxu0 %v1266_v2  ;;  %632 = vmatpush.msrb.mxu1 %v1273_v3 }
  0xd3   :  { %538 = vmatpush.msra.mxu3 %v1354_v16 }
  0xd4   :  { %613 = vmatpush.msrb.mxu0 %v1278_v4  ;;  %633 = vmatpush.msrb.mxu1 %v1283_v5 }
  0xd5   :  { %539 = vmatpush.msra.mxu3 %v1372_v20 }
  0xd6   :  { %614 = vmatpush.msrb.mxu0 %v1291_v6  ;;  %634 = vmatpush.msrb.mxu1 %v1296_v7 }
  0xd7   :  { %540 = vmatpush.msra.mxu3 %v1391_v23 }
  0xd8   :  { %615 = vmatpush.msrb.mxu0 %v1304_v8  ;;  %635 = vmatpush.msrb.mxu1 %v1309_v9 }
  0xd9   :  { %541 = vmatpush.msra.mxu3 %v1413_v27 }
  0xda   :  { %616 = vmatpush.msrb.mxu0 %v1317_v10  ;;  %636 = vmatpush.msrb.mxu1 %v1322_v11 }
  0xdb   :  { %542 = vmatpush.msra.mxu3 %v1431_v30 }
  0xdc   :  { %617 = vmatpush.msrb.mxu0 %v1340_v14  ;;  %637 = vmatpush.msrb.mxu1 %v1345_v15 }
  0xdd   :  { %543 = vmatpush.msra.mxu3 %v1450_v33 }
  0xde   :  { %618 = vmatpush.msrb.mxu0 %v1359_v17  ;;  %638 = vmatpush.msrb.mxu1 %v1364_v18 }
  0xdf   :  { %544 = vmatpush.msra.mxu3 %v1469_v36 }
  0xe0   :  { %619 = vmatpush.msrb.mxu0 %v1377_v21  ;;  %639 = vmatpush.msrb.mxu1 %v1382_v22 }
  0xe1   :  { %545 = vmatpush.msra.mxu3 %v1488_v39 }
  0xe2   :  { %620 = vmatpush.msrb.mxu0 %v1396_v24  ;;  %640 = vmatpush.msrb.mxu1 %v1401_v25 }
  0xe3   :  { %546 = vmatpush.msra.mxu3 %v1507_v42 }
  0xe4   :  { %621 = vmatpush.msrb.mxu0 %v1418_v28  ;;  %641 = vmatpush.msrb.mxu1 %v1423_v29 }
  0xe5   :  { %547 = vmatpush.msra.mxu3 %v1527_v45 }
  0xe6   :  { %622 = vmatpush.msrb.mxu0 %v1436_v31  ;;  %642 = vmatpush.msrb.mxu1 %v1441_v32 }
  0xe7   :  { %548 = vmatpush.msra.mxu3 %v1535_v47 }
  0xe8   :  { %623 = vmatpush.msrb.mxu0 %v1455_v34  ;;  %643 = vmatpush.msrb.mxu1 %v1460_v35 }
  0xe9   :  { %549 = vmatpush.msra.mxu3 %v1542_v48 }
  0xea   :  { %624 = vmatpush.msrb.mxu0 %v1474_v37  ;;  %644 = vmatpush.msrb.mxu1 %v1479_v38 }
  0xeb   :  { %550 = vmatpush.msra.mxu3 %v2259_v44 }
  0xec   :  { %625 = vmatpush.msrb.mxu0 %v2260_v49  ;;  %645 = vmatpush.msrb.mxu1 %v2261_v50 }
  0xed   :  { %551 = vmatpush.msra.mxu3 %v2262_v52 }
  0xee   :  { %626 = vmatpush.msrb.mxu0 %v2263_v61  ;;  %646 = vmatpush.msrb.mxu1 %v2264_v19 }
 0x14b   :  { %v303_v41 = vpop.f32.mrf.mxu0 }
 0x14c   :  { %v304_v51 = vadd.f32 %v303_v41, %v1677_v53 }
 0x14e   :  { %v346_v26 = vadd.f32 %v304_v51, %v33_v40 }
 0x150   :  { %v1079_v55 = vmul.f32 -1.442695, %v346_v26 }
 0x151   :  { %v283_v54 = vpop.f32.mrf.mxu3 }
 0x152   :  { %1105 = vpow2.f32 %v1079_v55  ;;  %v284_v46 = vadd.f32 %v283_v54, %v2265_v58 }
 0x154   :  { %v326_v43 = vadd.f32 %v284_v46, %v31_v57  ;;  %v323_v57 = vpop.f32.mrf.mxu1 }
 0x156   :  { %v1078_v59 = vmul.f32 -1.442695, %v326_v43 }
 0x158   :  { %v1106_v62 = vpop.eup %1105  ;;  %1107 = vpow2.f32 %v1078_v59  ;;  %v2266_v59 = vld [vmem:[#allocation12_spill] sm:$0xff] }
 0x159   :  { %v350_v63 = vadd.f32 1.0, %v1106_v62  ;;  %v324_v62 = vadd.f32 %v323_v57, %v2266_v59 }
 0x15b   :  { %1109 = vrcp.f32 %v350_v63  ;;  %vm356_vm14 = vweird.f32 %v350_v63 }
 0x15e   :  { %v1108_v19 = vpop.eup %1107 }
 0x15f   :  { %v330_v61 = vadd.f32 1.0, %v1108_v19 }
 0x161   :  { %1111 = vrcp.f32 %v330_v61  ;;  %v1110_v41 = vpop.eup %1109  ;;  %v342_v50 = vand.u32 2147483648, %v330_v61  ;;  %v340_v55 = vand.u32 2147483647, %v330_v61  ;;  %vm336_vm10 = vweird.f32 %v330_v61 }
 0x162   :  { %v352_v40 = vmul.f32 %v1110_v41, %v350_v63  ;;  %vm357_vm13 = vweird.f32 %v1110_v41 }
 0x163   :  { %v343_v43 = vor.u32 1.1754944e-38, %v342_v50  ;;  %vm341_vm12 = vcmp.eq.f32.partialorder %v340_v55, 8.507059e+37  ;;  %vm358_vm15 = vmor %vm356_vm14, %vm357_vm13 }
 0x164   :  { %v353_v53 = vsub.f32 1.0, %v352_v40  ;;  %v35_v40 = vld [vmem:[%s2225_s1 + $0x40] sm:$0xff] }
 0x166   :  { %v354_v54 = vmul.f32 %v1110_v41, %v353_v53  ;;  %v360_v53 = vand.u32 2147483647, %v350_v63 }
 0x167   :  { %v1112_v51 = vpop.eup %1111 }
 0x168   :  { %v332_v26 = vmul.f32 %v1112_v51, %v330_v61  ;;  %vm337_vm9 = vweird.f32 %v1112_v51  ;;  %vm361_vm0 = vcmp.eq.f32.partialorder %v360_v53, 8.507059e+37 }
 0x169   :  { %vm338_vm11 = vmor %vm336_vm10, %vm337_vm9  ;;  %vm490_vm10 = vcmp.gt.s32.totalorder %v1693_v56, 2 }
 0x16a   :  { %v333_v52 = vsub.f32 1.0, %v332_v26  ;;  %v355_v26 = vadd.f32 %v1110_v41, %v354_v54 }
 0x16c   :  { %v334_v49 = vmul.f32 %v1112_v51, %v333_v52  ;;  %v362_v52 = vand.u32 2147483648, %v350_v63  ;;  %v359_v61 = vsel %vm358_vm15, %v1110_v41, %v355_v26 }
 0x16e   :  { %v335_v46 = vadd.f32 %v1112_v51, %v334_v49  ;;  %v363_v38 = vor.u32 1.1754944e-38, %v362_v52 }
 0x170   :  { %v339_v19 = vsel %vm338_vm11, %v1112_v51, %v335_v46  ;;  %v364_v50 = vsel %vm361_vm0, %v363_v38, %v359_v61 }
 0x171   :  { %v344_v58 = vsel %vm341_vm12, %v343_v43, %v339_v19  ;;  %v369_v51 = vsub.f32 1.0, %v364_v50  ;;  %v371_v46 = vmul.f32 %v364_v50, %v1696_v60 }
 0x172   :  { %v366_v44 = vmul.f32 %v344_v58, %v324_v62 }
 0x174   :  { %v367_v49 = vadd.f32 %v366_v44, %v35_v40 }
 0x176   :  { %1113 = vtanh.f32 %v367_v49 }
 0x17c   :  { %v1114_v55 = vpop.eup %1113 }
 0x17d   :  { %v370_v57 = vmul.f32 %v1114_v55, %v369_v51 }
 0x17f   :  { %v372_v43 = vadd.f32 %v371_v46, %v370_v57 }
 0x181   :  { %v1761_v54 = vsel %vm375_vm1, %v372_v43, %v1696_v60  ;;  %v2275_v60 = vld [vmem:[#allocation11_spill] sm:$0xff] }
 0x182   :  { %397 = vmatmul.f32.vlgmr.msrb.gmra.mxu2 %v1761_v54  ;;  %417 = vmatmul.f32.vlgmr.msrb.gmra.mxu3 %v1761_v54 }
 0x183   :  { %437 = vmatmul.f32.vlgmr.msra.gmra.mxu0 %v1761_v54  ;;  %651 = vmatpush.msrb.mxu2 %v1327_v12 }
 0x184   :  { %726 = vmatpush.msrb.mxu3 %v1256_v0  ;;  %746 = vmatpush.msra.mxu0 %v1261_v1  ;;  %v2267_v0 = vld [vmem:[#allocation3_spill] sm:$0xff]  ;;  %v2268_v1 = vld [vmem:[#allocation8_spill] sm:$0xff] }
 0x185   :  { %652 = vmatpush.msrb.mxu2 %v1335_v13 }
 0x186   :  { %727 = vmatpush.msrb.mxu3 %v1266_v2  ;;  %747 = vmatpush.msra.mxu0 %v1273_v3  ;;  %v2269_v2 = vld [vmem:[#allocation4_spill] sm:$0xff]  ;;  %v2270_v3 = vld [vmem:[#allocation5_spill] sm:$0xff] }
 0x187   :  { %653 = vmatpush.msrb.mxu2 %v1354_v16 }
 0x188   :  { %728 = vmatpush.msrb.mxu3 %v1278_v4  ;;  %748 = vmatpush.msra.mxu0 %v1283_v5  ;;  %v2271_v4 = vld [vmem:[#allocation9_spill] sm:$0xff]  ;;  %v2272_v5 = vld [vmem:[#allocation6_spill] sm:$0xff] }
 0x189   :  { %654 = vmatpush.msrb.mxu2 %v1372_v20 }
 0x18a   :  { %729 = vmatpush.msrb.mxu3 %v1291_v6  ;;  %749 = vmatpush.msra.mxu0 %v1296_v7  ;;  %v2273_v6 = vld [vmem:[#allocation7_spill] sm:$0xff] }
 0x18b   :  { %655 = vmatpush.msrb.mxu2 %v1391_v23  ;;  %v37_v7 = vld [vmem:[%s2225_s1 + $0x60] sm:$0xff] }
 0x18c   :  { %730 = vmatpush.msrb.mxu3 %v1304_v8  ;;  %750 = vmatpush.msra.mxu0 %v1309_v9  ;;  %v39_v9 = vld [vmem:[%s2225_s1 + $0x68] sm:$0xff] }
 0x18d   :  { %656 = vmatpush.msrb.mxu2 %v1413_v27 }
 0x18e   :  { %731 = vmatpush.msrb.mxu3 %v1317_v10  ;;  %751 = vmatpush.msra.mxu0 %v1322_v11  ;;  %v2274_v11 = vld [vmem:[#allocation10_spill] sm:$0xff] }
 0x18f   :  { %657 = vmatpush.msrb.mxu2 %v1431_v30 }
 0x190   :  { %732 = vmatpush.msrb.mxu3 %v1340_v14  ;;  %752 = vmatpush.msra.mxu0 %v1345_v15 }
 0x191   :  { %658 = vmatpush.msrb.mxu2 %v1450_v33 }
 0x192   :  { %733 = vmatpush.msrb.mxu3 %v1359_v17  ;;  %753 = vmatpush.msra.mxu0 %v1364_v18 }
 0x193   :  { %659 = vmatpush.msrb.mxu2 %v1469_v36 }
 0x194   :  { %734 = vmatpush.msrb.mxu3 %v1377_v21  ;;  %754 = vmatpush.msra.mxu0 %v1382_v22 }
 0x195   :  { %660 = vmatpush.msrb.mxu2 %v1488_v39 }
 0x196   :  { %735 = vmatpush.msrb.mxu3 %v1396_v24  ;;  %755 = vmatpush.msra.mxu0 %v1401_v25 }
 0x197   :  { %661 = vmatpush.msrb.mxu2 %v1507_v42 }
 0x198   :  { %736 = vmatpush.msrb.mxu3 %v1418_v28  ;;  %756 = vmatpush.msra.mxu0 %v1423_v29 }
 0x199   :  { %662 = vmatpush.msrb.mxu2 %v1527_v45 }
 0x19a   :  { %737 = vmatpush.msrb.mxu3 %v1436_v31  ;;  %757 = vmatpush.msra.mxu0 %v1441_v32 }
 0x19b   :  { %663 = vmatpush.msrb.mxu2 %v1535_v47 }
 0x19c   :  { %738 = vmatpush.msrb.mxu3 %v1455_v34  ;;  %758 = vmatpush.msra.mxu0 %v1460_v35 }
 0x19d   :  { %664 = vmatpush.msrb.mxu2 %v1542_v48 }
 0x19e   :  { %739 = vmatpush.msrb.mxu3 %v1474_v37  ;;  %759 = vmatpush.msra.mxu0 %v2267_v0 }
 0x19f   :  { %665 = vmatpush.msrb.mxu2 %v2268_v1 }
 0x1a0   :  { %740 = vmatpush.msrb.mxu3 %v2269_v2  ;;  %760 = vmatpush.msra.mxu0 %v2270_v3 }
 0x1a1   :  { %666 = vmatpush.msrb.mxu2 %v2271_v4 }
 0x1a2   :  { %741 = vmatpush.msrb.mxu3 %v2272_v5  ;;  %761 = vmatpush.msra.mxu0 %v2273_v6 }
 0x205   :  { %v398_v8 = vpop.f32.mrf.mxu2  ;;  %v418_v10 = vpop.f32.mrf.mxu3 }
 0x206   :  { %v399_v38 = vadd.f32 %v398_v8, %v2274_v11  ;;  %v419_v44 = vadd.f32 %v418_v10, %v2275_v60 }
 0x208   :  { %v441_v58 = vadd.f32 %v399_v38, %v37_v7  ;;  %v461_v63 = vadd.f32 %v419_v44, %v39_v9  ;;  %v438_v7 = vpop.f32.mrf.mxu0 }
 0x209   :  { %v439_v38 = vadd.f32 %v438_v7, %v2266_v59 }
 0x20a   :  { %v1080_v41 = vmul.f32 -1.442695, %v441_v58  ;;  %v1081_v62 = vmul.f32 -1.442695, %v461_v63  ;;  %v41_v63 = vld [vmem:[%s2225_s1 + $0x70] sm:$0xff] }
 0x20c   :  { %1115 = vpow2.f32 %v1080_v41 }
 0x20d   :  { %1117 = vpow2.f32 %v1081_v62 }
 0x212   :  { %v1116_v19 = vpop.eup %1115 }
 0x213   :  { %v1118_v40 = vpop.eup %1117  ;;  %v445_v26 = vadd.f32 1.0, %v1116_v19 }
 0x214   :  { %v465_v52 = vadd.f32 1.0, %v1118_v40 }
 0x215   :  { %1119 = vrcp.f32 %v445_v26  ;;  %v457_v55 = vand.u32 2147483648, %v445_v26  ;;  %v455_v43 = vand.u32 2147483647, %v445_v26  ;;  %vm451_vm3 = vweird.f32 %v445_v26 }
 0x216   :  { %1121 = vrcp.f32 %v465_v52  ;;  %v477_v19 = vand.u32 2147483648, %v465_v52  ;;  %vm471_vm7 = vweird.f32 %v465_v52  ;;  %v475_v40 = vand.u32 2147483647, %v465_v52 }
 0x217   :  { %v458_v10 = vor.u32 1.1754944e-38, %v457_v55  ;;  %vm456_vm5 = vcmp.eq.f32.partialorder %v455_v43, 8.507059e+37 }
 0x218   :  { %vm476_vm9 = vcmp.eq.f32.partialorder %v475_v40, 8.507059e+37 }
 0x21b   :  { %v1120_v53 = vpop.eup %1119 }
 0x21c   :  { %v1122_v49 = vpop.eup %1121  ;;  %v447_v61 = vmul.f32 %v1120_v53, %v445_v26  ;;  %vm452_vm2 = vweird.f32 %v1120_v53 }
 0x21d   :  { %v467_v50 = vmul.f32 %v1122_v49, %v465_v52  ;;  %vm453_vm4 = vmor %vm451_vm3, %vm452_vm2  ;;  %vm472_vm6 = vweird.f32 %v1122_v49  ;;  %v1838_v52 = vld [vmem:[%s2226_s2 + $0x168] sm:$0xff]  ;;  %vm605_vm3 = vcmp.gt.s32.totalorder %v1693_v56, 3 }
 0x21e   :  { %v448_v51 = vsub.f32 1.0, %v447_v61  ;;  %vm473_vm8 = vmor %vm471_vm7, %vm472_vm6 }
 0x21f   :  { %v468_v57 = vsub.f32 1.0, %v467_v50  ;;  %v478_v50 = vor.u32 1.1754944e-38, %v477_v19 }
 0x220   :  { %v449_v46 = vmul.f32 %v1120_v53, %v448_v51 }
 0x221   :  { %v469_v8 = vmul.f32 %v1122_v49, %v468_v57 }
 0x222   :  { %v450_v9 = vadd.f32 %v1120_v53, %v449_v46 }
 0x223   :  { %v470_v41 = vadd.f32 %v1122_v49, %v469_v8  ;;  %v1870_v8 = vld [vmem:[%s2226_s2 + $0x140] sm:$0xff] }
 0x224   :  { %v454_v44 = vsel %vm453_vm4, %v1120_v53, %v450_v9  ;;  %v1883_v9 = vld [vmem:[%s2226_s2 + $0x128] sm:$0xff] }
 0x225   :  { %v459_v58 = vsel %vm456_vm5, %v458_v10, %v454_v44  ;;  %v474_v26 = vsel %vm473_vm8, %v1122_v49, %v470_v41  ;;  %v1857_v49 = vld [vmem:[%s2226_s2 + $0x158] sm:$0xff]  ;;  %v1896_v10 = vld [vmem:[%s2226_s2 + $0x110] sm:$0xff] }
 0x226   :  { %v481_v62 = vmul.f32 %v459_v58, %v439_v38  ;;  %v479_v51 = vsel %vm476_vm9, %v478_v50, %v474_v26  ;;  %v1909_v38 = vld [vmem:[%s2226_s2 + $0xf8] sm:$0xff] }
 0x227   :  { %v484_v53 = vsub.f32 1.0, %v479_v51  ;;  %v486_v46 = vmul.f32 %v479_v51, %v1761_v54 }
 0x228   :  { %v482_v61 = vadd.f32 %v481_v62, %v41_v63 }
 0x22a   :  { %1123 = vtanh.f32 %v482_v61 }
 0x230   :  { %v1124_v55 = vpop.eup %1123 }
 0x231   :  { %v485_v57 = vmul.f32 %v1124_v55, %v484_v53 }
 0x233   :  { %v487_v43 = vadd.f32 %v486_v46, %v485_v57  ;;  %v1965_v46 = vld [vmem:[%s2226_s2 + $0x178] sm:$0xff] }
 0x235   :  { %v1829_v7 = vsel %vm490_vm10, %v487_v43, %v1761_v54  ;;  %v1844_v54 = vld [vmem:[%s2226_s2 + $0x170] sm:$0xff]  ;;  %v1973_v43 = vld [vmem:[%s2226_s2 + $0x160] sm:$0xff] }
 0x236   :  { %512 = vmatmul.f32.vlgmr.msra.gmra.mxu1 %v1829_v7  ;;  %532 = vmatmul.f32.vlgmr.msra.gmra.mxu2 %v1829_v7 }
 0x237   :  { %552 = vmatmul.f32.vlgmr.msra.gmra.mxu3 %v1829_v7  ;;  %766 = vmatpush.msra.mxu1 %v1327_v12  ;;  %v1851_v12 = vld [vmem:[%s2226_s2 + $0x150] sm:$0xff] }
 0x238   :  { %841 = vmatpush.msra.mxu2 %v1838_v52  ;;  %861 = vmatpush.msra.mxu3 %v1844_v54 }
 0x239   :  { %767 = vmatpush.msra.mxu1 %v1335_v13  ;;  %v1864_v13 = vld [vmem:[%s2226_s2 + $0x138] sm:$0xff] }
 0x23a   :  { %842 = vmatpush.msra.mxu2 %v1851_v12  ;;  %862 = vmatpush.msra.mxu3 %v1857_v49 }
 0x23b   :  { %768 = vmatpush.msra.mxu1 %v1354_v16  ;;  %v1877_v16 = vld [vmem:[%s2226_s2 + $0x120] sm:$0xff] }
 0x23c   :  { %843 = vmatpush.msra.mxu2 %v1864_v13  ;;  %863 = vmatpush.msra.mxu3 %v1870_v8 }
 0x23d   :  { %769 = vmatpush.msra.mxu1 %v1372_v20  ;;  %v1890_v20 = vld [vmem:[%s2226_s2 + $0x108] sm:$0xff] }
 0x23e   :  { %844 = vmatpush.msra.mxu2 %v1877_v16  ;;  %864 = vmatpush.msra.mxu3 %v1883_v9 }
 0x23f   :  { %770 = vmatpush.msra.mxu1 %v1391_v23  ;;  %v1903_v23 = vld [vmem:[%s2226_s2 + $0xf0] sm:$0xff] }
 0x240   :  { %845 = vmatpush.msra.mxu2 %v1890_v20  ;;  %865 = vmatpush.msra.mxu3 %v1896_v10 }
 0x241   :  { %771 = vmatpush.msra.mxu1 %v1413_v27 }
 0x242   :  { %846 = vmatpush.msra.mxu2 %v1903_v23  ;;  %866 = vmatpush.msra.mxu3 %v1909_v38 }
 0x243   :  { %772 = vmatpush.msra.mxu1 %v1431_v30 }
 0x244   :  { %847 = vmatpush.msra.mxu2 %v1340_v14  ;;  %867 = vmatpush.msra.mxu3 %v1345_v15  ;;  %v43_v14 = vld [vmem:[%s2225_s1 + $0x90] sm:$0xff] }
 0x245   :  { %773 = vmatpush.msra.mxu1 %v1450_v33 }
 0x246   :  { %848 = vmatpush.msra.mxu2 %v1359_v17  ;;  %868 = vmatpush.msra.mxu3 %v1364_v18 }
 0x247   :  { %774 = vmatpush.msra.mxu1 %v1469_v36 }
 0x248   :  { %849 = vmatpush.msra.mxu2 %v1377_v21  ;;  %869 = vmatpush.msra.mxu3 %v1382_v22  ;;  %v45_v22 = vld [vmem:[%s2225_s1 + $0x98] sm:$0xff] }
 0x249   :  { %775 = vmatpush.msra.mxu1 %v1488_v39 }
 0x24a   :  { %850 = vmatpush.msra.mxu2 %v1396_v24  ;;  %870 = vmatpush.msra.mxu3 %v1401_v25 }
 0x24b   :  { %776 = vmatpush.msra.mxu1 %v1507_v42 }
 0x24c   :  { %851 = vmatpush.msra.mxu2 %v1418_v28  ;;  %871 = vmatpush.msra.mxu3 %v1423_v29 }
 0x24d   :  { %777 = vmatpush.msra.mxu1 %v1527_v45 }
 0x24e   :  { %852 = vmatpush.msra.mxu2 %v1436_v31  ;;  %872 = vmatpush.msra.mxu3 %v1441_v32 }
 0x24f   :  { %778 = vmatpush.msra.mxu1 %v1535_v47 }
 0x250   :  { %853 = vmatpush.msra.mxu2 %v1455_v34  ;;  %873 = vmatpush.msra.mxu3 %v1460_v35 }
 0x251   :  { %779 = vmatpush.msra.mxu1 %v1542_v48 }
 0x252   :  { %854 = vmatpush.msra.mxu2 %v1474_v37  ;;  %874 = vmatpush.msra.mxu3 %v2267_v0 }
 0x253   :  { %780 = vmatpush.msra.mxu1 %v2268_v1 }
 0x254   :  { %855 = vmatpush.msra.mxu2 %v2269_v2  ;;  %875 = vmatpush.msra.mxu3 %v2270_v3 }
 0x255   :  { %781 = vmatpush.msra.mxu1 %v2271_v4  ;;  %v47_v4 = vld [vmem:[%s2225_s1 + $0xa0] sm:$0xff] }
 0x256   :  { %856 = vmatpush.msra.mxu2 %v2272_v5  ;;  %876 = vmatpush.msra.mxu3 %v2273_v6 }
 0x2b3   :  { %v513_v15 = vpop.f32.mrf.mxu1 }
 0x2b4   :  { %v514_v17 = vadd.f32 %v513_v15, %v2274_v11  ;;  %v1203_v15 = vld [vmem:[%s2226_s2 + $0x90] sm:$0xff] }
 0x2b6   :  { %v556_v18 = vadd.f32 %v514_v17, %v43_v14  ;;  %v2049_v14 = vld [vmem:[%s2226_s2 + $0xa0] sm:$0xff]  ;;  %v1204_v17 = vld [vmem:[%s2226_s2 + $0x98] sm:$0xff] }
 0x2b8   :  { %v1082_v21 = vmul.f32 -1.442695, %v556_v18  ;;  %v2061_v18 = vld [vmem:[%s2226_s2 + $0x88] sm:$0xff] }
 0x2b9   :  { %v533_v24 = vpop.f32.mrf.mxu2 }
 0x2ba   :  { %1125 = vpow2.f32 %v1082_v21  ;;  %v534_v25 = vadd.f32 %v533_v24, %v2275_v60  ;;  %v553_v45 = vpop.f32.mrf.mxu3  ;;  %v1206_v21 = vld [vmem:[%s2226_s2 + $0x78] sm:$0xff]  ;;  %v2073_v24 = vld [vmem:[%s2226_s2 + $0x70] sm:$0xff] }
 0x2bb   :  { %v554_v2 = vadd.f32 %v553_v45, %v2266_v59  ;;  %v49_v45 = vld [vmem:[%s2225_s1 + $0xc0] sm:$0xff] }
 0x2bc   :  { %v576_v27 = vadd.f32 %v534_v25, %v45_v22  ;;  %v1207_v22 = vld [vmem:[%s2226_s2 + $0x80] sm:$0xff] }
 0x2bd   :  { %v1209_v25 = vld [vmem:[%s2226_s2 + $0x60] sm:$0xff] }
 0x2be   :  { %v1083_v28 = vmul.f32 -1.442695, %v576_v27  ;;  %v1210_v27 = vld [vmem:[%s2226_s2 + $0x68] sm:$0xff] }
 0x2c0   :  { %v1126_v29 = vpop.eup %1125  ;;  %1127 = vpow2.f32 %v1083_v28  ;;  %v2085_v28 = vld [vmem:[%s2226_s2 + $0x58] sm:$0xff] }
 0x2c1   :  { %v560_v30 = vadd.f32 1.0, %v1126_v29  ;;  %v1212_v29 = vld [vmem:[%s2226_s2 + $0x48] sm:$0xff] }
 0x2c3   :  { %1129 = vrcp.f32 %v560_v30  ;;  %v572_v36 = vand.u32 2147483648, %v560_v30  ;;  %v570_v39 = vand.u32 2147483647, %v560_v30  ;;  %vm566_vm12 = vweird.f32 %v560_v30 }
 0x2c5   :  { %v573_v0 = vor.u32 1.1754944e-38, %v572_v36  ;;  %vm571_vm14 = vcmp.eq.f32.partialorder %v570_v39, 8.507059e+37  ;;  %v1219_v36 = vld [vmem:[%s2226_s2 + $0x20] sm:$0xff] }
 0x2c6   :  { %v1128_v31 = vpop.eup %1127  ;;  %v1221_v39 = vld [vmem:[%s2226_s2] sm:$0xff] }
 0x2c7   :  { %v580_v32 = vadd.f32 1.0, %v1128_v31  ;;  %v2097_v31 = vld [vmem:[%s2226_s2 + $0x40] sm:$0xff] }
 0x2c9   :  { %v1130_v33 = vpop.eup %1129  ;;  %1131 = vrcp.f32 %v580_v32  ;;  %v592_v44 = vand.u32 2147483648, %v580_v32  ;;  %v590_v63 = vand.u32 2147483647, %v580_v32  ;;  %vm586_vm0 = vweird.f32 %v580_v32 }
 0x2ca   :  { %v562_v34 = vmul.f32 %v1130_v33, %v560_v30  ;;  %vm567_vm11 = vweird.f32 %v1130_v33  ;;  %v1213_v30 = vld [vmem:[%s2226_s2 + $0x50] sm:$0xff] }
 0x2cb   :  { %vm568_vm13 = vmor %vm566_vm12, %vm567_vm11  ;;  %v593_v19 = vor.u32 1.1754944e-38, %v592_v44  ;;  %vm591_vm2 = vcmp.eq.f32.partialorder %v590_v63, 8.507059e+37  ;;  %vm720_vm12 = vcmp.gt.s32.totalorder %v1693_v56, 4 }
 0x2cc   :  { %v563_v35 = vsub.f32 1.0, %v562_v34  ;;  %v2109_v34 = vld [vmem:[%s2226_s2 + $0x28] sm:$0xff] }
 0x2ce   :  { %v564_v37 = vmul.f32 %v1130_v33, %v563_v35  ;;  %v1218_v35 = vld [vmem:[%s2226_s2 + $0x18] sm:$0xff] }
 0x2cf   :  { %v1132_v42 = vpop.eup %1131 }
 0x2d0   :  { %v582_v47 = vmul.f32 %v1132_v42, %v580_v32  ;;  %v565_v48 = vadd.f32 %v1130_v33, %v564_v37  ;;  %vm587_vm15 = vweird.f32 %v1132_v42  ;;  %v1215_v32 = vld [vmem:[%s2226_s2 + $0x30] sm:$0xff] }
 0x2d1   :  { %vm588_vm1 = vmor %vm586_vm0, %vm587_vm15  ;;  %v2121_v37 = vld [vmem:[%s2226_s2 + $0x10] sm:$0xff] }
 0x2d2   :  { %v583_v1 = vsub.f32 1.0, %v582_v47  ;;  %v569_v3 = vsel %vm568_vm13, %v1130_v33, %v565_v48  ;;  %v1216_v33 = vld [vmem:[%s2226_s2 + $0x38] sm:$0xff]  ;;  %v51_v48 = vld [vmem:[%s2225_s1 + $0xc8] sm:$0xff] }
 0x2d3   :  { %v574_v5 = vsel %vm571_vm14, %v573_v0, %v569_v3 }
 0x2d4   :  { %v584_v6 = vmul.f32 %v1132_v42, %v583_v1  ;;  %v596_v58 = vmul.f32 %v574_v5, %v554_v2 }
 0x2d6   :  { %v585_v41 = vadd.f32 %v1132_v42, %v584_v6  ;;  %v597_v62 = vadd.f32 %v596_v58, %v47_v4 }
 0x2d8   :  { %v589_v40 = vsel %vm588_vm1, %v1132_v42, %v585_v41  ;;  %1133 = vtanh.f32 %v597_v62  ;;  %v1222_v42 = vld [vmem:[%s2226_s2 + $0x8] sm:$0xff] }
 0x2d9   :  { %v594_v61 = vsel %vm591_vm2, %v593_v19, %v589_v40 }
 0x2da   :  { %v599_v26 = vsub.f32 1.0, %v594_v61  ;;  %v601_v53 = vmul.f32 %v594_v61, %v1829_v7 }
 0x2de   :  { %v1134_v50 = vpop.eup %1133 }
 0x2df   :  { %v600_v51 = vmul.f32 %v1134_v50, %v599_v26 }
 0x2e1   :  { %v602_v55 = vadd.f32 %v601_v53, %v600_v51 }
 0x2e3   :  { %v1957_v57 = vsel %vm605_vm3, %v602_v55, %v1829_v7  ;;  %v1981_v7 = vld [vmem:[%s2226_s2 + $0x148] sm:$0xff] }
 0x2e4   :  { %627 = vmatmul.f32.vlgmr.msrb.gmra.mxu0 %v1957_v57  ;;  %647 = vmatmul.f32.vlgmr.msrb.gmra.mxu1 %v1957_v57 }
 0x2e5   :  { %667 = vmatmul.f32.vlgmr.msrb.gmra.mxu2 %v1957_v57  ;;  %881 = vmatpush.msrb.mxu0 %v1965_v46 }
 0x2e6   :  { %956 = vmatpush.msrb.mxu1 %v1838_v52  ;;  %976 = vmatpush.msrb.mxu2 %v1844_v54  ;;  %v1989_v52 = vld [vmem:[%s2226_s2 + $0x130] sm:$0xff]  ;;  %v1997_v54 = vld [vmem:[%s2226_s2 + $0x118] sm:$0xff] }
 0x2e7   :  { %882 = vmatpush.msrb.mxu0 %v1973_v43 }
 0x2e8   :  { %957 = vmatpush.msrb.mxu1 %v1851_v12  ;;  %977 = vmatpush.msrb.mxu2 %v1857_v49  ;;  %v2005_v12 = vld [vmem:[%s2226_s2 + $0x100] sm:$0xff]  ;;  %v2013_v49 = vld [vmem:[%s2226_s2 + $0xe8] sm:$0xff] }
 0x2e9   :  { %883 = vmatpush.msrb.mxu0 %v1981_v7 }
 0x2ea   :  { %958 = vmatpush.msrb.mxu1 %v1864_v13  ;;  %978 = vmatpush.msrb.mxu2 %v1870_v8  ;;  %v1194_v13 = vld [vmem:[%s2226_s2 + $0xd8] sm:$0xff]  ;;  %v1195_v8 = vld [vmem:[%s2226_s2 + $0xe0] sm:$0xff] }
 0x2eb   :  { %884 = vmatpush.msrb.mxu0 %v1989_v52 }
 0x2ec   :  { %959 = vmatpush.msrb.mxu1 %v1877_v16  ;;  %979 = vmatpush.msrb.mxu2 %v1883_v9  ;;  %v2025_v16 = vld [vmem:[%s2226_s2 + $0xd0] sm:$0xff]  ;;  %v1197_v9 = vld [vmem:[%s2226_s2 + $0xc0] sm:$0xff] }
 0x2ed   :  { %885 = vmatpush.msrb.mxu0 %v1997_v54 }
 0x2ee   :  { %960 = vmatpush.msrb.mxu1 %v1890_v20  ;;  %980 = vmatpush.msrb.mxu2 %v1896_v10  ;;  %v1198_v20 = vld [vmem:[%s2226_s2 + $0xc8] sm:$0xff]  ;;  %v2037_v10 = vld [vmem:[%s2226_s2 + $0xb8] sm:$0xff] }
 0x2ef   :  { %886 = vmatpush.msrb.mxu0 %v2005_v12 }
 0x2f0   :  { %961 = vmatpush.msrb.mxu1 %v1903_v23  ;;  %981 = vmatpush.msrb.mxu2 %v1909_v38  ;;  %v1200_v23 = vld [vmem:[%s2226_s2 + $0xa8] sm:$0xff]  ;;  %v1201_v38 = vld [vmem:[%s2226_s2 + $0xb0] sm:$0xff] }
 0x2f1   :  { %887 = vmatpush.msrb.mxu0 %v2013_v49 }
 0x2f2   :  { %962 = vmatpush.msrb.mxu1 %v1194_v13  ;;  %982 = vmatpush.msrb.mxu2 %v1195_v8 }
 0x2f3   :  { %888 = vmatpush.msrb.mxu0 %v2025_v16 }
 0x2f4   :  { %963 = vmatpush.msrb.mxu1 %v1197_v9  ;;  %983 = vmatpush.msrb.mxu2 %v1198_v20 }
 0x2f5   :  { %889 = vmatpush.msrb.mxu0 %v2037_v10 }
 0x2f6   :  { %964 = vmatpush.msrb.mxu1 %v1200_v23  ;;  %984 = vmatpush.msrb.mxu2 %v1201_v38 }
 0x2f7   :  { %890 = vmatpush.msrb.mxu0 %v2049_v14 }
 0x2f8   :  { %965 = vmatpush.msrb.mxu1 %v1203_v15  ;;  %985 = vmatpush.msrb.mxu2 %v1204_v17  ;;  %v53_v15 = vld [vmem:[%s2225_s1 + $0xd0] sm:$0xff] }
 0x2f9   :  { %891 = vmatpush.msrb.mxu0 %v2061_v18 }
 0x2fa   :  { %966 = vmatpush.msrb.mxu1 %v1206_v21  ;;  %986 = vmatpush.msrb.mxu2 %v1207_v22 }
 0x2fb   :  { %892 = vmatpush.msrb.mxu0 %v2073_v24 }
 0x2fc   :  { %967 = vmatpush.msrb.mxu1 %v1209_v25  ;;  %987 = vmatpush.msrb.mxu2 %v1210_v27 }
 0x2fd   :  { %893 = vmatpush.msrb.mxu0 %v2085_v28 }
 0x2fe   :  { %968 = vmatpush.msrb.mxu1 %v1212_v29  ;;  %988 = vmatpush.msrb.mxu2 %v1213_v30 }
 0x2ff   :  { %894 = vmatpush.msrb.mxu0 %v2097_v31 }
 0x300   :  { %969 = vmatpush.msrb.mxu1 %v1215_v32  ;;  %989 = vmatpush.msrb.mxu2 %v1216_v33 }
 0x301   :  { %895 = vmatpush.msrb.mxu0 %v2109_v34 }
 0x302   :  { %970 = vmatpush.msrb.mxu1 %v1218_v35  ;;  %990 = vmatpush.msrb.mxu2 %v1219_v36 }
 0x303   :  { %896 = vmatpush.msrb.mxu0 %v2121_v37 }
 0x304   :  { %971 = vmatpush.msrb.mxu1 %v1221_v39  ;;  %991 = vmatpush.msrb.mxu2 %v1222_v42 }
 0x361   :  { %v628_v47 = vpop.f32.mrf.mxu0  ;;  %v648_v0 = vpop.f32.mrf.mxu1 }
 0x362   :  { %v629_v1 = vadd.f32 %v628_v47, %v2274_v11  ;;  %v649_v2 = vadd.f32 %v648_v0, %v2275_v60 }
 0x364   :  { %v671_v3 = vadd.f32 %v629_v1, %v49_v45  ;;  %v691_v4 = vadd.f32 %v649_v2, %v51_v48 }
 0x366   :  { %v1084_v5 = vmul.f32 -1.442695, %v671_v3  ;;  %v1085_v6 = vmul.f32 -1.442695, %v691_v4 }
 0x368   :  { %1135 = vpow2.f32 %v1084_v5  ;;  %v668_v8 = vpop.f32.mrf.mxu2 }
 0x369   :  { %1137 = vpow2.f32 %v1085_v6  ;;  %v669_v23 = vadd.f32 %v668_v8, %v2266_v59 }
 0x36e   :  { %v1136_v44 = vpop.eup %1135 }
 0x36f   :  { %v1138_v58 = vpop.eup %1137  ;;  %v675_v63 = vadd.f32 1.0, %v1136_v44 }
 0x370   :  { %v695_v41 = vadd.f32 1.0, %v1138_v58 }
 0x371   :  { %1139 = vrcp.f32 %v675_v63  ;;  %v687_v51 = vand.u32 2147483648, %v675_v63  ;;  %v685_v55 = vand.u32 2147483647, %v675_v63  ;;  %vm681_vm5 = vweird.f32 %v675_v63 }
 0x372   :  { %1141 = vrcp.f32 %v695_v41  ;;  %v707_v22 = vand.u32 2147483648, %v695_v41  ;;  %vm701_vm9 = vweird.f32 %v695_v41  ;;  %v705_v27 = vand.u32 2147483647, %v695_v41 }
 0x373   :  { %v688_v20 = vor.u32 1.1754944e-38, %v687_v51  ;;  %vm686_vm7 = vcmp.eq.f32.partialorder %v685_v55, 8.507059e+37 }
 0x374   :  { %v708_v32 = vor.u32 1.1754944e-38, %v707_v22  ;;  %vm706_vm11 = vcmp.eq.f32.partialorder %v705_v27, 8.507059e+37  ;;  %v63_v22 = vld [vmem:[%s2225_s1 + $0x128] sm:$0xff] }
 0x377   :  { %v1140_v62 = vpop.eup %1139 }
 0x378   :  { %v1142_v19 = vpop.eup %1141  ;;  %v677_v40 = vmul.f32 %v1140_v62, %v675_v63  ;;  %vm682_vm4 = vweird.f32 %v1140_v62 }
 0x379   :  { %v697_v61 = vmul.f32 %v1142_v19, %v695_v41  ;;  %vm683_vm6 = vmor %vm681_vm5, %vm682_vm4  ;;  %vm702_vm8 = vweird.f32 %v1142_v19  ;;  %vm835_vm5 = vcmp.gt.s32.totalorder %v1693_v56, 5 }
 0x37a   :  { %v678_v26 = vsub.f32 1.0, %v677_v40  ;;  %vm703_vm10 = vmor %vm701_vm9, %vm702_vm8 }
 0x37b   :  { %v698_v50 = vsub.f32 1.0, %v697_v61 }
 0x37c   :  { %v679_v53 = vmul.f32 %v1140_v62, %v678_v26 }
 0x37d   :  { %v699_v13 = vmul.f32 %v1142_v19, %v698_v50 }
 0x37e   :  { %v680_v9 = vadd.f32 %v1140_v62, %v679_v53 }
 0x37f   :  { %v700_v21 = vadd.f32 %v1142_v19, %v699_v13 }
 0x380   :  { %v684_v38 = vsel %vm683_vm6, %v1140_v62, %v680_v9 }
 0x381   :  { %v689_v17 = vsel %vm686_vm7, %v688_v20, %v684_v38  ;;  %v704_v30 = vsel %vm703_vm10, %v1142_v19, %v700_v21  ;;  %v59_v19 = vld [vmem:[%s2225_s1 + $0x100] sm:$0xff] }
 0x382   :  { %v711_v25 = vmul.f32 %v689_v17, %v669_v23  ;;  %v709_v33 = vsel %vm706_vm11, %v708_v32, %v704_v30  ;;  %v61_v17 = vld [vmem:[%s2225_s1 + $0x120] sm:$0xff] }
 0x383   :  { %v714_v35 = vsub.f32 1.0, %v709_v33  ;;  %v716_v42 = vmul.f32 %v709_v33, %v1957_v57 }
 0x384   :  { %v712_v29 = vadd.f32 %v711_v25, %v53_v15 }
 0x386   :  { %1143 = vtanh.f32 %v712_v29 }
 0x38c   :  { %v1144_v36 = vpop.eup %1143 }
 0x38d   :  { %v715_v39 = vmul.f32 %v1144_v36, %v714_v35 }
 0x38f   :  { %v717_v45 = vadd.f32 %v716_v42, %v715_v39 }
 0x391   :  { %v2145_v47 = vsel %vm720_vm12, %v717_v45, %v1957_v57  ;;  %v57_v57 = vld [vmem:[%s2225_s1 + $0xf8] sm:$0xff] }
 0x392   :  { %742 = vmatmul.f32.vlgmr.msrb.gmra.mxu3 %v2145_v47  ;;  %762 = vmatmul.f32.vlgmr.msra.gmra.mxu0 %v2145_v47 }
 0x393   :  { %782 = vmatmul.f32.vlgmr.msra.gmra.mxu1 %v2145_v47  ;;  %996 = vmatpush.msrb.mxu3 %v1965_v46 }
 0x395   :  { %997 = vmatpush.msrb.mxu3 %v1973_v43 }
 0x397   :  { %998 = vmatpush.msrb.mxu3 %v1981_v7 }
 0x399   :  { %999 = vmatpush.msrb.mxu3 %v1989_v52 }
 0x39b   :  { %1000 = vmatpush.msrb.mxu3 %v1997_v54  ;;  %v55_v54 = vld [vmem:[%s2225_s1 + $0xf0] sm:$0xff] }
 0x39d   :  { %1001 = vmatpush.msrb.mxu3 %v2005_v12 }
 0x39f   :  { %1002 = vmatpush.msrb.mxu3 %v2013_v49 }
 0x3a1   :  { %1003 = vmatpush.msrb.mxu3 %v2025_v16 }
 0x3a3   :  { %1004 = vmatpush.msrb.mxu3 %v2037_v10 }
 0x3a5   :  { %1005 = vmatpush.msrb.mxu3 %v2049_v14 }
 0x3a7   :  { %1006 = vmatpush.msrb.mxu3 %v2061_v18 }
 0x3a9   :  { %1007 = vmatpush.msrb.mxu3 %v2073_v24 }
 0x3ab   :  { %1008 = vmatpush.msrb.mxu3 %v2085_v28 }
 0x3ad   :  { %1009 = vmatpush.msrb.mxu3 %v2097_v31 }
 0x3af   :  { %1010 = vmatpush.msrb.mxu3 %v2109_v34 }
 0x3b1   :  { %1011 = vmatpush.msrb.mxu3 %v2121_v37 }
 0x40f   :  { %v763_v46 = vpop.f32.mrf.mxu0 }
 0x410   :  { %v764_v43 = vadd.f32 %v763_v46, %v2275_v60  ;;  %v783_v6 = vpop.f32.mrf.mxu1 }
 0x411   :  { %v784_v63 = vadd.f32 %v783_v6, %v2266_v59 }
 0x412   :  { %v806_v7 = vadd.f32 %v764_v43, %v57_v57 }
 0x414   :  { %v1087_v52 = vmul.f32 -1.442695, %v806_v7 }
 0x415   :  { %v743_v12 = vpop.f32.mrf.mxu3 }
 0x416   :  { %1145 = vpow2.f32 %v1087_v52  ;;  %v744_v49 = vadd.f32 %v743_v12, %v2274_v11 }
 0x418   :  { %v786_v16 = vadd.f32 %v744_v49, %v55_v54 }
 0x41a   :  { %v1086_v10 = vmul.f32 -1.442695, %v786_v16 }
 0x41c   :  { %v1146_v14 = vpop.eup %1145  ;;  %1147 = vpow2.f32 %v1086_v10 }
 0x41d   :  { %v810_v18 = vadd.f32 1.0, %v1146_v14 }
 0x41f   :  { %1149 = vrcp.f32 %v810_v18  ;;  %v822_v61 = vand.u32 2147483648, %v810_v18  ;;  %vm816_vm2 = vweird.f32 %v810_v18  ;;  %v820_v50 = vand.u32 2147483647, %v810_v18 }
 0x421   :  { %v823_v55 = vor.u32 1.1754944e-38, %v822_v61  ;;  %vm821_vm4 = vcmp.eq.f32.partialorder %v820_v50, 8.507059e+37 }
 0x422   :  { %v1148_v24 = vpop.eup %1147 }
 0x423   :  { %v790_v28 = vadd.f32 1.0, %v1148_v24 }
 0x425   :  { %1151 = vrcp.f32 %v790_v28  ;;  %v1150_v31 = vpop.eup %1149  ;;  %v802_v2 = vand.u32 2147483648, %v790_v28  ;;  %v800_v4 = vand.u32 2147483647, %v790_v28  ;;  %vm796_vm14 = vweird.f32 %v790_v28 }
 0x426   :  { %v812_v34 = vmul.f32 %v1150_v31, %v810_v18  ;;  %vm817_vm1 = vweird.f32 %v1150_v31 }
 0x427   :  { %v803_v58 = vor.u32 1.1754944e-38, %v802_v2  ;;  %vm801_vm0 = vcmp.eq.f32.partialorder %v800_v4, 8.507059e+37  ;;  %vm818_vm3 = vmor %vm816_vm2, %vm817_vm1 }
 0x428   :  { %v813_v0 = vsub.f32 1.0, %v812_v34  ;;  %v65_v34 = vld [vmem:[%s2225_s1 + $0x130] sm:$0xff] }
 0x42a   :  { %v814_v5 = vmul.f32 %v1150_v31, %v813_v0 }
 0x42b   :  { %v1152_v37 = vpop.eup %1151 }
 0x42c   :  { %v792_v48 = vmul.f32 %v1152_v37, %v790_v28  ;;  %vm797_vm13 = vweird.f32 %v1152_v37  ;;  %v815_v40 = vadd.f32 %v1150_v31, %v814_v5 }
 0x42d   :  { %vm798_vm15 = vmor %vm796_vm14, %vm797_vm13  ;;  %vm950_vm14 = vcmp.gt.s32.totalorder %v1693_v56, 6 }
 0x42e   :  { %v793_v1 = vsub.f32 1.0, %v792_v48  ;;  %v819_v53 = vsel %vm818_vm3, %v1150_v31, %v815_v40 }
 0x42f   :  { %v824_v13 = vsel %vm821_vm4, %v823_v55, %v819_v53 }
 0x430   :  { %v794_v3 = vmul.f32 %v1152_v37, %v793_v1  ;;  %v829_v8 = vsub.f32 1.0, %v824_v13  ;;  %v831_v23 = vmul.f32 %v824_v13, %v2145_v47 }
 0x432   :  { %v795_v44 = vadd.f32 %v1152_v37, %v794_v3 }
 0x434   :  { %v799_v41 = vsel %vm798_vm15, %v1152_v37, %v795_v44 }
 0x435   :  { %v804_v62 = vsel %vm801_vm0, %v803_v58, %v799_v41 }
 0x436   :  { %v826_v26 = vmul.f32 %v804_v62, %v784_v63 }
 0x438   :  { %v827_v51 = vadd.f32 %v826_v26, %v59_v19  ;;  %v67_v19 = vld [vmem:[%s2225_s1 + $0x150] sm:$0xff] }
 0x43a   :  { %1153 = vtanh.f32 %v827_v51  ;;  %v69_v51 = vld [vmem:[%s2225_s1 + $0x158] sm:$0xff] }
 0x440   :  { %v1154_v9 = vpop.eup %1153 }
 0x441   :  { %v830_v20 = vmul.f32 %v1154_v9, %v829_v8 }
 0x443   :  { %v832_v38 = vadd.f32 %v831_v23, %v830_v20 }
 0x445   :  { %v2181_v15 = vsel %vm835_vm5, %v832_v38, %v2145_v47 }
 0x446   :  { %857 = vmatmul.f32.vlgmr.msra.gmra.mxu2 %v2181_v15  ;;  %877 = vmatmul.f32.vlgmr.msra.gmra.mxu3 %v2181_v15 }
 0x447   :  { %897 = vmatmul.f32.vlgmr.msrb.gmra.mxu0 %v2181_v15 }
 0x4c4   :  { %v898_v16 = vpop.f32.mrf.mxu0 }
 0x4c5   :  { %v899_v24 = vadd.f32 %v898_v16, %v2266_v59 }
 0x4c9   :  { %v858_v21 = vpop.f32.mrf.mxu2  ;;  %v878_v25 = vpop.f32.mrf.mxu3 }
 0x4ca   :  { %v859_v27 = vadd.f32 %v858_v21, %v2274_v11  ;;  %v879_v29 = vadd.f32 %v878_v25, %v2275_v60 }
 0x4cc   :  { %v901_v30 = vadd.f32 %v859_v27, %v61_v17  ;;  %v921_v32 = vadd.f32 %v879_v29, %v63_v22 }
 0x4ce   :  { %v1088_v33 = vmul.f32 -1.442695, %v901_v30  ;;  %v1089_v35 = vmul.f32 -1.442695, %v921_v32 }
 0x4d0   :  { %1155 = vpow2.f32 %v1088_v33 }
 0x4d1   :  { %1157 = vpow2.f32 %v1089_v35 }
 0x4d6   :  { %v1156_v36 = vpop.eup %1155 }
 0x4d7   :  { %v1158_v39 = vpop.eup %1157  ;;  %v905_v42 = vadd.f32 1.0, %v1156_v36 }
 0x4d8   :  { %v925_v45 = vadd.f32 1.0, %v1158_v39  ;;  %v71_v39 = vld [vmem:[%s2225_s1 + $0x160] sm:$0xff] }
 0x4d9   :  { %1159 = vrcp.f32 %v905_v42  ;;  %v917_v52 = vand.u32 2147483648, %v905_v42  ;;  %v915_v49 = vand.u32 2147483647, %v905_v42  ;;  %vm911_vm7 = vweird.f32 %v905_v42 }
 0x4da   :  { %1161 = vrcp.f32 %v925_v45  ;;  %v937_v0 = vand.u32 2147483648, %v925_v45  ;;  %vm931_vm11 = vweird.f32 %v925_v45  ;;  %v935_v1 = vand.u32 2147483647, %v925_v45 }
 0x4db   :  { %v918_v18 = vor.u32 1.1754944e-38, %v917_v52  ;;  %vm916_vm9 = vcmp.eq.f32.partialorder %v915_v49, 8.507059e+37 }
 0x4dc   :  { %v938_v4 = vor.u32 1.1754944e-38, %v937_v0  ;;  %vm936_vm13 = vcmp.eq.f32.partialorder %v935_v1, 8.507059e+37 }
 0x4df   :  { %v1160_v47 = vpop.eup %1159 }
 0x4e0   :  { %v1162_v57 = vpop.eup %1161  ;;  %v907_v46 = vmul.f32 %v1160_v47, %v905_v42  ;;  %vm912_vm6 = vweird.f32 %v1160_v47 }
 0x4e1   :  { %v927_v43 = vmul.f32 %v1162_v57, %v925_v45  ;;  %vm913_vm8 = vmor %vm911_vm7, %vm912_vm6  ;;  %vm932_vm10 = vweird.f32 %v1162_v57  ;;  %vm1065_vm7 = vcmp.gt.s32.totalorder %v1693_v56, 7 }
 0x4e2   :  { %v908_v7 = vsub.f32 1.0, %v907_v46  ;;  %vm933_vm12 = vmor %vm931_vm11, %vm932_vm10 }
 0x4e3   :  { %v928_v54 = vsub.f32 1.0, %v927_v43 }
 0x4e4   :  { %v909_v12 = vmul.f32 %v1160_v47, %v908_v7 }
 0x4e5   :  { %v929_v10 = vmul.f32 %v1162_v57, %v928_v54 }
 0x4e6   :  { %v910_v14 = vadd.f32 %v1160_v47, %v909_v12 }
 0x4e7   :  { %v930_v37 = vadd.f32 %v1162_v57, %v929_v10 }
 0x4e8   :  { %v914_v28 = vsel %vm913_vm8, %v1160_v47, %v910_v14 }
 0x4e9   :  { %v919_v31 = vsel %vm916_vm9, %v918_v18, %v914_v28  ;;  %v934_v3 = vsel %vm933_vm12, %v1162_v57, %v930_v37 }
 0x4ea   :  { %v941_v48 = vmul.f32 %v919_v31, %v899_v24  ;;  %v939_v5 = vsel %vm936_vm13, %v938_v4, %v934_v3 }
 0x4eb   :  { %v944_v6 = vsub.f32 1.0, %v939_v5  ;;  %v946_v63 = vmul.f32 %v939_v5, %v2181_v15 }
 0x4ec   :  { %v942_v2 = vadd.f32 %v941_v48, %v65_v34 }
 0x4ee   :  { %1163 = vtanh.f32 %v942_v2 }
 0x4f4   :  { %v1164_v44 = vpop.eup %1163 }
 0x4f5   :  { %v945_v58 = vmul.f32 %v1164_v44, %v944_v6 }
 0x4f7   :  { %v947_v41 = vadd.f32 %v946_v63, %v945_v58 }
 0x4f9   :  { %v2201_v62 = vsel %vm950_vm14, %v947_v41, %v2181_v15 }
 0x4fa   :  { %972 = vmatmul.f32.vlgmr.msrb.gmra.mxu1 %v2201_v62  ;;  %992 = vmatmul.f32.vlgmr.msrb.gmra.mxu2 %v2201_v62 }
 0x4fb   :  { %1012 = vmatmul.f32.vlgmr.msrb.gmra.mxu3 %v2201_v62 }
 0x577   :  { %v973_v40 = vpop.f32.mrf.mxu1 }
 0x578   :  { %v974_v61 = vadd.f32 %v973_v40, %v2274_v11 }
 0x57a   :  { %v1016_v26 = vadd.f32 %v974_v61, %v67_v19 }
 0x57c   :  { %v1090_v50 = vmul.f32 -1.442695, %v1016_v26 }
 0x57d   :  { %v993_v53 = vpop.f32.mrf.mxu2 }
 0x57e   :  { %1165 = vpow2.f32 %v1090_v50  ;;  %v994_v55 = vadd.f32 %v993_v53, %v2275_v60  ;;  %v1013_v29 = vpop.f32.mrf.mxu3 }
 0x57f   :  { %v1014_v35 = vadd.f32 %v1013_v29, %v2266_v59 }
 0x580   :  { %v1036_v13 = vadd.f32 %v994_v55, %v69_v51 }
 0x582   :  { %v1091_v8 = vmul.f32 -1.442695, %v1036_v13 }
 0x584   :  { %v1166_v9 = vpop.eup %1165  ;;  %1167 = vpow2.f32 %v1091_v8 }
 0x585   :  { %v1020_v20 = vadd.f32 1.0, %v1166_v9 }
 0x587   :  { %1169 = vrcp.f32 %v1020_v20  ;;  %v1032_v21 = vand.u32 2147483648, %v1020_v20  ;;  %v1030_v25 = vand.u32 2147483647, %v1020_v20  ;;  %vm1026_vm0 = vweird.f32 %v1020_v20 }
 0x589   :  { %v1033_v32 = vor.u32 1.1754944e-38, %v1032_v21  ;;  %vm1031_vm2 = vcmp.eq.f32.partialorder %v1030_v25, 8.507059e+37 }
 0x58a   :  { %v1168_v23 = vpop.eup %1167 }
 0x58b   :  { %v1040_v38 = vadd.f32 1.0, %v1168_v23 }
 0x58d   :  { %v1170_v15 = vpop.eup %1169  ;;  %1171 = vrcp.f32 %v1040_v38  ;;  %v1052_v47 = vand.u32 2147483648, %v1040_v38  ;;  %v1050_v46 = vand.u32 2147483647, %v1040_v38  ;;  %vm1046_vm4 = vweird.f32 %v1040_v38 }
 0x58e   :  { %v1022_v11 = vmul.f32 %v1170_v15, %v1020_v20  ;;  %vm1027_vm15 = vweird.f32 %v1170_v15 }
 0x58f   :  { %vm1028_vm1 = vmor %vm1026_vm0, %vm1027_vm15  ;;  %v1053_v52 = vor.u32 1.1754944e-38, %v1052_v47  ;;  %vm1051_vm6 = vcmp.eq.f32.partialorder %v1050_v46, 8.507059e+37 }
 0x590   :  { %v1023_v17 = vsub.f32 1.0, %v1022_v11 }
 0x592   :  { %v1024_v22 = vmul.f32 %v1170_v15, %v1023_v17 }
 0x593   :  { %v1172_v27 = vpop.eup %1171 }
 0x594   :  { %v1042_v30 = vmul.f32 %v1172_v27, %v1040_v38  ;;  %v1025_v60 = vadd.f32 %v1170_v15, %v1024_v22  ;;  %vm1047_vm3 = vweird.f32 %v1172_v27 }
 0x595   :  { %vm1048_vm5 = vmor %vm1046_vm4, %vm1047_vm3 }
 0x596   :  { %v1043_v33 = vsub.f32 1.0, %v1042_v30  ;;  %v1029_v36 = vsel %vm1028_vm1, %v1170_v15, %v1025_v60 }
 0x597   :  { %v1034_v42 = vsel %vm1031_vm2, %v1033_v32, %v1029_v36 }
 0x598   :  { %v1044_v45 = vmul.f32 %v1172_v27, %v1043_v33  ;;  %v1056_v57 = vmul.f32 %v1034_v42, %v1014_v35 }
 0x59a   :  { %v1045_v43 = vadd.f32 %v1172_v27, %v1044_v45  ;;  %v1057_v7 = vadd.f32 %v1056_v57, %v71_v39 }
 0x59c   :  { %v1049_v54 = vsel %vm1048_vm5, %v1172_v27, %v1045_v43  ;;  %1173 = vtanh.f32 %v1057_v7 }
 0x59d   :  { %v1054_v59 = vsel %vm1051_vm6, %v1053_v52, %v1049_v54 }
 0x59e   :  { %v1059_v12 = vsub.f32 1.0, %v1054_v59  ;;  %v1061_v10 = vmul.f32 %v1054_v59, %v2201_v62 }
 0x5a2   :  { %v1174_v49 = vpop.eup %1173 }
 0x5a3   :  { %v1060_v16 = vmul.f32 %v1174_v49, %v1059_v12 }
 0x5a5   :  { %v1062_v14 = vadd.f32 %v1061_v10, %v1060_v16 }
 0x5a7   :  { %v1066_v18 = vsel %vm1065_vm7, %v1062_v14, %v2201_v62 }
 0x5a8   :  { %1067 = vst [vmem:[%s2228_s4] sm:$0xff] %v1066_v18 }

// kernel: seq2seq_forward.8
= control target key start
LH: loop header
LB: loop body
LE: loop exit
PB: predicated region body
PF: predicated region fallthrough
CT: control target
= control target key end

     0   :  { %9 = vsyncpa [#allocation4], 0  ;;  %s1309_s8 = smov [#allocation3]   ;;  %s1310_s17 = smov 384   ;;  %s2050_s0 = inlined_call_operand.vmem [shape: s32[8,1], index: 0, kind: input, shape index: {}]   ;;  %s2051_s1 = inlined_call_operand.vmem [shape: f32[8,8,768], index: 1, kind: input, shape index: {}]   ;;  %s2052_s2 = inlined_call_operand.hbm [shape: f32[128,384], index: 2, kind: input, shape index: {}]   ;;  %s2053_s3 = inlined_call_operand.vmem [shape: f32[1,384], index: 3, kind: input, shape index: {}]   ;;  %s2054_s4 = inlined_call_operand.vmem [shape: f32[8,128], index: 4, kind: output, shape index: {}]  }
   0x1   :  { %v1342_v0 = vld [vmem:[%s2051_s1 + $0x18] sm:$0xff]  ;;  %v1347_v1 = vld [vmem:[%s2051_s1 + $0x20] sm:$0xff]  ;;  %v1352_v2 = vld [vmem:[%s2051_s1 + $0x28] sm:$0xff]  ;;  %s87_s7 = sshll.u32 %s2052_s2, 4  ;;  %s89_s9 = sshll.u32 %s1309_s8, 4  ;;  %s88_s7 = int_to_ptr.hbm [resolvable:$true] %s87_s7  ;;  %s90_s9 = int_to_ptr.vmem [resolvable:$true] %s89_s9 }
   0x2   :  { %2077 = vst [vmem:[#allocation6_spill] sm:$0xff] %v1342_v0  ;;  %v1357_v3 = vld [vmem:[%s2051_s1 + $0x48] sm:$0xff]  ;;  %v1362_v4 = vld [vmem:[%s2051_s1 + $0x50] sm:$0xff]  ;;  %v1367_v5 = vld [vmem:[%s2051_s1 + $0x58] sm:$0xff]  ;;  %s1311_s2 = smov 24  }
   0x3   :  { %2078 = vst [vmem:[#allocation7_spill] sm:$0xff] %v1347_v1  ;;  %v1372_v6 = vld [vmem:[%s2051_s1 + $0x78] sm:$0xff]  ;;  %v1377_v7 = vld [vmem:[%s2051_s1 + $0x80] sm:$0xff]  ;;  %v1385_v8 = vld [vmem:[%s2051_s1 + $0x88] sm:$0xff] }
   0x4   :  { %2079 = vst [vmem:[#allocation8_spill] sm:$0xff] %v1352_v2  ;;  %v1390_v9 = vld [vmem:[%s2051_s1 + $0xa8] sm:$0xff]  ;;  %v1395_v10 = vld [vmem:[%s2051_s1 + $0xb0] sm:$0xff]  ;;  %v1400_v11 = vld [vmem:[%s2051_s1 + $0xb8] sm:$0xff] }
   0x5   :  { %2080 = vst [vmem:[#allocation9_spill] sm:$0xff] %v1357_v3  ;;  %v1405_v12 = vld [vmem:[%s2051_s1 + $0xd8] sm:$0xff]  ;;  %v1410_v13 = vld [vmem:[%s2051_s1 + $0xe0] sm:$0xff]  ;;  %v1415_v14 = vld [vmem:[%s2051_s1 + $0xe8] sm:$0xff] }
   0x6   :  { %2081 = vst [vmem:[#allocation10_spill] sm:$0xff] %v1362_v4  ;;  %v1420_v15 = vld [vmem:[%s2051_s1 + $0x108] sm:$0xff]  ;;  %v1425_v16 = vld [vmem:[%s2051_s1 + $0x110] sm:$0xff]  ;;  %v1430_v17 = vld [vmem:[%s2051_s1 + $0x118] sm:$0xff] }
   0x7   :  { %2082 = vst [vmem:[#allocation11_spill] sm:$0xff] %v1367_v5  ;;  %v1435_v18 = vld [vmem:[%s2051_s1 + $0x138] sm:$0xff]  ;;  %v1440_v19 = vld [vmem:[%s2051_s1 + $0x140] sm:$0xff]  ;;  %v1445_v20 = vld [vmem:[%s2051_s1 + $0x148] sm:$0xff] }
   0x8   :  { %2083 = vst [vmem:[#allocation12_spill] sm:$0xff] %v1372_v6  ;;  %v1450_v21 = vld [vmem:[%s2051_s1 + $0x168] sm:$0xff]  ;;  %v1455_v22 = vld [vmem:[%s2051_s1 + $0x170] sm:$0xff]  ;;  %v1460_v23 = vld [vmem:[%s2051_s1 + $0x178] sm:$0xff] }
   0x9   :  { %2084 = vst [vmem:[#allocation13_spill] sm:$0xff] %v1377_v7  ;;  %95 = dma.hbm_to_vmem [thread:$0]  %s88_s7, 6144, %s90_s9, [#allocation4], %s1310_s17, %s1310_s17, %s1311_s2  }
   0xa   :  { %2085 = vst [vmem:[#allocation14_spill] sm:$0xff] %v1385_v8 }
   0xb   :  { %2086 = vst [vmem:[#allocation15_spill] sm:$0xff] %v1390_v9 }
   0xc   :  { %2087 = vst [vmem:[#allocation16_spill] sm:$0xff] %v1395_v10 }
   0xd   :  { %2088 = vst [vmem:[#allocation17_spill] sm:$0xff] %v1400_v11 }
   0xe   :  { %2089 = vst [vmem:[#allocation18_spill] sm:$0xff] %v1405_v12 }
   0xf   :  { %2090 = vst [vmem:[#allocation19_spill] sm:$0xff] %v1410_v13 }
  0x10   :  { %2091 = vst [vmem:[#allocation20_spill] sm:$0xff] %v1415_v14 }
  0x11   :  { %2092 = vst [vmem:[#allocation21_spill] sm:$0xff] %v1420_v15 }
  0x12   :  { %2093 = vst [vmem:[#allocation22_spill] sm:$0xff] %v1425_v16 }
  0x13   :  { %2094 = vst [vmem:[#allocation23_spill] sm:$0xff] %v1430_v17 }
  0x14   :  { %2095 = vst [vmem:[#allocation24_spill] sm:$0xff] %v1435_v18 }
  0x15   :  { %2096 = vst [vmem:[#allocation25_spill] sm:$0xff] %v1440_v19 }
  0x16   :  { %2097 = vst [vmem:[#allocation26_spill] sm:$0xff] %v1445_v20 }
  0x17   :  { %1307 = dma.done.wait [#allocation4], 6144  }
  0x18   :  { %1308 = vsyncadd [#allocation4], 4294961152  ;;  %v1462_v24 = vld [vmem:[#allocation3 + $0x168] sm:$0xff]  ;;  %v1464_v25 = vld [vmem:[#allocation3 + $0x170] sm:$0xff]  ;;  %v1312_v43 = vmov 0   ;;  %v1313_v4 = vmov 0.0  }
  0x19   :  { %v1466_v26 = vld [vmem:[#allocation3 + $0x150] sm:$0xff]  ;;  %178 = vmatpush.msra.mxu0 %v1462_v24  ;;  %198 = vmatpush.msra.mxu1 %v1464_v25  ;;  %v1470_v27 = vld [vmem:[#allocation3 + $0x158] sm:$0xff]  ;;  %v1474_v29 = vld [vmem:[#allocation3 + $0x140] sm:$0xff] }
  0x1a   :  { %v1472_v28 = vld [vmem:[#allocation3 + $0x138] sm:$0xff]  ;;  %293 = vmatpush.msra.mxu3 %v1462_v24  ;;  %v1479_v30 = vld [vmem:[#allocation3 + $0x120] sm:$0xff]  ;;  %v1481_v31 = vld [vmem:[#allocation3 + $0x128] sm:$0xff]  ;;  %1151 = vset.pattern.permute.xlu0 %v1312_v43 }
  0x1b   :  { %179 = vmatpush.msra.mxu0 %v1466_v26  ;;  %199 = vmatpush.msra.mxu1 %v1470_v27  ;;  %v1486_v32 = vld [vmem:[#allocation3 + $0x108] sm:$0xff]  ;;  %v1488_v33 = vld [vmem:[#allocation3 + $0x110] sm:$0xff]  ;;  %v1495_v35 = vld [vmem:[#allocation3 + $0xf8] sm:$0xff] }
  0x1c   :  { %294 = vmatpush.msra.mxu3 %v1466_v26  ;;  %v1493_v34 = vld [vmem:[#allocation3 + $0xf0] sm:$0xff]  ;;  %v1497_v36 = vld [vmem:[#allocation3 + $0x178] sm:$0xff]  ;;  %v1502_v37 = vld [vmem:[#allocation3 + $0x160] sm:$0xff] }
  0x1d   :  { %180 = vmatpush.msra.mxu0 %v1472_v28  ;;  %200 = vmatpush.msra.mxu1 %v1474_v29  ;;  %v1504_v38 = vld [vmem:[#allocation3 + $0xd8] sm:$0xff]  ;;  %v1506_v39 = vld [vmem:[#allocation3 + $0xe0] sm:$0xff]  ;;  %v1512_v40 = vld [vmem:[#allocation3 + $0x148] sm:$0xff] }
  0x1e   :  { %295 = vmatpush.msra.mxu3 %v1472_v28  ;;  %218 = vmatpush.msra.mxu2 %v1497_v36  ;;  %v1514_v41 = vld [vmem:[#allocation3 + $0xc0] sm:$0xff]  ;;  %v1516_v42 = vld [vmem:[#allocation3 + $0xc8] sm:$0xff]  ;;  %v1521_v44 = vld [vmem:[#allocation3 + $0x130] sm:$0xff] }
  0x1f   :  { %181 = vmatpush.msra.mxu0 %v1479_v30  ;;  %201 = vmatpush.msra.mxu1 %v1481_v31  ;;  %v1523_v45 = vld [vmem:[#allocation3 + $0xa8] sm:$0xff]  ;;  %v1525_v46 = vld [vmem:[#allocation3 + $0xb0] sm:$0xff]  ;;  %v1531_v47 = vld [vmem:[#allocation3 + $0x118] sm:$0xff] }
  0x20   :  { %296 = vmatpush.msra.mxu3 %v1479_v30  ;;  %219 = vmatpush.msra.mxu2 %v1502_v37  ;;  %v1533_v48 = vld [vmem:[#allocation3 + $0x90] sm:$0xff]  ;;  %v1535_v49 = vld [vmem:[#allocation3 + $0x98] sm:$0xff]  ;;  %v113_v50 = vld [vmem:[%s2050_s0] sm:$0xff] }
  0x21   :  { %182 = vmatpush.msra.mxu0 %v1486_v32  ;;  %202 = vmatpush.msra.mxu1 %v1488_v33  ;;  %v1544_v51 = vld [vmem:[#allocation3 + $0x100] sm:$0xff]  ;;  %v1546_v52 = vld [vmem:[#allocation3 + $0x78] sm:$0xff]  ;;  %v1553_v54 = vld [vmem:[#allocation3 + $0xe8] sm:$0xff] }
  0x22   :  { %297 = vmatpush.msra.mxu3 %v1486_v32  ;;  %220 = vmatpush.msra.mxu2 %v1512_v40  ;;  %v1548_v53 = vld [vmem:[#allocation3 + $0x80] sm:$0xff]  ;;  %v1557_v56 = vld [vmem:[#allocation3 + $0x68] sm:$0xff]  ;;  %v1563_v57 = vld [vmem:[#allocation3 + $0xd0] sm:$0xff] }
  0x23   :  { %183 = vmatpush.msra.mxu0 %v1493_v34  ;;  %203 = vmatpush.msra.mxu1 %v1495_v35  ;;  %v1555_v55 = vld [vmem:[#allocation3 + $0x60] sm:$0xff]  ;;  %v1565_v58 = vld [vmem:[#allocation3 + $0x48] sm:$0xff]  ;;  %v1567_v59 = vld [vmem:[#allocation3 + $0x50] sm:$0xff] }
  0x24   :  { %298 = vmatpush.msra.mxu3 %v1493_v34  ;;  %221 = vmatpush.msra.mxu2 %v1521_v44  ;;  %v1573_v60 = vld [vmem:[#allocation3 + $0xb8] sm:$0xff]  ;;  %v1575_v61 = vld [vmem:[#allocation3 + $0x30] sm:$0xff]  ;;  %v1583_v63 = vld [vmem:[#allocation3 + $0xa0] sm:$0xff] }
  0x25   :  { %184 = vmatpush.msra.mxu0 %v1504_v38  ;;  %204 = vmatpush.msra.mxu1 %v1506_v39  ;;  %2098 = vst [vmem:[#allocation27_spill] sm:$0xff] %v1575_v61  ;;  %v1577_v62 = vld [vmem:[#allocation3 + $0x38] sm:$0xff]  ;;  %v1593_v2 = vld [vmem:[#allocation3 + $0x88] sm:$0xff]  ;;  %v1595_v1 = vld [vmem:[#allocation3] sm:$0xff] }
  0x26   :  { %299 = vmatpush.msra.mxu3 %v1504_v38  ;;  %222 = vmatpush.msra.mxu2 %v1531_v47  ;;  %2099 = vst [vmem:[#allocation28_spill] sm:$0xff] %v1577_v62  ;;  %v1585_v43 = vld [vmem:[#allocation3 + $0x18] sm:$0xff]  ;;  %v1597_v0 = vld [vmem:[#allocation3 + $0x8] sm:$0xff]  ;;  %v1604_v5 = vld [vmem:[#allocation3 + $0x70] sm:$0xff] }
  0x27   :  { %185 = vmatpush.msra.mxu0 %v1514_v41  ;;  %205 = vmatpush.msra.mxu1 %v1516_v42  ;;  %2100 = vst [vmem:[#allocation29_spill] sm:$0xff] %v1585_v43  ;;  %v1609_v3 = vld [vmem:[#allocation3 + $0x58] sm:$0xff]  ;;  %v1613_v8 = vld [vmem:[#allocation3 + $0x40] sm:$0xff]  ;;  %v1619_v6 = vld [vmem:[#allocation3 + $0x28] sm:$0xff] }
  0x28   :  { %115 = vperm.xlu0 %1151, %v113_v50   ;;  %223 = vmatpush.msra.mxu2 %v1544_v51  ;;  %v1587_v50 = vld [vmem:[#allocation3 + $0x20] sm:$0xff]  ;;  %2102 = vst [vmem:[#allocation31_spill] sm:$0xff] %v1595_v1  ;;  %v1625_v7 = vld [vmem:[#allocation3 + $0x10] sm:$0xff] }
  0x29   :  { %186 = vmatpush.msra.mxu0 %v1523_v45  ;;  %206 = vmatpush.msra.mxu1 %v1525_v46  ;;  %2101 = vst [vmem:[#allocation30_spill] sm:$0xff] %v1587_v50 }
  0x2a   :  { %300 = vmatpush.msra.mxu3 %v1514_v41  ;;  %224 = vmatpush.msra.mxu2 %v1553_v54  ;;  %2103 = vst [vmem:[#allocation32_spill] sm:$0xff] %v1597_v0 }
  0x2b   :  { %187 = vmatpush.msra.mxu0 %v1533_v48  ;;  %207 = vmatpush.msra.mxu1 %v1535_v49  ;;  %2104 = vst [vmem:[#allocation33_spill] sm:$0xff] %v1613_v8 }
  0x2c   :  { %301 = vmatpush.msra.mxu3 %v1523_v45  ;;  %225 = vmatpush.msra.mxu2 %v1563_v57  ;;  %2105 = vst [vmem:[#allocation34_spill] sm:$0xff] %v1619_v6 }
  0x2d   :  { %188 = vmatpush.msra.mxu0 %v1546_v52  ;;  %208 = vmatpush.msra.mxu1 %v1548_v53  ;;  %2106 = vst [vmem:[#allocation35_spill] sm:$0xff] %v1625_v7 }
  0x2e   :  { %302 = vmatpush.msra.mxu3 %v1533_v48  ;;  %226 = vmatpush.msra.mxu2 %v1573_v60 }
  0x2f   :  { %189 = vmatpush.msra.mxu0 %v1555_v55  ;;  %209 = vmatpush.msra.mxu1 %v1557_v56 }
  0x30   :  { %303 = vmatpush.msra.mxu3 %v1546_v52  ;;  %227 = vmatpush.msra.mxu2 %v1583_v63 }
  0x31   :  { %190 = vmatpush.msra.mxu0 %v1565_v58  ;;  %210 = vmatpush.msra.mxu1 %v1567_v59 }
  0x32   :  { %304 = vmatpush.msra.mxu3 %v1555_v55  ;;  %228 = vmatpush.msra.mxu2 %v1593_v2 }
  0x33   :  { %191 = vmatpush.msra.mxu0 %v1575_v61  ;;  %211 = vmatpush.msra.mxu1 %v1577_v62 }
  0x34   :  { %305 = vmatpush.msra.mxu3 %v1565_v58  ;;  %229 = vmatpush.msra.mxu2 %v1604_v5 }
  0x35   :  { %192 = vmatpush.msra.mxu0 %v1585_v43  ;;  %212 = vmatpush.msra.mxu1 %v1587_v50 }
  0x36   :  { %306 = vmatpush.msra.mxu3 %v1575_v61  ;;  %230 = vmatpush.msra.mxu2 %v1609_v3 }
  0x37   :  { %193 = vmatpush.msra.mxu0 %v1595_v1  ;;  %213 = vmatpush.msra.mxu1 %v1597_v0 }
  0x38   :  { %194 = vmatmul.f32.vlgmr.msra.gmra.mxu0 %v1313_v4  ;;  %214 = vmatmul.f32.vlgmr.msra.gmra.mxu1 %v1313_v4 }
  0x39   :  { %313 = vmatpush.msrb.mxu0 %v1464_v25  ;;  %333 = vmatpush.msrb.mxu1 %v1497_v36 }
  0x3a   :  { %307 = vmatpush.msra.mxu3 %v1585_v43  ;;  %231 = vmatpush.msra.mxu2 %v1613_v8 }
  0x3b   :  { %314 = vmatpush.msrb.mxu0 %v1470_v27  ;;  %334 = vmatpush.msrb.mxu1 %v1502_v37 }
  0x3c   :  { %308 = vmatpush.msra.mxu3 %v1595_v1  ;;  %232 = vmatpush.msra.mxu2 %v1619_v6 }
  0x3d   :  { %315 = vmatpush.msrb.mxu0 %v1474_v29  ;;  %335 = vmatpush.msrb.mxu1 %v1512_v40 }
  0x3e   :  { %428 = vmatpush.msrb.mxu3 %v1464_v25  ;;  %233 = vmatpush.msra.mxu2 %v1625_v7 }
  0x3f   :  { %316 = vmatpush.msrb.mxu0 %v1481_v31  ;;  %336 = vmatpush.msrb.mxu1 %v1521_v44 }
  0x40   :  { %234 = vmatmul.f32.vlgmr.msra.gmra.mxu2 %v1313_v4  ;;  %429 = vmatpush.msrb.mxu3 %v1470_v27  ;;  %v170_v4 = vld [vmem:[%s2053_s3] sm:$0x7] }
  0x41   :  { %317 = vmatpush.msrb.mxu0 %v1488_v33  ;;  %337 = vmatpush.msrb.mxu1 %v1531_v47  ;;  %v1740_v11 = vperm.slane %v170_v4, 0  ;;  %v1742_v10 = vperm.slane %v170_v4, 1 }
  0x42   :  { %408 = vmatpush.msrb.mxu2 %v1462_v24  ;;  %430 = vmatpush.msrb.mxu3 %v1474_v29 }
  0x43   :  { %318 = vmatpush.msrb.mxu0 %v1495_v35  ;;  %338 = vmatpush.msrb.mxu1 %v1544_v51  ;;  %2107 = vst [vmem:[#allocation36_spill] sm:$0xff] %v1740_v11 }
  0x44   :  { %409 = vmatpush.msrb.mxu2 %v1466_v26  ;;  %431 = vmatpush.msrb.mxu3 %v1481_v31  ;;  %2108 = vst [vmem:[#allocation37_spill] sm:$0xff] %v1742_v10 }
  0x45   :  { %319 = vmatpush.msrb.mxu0 %v1506_v39  ;;  %339 = vmatpush.msrb.mxu1 %v1553_v54 }
  0x46   :  { %410 = vmatpush.msrb.mxu2 %v1472_v28  ;;  %432 = vmatpush.msrb.mxu3 %v1488_v33 }
  0x47   :  { %320 = vmatpush.msrb.mxu0 %v1516_v42  ;;  %340 = vmatpush.msrb.mxu1 %v1563_v57 }
  0x48   :  { %411 = vmatpush.msrb.mxu2 %v1479_v30  ;;  %433 = vmatpush.msrb.mxu3 %v1495_v35 }
  0x49   :  { %321 = vmatpush.msrb.mxu0 %v1525_v46  ;;  %341 = vmatpush.msrb.mxu1 %v1573_v60 }
  0x4a   :  { %412 = vmatpush.msrb.mxu2 %v1486_v32  ;;  %434 = vmatpush.msrb.mxu3 %v1506_v39 }
  0x4b   :  { %322 = vmatpush.msrb.mxu0 %v1535_v49  ;;  %342 = vmatpush.msrb.mxu1 %v1583_v63 }
  0x4c   :  { %413 = vmatpush.msrb.mxu2 %v1493_v34  ;;  %435 = vmatpush.msrb.mxu3 %v1516_v42 }
  0x4d   :  { %323 = vmatpush.msrb.mxu0 %v1548_v53  ;;  %343 = vmatpush.msrb.mxu1 %v1593_v2 }
  0x4e   :  { %414 = vmatpush.msrb.mxu2 %v1504_v38  ;;  %436 = vmatpush.msrb.mxu3 %v1525_v46 }
  0x4f   :  { %324 = vmatpush.msrb.mxu0 %v1557_v56  ;;  %344 = vmatpush.msrb.mxu1 %v1604_v5 }
  0x50   :  { %415 = vmatpush.msrb.mxu2 %v1514_v41  ;;  %437 = vmatpush.msrb.mxu3 %v1535_v49 }
  0x51   :  { %325 = vmatpush.msrb.mxu0 %v1567_v59  ;;  %345 = vmatpush.msrb.mxu1 %v1609_v3 }
  0x52   :  { %416 = vmatpush.msrb.mxu2 %v1523_v45  ;;  %438 = vmatpush.msrb.mxu3 %v1548_v53 }
  0x53   :  { %326 = vmatpush.msrb.mxu0 %v1577_v62  ;;  %346 = vmatpush.msrb.mxu1 %v1613_v8 }
  0x54   :  { %417 = vmatpush.msrb.mxu2 %v1533_v48  ;;  %439 = vmatpush.msrb.mxu3 %v1557_v56 }
  0x55   :  { %327 = vmatpush.msrb.mxu0 %v1587_v50  ;;  %347 = vmatpush.msrb.mxu1 %v1619_v6 }
  0x56   :  { %418 = vmatpush.msrb.mxu2 %v1546_v52  ;;  %440 = vmatpush.msrb.mxu3 %v1567_v59 }
  0x57   :  { %328 = vmatpush.msrb.mxu0 %v1597_v0  ;;  %348 = vmatpush.msrb.mxu1 %v1625_v7 }
  0x58   :  { %419 = vmatpush.msrb.mxu2 %v1555_v55  ;;  %441 = vmatpush.msrb.mxu3 %v1577_v62 }
  0x59   :  { %448 = vmatpush.msra.mxu0 %v1497_v36  ;;  %523 = vmatpush.msra.mxu1 %v1462_v24 }
  0x5a   :  { %420 = vmatpush.msrb.mxu2 %v1565_v58  ;;  %442 = vmatpush.msrb.mxu3 %v1587_v50 }
  0x5b   :  { %449 = vmatpush.msra.mxu0 %v1502_v37  ;;  %524 = vmatpush.msra.mxu1 %v1466_v26 }
  0x5c   :  { %421 = vmatpush.msrb.mxu2 %v1575_v61  ;;  %443 = vmatpush.msrb.mxu3 %v1597_v0 }
  0x5d   :  { %450 = vmatpush.msra.mxu0 %v1512_v40  ;;  %525 = vmatpush.msra.mxu1 %v1472_v28 }
  0x5e   :  { %422 = vmatpush.msrb.mxu2 %v1585_v43 }
  0x5f   :  { %451 = vmatpush.msra.mxu0 %v1521_v44  ;;  %526 = vmatpush.msra.mxu1 %v1479_v30 }
  0x60   :  { %423 = vmatpush.msrb.mxu2 %v1595_v1 }
  0x61   :  { %452 = vmatpush.msra.mxu0 %v1531_v47  ;;  %527 = vmatpush.msra.mxu1 %v1486_v32 }
  0x62   :  { %543 = vmatpush.msra.mxu2 %v1464_v25 }
  0x63   :  { %453 = vmatpush.msra.mxu0 %v1544_v51  ;;  %528 = vmatpush.msra.mxu1 %v1493_v34 }
  0x64   :  { %544 = vmatpush.msra.mxu2 %v1470_v27 }
  0x65   :  { %454 = vmatpush.msra.mxu0 %v1553_v54  ;;  %529 = vmatpush.msra.mxu1 %v1504_v38 }
  0x66   :  { %545 = vmatpush.msra.mxu2 %v1474_v29 }
  0x67   :  { %455 = vmatpush.msra.mxu0 %v1563_v57  ;;  %530 = vmatpush.msra.mxu1 %v1514_v41 }
  0x68   :  { %546 = vmatpush.msra.mxu2 %v1481_v31 }
  0x69   :  { %456 = vmatpush.msra.mxu0 %v1573_v60  ;;  %531 = vmatpush.msra.mxu1 %v1523_v45 }
  0x6a   :  { %547 = vmatpush.msra.mxu2 %v1488_v33 }
  0x6b   :  { %457 = vmatpush.msra.mxu0 %v1583_v63  ;;  %532 = vmatpush.msra.mxu1 %v1533_v48 }
  0x6c   :  { %548 = vmatpush.msra.mxu2 %v1495_v35 }
  0x6d   :  { %458 = vmatpush.msra.mxu0 %v1593_v2  ;;  %533 = vmatpush.msra.mxu1 %v1546_v52 }
  0x6e   :  { %549 = vmatpush.msra.mxu2 %v1506_v39 }
  0x6f   :  { %459 = vmatpush.msra.mxu0 %v1604_v5  ;;  %534 = vmatpush.msra.mxu1 %v1555_v55 }
  0x70   :  { %550 = vmatpush.msra.mxu2 %v1516_v42 }
  0x71   :  { %460 = vmatpush.msra.mxu0 %v1609_v3  ;;  %535 = vmatpush.msra.mxu1 %v1565_v58 }
  0x72   :  { %551 = vmatpush.msra.mxu2 %v1525_v46 }
  0x73   :  { %461 = vmatpush.msra.mxu0 %v1613_v8  ;;  %536 = vmatpush.msra.mxu1 %v1575_v61 }
  0x74   :  { %552 = vmatpush.msra.mxu2 %v1535_v49 }
  0x75   :  { %462 = vmatpush.msra.mxu0 %v1619_v6  ;;  %537 = vmatpush.msra.mxu1 %v1585_v43 }
  0x76   :  { %553 = vmatpush.msra.mxu2 %v1548_v53 }
  0x77   :  { %463 = vmatpush.msra.mxu0 %v1625_v7  ;;  %538 = vmatpush.msra.mxu1 %v1595_v1 }
  0x78   :  { %554 = vmatpush.msra.mxu2 %v1557_v56 }
  0x7a   :  { %555 = vmatpush.msra.mxu2 %v1567_v59 }
  0x7c   :  { %556 = vmatpush.msra.mxu2 %v1577_v62 }
  0x7e   :  { %557 = vmatpush.msra.mxu2 %v1587_v50 }
  0x80   :  { %558 = vmatpush.msra.mxu2 %v1597_v0 }
  0xb5   :  { %v195_v9 = vpop.f32.mrf.mxu0  ;;  %v215_v14 = vpop.f32.mrf.mxu1 }
  0xb6   :  { %v196_v13 = vadd.f32 %v195_v9, %v1740_v11  ;;  %v216_v12 = vadd.f32 %v215_v14, %v1742_v10  ;;  %v1748_v11 = vperm.slane %v170_v4, 2 }
  0xb8   :  { %v238_v17 = vadd.f32 %v1450_v21, %v196_v13  ;;  %v258_v16 = vadd.f32 %v1455_v22, %v216_v12 }
  0xba   :  { %v1130_v15 = vmul.f32 -1.442695, %v238_v17  ;;  %v1131_v20 = vmul.f32 -1.442695, %v258_v16 }
  0xbc   :  { %1152 = vpow2.f32 %v1130_v15 }
  0xbd   :  { %1154 = vpow2.f32 %v1131_v20 }
  0xc2   :  { %v1153_v18 = vpop.eup %1152 }
  0xc3   :  { %v1155_v19 = vpop.eup %1154  ;;  %v242_v0 = vadd.f32 1.0, %v1153_v18  ;;  %v235_v21 = vpop.f32.mrf.mxu2 }
  0xc4   :  { %v262_v1 = vadd.f32 1.0, %v1155_v19  ;;  %v236_v20 = vadd.f32 %v235_v21, %v1748_v11 }
  0xc5   :  { %1156 = vrcp.f32 %v242_v0  ;;  %v254_v12 = vand.u32 2147483648, %v242_v0  ;;  %v252_v15 = vand.u32 2147483647, %v242_v0  ;;  %vm248_vm1 = vweird.f32 %v242_v0 }
  0xc6   :  { %1158 = vrcp.f32 %v262_v1  ;;  %vm268_vm4 = vweird.f32 %v262_v1  ;;  %v272_v6 = vand.u32 2147483647, %v262_v1 }
  0xc7   :  { %v255_v19 = vor.u32 1.1754944e-38, %v254_v12  ;;  %vm253_vm3 = vcmp.eq.f32.partialorder %v252_v15, 8.507059e+37 }
  0xc8   :  { %vm273_vm7 = vcmp.eq.f32.partialorder %v272_v6, 8.507059e+37  ;;  %v2110_v6 = vld [vmem:[#allocation34_spill] sm:$0xff] }
  0xcb   :  { %v1157_v7 = vpop.eup %1156 }
  0xcc   :  { %v1159_v50 = vpop.eup %1158  ;;  %v244_v43 = vmul.f32 %v1157_v7, %v242_v0  ;;  %vm249_vm0 = vweird.f32 %v1157_v7 }
  0xcd   :  { %v264_v9 = vmul.f32 %v1159_v50, %v262_v1  ;;  %vm250_vm2 = vmor %vm248_vm1, %vm249_vm0  ;;  %vm269_vm5 = vweird.f32 %v1159_v50 }
  0xce   :  { %v245_v14 = vsub.f32 1.0, %v244_v43  ;;  %v274_v43 = vand.u32 2147483648, %v262_v1  ;;  %vm270_vm6 = vmor %vm268_vm4, %vm269_vm5  ;;  %v2109_v1 = vld [vmem:[#allocation28_spill] sm:$0xff] }
  0xcf   :  { %v265_v13 = vsub.f32 1.0, %v264_v9 }
  0xd0   :  { %v246_v17 = vmul.f32 %v1157_v7, %v245_v14 }
  0xd1   :  { %v266_v16 = vmul.f32 %v1159_v50, %v265_v13  ;;  %v275_v13 = vor.u32 1.1754944e-38, %v274_v43  ;;  %v2117_v43 = vld [vmem:[#allocation25_spill] sm:$0xff] }
  0xd2   :  { %v247_v18 = vadd.f32 %v1157_v7, %v246_v17  ;;  %v1752_v17 = vpop.permute.xlu0 %115 }
  0xd3   :  { %v267_v10 = vadd.f32 %v1159_v50, %v266_v16  ;;  %vm287_vm8 = vcmp.gt.s32.totalorder %v1752_v17, 7  ;;  %vm402_vm1 = vcmp.gt.s32.totalorder %v1752_v17, 6 }
  0xd4   :  { %v251_v22 = vsel %vm250_vm2, %v1157_v7, %v247_v18 }
  0xd5   :  { %v256_v4 = vsel %vm253_vm3, %v255_v19, %v251_v22  ;;  %v271_v62 = vsel %vm270_vm6, %v1159_v50, %v267_v10  ;;  %v2111_v10 = vld [vmem:[#allocation29_spill] sm:$0xff]  ;;  %v2114_v50 = vld [vmem:[#allocation31_spill] sm:$0xff] }
  0xd6   :  { %v278_v9 = vmul.f32 %v256_v4, %v236_v20  ;;  %v276_v21 = vsel %vm273_vm7, %v275_v13, %v271_v62  ;;  %v2113_v62 = vld [vmem:[#allocation35_spill] sm:$0xff]  ;;  %v2115_v20 = vld [vmem:[#allocation32_spill] sm:$0xff]  ;;  %v2116_v22 = vld [vmem:[#allocation37_spill] sm:$0xff] }
  0xd7   :  { %v281_v0 = vsub.f32 1.0, %v276_v21  ;;  %v283_v15 = vmul.f32 0.0, %v276_v21  ;;  %v2118_v21 = vld [vmem:[#allocation36_spill] sm:$0xff] }
  0xd8   :  { %v279_v14 = vadd.f32 %v1460_v23, %v278_v9  ;;  %v2112_v23 = vld [vmem:[#allocation30_spill] sm:$0xff] }
  0xda   :  { %1160 = vtanh.f32 %v279_v14 }
  0xe0   :  { %v1161_v7 = vpop.eup %1160 }
  0xe1   :  { %v282_v12 = vmul.f32 %v1161_v7, %v281_v0  ;;  %v2119_v7 = vld [vmem:[#allocation24_spill] sm:$0xff] }
  0xe3   :  { %v284_v16 = vadd.f32 %v283_v15, %v282_v12 }
  0xe5   :  { %v1755_v18 = vsel %vm287_vm8, %v284_v16, 0.0  ;;  %1280 = vmatmul.msk.f32.vlgmr.msra.gmra.mxu3 %vm287_vm8, %v284_v16  ;;  %1281 = vmatmul.msk.f32.vlgmr.msrb.gmra.mxu0 %vm287_vm8, %v284_v16 }
  0xe6   :  { %1282 = vmatmul.msk.f32.vlgmr.msrb.gmra.mxu1 %vm287_vm8, %v284_v16  ;;  %563 = vmatpush.msra.mxu3 %v1497_v36 }
  0xe7   :  { %638 = vmatpush.msrb.mxu0 %v1462_v24  ;;  %658 = vmatpush.msrb.mxu1 %v1464_v25 }
  0xe8   :  { %564 = vmatpush.msra.mxu3 %v1502_v37 }
  0xe9   :  { %639 = vmatpush.msrb.mxu0 %v1466_v26  ;;  %659 = vmatpush.msrb.mxu1 %v1470_v27 }
  0xea   :  { %565 = vmatpush.msra.mxu3 %v1512_v40 }
  0xeb   :  { %640 = vmatpush.msrb.mxu0 %v1472_v28  ;;  %660 = vmatpush.msrb.mxu1 %v1474_v29 }
  0xec   :  { %566 = vmatpush.msra.mxu3 %v1521_v44 }
  0xed   :  { %641 = vmatpush.msrb.mxu0 %v1479_v30  ;;  %661 = vmatpush.msrb.mxu1 %v1481_v31 }
  0xee   :  { %567 = vmatpush.msra.mxu3 %v1531_v47 }
  0xef   :  { %642 = vmatpush.msrb.mxu0 %v1486_v32  ;;  %662 = vmatpush.msrb.mxu1 %v1488_v33 }
  0xf0   :  { %568 = vmatpush.msra.mxu3 %v1544_v51 }
  0xf1   :  { %643 = vmatpush.msrb.mxu0 %v1493_v34  ;;  %663 = vmatpush.msrb.mxu1 %v1495_v35 }
  0xf2   :  { %569 = vmatpush.msra.mxu3 %v1553_v54 }
  0xf3   :  { %644 = vmatpush.msrb.mxu0 %v1504_v38  ;;  %664 = vmatpush.msrb.mxu1 %v1506_v39 }
  0xf4   :  { %570 = vmatpush.msra.mxu3 %v1563_v57 }
  0xf5   :  { %645 = vmatpush.msrb.mxu0 %v1514_v41  ;;  %665 = vmatpush.msrb.mxu1 %v1516_v42 }
  0xf6   :  { %571 = vmatpush.msra.mxu3 %v1573_v60 }
  0xf7   :  { %646 = vmatpush.msrb.mxu0 %v1523_v45  ;;  %666 = vmatpush.msrb.mxu1 %v1525_v46 }
  0xf8   :  { %572 = vmatpush.msra.mxu3 %v1583_v63 }
  0xf9   :  { %647 = vmatpush.msrb.mxu0 %v1533_v48  ;;  %667 = vmatpush.msrb.mxu1 %v1535_v49 }
  0xfa   :  { %573 = vmatpush.msra.mxu3 %v1593_v2 }
  0xfb   :  { %648 = vmatpush.msrb.mxu0 %v1546_v52  ;;  %668 = vmatpush.msrb.mxu1 %v1548_v53 }
  0xfc   :  { %574 = vmatpush.msra.mxu3 %v1604_v5 }
  0xfd   :  { %649 = vmatpush.msrb.mxu0 %v1555_v55  ;;  %669 = vmatpush.msrb.mxu1 %v1557_v56 }
  0xfe   :  { %575 = vmatpush.msra.mxu3 %v1609_v3 }
  0xff   :  { %650 = vmatpush.msrb.mxu0 %v1565_v58  ;;  %670 = vmatpush.msrb.mxu1 %v1567_v59 }
 0x100   :  { %576 = vmatpush.msra.mxu3 %v1613_v8 }
 0x101   :  { %651 = vmatpush.msrb.mxu0 %v1575_v61  ;;  %671 = vmatpush.msrb.mxu1 %v2109_v1 }
 0x102   :  { %577 = vmatpush.msra.mxu3 %v2110_v6 }
 0x103   :  { %652 = vmatpush.msrb.mxu0 %v2111_v10  ;;  %672 = vmatpush.msrb.mxu1 %v2112_v23 }
 0x104   :  { %578 = vmatpush.msra.mxu3 %v2113_v62 }
 0x105   :  { %653 = vmatpush.msrb.mxu0 %v2114_v50  ;;  %673 = vmatpush.msrb.mxu1 %v2115_v20 }
 0x162   :  { %v330_v19 = vpop.f32.mrf.mxu0 }
 0x163   :  { %v331_v4 = vadd.f32 %v330_v19, %v2116_v22 }
 0x165   :  { %v373_v9 = vadd.f32 %v2117_v43, %v331_v4 }
 0x167   :  { %v1133_v14 = vmul.f32 -1.442695, %v373_v9 }
 0x168   :  { %v310_v13 = vpop.f32.mrf.mxu3 }
 0x169   :  { %1162 = vpow2.f32 %v1133_v14  ;;  %v311_v0 = vadd.f32 %v310_v13, %v2118_v21 }
 0x16b   :  { %v353_v12 = vadd.f32 %v2119_v7, %v311_v0  ;;  %v350_v0 = vpop.f32.mrf.mxu1 }
 0x16d   :  { %v1132_v15 = vmul.f32 -1.442695, %v353_v12 }
 0x16f   :  { %v1163_v16 = vpop.eup %1162  ;;  %1164 = vpow2.f32 %v1132_v15  ;;  %v351_v15 = vadd.f32 %v350_v0, %v1748_v11 }
 0x170   :  { %v377_v62 = vadd.f32 1.0, %v1163_v16 }
 0x172   :  { %1166 = vrcp.f32 %v377_v62  ;;  %v389_v1 = vand.u32 2147483648, %v377_v62  ;;  %vm383_vm14 = vweird.f32 %v377_v62 }
 0x174   :  { %v390_v8 = vor.u32 1.1754944e-38, %v389_v1  ;;  %v2125_v1 = vld [vmem:[#allocation29_spill] sm:$0xff] }
 0x175   :  { %v1165_v50 = vpop.eup %1164 }
 0x176   :  { %v357_v23 = vadd.f32 1.0, %v1165_v50 }
 0x178   :  { %1168 = vrcp.f32 %v357_v23  ;;  %v1167_v20 = vpop.eup %1166  ;;  %v369_v9 = vand.u32 2147483648, %v357_v23  ;;  %v367_v13 = vand.u32 2147483647, %v357_v23  ;;  %vm363_vm10 = vweird.f32 %v357_v23 }
 0x179   :  { %v379_v10 = vmul.f32 %v1167_v20, %v377_v62  ;;  %vm384_vm13 = vweird.f32 %v1167_v20 }
 0x17a   :  { %v370_v12 = vor.u32 1.1754944e-38, %v369_v9  ;;  %vm368_vm12 = vcmp.eq.f32.partialorder %v367_v13, 8.507059e+37  ;;  %vm385_vm15 = vmor %vm383_vm14, %vm384_vm13 }
 0x17b   :  { %v380_v4 = vsub.f32 1.0, %v379_v10 }
 0x17d   :  { %v381_v21 = vmul.f32 %v1167_v20, %v380_v4 }
 0x17e   :  { %v1169_v19 = vpop.eup %1168 }
 0x17f   :  { %v359_v22 = vmul.f32 %v1169_v19, %v357_v23  ;;  %vm364_vm9 = vweird.f32 %v1169_v19  ;;  %v382_v6 = vadd.f32 %v1167_v20, %v381_v21 }
 0x180   :  { %vm365_vm11 = vmor %vm363_vm10, %vm364_vm9  ;;  %vm517_vm10 = vcmp.gt.s32.totalorder %v1752_v17, 5 }
 0x181   :  { %v360_v43 = vsub.f32 1.0, %v359_v22  ;;  %v387_v22 = vand.u32 2147483647, %v377_v62  ;;  %v386_v4 = vsel %vm385_vm15, %v1167_v20, %v382_v6  ;;  %v2126_v6 = vld [vmem:[#allocation30_spill] sm:$0xff]  ;;  %v2127_v62 = vld [vmem:[#allocation35_spill] sm:$0xff] }
 0x182   :  { %v2128_v20 = vld [vmem:[#allocation31_spill] sm:$0xff] }
 0x183   :  { %v361_v14 = vmul.f32 %v1169_v19, %v360_v43  ;;  %v2120_v43 = vld [vmem:[#allocation26_spill] sm:$0xff]  ;;  %vm388_vm0 = vcmp.eq.f32.partialorder %v387_v22, 8.507059e+37 }
 0x184   :  { %v391_v23 = vsel %vm388_vm0, %v390_v8, %v386_v4  ;;  %v2121_v8 = vld [vmem:[#allocation33_spill] sm:$0xff] }
 0x185   :  { %v362_v7 = vadd.f32 %v1169_v19, %v361_v14  ;;  %v396_v9 = vsub.f32 1.0, %v391_v23 }
 0x187   :  { %v366_v50 = vsel %vm365_vm11, %v1169_v19, %v362_v7  ;;  %v398_v19 = vmul.f32 %v391_v23, %v1755_v18  ;;  %v2129_v7 = vld [vmem:[#allocation32_spill] sm:$0xff]  ;;  %v2133_v23 = vld [vmem:[#allocation22_spill] sm:$0xff] }
 0x188   :  { %v371_v16 = vsel %vm368_vm12, %v370_v12, %v366_v50  ;;  %v2130_v50 = vld [vmem:[#allocation36_spill] sm:$0xff] }
 0x189   :  { %v393_v10 = vmul.f32 %v371_v16, %v351_v15 }
 0x18b   :  { %v394_v61 = vadd.f32 %v2120_v43, %v393_v10  ;;  %v2131_v10 = vld [vmem:[#allocation37_spill] sm:$0xff] }
 0x18c   :  { %v2132_v43 = vld [vmem:[#allocation21_spill] sm:$0xff] }
 0x18d   :  { %1170 = vtanh.f32 %v394_v61  ;;  %v2123_v61 = vld [vmem:[#allocation28_spill] sm:$0xff] }
 0x193   :  { %v1171_v14 = vpop.eup %1170 }
 0x194   :  { %v397_v0 = vmul.f32 %v1171_v14, %v396_v9 }
 0x196   :  { %v399_v13 = vadd.f32 %v398_v19, %v397_v0 }
 0x198   :  { %v1814_v21 = vsel %vm402_vm1, %v399_v13, %v1755_v18  ;;  %v2124_v18 = vld [vmem:[#allocation34_spill] sm:$0xff] }
 0x199   :  { %424 = vmatmul.f32.vlgmr.msrb.gmra.mxu2 %v1814_v21  ;;  %444 = vmatmul.f32.vlgmr.msrb.gmra.mxu3 %v1814_v21 }
 0x19a   :  { %464 = vmatmul.f32.vlgmr.msra.gmra.mxu0 %v1814_v21  ;;  %678 = vmatpush.msrb.mxu2 %v1497_v36 }
 0x19b   :  { %753 = vmatpush.msrb.mxu3 %v1462_v24  ;;  %773 = vmatpush.msra.mxu0 %v1464_v25 }
 0x19c   :  { %679 = vmatpush.msrb.mxu2 %v1502_v37 }
 0x19d   :  { %754 = vmatpush.msrb.mxu3 %v1466_v26  ;;  %774 = vmatpush.msra.mxu0 %v1470_v27  ;;  %v2122_v26 = vld [vmem:[#allocation27_spill] sm:$0xff] }
 0x19e   :  { %680 = vmatpush.msrb.mxu2 %v1512_v40 }
 0x19f   :  { %755 = vmatpush.msrb.mxu3 %v1472_v28  ;;  %775 = vmatpush.msra.mxu0 %v1474_v29 }
 0x1a0   :  { %681 = vmatpush.msrb.mxu2 %v1521_v44 }
 0x1a1   :  { %756 = vmatpush.msrb.mxu3 %v1479_v30  ;;  %776 = vmatpush.msra.mxu0 %v1481_v31 }
 0x1a2   :  { %682 = vmatpush.msrb.mxu2 %v1531_v47 }
 0x1a3   :  { %757 = vmatpush.msrb.mxu3 %v1486_v32  ;;  %777 = vmatpush.msra.mxu0 %v1488_v33 }
 0x1a4   :  { %683 = vmatpush.msrb.mxu2 %v1544_v51 }
 0x1a5   :  { %758 = vmatpush.msrb.mxu3 %v1493_v34  ;;  %778 = vmatpush.msra.mxu0 %v1495_v35 }
 0x1a6   :  { %684 = vmatpush.msrb.mxu2 %v1553_v54 }
 0x1a7   :  { %759 = vmatpush.msrb.mxu3 %v1504_v38  ;;  %779 = vmatpush.msra.mxu0 %v1506_v39 }
 0x1a8   :  { %685 = vmatpush.msrb.mxu2 %v1563_v57 }
 0x1a9   :  { %760 = vmatpush.msrb.mxu3 %v1514_v41  ;;  %780 = vmatpush.msra.mxu0 %v1516_v42 }
 0x1aa   :  { %686 = vmatpush.msrb.mxu2 %v1573_v60 }
 0x1ab   :  { %761 = vmatpush.msrb.mxu3 %v1523_v45  ;;  %781 = vmatpush.msra.mxu0 %v1525_v46 }
 0x1ac   :  { %687 = vmatpush.msrb.mxu2 %v1583_v63 }
 0x1ad   :  { %762 = vmatpush.msrb.mxu3 %v1533_v48  ;;  %782 = vmatpush.msra.mxu0 %v1535_v49 }
 0x1ae   :  { %688 = vmatpush.msrb.mxu2 %v1593_v2 }
 0x1af   :  { %763 = vmatpush.msrb.mxu3 %v1546_v52  ;;  %783 = vmatpush.msra.mxu0 %v1548_v53 }
 0x1b0   :  { %689 = vmatpush.msrb.mxu2 %v1604_v5 }
 0x1b1   :  { %764 = vmatpush.msrb.mxu3 %v1555_v55  ;;  %784 = vmatpush.msra.mxu0 %v1557_v56 }
 0x1b2   :  { %690 = vmatpush.msrb.mxu2 %v1609_v3 }
 0x1b3   :  { %765 = vmatpush.msrb.mxu3 %v1565_v58  ;;  %785 = vmatpush.msra.mxu0 %v1567_v59 }
 0x1b4   :  { %691 = vmatpush.msrb.mxu2 %v2121_v8 }
 0x1b5   :  { %766 = vmatpush.msrb.mxu3 %v2122_v26  ;;  %786 = vmatpush.msra.mxu0 %v2123_v61 }
 0x1b6   :  { %692 = vmatpush.msrb.mxu2 %v2124_v18 }
 0x1b7   :  { %767 = vmatpush.msrb.mxu3 %v2125_v1  ;;  %787 = vmatpush.msra.mxu0 %v2126_v6 }
 0x1b8   :  { %693 = vmatpush.msrb.mxu2 %v2127_v62 }
 0x1b9   :  { %768 = vmatpush.msrb.mxu3 %v2128_v20  ;;  %788 = vmatpush.msra.mxu0 %v2129_v7 }
 0x21c   :  { %v425_v12 = vpop.f32.mrf.mxu2  ;;  %v445_v15 = vpop.f32.mrf.mxu3 }
 0x21d   :  { %v426_v16 = vadd.f32 %v425_v12, %v2130_v50  ;;  %v446_v22 = vadd.f32 %v445_v15, %v2131_v10 }
 0x21f   :  { %v468_v4 = vadd.f32 %v2132_v43, %v426_v16  ;;  %v488_v9 = vadd.f32 %v2133_v23, %v446_v22  ;;  %v465_v43 = vpop.f32.mrf.mxu0 }
 0x221   :  { %v1134_v14 = vmul.f32 -1.442695, %v468_v4  ;;  %v1135_v0 = vmul.f32 -1.442695, %v488_v9 }
 0x223   :  { %1172 = vpow2.f32 %v1134_v14  ;;  %v466_v14 = vadd.f32 %v465_v43, %v1748_v11 }
 0x224   :  { %1174 = vpow2.f32 %v1135_v0 }
 0x229   :  { %v1173_v19 = vpop.eup %1172 }
 0x22a   :  { %v1175_v13 = vpop.eup %1174  ;;  %v472_v62 = vadd.f32 1.0, %v1173_v19 }
 0x22b   :  { %v492_v20 = vadd.f32 1.0, %v1175_v13 }
 0x22c   :  { %1176 = vrcp.f32 %v472_v62  ;;  %v484_v15 = vand.u32 2147483648, %v472_v62  ;;  %v482_v22 = vand.u32 2147483647, %v472_v62  ;;  %vm478_vm3 = vweird.f32 %v472_v62 }
 0x22d   :  { %1178 = vrcp.f32 %v492_v20  ;;  %vm498_vm7 = vweird.f32 %v492_v20 }
 0x22e   :  { %v485_v9 = vor.u32 1.1754944e-38, %v484_v15  ;;  %vm483_vm5 = vcmp.eq.f32.partialorder %v482_v22, 8.507059e+37 }
 0x232   :  { %v1177_v7 = vpop.eup %1176 }
 0x233   :  { %v1179_v6 = vpop.eup %1178  ;;  %v474_v1 = vmul.f32 %v1177_v7, %v472_v62  ;;  %vm479_vm2 = vweird.f32 %v1177_v7 }
 0x234   :  { %v494_v12 = vmul.f32 %v1179_v6, %v492_v20  ;;  %vm480_vm4 = vmor %vm478_vm3, %vm479_vm2  ;;  %vm499_vm6 = vweird.f32 %v1179_v6  ;;  %vm632_vm3 = vcmp.gt.s32.totalorder %v1752_v17, 4 }
 0x235   :  { %v475_v50 = vsub.f32 1.0, %v474_v1  ;;  %v504_v1 = vand.u32 2147483648, %v492_v20  ;;  %vm500_vm8 = vmor %vm498_vm7, %vm499_vm6 }
 0x236   :  { %v495_v10 = vsub.f32 1.0, %v494_v12  ;;  %v502_v12 = vand.u32 2147483647, %v492_v20 }
 0x237   :  { %v476_v16 = vmul.f32 %v1177_v7, %v475_v50  ;;  %v2134_v50 = vld [vmem:[#allocation23_spill] sm:$0xff] }
 0x238   :  { %v496_v4 = vmul.f32 %v1179_v6, %v495_v10  ;;  %v505_v10 = vor.u32 1.1754944e-38, %v504_v1  ;;  %vm503_vm9 = vcmp.eq.f32.partialorder %v502_v12, 8.507059e+37 }
 0x239   :  { %v477_v23 = vadd.f32 %v1177_v7, %v476_v16 }
 0x23a   :  { %v497_v13 = vadd.f32 %v1179_v6, %v496_v4 }
 0x23b   :  { %v481_v0 = vsel %vm480_vm4, %v1177_v7, %v477_v23  ;;  %v2147_v23 = vld [vmem:[#allocation20_spill] sm:$0xff] }
 0x23c   :  { %v486_v19 = vsel %vm483_vm5, %v485_v9, %v481_v0  ;;  %v501_v26 = vsel %vm500_vm8, %v1179_v6, %v497_v13 }
 0x23d   :  { %v508_v18 = vmul.f32 %v486_v19, %v466_v14  ;;  %v506_v62 = vsel %vm503_vm9, %v505_v10, %v501_v26  ;;  %v1885_v26 = vld [vmem:[#allocation3 + $0x150] sm:$0xff] }
 0x23e   :  { %v511_v15 = vsub.f32 1.0, %v506_v62  ;;  %v513_v7 = vmul.f32 %v506_v62, %v1814_v21 }
 0x23f   :  { %v509_v61 = vadd.f32 %v2134_v50, %v508_v18 }
 0x241   :  { %1180 = vtanh.f32 %v509_v61 }
 0x247   :  { %v1181_v16 = vpop.eup %1180 }
 0x248   :  { %v512_v43 = vmul.f32 %v1181_v16, %v511_v15  ;;  %v1945_v15 = vld [vmem:[#allocation3 + $0x178] sm:$0xff]  ;;  %v1234_v16 = vld [vmem:[#allocation3 + $0x168] sm:$0xff] }
 0x24a   :  { %v514_v22 = vadd.f32 %v513_v7, %v512_v43  ;;  %v1235_v43 = vld [vmem:[#allocation3 + $0x170] sm:$0xff]  ;;  %v1948_v7 = vld [vmem:[#allocation3 + $0x160] sm:$0xff] }
 0x24c   :  { %v1876_v4 = vsel %vm517_vm10, %v514_v22, %v1814_v21  ;;  %v1237_v22 = vld [vmem:[#allocation3 + $0x158] sm:$0xff] }
 0x24d   :  { %539 = vmatmul.f32.vlgmr.msra.gmra.mxu1 %v1876_v4  ;;  %559 = vmatmul.f32.vlgmr.msra.gmra.mxu2 %v1876_v4 }
 0x24e   :  { %579 = vmatmul.f32.vlgmr.msra.gmra.mxu3 %v1876_v4  ;;  %793 = vmatpush.msra.mxu1 %v1497_v36 }
 0x24f   :  { %868 = vmatpush.msra.mxu2 %v1462_v24  ;;  %888 = vmatpush.msra.mxu3 %v1464_v25  ;;  %v2135_v24 = vld [vmem:[#allocation27_spill] sm:$0xff]  ;;  %v2137_v25 = vld [vmem:[#allocation34_spill] sm:$0xff] }
 0x250   :  { %794 = vmatpush.msra.mxu1 %v1502_v37  ;;  %v2145_v37 = vld [vmem:[#allocation37_spill] sm:$0xff] }
 0x251   :  { %869 = vmatpush.msra.mxu2 %v1885_v26  ;;  %889 = vmatpush.msra.mxu3 %v1470_v27  ;;  %v2138_v27 = vld [vmem:[#allocation29_spill] sm:$0xff] }
 0x252   :  { %795 = vmatpush.msra.mxu1 %v1512_v40 }
 0x253   :  { %870 = vmatpush.msra.mxu2 %v1472_v28  ;;  %890 = vmatpush.msra.mxu3 %v1474_v29  ;;  %v2140_v28 = vld [vmem:[#allocation35_spill] sm:$0xff] }
 0x254   :  { %796 = vmatpush.msra.mxu1 %v1521_v44  ;;  %v2141_v29 = vld [vmem:[#allocation31_spill] sm:$0xff] }
 0x255   :  { %871 = vmatpush.msra.mxu2 %v1479_v30  ;;  %891 = vmatpush.msra.mxu3 %v1481_v31  ;;  %v2143_v31 = vld [vmem:[#allocation36_spill] sm:$0xff] }
 0x256   :  { %797 = vmatpush.msra.mxu1 %v1531_v47 }
 0x257   :  { %872 = vmatpush.msra.mxu2 %v1486_v32  ;;  %892 = vmatpush.msra.mxu3 %v1488_v33  ;;  %v2144_v33 = vld [vmem:[#allocation18_spill] sm:$0xff] }
 0x258   :  { %798 = vmatpush.msra.mxu1 %v1544_v51 }
 0x259   :  { %873 = vmatpush.msra.mxu2 %v1493_v34  ;;  %893 = vmatpush.msra.mxu3 %v1495_v35 }
 0x25a   :  { %799 = vmatpush.msra.mxu1 %v1553_v54 }
 0x25b   :  { %874 = vmatpush.msra.mxu2 %v1504_v38  ;;  %894 = vmatpush.msra.mxu3 %v1506_v39  ;;  %v2146_v39 = vld [vmem:[#allocation19_spill] sm:$0xff] }
 0x25c   :  { %800 = vmatpush.msra.mxu1 %v1563_v57 }
 0x25d   :  { %875 = vmatpush.msra.mxu2 %v1514_v41  ;;  %895 = vmatpush.msra.mxu3 %v1516_v42 }
 0x25e   :  { %801 = vmatpush.msra.mxu1 %v1573_v60 }
 0x25f   :  { %876 = vmatpush.msra.mxu2 %v1523_v45  ;;  %896 = vmatpush.msra.mxu3 %v1525_v46 }
 0x260   :  { %802 = vmatpush.msra.mxu1 %v1583_v63 }
 0x261   :  { %877 = vmatpush.msra.mxu2 %v1533_v48  ;;  %897 = vmatpush.msra.mxu3 %v1535_v49 }
 0x262   :  { %803 = vmatpush.msra.mxu1 %v1593_v2  ;;  %v2136_v2 = vld [vmem:[#allocation28_spill] sm:$0xff] }
 0x263   :  { %878 = vmatpush.msra.mxu2 %v1546_v52  ;;  %898 = vmatpush.msra.mxu3 %v1548_v53 }
 0x264   :  { %804 = vmatpush.msra.mxu1 %v1604_v5  ;;  %v2139_v5 = vld [vmem:[#allocation30_spill] sm:$0xff] }
 0x265   :  { %879 = vmatpush.msra.mxu2 %v1555_v55  ;;  %899 = vmatpush.msra.mxu3 %v1557_v56 }
 0x266   :  { %805 = vmatpush.msra.mxu1 %v1609_v3  ;;  %v2142_v3 = vld [vmem:[#allocation32_spill] sm:$0xff] }
 0x267   :  { %880 = vmatpush.msra.mxu2 %v1565_v58  ;;  %900 = vmatpush.msra.mxu3 %v1567_v59 }
 0x268   :  { %806 = vmatpush.msra.mxu1 %v2121_v8 }
 0x269   :  { %881 = vmatpush.msra.mxu2 %v2135_v24  ;;  %901 = vmatpush.msra.mxu3 %v2136_v2  ;;  %v1239_v24 = vld [vmem:[#allocation3 + $0x138] sm:$0xff]  ;;  %v1240_v2 = vld [vmem:[#allocation3 + $0x140] sm:$0xff] }
 0x26a   :  { %807 = vmatpush.msra.mxu1 %v2137_v25  ;;  %v1955_v25 = vld [vmem:[#allocation3 + $0x130] sm:$0xff] }
 0x26b   :  { %882 = vmatpush.msra.mxu2 %v2138_v27  ;;  %902 = vmatpush.msra.mxu3 %v2139_v5  ;;  %v1242_v27 = vld [vmem:[#allocation3 + $0x120] sm:$0xff]  ;;  %v1243_v5 = vld [vmem:[#allocation3 + $0x128] sm:$0xff] }
 0x26c   :  { %808 = vmatpush.msra.mxu1 %v2140_v28  ;;  %v1958_v28 = vld [vmem:[#allocation3 + $0x118] sm:$0xff] }
 0x26d   :  { %883 = vmatpush.msra.mxu2 %v2141_v29  ;;  %903 = vmatpush.msra.mxu3 %v2142_v3  ;;  %v1246_v29 = vld [vmem:[#allocation3 + $0x110] sm:$0xff]  ;;  %v1961_v3 = vld [vmem:[#allocation3 + $0x100] sm:$0xff] }
 0x2ca   :  { %v540_v30 = vpop.f32.mrf.mxu1 }
 0x2cb   :  { %v541_v32 = vadd.f32 %v540_v30, %v2143_v31  ;;  %v1248_v30 = vld [vmem:[#allocation3 + $0xf0] sm:$0xff] }
 0x2cd   :  { %v583_v34 = vadd.f32 %v2144_v33, %v541_v32  ;;  %v1249_v32 = vld [vmem:[#allocation3 + $0xf8] sm:$0xff]  ;;  %v1964_v33 = vld [vmem:[#allocation3 + $0xe8] sm:$0xff] }
 0x2cf   :  { %v1136_v35 = vmul.f32 -1.442695, %v583_v34  ;;  %v1251_v34 = vld [vmem:[#allocation3 + $0xd8] sm:$0xff] }
 0x2d0   :  { %v560_v36 = vpop.f32.mrf.mxu2 }
 0x2d1   :  { %1182 = vpow2.f32 %v1136_v35  ;;  %v561_v38 = vadd.f32 %v560_v36, %v2145_v37  ;;  %v580_v55 = vpop.f32.mrf.mxu3  ;;  %v1252_v35 = vld [vmem:[#allocation3 + $0xe0] sm:$0xff]  ;;  %v1967_v36 = vld [vmem:[#allocation3 + $0xd0] sm:$0xff] }
 0x2d2   :  { %v581_v60 = vadd.f32 %v580_v55, %v1748_v11  ;;  %v1269_v55 = vld [vmem:[#allocation3 + $0x48] sm:$0xff] }
 0x2d3   :  { %v603_v40 = vadd.f32 %v2146_v39, %v561_v38  ;;  %v1254_v38 = vld [vmem:[#allocation3 + $0xc0] sm:$0xff]  ;;  %v1255_v39 = vld [vmem:[#allocation3 + $0xc8] sm:$0xff] }
 0x2d5   :  { %v1137_v41 = vmul.f32 -1.442695, %v603_v40  ;;  %v1970_v40 = vld [vmem:[#allocation3 + $0xb8] sm:$0xff] }
 0x2d7   :  { %v1183_v42 = vpop.eup %1182  ;;  %1184 = vpow2.f32 %v1137_v41  ;;  %v1257_v41 = vld [vmem:[#allocation3 + $0xa8] sm:$0xff] }
 0x2d8   :  { %v587_v44 = vadd.f32 1.0, %v1183_v42  ;;  %v1258_v42 = vld [vmem:[#allocation3 + $0xb0] sm:$0xff] }
 0x2da   :  { %1186 = vrcp.f32 %v587_v44  ;;  %v599_v51 = vand.u32 2147483648, %v587_v44  ;;  %v597_v53 = vand.u32 2147483647, %v587_v44  ;;  %vm593_vm12 = vweird.f32 %v587_v44 }
 0x2dc   :  { %v600_v58 = vor.u32 1.1754944e-38, %v599_v51  ;;  %vm598_vm14 = vcmp.eq.f32.partialorder %v597_v53, 8.507059e+37  ;;  %v1979_v51 = vld [vmem:[#allocation3 + $0x70] sm:$0xff]  ;;  %v1267_v53 = vld [vmem:[#allocation3 + $0x68] sm:$0xff] }
 0x2dd   :  { %v1185_v45 = vpop.eup %1184 }
 0x2de   :  { %v607_v46 = vadd.f32 1.0, %v1185_v45  ;;  %v1260_v45 = vld [vmem:[#allocation3 + $0x90] sm:$0xff] }
 0x2e0   :  { %v1187_v47 = vpop.eup %1186  ;;  %1188 = vrcp.f32 %v607_v46  ;;  %v619_v61 = vand.u32 2147483648, %v607_v46  ;;  %v617_v6 = vand.u32 2147483647, %v607_v46  ;;  %vm613_vm0 = vweird.f32 %v607_v46 }
 0x2e1   :  { %v589_v48 = vmul.f32 %v1187_v47, %v587_v44  ;;  %vm594_vm11 = vweird.f32 %v1187_v47  ;;  %v1973_v44 = vld [vmem:[#allocation3 + $0xa0] sm:$0xff] }
 0x2e2   :  { %vm595_vm13 = vmor %vm593_vm12, %vm594_vm11  ;;  %v620_v14 = vor.u32 1.1754944e-38, %v619_v61  ;;  %vm618_vm2 = vcmp.eq.f32.partialorder %v617_v6, 8.507059e+37  ;;  %v1278_v61 = vld [vmem:[#allocation3] sm:$0xff]  ;;  %vm747_vm12 = vcmp.gt.s32.totalorder %v1752_v17, 3 }
 0x2e3   :  { %v590_v49 = vsub.f32 1.0, %v589_v48  ;;  %v1263_v48 = vld [vmem:[#allocation3 + $0x78] sm:$0xff] }
 0x2e5   :  { %v591_v52 = vmul.f32 %v1187_v47, %v590_v49  ;;  %v1264_v49 = vld [vmem:[#allocation3 + $0x80] sm:$0xff] }
 0x2e6   :  { %v1189_v54 = vpop.eup %1188 }
 0x2e7   :  { %v609_v56 = vmul.f32 %v1189_v54, %v607_v46  ;;  %v592_v57 = vadd.f32 %v1187_v47, %v591_v52  ;;  %vm614_vm15 = vweird.f32 %v1189_v54  ;;  %v1261_v46 = vld [vmem:[#allocation3 + $0x98] sm:$0xff]  ;;  %v1266_v52 = vld [vmem:[#allocation3 + $0x60] sm:$0xff] }
 0x2e8   :  { %vm615_vm1 = vmor %vm613_vm0, %vm614_vm15 }
 0x2e9   :  { %v610_v59 = vsub.f32 1.0, %v609_v56  ;;  %v596_v63 = vsel %vm595_vm13, %v1187_v47, %v592_v57  ;;  %v1976_v47 = vld [vmem:[#allocation3 + $0x88] sm:$0xff]  ;;  %v1270_v56 = vld [vmem:[#allocation3 + $0x50] sm:$0xff]  ;;  %v1985_v57 = vld [vmem:[#allocation3 + $0x40] sm:$0xff] }
 0x2ea   :  { %v601_v21 = vsel %vm598_vm14, %v600_v58, %v596_v63  ;;  %v1272_v58 = vld [vmem:[#allocation3 + $0x30] sm:$0xff]  ;;  %v1275_v63 = vld [vmem:[#allocation3 + $0x18] sm:$0xff] }
 0x2eb   :  { %v611_v8 = vmul.f32 %v1189_v54, %v610_v59  ;;  %v623_v18 = vmul.f32 %v601_v21, %v581_v60  ;;  %v1273_v59 = vld [vmem:[#allocation3 + $0x38] sm:$0xff]  ;;  %v1988_v60 = vld [vmem:[#allocation3 + $0x28] sm:$0xff]  ;;  %v1276_v21 = vld [vmem:[#allocation3 + $0x20] sm:$0xff] }
 0x2ed   :  { %v612_v20 = vadd.f32 %v1189_v54, %v611_v8  ;;  %v624_v9 = vadd.f32 %v2147_v23, %v623_v18  ;;  %v1991_v8 = vld [vmem:[#allocation3 + $0x10] sm:$0xff]  ;;  %v1279_v18 = vld [vmem:[#allocation3 + $0x8] sm:$0xff] }
 0x2ef   :  { %v616_v0 = vsel %vm615_vm1, %v1189_v54, %v612_v20  ;;  %1190 = vtanh.f32 %v624_v9  ;;  %v1982_v54 = vld [vmem:[#allocation3 + $0x58] sm:$0xff] }
 0x2f0   :  { %v621_v19 = vsel %vm618_vm2, %v620_v14, %v616_v0  ;;  %v2148_v14 = vld [vmem:[#allocation15_spill] sm:$0xff] }
 0x2f1   :  { %v626_v13 = vsub.f32 1.0, %v621_v19  ;;  %v628_v50 = vmul.f32 %v621_v19, %v1876_v4  ;;  %v2149_v19 = vld [vmem:[#allocation16_spill] sm:$0xff] }
 0x2f5   :  { %v1191_v1 = vpop.eup %1190 }
 0x2f6   :  { %v627_v12 = vmul.f32 %v1191_v1, %v626_v13 }
 0x2f8   :  { %v629_v10 = vadd.f32 %v628_v50, %v627_v12 }
 0x2fa   :  { %v1940_v62 = vsel %vm632_vm3, %v629_v10, %v1876_v4  ;;  %v1952_v4 = vld [vmem:[#allocation3 + $0x148] sm:$0xff] }
 0x2fb   :  { %654 = vmatmul.f32.vlgmr.msrb.gmra.mxu0 %v1940_v62  ;;  %674 = vmatmul.f32.vlgmr.msrb.gmra.mxu1 %v1940_v62 }
 0x2fc   :  { %694 = vmatmul.f32.vlgmr.msrb.gmra.mxu2 %v1940_v62  ;;  %908 = vmatpush.msrb.mxu0 %v1945_v15 }
 0x2fd   :  { %982 = vmatpush.msrb.mxu1 %v1234_v16  ;;  %1002 = vmatpush.msrb.mxu2 %v1235_v43 }
 0x2fe   :  { %909 = vmatpush.msrb.mxu0 %v1948_v7 }
 0x2ff   :  { %983 = vmatpush.msrb.mxu1 %v1885_v26  ;;  %1003 = vmatpush.msrb.mxu2 %v1237_v22  ;;  %v1245_v26 = vld [vmem:[#allocation3 + $0x108] sm:$0xff] }
 0x300   :  { %910 = vmatpush.msrb.mxu0 %v1952_v4 }
 0x301   :  { %984 = vmatpush.msrb.mxu1 %v1239_v24  ;;  %1004 = vmatpush.msrb.mxu2 %v1240_v2 }
 0x302   :  { %911 = vmatpush.msrb.mxu0 %v1955_v25 }
 0x303   :  { %985 = vmatpush.msrb.mxu1 %v1242_v27  ;;  %1005 = vmatpush.msrb.mxu2 %v1243_v5 }
 0x304   :  { %912 = vmatpush.msrb.mxu0 %v1958_v28 }
 0x305   :  { %986 = vmatpush.msrb.mxu1 %v1245_v26  ;;  %1006 = vmatpush.msrb.mxu2 %v1246_v29 }
 0x306   :  { %913 = vmatpush.msrb.mxu0 %v1961_v3 }
 0x307   :  { %987 = vmatpush.msrb.mxu1 %v1248_v30  ;;  %1007 = vmatpush.msrb.mxu2 %v1249_v32 }
 0x308   :  { %914 = vmatpush.msrb.mxu0 %v1964_v33 }
 0x309   :  { %988 = vmatpush.msrb.mxu1 %v1251_v34  ;;  %1008 = vmatpush.msrb.mxu2 %v1252_v35 }
 0x30a   :  { %915 = vmatpush.msrb.mxu0 %v1967_v36 }
 0x30b   :  { %989 = vmatpush.msrb.mxu1 %v1254_v38  ;;  %1009 = vmatpush.msrb.mxu2 %v1255_v39 }
 0x30c   :  { %916 = vmatpush.msrb.mxu0 %v1970_v40 }
 0x30d   :  { %990 = vmatpush.msrb.mxu1 %v1257_v41  ;;  %1010 = vmatpush.msrb.mxu2 %v1258_v42 }
 0x30e   :  { %917 = vmatpush.msrb.mxu0 %v1973_v44 }
 0x30f   :  { %991 = vmatpush.msrb.mxu1 %v1260_v45  ;;  %1011 = vmatpush.msrb.mxu2 %v1261_v46 }
 0x310   :  { %918 = vmatpush.msrb.mxu0 %v1976_v47 }
 0x311   :  { %992 = vmatpush.msrb.mxu1 %v1263_v48  ;;  %1012 = vmatpush.msrb.mxu2 %v1264_v49 }
 0x312   :  { %919 = vmatpush.msrb.mxu0 %v1979_v51 }
 0x313   :  { %993 = vmatpush.msrb.mxu1 %v1266_v52  ;;  %1013 = vmatpush.msrb.mxu2 %v1267_v53  ;;  %v2150_v53 = vld [vmem:[#allocation17_spill] sm:$0xff] }
 0x314   :  { %920 = vmatpush.msrb.mxu0 %v1982_v54 }
 0x315   :  { %994 = vmatpush.msrb.mxu1 %v1269_v55  ;;  %1014 = vmatpush.msrb.mxu2 %v1270_v56 }
 0x316   :  { %921 = vmatpush.msrb.mxu0 %v1985_v57 }
 0x317   :  { %995 = vmatpush.msrb.mxu1 %v1272_v58  ;;  %1015 = vmatpush.msrb.mxu2 %v1273_v59 }
 0x318   :  { %922 = vmatpush.msrb.mxu0 %v1988_v60 }
 0x319   :  { %996 = vmatpush.msrb.mxu1 %v1275_v63  ;;  %1016 = vmatpush.msrb.mxu2 %v1276_v21 }
 0x31a   :  { %923 = vmatpush.msrb.mxu0 %v1991_v8 }
 0x31b   :  { %997 = vmatpush.msrb.mxu1 %v1278_v61  ;;  %1017 = vmatpush.msrb.mxu2 %v1279_v18 }
 0x378   :  { %v655_v6 = vpop.f32.mrf.mxu0  ;;  %v675_v20 = vpop.f32.mrf.mxu1 }
 0x379   :  { %v656_v23 = vadd.f32 %v655_v6, %v2143_v31  ;;  %v676_v9 = vadd.f32 %v675_v20, %v2145_v37 }
 0x37b   :  { %v698_v0 = vadd.f32 %v2148_v14, %v656_v23  ;;  %v718_v13 = vadd.f32 %v2149_v19, %v676_v9 }
 0x37d   :  { %v1138_v1 = vmul.f32 -1.442695, %v698_v0  ;;  %v1139_v12 = vmul.f32 -1.442695, %v718_v13 }
 0x37f   :  { %1192 = vpow2.f32 %v1138_v1  ;;  %v695_v35 = vpop.f32.mrf.mxu2 }
 0x380   :  { %1194 = vpow2.f32 %v1139_v12  ;;  %v696_v41 = vadd.f32 %v695_v35, %v1748_v11 }
 0x385   :  { %v1193_v50 = vpop.eup %1192 }
 0x386   :  { %v1195_v10 = vpop.eup %1194  ;;  %v702_v16 = vadd.f32 1.0, %v1193_v50 }
 0x387   :  { %v722_v43 = vadd.f32 1.0, %v1195_v10 }
 0x388   :  { %1196 = vrcp.f32 %v702_v16  ;;  %v714_v29 = vand.u32 2147483648, %v702_v16  ;;  %v712_v32 = vand.u32 2147483647, %v702_v16  ;;  %vm708_vm5 = vweird.f32 %v702_v16 }
 0x389   :  { %1198 = vrcp.f32 %v722_v43  ;;  %v734_v48 = vand.u32 2147483648, %v722_v43  ;;  %vm728_vm9 = vweird.f32 %v722_v43  ;;  %v732_v52 = vand.u32 2147483647, %v722_v43 }
 0x38a   :  { %v715_v39 = vor.u32 1.1754944e-38, %v714_v29  ;;  %vm713_vm7 = vcmp.eq.f32.partialorder %v712_v32, 8.507059e+37 }
 0x38b   :  { %v735_v58 = vor.u32 1.1754944e-38, %v734_v48  ;;  %vm733_vm11 = vcmp.eq.f32.partialorder %v732_v52, 8.507059e+37 }
 0x38e   :  { %v1197_v22 = vpop.eup %1196 }
 0x38f   :  { %v1199_v24 = vpop.eup %1198  ;;  %v704_v2 = vmul.f32 %v1197_v22, %v702_v16  ;;  %vm709_vm4 = vweird.f32 %v1197_v22 }
 0x390   :  { %v724_v27 = vmul.f32 %v1199_v24, %v722_v43  ;;  %vm710_vm6 = vmor %vm708_vm5, %vm709_vm4  ;;  %vm729_vm8 = vweird.f32 %v1199_v24  ;;  %vm862_vm5 = vcmp.gt.s32.totalorder %v1752_v17, 2 }
 0x391   :  { %v705_v5 = vsub.f32 1.0, %v704_v2  ;;  %vm730_vm10 = vmor %vm728_vm9, %vm729_vm8 }
 0x392   :  { %v725_v26 = vsub.f32 1.0, %v724_v27 }
 0x393   :  { %v706_v30 = vmul.f32 %v1197_v22, %v705_v5 }
 0x394   :  { %v726_v34 = vmul.f32 %v1199_v24, %v725_v26  ;;  %v2153_v26 = vld [vmem:[#allocation14_spill] sm:$0xff] }
 0x395   :  { %v707_v38 = vadd.f32 %v1197_v22, %v706_v30 }
 0x396   :  { %v727_v46 = vadd.f32 %v1199_v24, %v726_v34 }
 0x397   :  { %v711_v42 = vsel %vm710_vm6, %v1197_v22, %v707_v38 }
 0x398   :  { %v716_v45 = vsel %vm713_vm7, %v715_v39, %v711_v42  ;;  %v731_v56 = vsel %vm730_vm10, %v1199_v24, %v727_v46 }
 0x399   :  { %v738_v49 = vmul.f32 %v716_v45, %v696_v41  ;;  %v736_v59 = vsel %vm733_vm11, %v735_v58, %v731_v56  ;;  %v2155_v56 = vld [vmem:[#allocation10_spill] sm:$0xff] }
 0x39a   :  { %v741_v63 = vsub.f32 1.0, %v736_v59  ;;  %v743_v18 = vmul.f32 %v736_v59, %v1940_v62 }
 0x39b   :  { %v739_v55 = vadd.f32 %v2150_v53, %v738_v49  ;;  %v2154_v53 = vld [vmem:[#allocation9_spill] sm:$0xff] }
 0x39d   :  { %1200 = vtanh.f32 %v739_v55 }
 0x3a3   :  { %v1201_v21 = vpop.eup %1200 }
 0x3a4   :  { %v742_v61 = vmul.f32 %v1201_v21, %v741_v63 }
 0x3a6   :  { %v744_v6 = vadd.f32 %v743_v18, %v742_v61 }
 0x3a8   :  { %v2003_v20 = vsel %vm747_vm12, %v744_v6, %v1940_v62 }
 0x3a9   :  { %769 = vmatmul.f32.vlgmr.msrb.gmra.mxu3 %v2003_v20  ;;  %789 = vmatmul.f32.vlgmr.msra.gmra.mxu0 %v2003_v20 }
 0x3aa   :  { %809 = vmatmul.f32.vlgmr.msra.gmra.mxu1 %v2003_v20  ;;  %1022 = vmatpush.msrb.mxu3 %v1945_v15 }
 0x3ac   :  { %1023 = vmatpush.msrb.mxu3 %v1948_v7  ;;  %v2151_v7 = vld [vmem:[#allocation13_spill] sm:$0xff] }
 0x3ae   :  { %1024 = vmatpush.msrb.mxu3 %v1952_v4 }
 0x3b0   :  { %1025 = vmatpush.msrb.mxu3 %v1955_v25 }
 0x3b2   :  { %1026 = vmatpush.msrb.mxu3 %v1958_v28 }
 0x3b4   :  { %1027 = vmatpush.msrb.mxu3 %v1961_v3 }
 0x3b6   :  { %1028 = vmatpush.msrb.mxu3 %v1964_v33  ;;  %v2152_v33 = vld [vmem:[#allocation12_spill] sm:$0xff] }
 0x3b8   :  { %1029 = vmatpush.msrb.mxu3 %v1967_v36 }
 0x3ba   :  { %1030 = vmatpush.msrb.mxu3 %v1970_v40 }
 0x3bc   :  { %1031 = vmatpush.msrb.mxu3 %v1973_v44 }
 0x3be   :  { %1032 = vmatpush.msrb.mxu3 %v1976_v47 }
 0x3c0   :  { %1033 = vmatpush.msrb.mxu3 %v1979_v51 }
 0x3c2   :  { %1034 = vmatpush.msrb.mxu3 %v1982_v54 }
 0x3c4   :  { %1035 = vmatpush.msrb.mxu3 %v1985_v57 }
 0x3c6   :  { %1036 = vmatpush.msrb.mxu3 %v1988_v60 }
 0x3c8   :  { %1037 = vmatpush.msrb.mxu3 %v1991_v8 }
 0x426   :  { %v790_v62 = vpop.f32.mrf.mxu0 }
 0x427   :  { %v791_v15 = vadd.f32 %v790_v62, %v2145_v37  ;;  %v810_v12 = vpop.f32.mrf.mxu1 }
 0x428   :  { %v811_v16 = vadd.f32 %v810_v12, %v1748_v11 }
 0x429   :  { %v833_v4 = vadd.f32 %v2151_v7, %v791_v15 }
 0x42b   :  { %v1141_v25 = vmul.f32 -1.442695, %v833_v4 }
 0x42c   :  { %v770_v28 = vpop.f32.mrf.mxu3 }
 0x42d   :  { %1202 = vpow2.f32 %v1141_v25  ;;  %v771_v3 = vadd.f32 %v770_v28, %v2143_v31 }
 0x42f   :  { %v813_v36 = vadd.f32 %v2152_v33, %v771_v3 }
 0x431   :  { %v1140_v40 = vmul.f32 -1.442695, %v813_v36 }
 0x433   :  { %v1203_v44 = vpop.eup %1202  ;;  %1204 = vpow2.f32 %v1140_v40 }
 0x434   :  { %v837_v47 = vadd.f32 1.0, %v1203_v44 }
 0x436   :  { %1206 = vrcp.f32 %v837_v47  ;;  %v849_v2 = vand.u32 2147483648, %v837_v47  ;;  %vm843_vm2 = vweird.f32 %v837_v47  ;;  %v847_v5 = vand.u32 2147483647, %v837_v47 }
 0x438   :  { %v850_v32 = vor.u32 1.1754944e-38, %v849_v2  ;;  %vm848_vm4 = vcmp.eq.f32.partialorder %v847_v5, 8.507059e+37 }
 0x439   :  { %v1205_v51 = vpop.eup %1204 }
 0x43a   :  { %v817_v54 = vadd.f32 1.0, %v1205_v51 }
 0x43c   :  { %1208 = vrcp.f32 %v817_v54  ;;  %v1207_v57 = vpop.eup %1206  ;;  %v829_v0 = vand.u32 2147483648, %v817_v54  ;;  %v827_v13 = vand.u32 2147483647, %v817_v54  ;;  %vm823_vm14 = vweird.f32 %v817_v54 }
 0x43d   :  { %v839_v60 = vmul.f32 %v1207_v57, %v837_v47  ;;  %vm844_vm1 = vweird.f32 %v1207_v57 }
 0x43e   :  { %v830_v10 = vor.u32 1.1754944e-38, %v829_v0  ;;  %vm828_vm0 = vcmp.eq.f32.partialorder %v827_v13, 8.507059e+37  ;;  %vm845_vm3 = vmor %vm843_vm2, %vm844_vm1 }
 0x43f   :  { %v840_v9 = vsub.f32 1.0, %v839_v60 }
 0x441   :  { %v841_v1 = vmul.f32 %v1207_v57, %v840_v9 }
 0x442   :  { %v1209_v8 = vpop.eup %1208 }
 0x443   :  { %v819_v23 = vmul.f32 %v1209_v8, %v817_v54  ;;  %vm824_vm13 = vweird.f32 %v1209_v8  ;;  %v842_v24 = vadd.f32 %v1207_v57, %v841_v1 }
 0x444   :  { %vm825_vm15 = vmor %vm823_vm14, %vm824_vm13  ;;  %vm977_vm14 = vcmp.gt.s32.totalorder %v1752_v17, 1 }
 0x445   :  { %v820_v14 = vsub.f32 1.0, %v819_v23  ;;  %v846_v30 = vsel %vm845_vm3, %v1207_v57, %v842_v24 }
 0x446   :  { %v851_v34 = vsel %vm848_vm4, %v850_v32, %v846_v30  ;;  %v2158_v32 = vld [vmem:[#allocation7_spill] sm:$0xff] }
 0x447   :  { %v821_v19 = vmul.f32 %v1209_v8, %v820_v14  ;;  %v856_v35 = vsub.f32 1.0, %v851_v34  ;;  %v858_v41 = vmul.f32 %v851_v34, %v2003_v20  ;;  %v2156_v14 = vld [vmem:[#allocation11_spill] sm:$0xff] }
 0x449   :  { %v822_v50 = vadd.f32 %v1209_v8, %v821_v19 }
 0x44b   :  { %v826_v43 = vsel %vm825_vm15, %v1209_v8, %v822_v50 }
 0x44c   :  { %v831_v22 = vsel %vm828_vm0, %v830_v10, %v826_v43 }
 0x44d   :  { %v853_v27 = vmul.f32 %v831_v22, %v811_v16 }
 0x44f   :  { %v854_v29 = vadd.f32 %v2153_v26, %v853_v27  ;;  %v2157_v27 = vld [vmem:[#allocation6_spill] sm:$0xff] }
 0x451   :  { %1210 = vtanh.f32 %v854_v29 }
 0x457   :  { %v1211_v38 = vpop.eup %1210 }
 0x458   :  { %v857_v39 = vmul.f32 %v1211_v38, %v856_v35 }
 0x45a   :  { %v859_v42 = vadd.f32 %v858_v41, %v857_v39 }
 0x45c   :  { %v863_v45 = vsel %vm862_vm5, %v859_v42, %v2003_v20 }
 0x45d   :  { %884 = vmatmul.f32.vlgmr.msra.gmra.mxu2 %v863_v45  ;;  %904 = vmatmul.f32.vlgmr.msra.gmra.mxu3 %v863_v45 }
 0x45e   :  { %924 = vmatmul.f32.vlgmr.msrb.gmra.mxu0 %v863_v45 }
 0x4db   :  { %v925_v36 = vpop.f32.mrf.mxu0 }
 0x4dc   :  { %v926_v51 = vadd.f32 %v925_v36, %v1748_v11 }
 0x4e0   :  { %v885_v46 = vpop.f32.mrf.mxu2  ;;  %v905_v48 = vpop.f32.mrf.mxu3 }
 0x4e1   :  { %v886_v49 = vadd.f32 %v885_v46, %v2143_v31  ;;  %v906_v52 = vadd.f32 %v905_v48, %v2145_v37 }
 0x4e3   :  { %v928_v55 = vadd.f32 %v2154_v53, %v886_v49  ;;  %v948_v58 = vadd.f32 %v2155_v56, %v906_v52 }
 0x4e5   :  { %v1142_v59 = vmul.f32 -1.442695, %v928_v55  ;;  %v1143_v63 = vmul.f32 -1.442695, %v948_v58 }
 0x4e7   :  { %1212 = vpow2.f32 %v1142_v59 }
 0x4e8   :  { %1214 = vpow2.f32 %v1143_v63 }
 0x4ed   :  { %v1213_v21 = vpop.eup %1212 }
 0x4ee   :  { %v1215_v61 = vpop.eup %1214  ;;  %v932_v18 = vadd.f32 1.0, %v1213_v21 }
 0x4ef   :  { %v952_v6 = vadd.f32 1.0, %v1215_v61 }
 0x4f0   :  { %1216 = vrcp.f32 %v932_v18  ;;  %v944_v25 = vand.u32 2147483648, %v932_v18  ;;  %v942_v33 = vand.u32 2147483647, %v932_v18  ;;  %vm938_vm7 = vweird.f32 %v932_v18 }
 0x4f1   :  { %1218 = vrcp.f32 %v952_v6  ;;  %v964_v23 = vand.u32 2147483648, %v952_v6  ;;  %vm958_vm11 = vweird.f32 %v952_v6  ;;  %v962_v9 = vand.u32 2147483647, %v952_v6 }
 0x4f2   :  { %v945_v47 = vor.u32 1.1754944e-38, %v944_v25  ;;  %vm943_vm9 = vcmp.eq.f32.partialorder %v942_v33, 8.507059e+37 }
 0x4f3   :  { %v965_v13 = vor.u32 1.1754944e-38, %v964_v23  ;;  %vm963_vm13 = vcmp.eq.f32.partialorder %v962_v9, 8.507059e+37 }
 0x4f6   :  { %v1217_v20 = vpop.eup %1216 }
 0x4f7   :  { %v1219_v62 = vpop.eup %1218  ;;  %v934_v15 = vmul.f32 %v1217_v20, %v932_v18  ;;  %vm939_vm6 = vweird.f32 %v1217_v20 }
 0x4f8   :  { %v954_v7 = vmul.f32 %v1219_v62, %v952_v6  ;;  %vm940_vm8 = vmor %vm938_vm7, %vm939_vm6  ;;  %vm959_vm10 = vweird.f32 %v1219_v62  ;;  %vm1090_vm7 = vcmp.gt.s32.totalorder %v1752_v17, 0 }
 0x4f9   :  { %v935_v4 = vsub.f32 1.0, %v934_v15  ;;  %vm960_vm12 = vmor %vm958_vm11, %vm959_vm10 }
 0x4fa   :  { %v955_v28 = vsub.f32 1.0, %v954_v7  ;;  %v2159_v7 = vld [vmem:[#allocation8_spill] sm:$0xff] }
 0x4fb   :  { %v936_v3 = vmul.f32 %v1217_v20, %v935_v4 }
 0x4fc   :  { %v956_v40 = vmul.f32 %v1219_v62, %v955_v28 }
 0x4fd   :  { %v937_v44 = vadd.f32 %v1217_v20, %v936_v3 }
 0x4fe   :  { %v957_v60 = vadd.f32 %v1219_v62, %v956_v40 }
 0x4ff   :  { %v941_v54 = vsel %vm940_vm8, %v1217_v20, %v937_v44 }
 0x500   :  { %v946_v57 = vsel %vm943_vm9, %v945_v47, %v941_v54  ;;  %v961_v19 = vsel %vm960_vm12, %v1219_v62, %v957_v60 }
 0x501   :  { %v968_v8 = vmul.f32 %v946_v57, %v926_v51  ;;  %v966_v1 = vsel %vm963_vm13, %v965_v13, %v961_v19 }
 0x502   :  { %v971_v12 = vsub.f32 1.0, %v966_v1  ;;  %v973_v16 = vmul.f32 %v966_v1, %v863_v45 }
 0x503   :  { %v969_v0 = vadd.f32 %v2156_v14, %v968_v8 }
 0x505   :  { %1220 = vtanh.f32 %v969_v0 }
 0x50b   :  { %v1221_v50 = vpop.eup %1220 }
 0x50c   :  { %v972_v10 = vmul.f32 %v1221_v50, %v971_v12 }
 0x50e   :  { %v974_v43 = vadd.f32 %v973_v16, %v972_v10 }
 0x510   :  { %v978_v22 = vsel %vm977_vm14, %v974_v43, %v863_v45 }
 0x511   :  { %998 = vmatmul.f32.vlgmr.msrb.gmra.mxu1 %v978_v22  ;;  %1018 = vmatmul.f32.vlgmr.msrb.gmra.mxu2 %v978_v22 }
 0x512   :  { %1038 = vmatmul.f32.vlgmr.msrb.gmra.mxu3 %v978_v22 }
 0x58e   :  { %v999_v24 = vpop.f32.mrf.mxu1 }
 0x58f   :  { %v1000_v2 = vadd.f32 %v999_v24, %v2143_v31 }
 0x591   :  { %v1042_v5 = vadd.f32 %v2157_v27, %v1000_v2 }
 0x593   :  { %v1144_v26 = vmul.f32 -1.442695, %v1042_v5 }
 0x594   :  { %v1019_v29 = vpop.f32.mrf.mxu2 }
 0x595   :  { %1222 = vpow2.f32 %v1144_v26  ;;  %v1020_v30 = vadd.f32 %v1019_v29, %v2145_v37  ;;  %v1039_v55 = vpop.f32.mrf.mxu3 }
 0x596   :  { %v1040_v63 = vadd.f32 %v1039_v55, %v1748_v11 }
 0x597   :  { %v1062_v34 = vadd.f32 %v2158_v32, %v1020_v30 }
 0x599   :  { %v1145_v35 = vmul.f32 -1.442695, %v1062_v34 }
 0x59b   :  { %v1223_v38 = vpop.eup %1222  ;;  %1224 = vpow2.f32 %v1145_v35 }
 0x59c   :  { %v1046_v39 = vadd.f32 1.0, %v1223_v38 }
 0x59e   :  { %1226 = vrcp.f32 %v1046_v39  ;;  %v1058_v48 = vand.u32 2147483648, %v1046_v39  ;;  %v1056_v52 = vand.u32 2147483647, %v1046_v39  ;;  %vm1052_vm0 = vweird.f32 %v1046_v39 }
 0x5a0   :  { %v1059_v58 = vor.u32 1.1754944e-38, %v1058_v48  ;;  %vm1057_vm2 = vcmp.eq.f32.partialorder %v1056_v52, 8.507059e+37 }
 0x5a1   :  { %v1225_v41 = vpop.eup %1224 }
 0x5a2   :  { %v1066_v42 = vadd.f32 1.0, %v1225_v41 }
 0x5a4   :  { %v1227_v45 = vpop.eup %1226  ;;  %1228 = vrcp.f32 %v1066_v42  ;;  %v1078_v6 = vand.u32 2147483648, %v1066_v42  ;;  %v1076_v62 = vand.u32 2147483647, %v1066_v42  ;;  %vm1072_vm4 = vweird.f32 %v1066_v42 }
 0x5a5   :  { %v1048_v46 = vmul.f32 %v1227_v45, %v1046_v39  ;;  %vm1053_vm15 = vweird.f32 %v1227_v45 }
 0x5a6   :  { %vm1054_vm1 = vmor %vm1052_vm0, %vm1053_vm15  ;;  %v1079_v25 = vor.u32 1.1754944e-38, %v1078_v6  ;;  %vm1077_vm6 = vcmp.eq.f32.partialorder %v1076_v62, 8.507059e+37 }
 0x5a7   :  { %v1049_v31 = vsub.f32 1.0, %v1048_v46 }
 0x5a9   :  { %v1050_v49 = vmul.f32 %v1227_v45, %v1049_v31 }
 0x5aa   :  { %v1229_v53 = vpop.eup %1228 }
 0x5ab   :  { %v1068_v37 = vmul.f32 %v1229_v53, %v1066_v42  ;;  %v1051_v56 = vadd.f32 %v1227_v45, %v1050_v49  ;;  %vm1073_vm3 = vweird.f32 %v1229_v53 }
 0x5ac   :  { %vm1074_vm5 = vmor %vm1072_vm4, %vm1073_vm3 }
 0x5ad   :  { %v1069_v59 = vsub.f32 1.0, %v1068_v37  ;;  %v1055_v21 = vsel %vm1054_vm1, %v1227_v45, %v1051_v56 }
 0x5ae   :  { %v1060_v61 = vsel %vm1057_vm2, %v1059_v58, %v1055_v21 }
 0x5af   :  { %v1070_v18 = vmul.f32 %v1229_v53, %v1069_v59  ;;  %v1082_v20 = vmul.f32 %v1060_v61, %v1040_v63 }
 0x5b1   :  { %v1071_v15 = vadd.f32 %v1229_v53, %v1070_v18  ;;  %v1083_v4 = vadd.f32 %v2159_v7, %v1082_v20 }
 0x5b3   :  { %v1075_v28 = vsel %vm1074_vm5, %v1229_v53, %v1071_v15  ;;  %1230 = vtanh.f32 %v1083_v4 }
 0x5b4   :  { %v1080_v3 = vsel %vm1077_vm6, %v1079_v25, %v1075_v28 }
 0x5b5   :  { %v1085_v33 = vsub.f32 1.0, %v1080_v3  ;;  %v1087_v40 = vmul.f32 %v1080_v3, %v978_v22 }
 0x5b9   :  { %v1231_v11 = vpop.eup %1230 }
 0x5ba   :  { %v1086_v36 = vmul.f32 %v1231_v11, %v1085_v33 }
 0x5bc   :  { %v1088_v44 = vadd.f32 %v1087_v40, %v1086_v36 }
 0x5be   :  { %v1091_v47 = vsel %vm1090_vm7, %v1088_v44, %v978_v22 }
 0x5bf   :  { %1092 = vst [vmem:[%s2054_s4] sm:$0xff] %v1091_v47 }
 0x5c0   :  { %1097 = vsyncpa [#allocation4], 1 }

// kernel: seq2seq_forward.9
= control target key start
LH: loop header
LB: loop body
LE: loop exit
PB: predicated region body
PF: predicated region fallthrough
CT: control target
= control target key end

     0   :  { %s696_s12 = smov 0   ;;  %s698_s13 = smov 0   ;;  %s839_s0 = inlined_call_operand.vmem [shape: f32[48,128], index: 0, kind: input, shape index: {}]   ;;  %s840_s1 = inlined_call_operand.vmem [shape: f32[128,384], index: 1, kind: input, shape index: {}]   ;;  %s841_s2 = inlined_call_operand.vmem [shape: f32[1,384], index: 2, kind: input, shape index: {}]   ;;  %s842_s3 = inlined_call_operand.vmem [shape: f32[48,384], index: 3, kind: output, shape index: {}]  }
   0x1   :  { %s700_s14 = smov 0   ;;  %s702_s15 = smov 0  }
   0x2   :  { %s704_s16 = smov 0  }
   0x3 LB: > { %s25_s17 = sadd.s32 1, %s670_s15  ;;  %s534_s18 = sadd.s32 4294967295, %s674_s16   ;;  %s674_s16 = sphi %s704_s16, %s13_s16   ;;  %s670_s15 = sphi %s702_s15, %s847_s15   ;;  %s666_s14 = sphi %s700_s14, %s846_s14   ;;  %s662_s13 = sphi %s698_s13, %s845_s13   ;;  %s658_s12 = sphi %s696_s12, %s844_s12  }
   0x4   : > { %p27_p0 = scmp.ge.s32.totalorder %s25_s17, 3  ;;  %p65_p1 = scmp.ne.s32.totalorder %s662_s13, %s658_s12 }
   0x5   : > { %p66_p2 = scmp.eq.s32.totalorder %s674_s16, 0  ;;  %p123_p4 = scmp.eq.s32.totalorder %s534_s18, 2 }
   0x6   : > { %s849_s17 = smov (%p27_p0, %s25_s17), 0  ;;  %s58_s20 = sadd.s32 1, %s662_s13 }
   0x7   : > { %p67_p3 = por %p66_p2, %p65_p1  ;;  %s55_s19 = ssub.s32 %s670_s15, %s849_s17 }
   0x8   : > { %p56_p5 = scmp.eq.s32.totalorder %s55_s19, 0  ;;  %p731_p6 = por %p123_p4, %p65_p1 }
   0x9   : > { %p538_p7 = scmp.ge.s32.totalorder %s674_s16, 3 }
   0xa   : > { %s736_s22 = scalar_select %p56_p5, %s662_s13, %s58_s20  }
   0xb   : > { %154 = sbr.rel (%p538_p7) target bundleno = 36 (0x24), region = 20 }
  0x10   : > { %157 = sbr.rel (!%p67_p3) target bundleno = 36 (0x24), region = 24  ;;  %s159_s23 = sand.u32 (%p67_p3), 1, %s662_s13  }
  0x11   : > { %s540_s24 = sshll.u32 (%p67_p3), %s670_s15, 3  ;;  %s539_s25 = sshll.u32 (%p67_p3), %s159_s23, 7 }
  0x12   : > { %s744_s28 = scalar_lea.vmem (%p67_p3), %s840_s1, %s540_s24  ;;  %s161_s29 = scalar_lea.vmem (%p67_p3), [#allocation2], %s539_s25 }
  0x13   : > { %v222_v0 = vld [vmem:[%s744_s28] sm:$0xff] (%p67_p3)  ;;  %v224_v1 = vld [vmem:[%s744_s28 + $0x18] sm:$0xff] (%p67_p3)  ;;  %v226_v2 = vld [vmem:[%s744_s28 + $0x30] sm:$0xff] (%p67_p3) }
  0x14   : > { %223 = vst [vmem:[%s161_s29] sm:$0xff] (%p67_p3), %v222_v0  ;;  %v228_v3 = vld [vmem:[%s744_s28 + $0x48] sm:$0xff] (%p67_p3)  ;;  %v230_v4 = vld [vmem:[%s744_s28 + $0x60] sm:$0xff] (%p67_p3)  ;;  %v232_v5 = vld [vmem:[%s744_s28 + $0x78] sm:$0xff] (%p67_p3) }
  0x15   : > { %225 = vst [vmem:[%s161_s29 + $0x8] sm:$0xff] %v224_v1  ;;  %v234_v6 = vld [vmem:[%s744_s28 + $0x90] sm:$0xff]  ;;  %v236_v7 = vld [vmem:[%s744_s28 + $0xa8] sm:$0xff]  ;;  %v238_v8 = vld [vmem:[%s744_s28 + $0xc0] sm:$0xff] }
  0x16   : > { %227 = vst [vmem:[%s161_s29 + $0x10] sm:$0xff] %v226_v2  ;;  %v240_v9 = vld [vmem:[%s744_s28 + $0xd8] sm:$0xff]  ;;  %v242_v10 = vld [vmem:[%s744_s28 + $0xf0] sm:$0xff]  ;;  %v244_v11 = vld [vmem:[%s744_s28 + $0x108] sm:$0xff] }
  0x17   : > { %229 = vst [vmem:[%s161_s29 + $0x18] sm:$0xff] %v228_v3  ;;  %v246_v12 = vld [vmem:[%s744_s28 + $0x120] sm:$0xff]  ;;  %v248_v13 = vld [vmem:[%s744_s28 + $0x138] sm:$0xff]  ;;  %v250_v14 = vld [vmem:[%s744_s28 + $0x150] sm:$0xff] }
  0x18   : > { %231 = vst [vmem:[%s161_s29 + $0x20] sm:$0xff] %v230_v4  ;;  %v252_v15 = vld [vmem:[%s744_s28 + $0x168] sm:$0xff] }
  0x19   : > { %233 = vst [vmem:[%s161_s29 + $0x28] sm:$0xff] %v232_v5 }
  0x1a   : > { %235 = vst [vmem:[%s161_s29 + $0x30] sm:$0xff] %v234_v6 }
  0x1b   : > { %237 = vst [vmem:[%s161_s29 + $0x38] sm:$0xff] %v236_v7 }
  0x1c   : > { %239 = vst [vmem:[%s161_s29 + $0x40] sm:$0xff] %v238_v8 }
  0x1d   : > { %241 = vst [vmem:[%s161_s29 + $0x48] sm:$0xff] %v240_v9 }
  0x1e   : > { %243 = vst [vmem:[%s161_s29 + $0x50] sm:$0xff] %v242_v10 }
  0x1f   : > { %245 = vst [vmem:[%s161_s29 + $0x58] sm:$0xff] %v244_v11 }
  0x20   : > { %247 = vst [vmem:[%s161_s29 + $0x60] sm:$0xff] %v246_v12 }
  0x21   : > { %249 = vst [vmem:[%s161_s29 + $0x68] sm:$0xff] %v248_v13 }
  0x22   : > { %251 = vst [vmem:[%s161_s29 + $0x70] sm:$0xff] %v250_v14 }
  0x23   : > { %253 = vst [vmem:[%s161_s29 + $0x78] sm:$0xff] %v252_v15 }
  0x24 PF: > { %p541_p8 = scmp.ge.s32.totalorder %s674_s16, 1  ;;  %p264_p9 = scmp.lt.s32.totalorder %s674_s16, 4 }
  0x26   : > { %p265_p10 = pnand %p541_p8, %p264_p9 }
  0x27   : > { %s271_s30 = sand.u32 (!%p265_p10), 1, %s658_s12   ;;  %p307_p11 = scmp.lt.s32.totalorder (!%p265_p10), %s666_s14, 2 }
  0x28   : > { %268 = sbr.rel (%p265_p10) target bundleno = 229 (0xe5), region = 66  ;;  %s542_s4 = sshll.u32 (!%p265_p10), %s271_s30, 7 }
  0x29   : > { %s768_s5 = scalar_lea.vmem (!%p265_p10), [#allocation2], %s542_s4  ;;  %s594_s4 = smul.u32 (!%p265_p10), 48, %s271_s30 }
  0x2b   : > { %s300_s8 = scalar_lea.vmem (!%p265_p10), [#allocation3], %s594_s4 }
  0x2d   : > { %v332_v16 = vld [vmem:[%s768_s5 + $0x78] sm:$0xff]  ;;  %v331_v17 = vld [vmem:[%s768_s5 + $0x70] sm:$0xff]  ;;  %s773_s6 = scalar_select %p307_p11, %s666_s14, 2  ;;  %v330_v18 = vld [vmem:[%s768_s5 + $0x68] sm:$0xff] }
  0x2e   : > { %547 = vmatpush.msra.mxu2 %v332_v16  ;;  %548 = vmatpush.msra.mxu3 %v332_v16  ;;  %v329_v19 = vld [vmem:[%s768_s5 + $0x60] sm:$0xff]  ;;  %v328_v20 = vld [vmem:[%s768_s5 + $0x58] sm:$0xff]  ;;  %v327_v21 = vld [vmem:[%s768_s5 + $0x50] sm:$0xff]  ;;  %s543_s12 = sshll.u32 (%p731_p6), %s666_s14, 3 }
  0x2f   : > { %337 = vmatpush.msra.mxu0 %v332_v16  ;;  %546 = vmatpush.msra.mxu1 %v332_v16  ;;  %s309_s9 = scalar_lea.vmem %s841_s2, %s773_s6  ;;  %v326_v22 = vld [vmem:[%s768_s5 + $0x48] sm:$0xff]  ;;  %v325_v23 = vld [vmem:[%s768_s5 + $0x40] sm:$0xff]  ;;  %v324_v24 = vld [vmem:[%s768_s5 + $0x38] sm:$0xff] }
  0x30   : > { %550 = vmatpush.msra.mxu2 %v331_v17  ;;  %551 = vmatpush.msra.mxu3 %v331_v17  ;;  %v323_v25 = vld [vmem:[%s768_s5 + $0x30] sm:$0xff]  ;;  %v322_v26 = vld [vmem:[%s768_s5 + $0x28] sm:$0xff]  ;;  %v321_v27 = vld [vmem:[%s768_s5 + $0x20] sm:$0xff] }
  0x31   : > { %338 = vmatpush.msra.mxu0 %v331_v17  ;;  %549 = vmatpush.msra.mxu1 %v331_v17  ;;  %v320_v28 = vld [vmem:[%s768_s5 + $0x18] sm:$0xff]  ;;  %v319_v29 = vld [vmem:[%s768_s5 + $0x10] sm:$0xff]  ;;  %v318_v30 = vld [vmem:[%s768_s5 + $0x8] sm:$0xff] }
  0x32   : > { %553 = vmatpush.msra.mxu2 %v330_v18  ;;  %554 = vmatpush.msra.mxu3 %v330_v18  ;;  %v317_v31 = vld [vmem:[%s768_s5] sm:$0xff]  ;;  %v313_v32 = vld [vmem:[%s839_s0 + $0x10] sm:$0xff]  ;;  %v312_v35 = vld [vmem:[%s839_s0 + $0x8] sm:$0xff] }
  0x33   : > { %339 = vmatpush.msra.mxu0 %v330_v18  ;;  %552 = vmatpush.msra.mxu1 %v330_v18  ;;  %v315_v33 = vld [vmem:[%s839_s0 + $0x20] sm:$0xff]  ;;  %v314_v36 = vld [vmem:[%s839_s0 + $0x18] sm:$0xff]  ;;  %v316_v37 = vld [vmem:[%s839_s0 + $0x28] sm:$0xff] }
  0x34   : > { %556 = vmatpush.msra.mxu2 %v329_v19  ;;  %557 = vmatpush.msra.mxu3 %v329_v19  ;;  %v311_v34 = vld [vmem:[%s839_s0] sm:$0xff] }
  0x35   : > { %340 = vmatpush.msra.mxu0 %v329_v19  ;;  %555 = vmatpush.msra.mxu1 %v329_v19  ;;  %v635_v38 = vld [vmem:[%s309_s9] ss:$0 sm:$0xff]  ;;  %s389_s9 = scalar_lea.vmem (%p731_p6), %s842_s3, %s543_s12 }
  0x36   : > { %559 = vmatpush.msra.mxu2 %v328_v20  ;;  %560 = vmatpush.msra.mxu3 %v328_v20 }
  0x37   : > { %341 = vmatpush.msra.mxu0 %v328_v20  ;;  %558 = vmatpush.msra.mxu1 %v328_v20 }
  0x38   : > { %562 = vmatpush.msra.mxu2 %v327_v21  ;;  %563 = vmatpush.msra.mxu3 %v327_v21 }
  0x39   : > { %342 = vmatpush.msra.mxu0 %v327_v21  ;;  %561 = vmatpush.msra.mxu1 %v327_v21 }
  0x3a   : > { %565 = vmatpush.msra.mxu2 %v326_v22  ;;  %566 = vmatpush.msra.mxu3 %v326_v22 }
  0x3b   : > { %343 = vmatpush.msra.mxu0 %v326_v22  ;;  %564 = vmatpush.msra.mxu1 %v326_v22 }
  0x3c   : > { %568 = vmatpush.msra.mxu2 %v325_v23  ;;  %569 = vmatpush.msra.mxu3 %v325_v23 }
  0x3d   : > { %344 = vmatpush.msra.mxu0 %v325_v23  ;;  %567 = vmatpush.msra.mxu1 %v325_v23 }
  0x3e   : > { %571 = vmatpush.msra.mxu2 %v324_v24  ;;  %572 = vmatpush.msra.mxu3 %v324_v24 }
  0x3f   : > { %345 = vmatpush.msra.mxu0 %v324_v24  ;;  %570 = vmatpush.msra.mxu1 %v324_v24 }
  0x40   : > { %574 = vmatpush.msra.mxu2 %v323_v25  ;;  %575 = vmatpush.msra.mxu3 %v323_v25 }
  0x41   : > { %346 = vmatpush.msra.mxu0 %v323_v25  ;;  %573 = vmatpush.msra.mxu1 %v323_v25 }
  0x42   : > { %577 = vmatpush.msra.mxu2 %v322_v26  ;;  %578 = vmatpush.msra.mxu3 %v322_v26 }
  0x43   : > { %347 = vmatpush.msra.mxu0 %v322_v26  ;;  %576 = vmatpush.msra.mxu1 %v322_v26 }
  0x44   : > { %580 = vmatpush.msra.mxu2 %v321_v27  ;;  %581 = vmatpush.msra.mxu3 %v321_v27 }
  0x45   : > { %348 = vmatpush.msra.mxu0 %v321_v27  ;;  %579 = vmatpush.msra.mxu1 %v321_v27 }
  0x46   : > { %583 = vmatpush.msra.mxu2 %v320_v28  ;;  %584 = vmatpush.msra.mxu3 %v320_v28 }
  0x47   : > { %349 = vmatpush.msra.mxu0 %v320_v28  ;;  %582 = vmatpush.msra.mxu1 %v320_v28 }
  0x48   : > { %586 = vmatpush.msra.mxu2 %v319_v29  ;;  %587 = vmatpush.msra.mxu3 %v319_v29 }
  0x49   : > { %350 = vmatpush.msra.mxu0 %v319_v29  ;;  %585 = vmatpush.msra.mxu1 %v319_v29 }
  0x4a   : > { %589 = vmatpush.msra.mxu2 %v318_v30  ;;  %590 = vmatpush.msra.mxu3 %v318_v30 }
  0x4b   : > { %351 = vmatpush.msra.mxu0 %v318_v30  ;;  %588 = vmatpush.msra.mxu1 %v318_v30 }
  0x4c   : > { %592 = vmatpush.msra.mxu2 %v317_v31  ;;  %593 = vmatpush.msra.mxu3 %v317_v31 }
  0x4d   : > { %359 = vmatmul.f32.vlgmr.msra.gmra.mxu2 %v313_v32  ;;  %365 = vmatmul.f32.vlgmr.msra.gmra.mxu3 %v315_v33 }
  0x4e   : > { %352 = vmatpush.msra.mxu0 %v317_v31  ;;  %591 = vmatpush.msra.mxu1 %v317_v31 }
  0x4f   : > { %353 = vmatmul.f32.vlgmr.msra.gmra.mxu0 %v311_v34  ;;  %356 = vmatmul.f32.vlgmr.msra.gmra.mxu1 %v312_v35 }
  0x55   : > { %362 = vmatmul.f32.gmra.mxu2 %v314_v36  ;;  %368 = vmatmul.f32.gmra.mxu3 %v316_v37 }
  0xcc   : > { %v354_v39 = vpop.f32.mrf.mxu0  ;;  %v357_v40 = vpop.f32.mrf.mxu1 }
  0xcd   : > { %v355_v41 = vadd.f32 %v635_v38, %v354_v39  ;;  %v358_v42 = vadd.f32 %v635_v38, %v357_v40 }
  0xcf   : > { %372 = vst [vmem:[%s300_s8] sm:$0xff] %v355_v41 }
  0xd0   : > { %v360_v43 = vpop.f32.mrf.mxu2  ;;  %v366_v44 = vpop.f32.mrf.mxu3  ;;  %373 = vst [vmem:[%s300_s8 + $0x8] sm:$0xff] %v358_v42 }
  0xd1   : > { %v361_v45 = vadd.f32 %v635_v38, %v360_v43  ;;  %v367_v46 = vadd.f32 %v635_v38, %v366_v44 }
  0xd3   : > { %374 = vst [vmem:[%s300_s8 + $0x10] sm:$0xff] %v361_v45 }
  0xd4   : > { %376 = vst [vmem:[%s300_s8 + $0x20] sm:$0xff] %v367_v46 }
  0xd6   : > { %v428_v51 = vld [vmem:[%s300_s8] sm:$0xff] (%p731_p6) }
  0xd7   : > { %v430_v52 = vld [vmem:[%s300_s8 + $0x8] sm:$0xff] (%p731_p6)  ;;  %429 = vst [vmem:[%s389_s9] sm:$0xff] (%p731_p6), %v428_v51 }
  0xd8   : > { %v363_v47 = vpop.f32.mrf.mxu2  ;;  %v369_v48 = vpop.f32.mrf.mxu3  ;;  %384 = sbr.rel (!%p731_p6) target bundleno = 229 (0xe5), region = 74  ;;  %431 = vst [vmem:[%s389_s9 + $0x18] sm:$0xff] (%p731_p6), %v430_v52 }
  0xd9   : > { %v364_v49 = vadd.f32 %v635_v38, %v363_v47  ;;  %v370_v50 = vadd.f32 %v635_v38, %v369_v48 }
  0xda   : > { %v432_v53 = vld [vmem:[%s300_s8 + $0x10] sm:$0xff] (%p731_p6) }
  0xdb   : > { %375 = vst [vmem:[%s300_s8 + $0x18] sm:$0xff] %v364_v49  ;;  %v436_v55 = vld [vmem:[%s300_s8 + $0x20] sm:$0xff] (%p731_p6) }
  0xdc   : > { %377 = vst [vmem:[%s300_s8 + $0x28] sm:$0xff] %v370_v50 }
  0xdd   : > { %433 = vst [vmem:[%s389_s9 + $0x30] sm:$0xff] %v432_v53 }
  0xde   : > { %437 = vst [vmem:[%s389_s9 + $0x60] sm:$0xff] %v436_v55 }
  0xe2   : > { %v434_v54 = vld [vmem:[%s300_s8 + $0x18] sm:$0xff] }
  0xe3   : > { %v438_v56 = vld [vmem:[%s300_s8 + $0x28] sm:$0xff]  ;;  %435 = vst [vmem:[%s389_s9 + $0x48] sm:$0xff] %v434_v54 }
  0xe4   : > { %439 = vst [vmem:[%s389_s9 + $0x78] sm:$0xff] %v438_v56 }
  0xe5 PF: > { %s13_s16 = sadd.s32 1, %s674_s16   ;;  %s844_s12 = smov %s662_s13 }
  0xe6   : > { %p10_p12 = scmp.ge.s32.totalorder %s13_s16, 5   ;;  %s845_s13 = smov %s736_s22 }
  0xe7   : > { %s846_s14 = smov %s670_s15  ;;  %s847_s15 = smov %s849_s17 }
  0xe8   :  { %12 = sbr.rel (!%p10_p12) target bundleno = 3 (0x3), region = 149 }

// kernel: seq2seq_forward.11
= control target key start
LH: loop header
LB: loop body
LE: loop exit
PB: predicated region body
PF: predicated region fallthrough
CT: control target
= control target key end

     0   :  { %8 = vsyncpa [#allocation3], 0  ;;  %s222_s15 = smov [#allocation2]   ;;  %s223_s17 = smov 256   ;;  %s305_s0 = inlined_call_operand.vmem [shape: f32[48,128], index: 0, kind: input, shape index: {}]   ;;  %s306_s1 = inlined_call_operand.hbm [shape: f32[128,256], index: 1, kind: input, shape index: {}]   ;;  %s307_s2 = inlined_call_operand.vmem [shape: f32[1,256], index: 2, kind: input, shape index: {}]   ;;  %s308_s3 = inlined_call_operand.vmem [shape: f32[48,256], index: 3, kind: output, shape index: {}]  }
   0x1   :  { %s15_s14 = sshll.u32 %s306_s1, 4  ;;  %s17_s16 = sshll.u32 %s222_s15, 4  ;;  %s16_s14 = int_to_ptr.hbm [resolvable:$true] %s15_s14  ;;  %s18_s16 = int_to_ptr.vmem [resolvable:$true] %s17_s16 }
   0x2   :  { %s224_s18 = smov 16  }
   0x3   :  { %23 = dma.hbm_to_vmem [thread:$0]  %s16_s14, 4096, %s18_s16, [#allocation3], %s223_s17, %s223_s17, %s224_s18  }
   0x4   :  { %220 = dma.done.wait [#allocation3], 4096  }
   0x5   :  { %221 = vsyncadd [#allocation3], 4294963200  ;;  %v66_v0 = vld [vmem:[#allocation2 + $0xf0] sm:$0xff]  ;;  %v67_v1 = vld [vmem:[#allocation2 + $0xf8] sm:$0xff] }
   0x6   :  { %v64_v2 = vld [vmem:[#allocation2 + $0xe0] sm:$0xff]  ;;  %161 = vmatpush.msra.mxu2 %v66_v0  ;;  %177 = vmatpush.msra.mxu3 %v67_v1  ;;  %v65_v3 = vld [vmem:[#allocation2 + $0xe8] sm:$0xff]  ;;  %v62_v4 = vld [vmem:[#allocation2 + $0xd0] sm:$0xff] }
   0x7   :  { %v63_v5 = vld [vmem:[#allocation2 + $0xd8] sm:$0xff]  ;;  %74 = vmatpush.msra.mxu0 %v66_v0  ;;  %109 = vmatpush.msra.mxu1 %v67_v1  ;;  %v60_v6 = vld [vmem:[#allocation2 + $0xc0] sm:$0xff]  ;;  %v61_v7 = vld [vmem:[#allocation2 + $0xc8] sm:$0xff] }
   0x8   :  { %162 = vmatpush.msra.mxu2 %v64_v2  ;;  %178 = vmatpush.msra.mxu3 %v65_v3  ;;  %v58_v8 = vld [vmem:[#allocation2 + $0xb0] sm:$0xff]  ;;  %v59_v9 = vld [vmem:[#allocation2 + $0xb8] sm:$0xff]  ;;  %v56_v10 = vld [vmem:[#allocation2 + $0xa0] sm:$0xff] }
   0x9   :  { %75 = vmatpush.msra.mxu0 %v64_v2  ;;  %110 = vmatpush.msra.mxu1 %v65_v3  ;;  %v57_v11 = vld [vmem:[#allocation2 + $0xa8] sm:$0xff]  ;;  %v54_v12 = vld [vmem:[#allocation2 + $0x90] sm:$0xff]  ;;  %v55_v13 = vld [vmem:[#allocation2 + $0x98] sm:$0xff] }
   0xa   :  { %163 = vmatpush.msra.mxu2 %v62_v4  ;;  %179 = vmatpush.msra.mxu3 %v63_v5  ;;  %v52_v14 = vld [vmem:[#allocation2 + $0x80] sm:$0xff]  ;;  %v53_v15 = vld [vmem:[#allocation2 + $0x88] sm:$0xff]  ;;  %v50_v16 = vld [vmem:[#allocation2 + $0x70] sm:$0xff] }
   0xb   :  { %76 = vmatpush.msra.mxu0 %v62_v4  ;;  %111 = vmatpush.msra.mxu1 %v63_v5  ;;  %v51_v17 = vld [vmem:[#allocation2 + $0x78] sm:$0xff]  ;;  %v48_v18 = vld [vmem:[#allocation2 + $0x60] sm:$0xff]  ;;  %v49_v19 = vld [vmem:[#allocation2 + $0x68] sm:$0xff] }
   0xc   :  { %164 = vmatpush.msra.mxu2 %v60_v6  ;;  %180 = vmatpush.msra.mxu3 %v61_v7  ;;  %v46_v20 = vld [vmem:[#allocation2 + $0x50] sm:$0xff]  ;;  %v47_v21 = vld [vmem:[#allocation2 + $0x58] sm:$0xff]  ;;  %v44_v22 = vld [vmem:[#allocation2 + $0x40] sm:$0xff] }
   0xd   :  { %77 = vmatpush.msra.mxu0 %v60_v6  ;;  %112 = vmatpush.msra.mxu1 %v61_v7  ;;  %v45_v23 = vld [vmem:[#allocation2 + $0x48] sm:$0xff]  ;;  %v42_v24 = vld [vmem:[#allocation2 + $0x30] sm:$0xff]  ;;  %v43_v25 = vld [vmem:[#allocation2 + $0x38] sm:$0xff] }
   0xe   :  { %165 = vmatpush.msra.mxu2 %v58_v8  ;;  %181 = vmatpush.msra.mxu3 %v59_v9  ;;  %v40_v26 = vld [vmem:[#allocation2 + $0x20] sm:$0xff]  ;;  %v41_v27 = vld [vmem:[#allocation2 + $0x28] sm:$0xff]  ;;  %v38_v28 = vld [vmem:[#allocation2 + $0x10] sm:$0xff] }
   0xf   :  { %78 = vmatpush.msra.mxu0 %v58_v8  ;;  %113 = vmatpush.msra.mxu1 %v59_v9  ;;  %v39_v29 = vld [vmem:[#allocation2 + $0x18] sm:$0xff]  ;;  %v36_v30 = vld [vmem:[#allocation2] sm:$0xff]  ;;  %v37_v31 = vld [vmem:[#allocation2 + $0x8] sm:$0xff] }
  0x10   :  { %166 = vmatpush.msra.mxu2 %v56_v10  ;;  %182 = vmatpush.msra.mxu3 %v57_v11  ;;  %v33_v32 = vld [vmem:[%s305_s0 + $0x18] sm:$0xff]  ;;  %v30_v33 = vld [vmem:[%s305_s0] sm:$0xff]  ;;  %v31_v35 = vld [vmem:[%s305_s0 + $0x8] sm:$0xff] }
  0x11   :  { %79 = vmatpush.msra.mxu0 %v56_v10  ;;  %114 = vmatpush.msra.mxu1 %v57_v11  ;;  %v34_v34 = vld [vmem:[%s305_s0 + $0x20] sm:$0xff]  ;;  %v35_v36 = vld [vmem:[%s305_s0 + $0x28] sm:$0xff]  ;;  %v32_v37 = vld [vmem:[%s305_s0 + $0x10] sm:$0xff] }
  0x12   :  { %167 = vmatpush.msra.mxu2 %v54_v12  ;;  %183 = vmatpush.msra.mxu3 %v55_v13  ;;  %v68_v38 = vld [vmem:[%s307_s2] sm:$0x3] }
  0x13   :  { %80 = vmatpush.msra.mxu0 %v54_v12  ;;  %115 = vmatpush.msra.mxu1 %v55_v13  ;;  %v70_v39 = vperm.slane %v68_v38, 0  ;;  %v71_v40 = vperm.slane %v68_v38, 1 }
  0x14   :  { %168 = vmatpush.msra.mxu2 %v52_v14  ;;  %184 = vmatpush.msra.mxu3 %v53_v15 }
  0x15   :  { %81 = vmatpush.msra.mxu0 %v52_v14  ;;  %116 = vmatpush.msra.mxu1 %v53_v15 }
  0x16   :  { %169 = vmatpush.msra.mxu2 %v50_v16  ;;  %185 = vmatpush.msra.mxu3 %v51_v17 }
  0x17   :  { %82 = vmatpush.msra.mxu0 %v50_v16  ;;  %117 = vmatpush.msra.mxu1 %v51_v17 }
  0x18   :  { %170 = vmatpush.msra.mxu2 %v48_v18  ;;  %186 = vmatpush.msra.mxu3 %v49_v19 }
  0x19   :  { %83 = vmatpush.msra.mxu0 %v48_v18  ;;  %118 = vmatpush.msra.mxu1 %v49_v19 }
  0x1a   :  { %171 = vmatpush.msra.mxu2 %v46_v20  ;;  %187 = vmatpush.msra.mxu3 %v47_v21 }
  0x1b   :  { %84 = vmatpush.msra.mxu0 %v46_v20  ;;  %119 = vmatpush.msra.mxu1 %v47_v21 }
  0x1c   :  { %172 = vmatpush.msra.mxu2 %v44_v22  ;;  %188 = vmatpush.msra.mxu3 %v45_v23 }
  0x1d   :  { %85 = vmatpush.msra.mxu0 %v44_v22  ;;  %120 = vmatpush.msra.mxu1 %v45_v23 }
  0x1e   :  { %173 = vmatpush.msra.mxu2 %v42_v24  ;;  %189 = vmatpush.msra.mxu3 %v43_v25 }
  0x1f   :  { %86 = vmatpush.msra.mxu0 %v42_v24  ;;  %121 = vmatpush.msra.mxu1 %v43_v25 }
  0x20   :  { %174 = vmatpush.msra.mxu2 %v40_v26  ;;  %190 = vmatpush.msra.mxu3 %v41_v27 }
  0x21   :  { %87 = vmatpush.msra.mxu0 %v40_v26  ;;  %122 = vmatpush.msra.mxu1 %v41_v27 }
  0x22   :  { %175 = vmatpush.msra.mxu2 %v38_v28  ;;  %191 = vmatpush.msra.mxu3 %v39_v29 }
  0x23   :  { %88 = vmatpush.msra.mxu0 %v38_v28  ;;  %123 = vmatpush.msra.mxu1 %v39_v29 }
  0x24   :  { %176 = vmatpush.msra.mxu2 %v36_v30  ;;  %192 = vmatpush.msra.mxu3 %v37_v31 }
  0x25   :  { %99 = vmatmul.f32.vlgmr.msra.gmra.mxu2 %v33_v32  ;;  %134 = vmatmul.f32.vlgmr.msra.gmra.mxu3 %v33_v32 }
  0x26   :  { %89 = vmatpush.msra.mxu0 %v36_v30  ;;  %124 = vmatpush.msra.mxu1 %v37_v31 }
  0x27   :  { %90 = vmatmul.f32.vlgmr.msra.gmra.mxu0 %v30_v33  ;;  %125 = vmatmul.f32.vlgmr.msra.gmra.mxu1 %v30_v33 }
  0x2d   :  { %102 = vmatmul.f32.gmra.mxu2 %v34_v34  ;;  %137 = vmatmul.f32.gmra.mxu3 %v34_v34 }
  0x2f   :  { %93 = vmatmul.f32.gmra.mxu0 %v31_v35  ;;  %128 = vmatmul.f32.gmra.mxu1 %v31_v35 }
  0x35   :  { %105 = vmatmul.f32.gmra.mxu2 %v35_v36  ;;  %140 = vmatmul.f32.gmra.mxu3 %v35_v36 }
  0x37   :  { %96 = vmatmul.f32.gmra.mxu0 %v32_v37  ;;  %131 = vmatmul.f32.gmra.mxu1 %v32_v37 }
  0xa4   :  { %v91_v41 = vpop.f32.mrf.mxu0  ;;  %v126_v42 = vpop.f32.mrf.mxu1 }
  0xa5   :  { %v92_v43 = vadd.f32 %v91_v41, %v70_v39  ;;  %v127_v44 = vadd.f32 %v126_v42, %v71_v40 }
  0xa7   :  { %144 = vst [vmem:[%s308_s3] sm:$0xff] %v92_v43 }
  0xa8   :  { %v100_v45 = vpop.f32.mrf.mxu2  ;;  %145 = vst [vmem:[%s308_s3 + $0x8] sm:$0xff] %v127_v44  ;;  %v135_v46 = vpop.f32.mrf.mxu3 }
  0xa9   :  { %v101_v47 = vadd.f32 %v100_v45, %v70_v39  ;;  %v136_v48 = vadd.f32 %v135_v46, %v71_v40 }
  0xab   :  { %150 = vst [vmem:[%s308_s3 + $0x30] sm:$0xff] %v101_v47 }
  0xac   :  { %151 = vst [vmem:[%s308_s3 + $0x38] sm:$0xff] %v136_v48  ;;  %v94_v49 = vpop.f32.mrf.mxu0  ;;  %v129_v50 = vpop.f32.mrf.mxu1 }
  0xad   :  { %v95_v51 = vadd.f32 %v94_v49, %v70_v39  ;;  %v130_v52 = vadd.f32 %v129_v50, %v71_v40 }
  0xaf   :  { %146 = vst [vmem:[%s308_s3 + $0x10] sm:$0xff] %v95_v51 }
  0xb0   :  { %v103_v53 = vpop.f32.mrf.mxu2  ;;  %147 = vst [vmem:[%s308_s3 + $0x18] sm:$0xff] %v130_v52  ;;  %v138_v54 = vpop.f32.mrf.mxu3 }
  0xb1   :  { %v104_v55 = vadd.f32 %v103_v53, %v70_v39  ;;  %v139_v56 = vadd.f32 %v138_v54, %v71_v40 }
  0xb3   :  { %152 = vst [vmem:[%s308_s3 + $0x40] sm:$0xff] %v104_v55 }
  0xb4   :  { %153 = vst [vmem:[%s308_s3 + $0x48] sm:$0xff] %v139_v56  ;;  %v97_v57 = vpop.f32.mrf.mxu0  ;;  %v132_v58 = vpop.f32.mrf.mxu1 }
  0xb5   :  { %v98_v59 = vadd.f32 %v97_v57, %v70_v39  ;;  %v133_v60 = vadd.f32 %v132_v58, %v71_v40 }
  0xb7   :  { %148 = vst [vmem:[%s308_s3 + $0x20] sm:$0xff] %v98_v59 }
  0xb8   :  { %v106_v61 = vpop.f32.mrf.mxu2  ;;  %149 = vst [vmem:[%s308_s3 + $0x28] sm:$0xff] %v133_v60  ;;  %v141_v62 = vpop.f32.mrf.mxu3 }
  0xb9   :  { %v107_v63 = vadd.f32 %v106_v61, %v70_v39  ;;  %v142_v0 = vadd.f32 %v141_v62, %v71_v40 }
  0xbb   :  { %154 = vst [vmem:[%s308_s3 + $0x50] sm:$0xff] %v107_v63 }
  0xbc   :  { %155 = vst [vmem:[%s308_s3 + $0x58] sm:$0xff] %v142_v0 }
  0xbd   :  { %160 = vsyncpa [#allocation3], 1 }

// kernel: seq2seq_forward.10
= control target key start
LH: loop header
LB: loop body
LE: loop exit
PB: predicated region body
PF: predicated region fallthrough
CT: control target
= control target key end

     0   :  { %s2582_s2 = inlined_call_operand.vmem [shape: f32[128,384], index: 2, kind: input, shape index: {}]   ;;  %s2583_s1 = inlined_call_operand.vmem [shape: f32[8,128], index: 1, kind: input, shape index: {}]   ;;  %s2584_s3 = inlined_call_operand.vmem [shape: f32[1,384], index: 3, kind: input, shape index: {}]   ;;  %s2585_s0 = inlined_call_operand.vmem [shape: f32[8,8,384], index: 0, kind: input, shape index: {}]   ;;  %s2586_s4 = inlined_call_operand.vmem [shape: f32[8,8,128], index: 4, kind: output, shape index: {}]  }
   0x1   :  { %v1531_v0 = vld [vmem:[%s2582_s2 + $0x168] sm:$0xff]  ;;  %v1536_v1 = vld [vmem:[%s2582_s2 + $0x170] sm:$0xff]  ;;  %v1548_v3 = vld [vmem:[%s2582_s2 + $0x158] sm:$0xff] }
   0x2   :  { %v1541_v2 = vld [vmem:[%s2582_s2 + $0x150] sm:$0xff]  ;;  %83 = vmatpush.msra.mxu0 %v1531_v0  ;;  %103 = vmatpush.msra.mxu1 %v1536_v1  ;;  %v1553_v4 = vld [vmem:[%s2582_s2 + $0x138] sm:$0xff]  ;;  %v1558_v5 = vld [vmem:[%s2582_s2 + $0x140] sm:$0xff] }
   0x3   :  { %251 = vmatpush.msra.mxu3 %v1531_v0  ;;  %v1566_v6 = vld [vmem:[%s2582_s2 + $0x120] sm:$0xff]  ;;  %v1571_v7 = vld [vmem:[%s2582_s2 + $0x128] sm:$0xff]  ;;  %v1584_v9 = vld [vmem:[%s2582_s2 + $0x110] sm:$0xff] }
   0x4   :  { %84 = vmatpush.msra.mxu0 %v1541_v2  ;;  %104 = vmatpush.msra.mxu1 %v1548_v3  ;;  %v1579_v8 = vld [vmem:[%s2582_s2 + $0x108] sm:$0xff]  ;;  %v1592_v10 = vld [vmem:[%s2582_s2 + $0xf0] sm:$0xff]  ;;  %v1597_v11 = vld [vmem:[%s2582_s2 + $0xf8] sm:$0xff] }
   0x5   :  { %252 = vmatpush.msra.mxu3 %v1541_v2  ;;  %v1602_v12 = vld [vmem:[%s2582_s2 + $0x178] sm:$0xff]  ;;  %v1610_v13 = vld [vmem:[%s2582_s2 + $0x160] sm:$0xff]  ;;  %v1629_v16 = vld [vmem:[%s2582_s2 + $0x148] sm:$0xff] }
   0x6   :  { %85 = vmatpush.msra.mxu0 %v1553_v4  ;;  %105 = vmatpush.msra.mxu1 %v1558_v5  ;;  %v1615_v14 = vld [vmem:[%s2582_s2 + $0xd8] sm:$0xff]  ;;  %v1620_v15 = vld [vmem:[%s2582_s2 + $0xe0] sm:$0xff]  ;;  %v1639_v18 = vld [vmem:[%s2582_s2 + $0xc8] sm:$0xff] }
   0x7   :  { %253 = vmatpush.msra.mxu3 %v1553_v4  ;;  %123 = vmatpush.msra.mxu2 %v1602_v12  ;;  %v1634_v17 = vld [vmem:[%s2582_s2 + $0xc0] sm:$0xff]  ;;  %v1648_v19 = vld [vmem:[%s2582_s2 + $0x130] sm:$0xff]  ;;  %v1653_v20 = vld [vmem:[%s2582_s2 + $0xa8] sm:$0xff] }
   0x8   :  { %86 = vmatpush.msra.mxu0 %v1566_v6  ;;  %106 = vmatpush.msra.mxu1 %v1571_v7  ;;  %v1658_v21 = vld [vmem:[%s2582_s2 + $0xb0] sm:$0xff]  ;;  %v1667_v22 = vld [vmem:[%s2582_s2 + $0x118] sm:$0xff]  ;;  %v1686_v25 = vld [vmem:[%s2582_s2 + $0x100] sm:$0xff] }
   0x9   :  { %254 = vmatpush.msra.mxu3 %v1566_v6  ;;  %124 = vmatpush.msra.mxu2 %v1610_v13  ;;  %v1672_v23 = vld [vmem:[%s2582_s2 + $0x90] sm:$0xff]  ;;  %v1677_v24 = vld [vmem:[%s2582_s2 + $0x98] sm:$0xff]  ;;  %v1696_v27 = vld [vmem:[%s2582_s2 + $0x80] sm:$0xff] }
   0xa   :  { %87 = vmatpush.msra.mxu0 %v1579_v8  ;;  %107 = vmatpush.msra.mxu1 %v1584_v9  ;;  %v1691_v26 = vld [vmem:[%s2582_s2 + $0x78] sm:$0xff]  ;;  %v1705_v28 = vld [vmem:[%s2582_s2 + $0xe8] sm:$0xff]  ;;  %v1710_v29 = vld [vmem:[%s2582_s2 + $0x60] sm:$0xff] }
   0xb   :  { %255 = vmatpush.msra.mxu3 %v1579_v8  ;;  %125 = vmatpush.msra.mxu2 %v1629_v16  ;;  %v1715_v30 = vld [vmem:[%s2582_s2 + $0x68] sm:$0xff]  ;;  %v1724_v31 = vld [vmem:[%s2582_s2 + $0xd0] sm:$0xff]  ;;  %v1743_v34 = vld [vmem:[%s2582_s2 + $0xb8] sm:$0xff] }
   0xc   :  { %88 = vmatpush.msra.mxu0 %v1592_v10  ;;  %108 = vmatpush.msra.mxu1 %v1597_v11  ;;  %v1729_v32 = vld [vmem:[%s2582_s2 + $0x48] sm:$0xff]  ;;  %v1734_v33 = vld [vmem:[%s2582_s2 + $0x50] sm:$0xff]  ;;  %v1753_v36 = vld [vmem:[%s2582_s2 + $0x38] sm:$0xff] }
   0xd   :  { %256 = vmatpush.msra.mxu3 %v1592_v10  ;;  %126 = vmatpush.msra.mxu2 %v1648_v19  ;;  %v1748_v35 = vld [vmem:[%s2582_s2 + $0x30] sm:$0xff]  ;;  %v1762_v37 = vld [vmem:[%s2582_s2 + $0xa0] sm:$0xff]  ;;  %v1767_v38 = vld [vmem:[%s2582_s2 + $0x18] sm:$0xff] }
   0xe   :  { %89 = vmatpush.msra.mxu0 %v1615_v14  ;;  %109 = vmatpush.msra.mxu1 %v1620_v15  ;;  %v1772_v39 = vld [vmem:[%s2582_s2 + $0x20] sm:$0xff]  ;;  %v1781_v40 = vld [vmem:[%s2582_s2 + $0x88] sm:$0xff]  ;;  %v1806_v44 = vld [vmem:[%s2582_s2 + $0x70] sm:$0xff] }
   0xf   :  { %257 = vmatpush.msra.mxu3 %v1615_v14  ;;  %127 = vmatpush.msra.mxu2 %v1667_v22  ;;  %v1786_v41 = vld [vmem:[%s2582_s2] sm:$0xff]  ;;  %v1791_v42 = vld [vmem:[%s2582_s2 + $0x8] sm:$0xff]  ;;  %v1816_v45 = vld [vmem:[%s2582_s2 + $0x58] sm:$0xff] }
  0x10   :  { %90 = vmatpush.msra.mxu0 %v1634_v17  ;;  %110 = vmatpush.msra.mxu1 %v1639_v18  ;;  %v1800_v43 = vld [vmem:[%s2583_s1] sm:$0xff]  ;;  %v1832_v47 = vld [vmem:[%s2582_s2 + $0x28] sm:$0xff]  ;;  %v1841_v48 = vld [vmem:[%s2582_s2 + $0x10] sm:$0xff] }
  0x11   :  { %258 = vmatpush.msra.mxu3 %v1634_v17  ;;  %128 = vmatpush.msra.mxu2 %v1686_v25  ;;  %v1823_v46 = vld [vmem:[%s2582_s2 + $0x40] sm:$0xff]  ;;  %v25_v54 = vld [vmem:[%s2585_s0 + $0x8] sm:$0xff] }
  0x12   :  { %91 = vmatpush.msra.mxu0 %v1653_v20  ;;  %111 = vmatpush.msra.mxu1 %v1658_v21  ;;  %v75_v49 = vld [vmem:[%s2584_s3] sm:$0x7] }
  0x13   :  { %259 = vmatpush.msra.mxu3 %v1653_v20  ;;  %129 = vmatpush.msra.mxu2 %v1705_v28  ;;  %v77_v50 = vperm.slane %v75_v49, 0  ;;  %v78_v51 = vperm.slane %v75_v49, 1  ;;  %v24_v52 = vld [vmem:[%s2585_s0] sm:$0xff] }
  0x14   :  { %92 = vmatpush.msra.mxu0 %v1672_v23  ;;  %112 = vmatpush.msra.mxu1 %v1677_v24 }
  0x15   :  { %260 = vmatpush.msra.mxu3 %v1672_v23  ;;  %130 = vmatpush.msra.mxu2 %v1724_v31 }
  0x16   :  { %93 = vmatpush.msra.mxu0 %v1691_v26  ;;  %113 = vmatpush.msra.mxu1 %v1696_v27 }
  0x17   :  { %261 = vmatpush.msra.mxu3 %v1691_v26  ;;  %131 = vmatpush.msra.mxu2 %v1743_v34 }
  0x18   :  { %94 = vmatpush.msra.mxu0 %v1710_v29  ;;  %114 = vmatpush.msra.mxu1 %v1715_v30 }
  0x19   :  { %262 = vmatpush.msra.mxu3 %v1710_v29  ;;  %132 = vmatpush.msra.mxu2 %v1762_v37 }
  0x1a   :  { %95 = vmatpush.msra.mxu0 %v1729_v32  ;;  %115 = vmatpush.msra.mxu1 %v1734_v33 }
  0x1b   :  { %263 = vmatpush.msra.mxu3 %v1729_v32  ;;  %133 = vmatpush.msra.mxu2 %v1781_v40 }
  0x1c   :  { %96 = vmatpush.msra.mxu0 %v1748_v35  ;;  %116 = vmatpush.msra.mxu1 %v1753_v36 }
  0x1d   :  { %264 = vmatpush.msra.mxu3 %v1748_v35  ;;  %134 = vmatpush.msra.mxu2 %v1806_v44 }
  0x1e   :  { %97 = vmatpush.msra.mxu0 %v1767_v38  ;;  %117 = vmatpush.msra.mxu1 %v1772_v39 }
  0x1f   :  { %265 = vmatpush.msra.mxu3 %v1767_v38  ;;  %135 = vmatpush.msra.mxu2 %v1816_v45 }
  0x20   :  { %98 = vmatpush.msra.mxu0 %v1786_v41  ;;  %118 = vmatpush.msra.mxu1 %v1791_v42 }
  0x21   :  { %99 = vmatmul.f32.vlgmr.msra.gmra.mxu0 %v1800_v43  ;;  %119 = vmatmul.f32.vlgmr.msra.gmra.mxu1 %v1800_v43 }
  0x22   :  { %271 = vmatpush.msrb.mxu0 %v1536_v1  ;;  %291 = vmatpush.msrb.mxu1 %v1602_v12 }
  0x23   :  { %266 = vmatpush.msra.mxu3 %v1786_v41  ;;  %136 = vmatpush.msra.mxu2 %v1823_v46 }
  0x24   :  { %272 = vmatpush.msrb.mxu0 %v1548_v3  ;;  %292 = vmatpush.msrb.mxu1 %v1610_v13 }
  0x25   :  { %440 = vmatpush.msrb.mxu3 %v1536_v1  ;;  %137 = vmatpush.msra.mxu2 %v1832_v47 }
  0x26   :  { %273 = vmatpush.msrb.mxu0 %v1558_v5  ;;  %293 = vmatpush.msrb.mxu1 %v1629_v16 }
  0x27   :  { %441 = vmatpush.msrb.mxu3 %v1548_v3  ;;  %138 = vmatpush.msra.mxu2 %v1841_v48 }
  0x28   :  { %274 = vmatpush.msrb.mxu0 %v1571_v7  ;;  %294 = vmatpush.msrb.mxu1 %v1648_v19 }
  0x29   :  { %442 = vmatpush.msrb.mxu3 %v1558_v5  ;;  %139 = vmatmul.f32.vlgmr.msra.gmra.mxu2 %v1800_v43 }
  0x2a   :  { %275 = vmatpush.msrb.mxu0 %v1584_v9  ;;  %295 = vmatpush.msrb.mxu1 %v1667_v22 }
  0x2b   :  { %420 = vmatpush.msrb.mxu2 %v1531_v0  ;;  %443 = vmatpush.msrb.mxu3 %v1571_v7 }
  0x2c   :  { %276 = vmatpush.msrb.mxu0 %v1597_v11  ;;  %296 = vmatpush.msrb.mxu1 %v1686_v25 }
  0x2d   :  { %421 = vmatpush.msrb.mxu2 %v1541_v2  ;;  %444 = vmatpush.msrb.mxu3 %v1584_v9 }
  0x2e   :  { %277 = vmatpush.msrb.mxu0 %v1620_v15  ;;  %297 = vmatpush.msrb.mxu1 %v1705_v28 }
  0x2f   :  { %422 = vmatpush.msrb.mxu2 %v1553_v4  ;;  %445 = vmatpush.msrb.mxu3 %v1597_v11 }
  0x30   :  { %278 = vmatpush.msrb.mxu0 %v1639_v18  ;;  %298 = vmatpush.msrb.mxu1 %v1724_v31 }
  0x31   :  { %423 = vmatpush.msrb.mxu2 %v1566_v6  ;;  %446 = vmatpush.msrb.mxu3 %v1620_v15 }
  0x32   :  { %279 = vmatpush.msrb.mxu0 %v1658_v21  ;;  %299 = vmatpush.msrb.mxu1 %v1743_v34 }
  0x33   :  { %424 = vmatpush.msrb.mxu2 %v1579_v8  ;;  %447 = vmatpush.msrb.mxu3 %v1639_v18 }
  0x34   :  { %280 = vmatpush.msrb.mxu0 %v1677_v24  ;;  %300 = vmatpush.msrb.mxu1 %v1762_v37 }
  0x35   :  { %425 = vmatpush.msrb.mxu2 %v1592_v10  ;;  %448 = vmatpush.msrb.mxu3 %v1658_v21 }
  0x36   :  { %281 = vmatpush.msrb.mxu0 %v1696_v27  ;;  %301 = vmatpush.msrb.mxu1 %v1781_v40 }
  0x37   :  { %426 = vmatpush.msrb.mxu2 %v1615_v14  ;;  %449 = vmatpush.msrb.mxu3 %v1677_v24 }
  0x38   :  { %282 = vmatpush.msrb.mxu0 %v1715_v30  ;;  %302 = vmatpush.msrb.mxu1 %v1806_v44 }
  0x39   :  { %427 = vmatpush.msrb.mxu2 %v1634_v17  ;;  %450 = vmatpush.msrb.mxu3 %v1696_v27 }
  0x3a   :  { %283 = vmatpush.msrb.mxu0 %v1734_v33  ;;  %303 = vmatpush.msrb.mxu1 %v1816_v45 }
  0x3b   :  { %428 = vmatpush.msrb.mxu2 %v1653_v20  ;;  %451 = vmatpush.msrb.mxu3 %v1715_v30 }
  0x3c   :  { %284 = vmatpush.msrb.mxu0 %v1753_v36  ;;  %304 = vmatpush.msrb.mxu1 %v1823_v46 }
  0x3d   :  { %429 = vmatpush.msrb.mxu2 %v1672_v23  ;;  %452 = vmatpush.msrb.mxu3 %v1734_v33 }
  0x3e   :  { %285 = vmatpush.msrb.mxu0 %v1772_v39  ;;  %305 = vmatpush.msrb.mxu1 %v1832_v47 }
  0x3f   :  { %430 = vmatpush.msrb.mxu2 %v1691_v26  ;;  %453 = vmatpush.msrb.mxu3 %v1753_v36 }
  0x40   :  { %286 = vmatpush.msrb.mxu0 %v1791_v42  ;;  %306 = vmatpush.msrb.mxu1 %v1841_v48 }
  0x41   :  { %431 = vmatpush.msrb.mxu2 %v1710_v29  ;;  %454 = vmatpush.msrb.mxu3 %v1772_v39 }
  0x42   :  { %460 = vmatpush.msra.mxu0 %v1602_v12  ;;  %589 = vmatpush.msra.mxu1 %v1531_v0 }
  0x43   :  { %432 = vmatpush.msrb.mxu2 %v1729_v32  ;;  %455 = vmatpush.msrb.mxu3 %v1791_v42 }
  0x44   :  { %461 = vmatpush.msra.mxu0 %v1610_v13  ;;  %590 = vmatpush.msra.mxu1 %v1541_v2 }
  0x45   :  { %433 = vmatpush.msrb.mxu2 %v1748_v35 }
  0x46   :  { %462 = vmatpush.msra.mxu0 %v1629_v16  ;;  %591 = vmatpush.msra.mxu1 %v1553_v4 }
  0x47   :  { %434 = vmatpush.msrb.mxu2 %v1767_v38 }
  0x48   :  { %463 = vmatpush.msra.mxu0 %v1648_v19  ;;  %592 = vmatpush.msra.mxu1 %v1566_v6  ;;  %v79_v6 = vperm.slane %v75_v49, 2 }
  0x49   :  { %435 = vmatpush.msrb.mxu2 %v1786_v41 }
  0x4a   :  { %464 = vmatpush.msra.mxu0 %v1667_v22  ;;  %593 = vmatpush.msra.mxu1 %v1579_v8 }
  0x4b   :  { %609 = vmatpush.msra.mxu2 %v1536_v1 }
  0x4c   :  { %465 = vmatpush.msra.mxu0 %v1686_v25  ;;  %594 = vmatpush.msra.mxu1 %v1592_v10 }
  0x4d   :  { %610 = vmatpush.msra.mxu2 %v1548_v3 }
  0x4e   :  { %466 = vmatpush.msra.mxu0 %v1705_v28  ;;  %595 = vmatpush.msra.mxu1 %v1615_v14 }
  0x4f   :  { %611 = vmatpush.msra.mxu2 %v1558_v5 }
  0x50   :  { %467 = vmatpush.msra.mxu0 %v1724_v31  ;;  %596 = vmatpush.msra.mxu1 %v1634_v17 }
  0x51   :  { %612 = vmatpush.msra.mxu2 %v1571_v7 }
  0x52   :  { %468 = vmatpush.msra.mxu0 %v1743_v34  ;;  %597 = vmatpush.msra.mxu1 %v1653_v20 }
  0x53   :  { %613 = vmatpush.msra.mxu2 %v1584_v9 }
  0x54   :  { %469 = vmatpush.msra.mxu0 %v1762_v37  ;;  %598 = vmatpush.msra.mxu1 %v1672_v23  ;;  %v26_v23 = vld [vmem:[%s2585_s0 + $0x10] sm:$0xff] }
  0x55   :  { %614 = vmatpush.msra.mxu2 %v1597_v11 }
  0x56   :  { %470 = vmatpush.msra.mxu0 %v1781_v40  ;;  %599 = vmatpush.msra.mxu1 %v1691_v26 }
  0x57   :  { %615 = vmatpush.msra.mxu2 %v1620_v15 }
  0x58   :  { %471 = vmatpush.msra.mxu0 %v1806_v44  ;;  %600 = vmatpush.msra.mxu1 %v1710_v29 }
  0x59   :  { %616 = vmatpush.msra.mxu2 %v1639_v18 }
  0x5a   :  { %472 = vmatpush.msra.mxu0 %v1816_v45  ;;  %601 = vmatpush.msra.mxu1 %v1729_v32 }
  0x5b   :  { %617 = vmatpush.msra.mxu2 %v1658_v21 }
  0x5c   :  { %473 = vmatpush.msra.mxu0 %v1823_v46  ;;  %602 = vmatpush.msra.mxu1 %v1748_v35 }
  0x5d   :  { %618 = vmatpush.msra.mxu2 %v1677_v24 }
  0x5e   :  { %474 = vmatpush.msra.mxu0 %v1832_v47  ;;  %603 = vmatpush.msra.mxu1 %v1767_v38 }
  0x5f   :  { %619 = vmatpush.msra.mxu2 %v1696_v27 }
  0x60   :  { %475 = vmatpush.msra.mxu0 %v1841_v48  ;;  %604 = vmatpush.msra.mxu1 %v1786_v41 }
  0x61   :  { %620 = vmatpush.msra.mxu2 %v1715_v30 }
  0x63   :  { %621 = vmatpush.msra.mxu2 %v1734_v33 }
  0x65   :  { %622 = vmatpush.msra.mxu2 %v1753_v36 }
  0x67   :  { %623 = vmatpush.msra.mxu2 %v1772_v39 }
  0x69   :  { %624 = vmatpush.msra.mxu2 %v1791_v42 }
  0x9e   :  { %v100_v53 = vpop.f32.mrf.mxu0  ;;  %v120_v55 = vpop.f32.mrf.mxu1 }
  0x9f   :  { %v101_v56 = vadd.f32 %v100_v53, %v77_v50  ;;  %v121_v57 = vadd.f32 %v120_v55, %v78_v51 }
  0xa1   :  { %v143_v58 = vadd.f32 %v101_v56, %v24_v52  ;;  %v163_v59 = vadd.f32 %v121_v57, %v25_v54 }
  0xa3   :  { %v1379_v60 = vmul.f32 -1.442695, %v143_v58  ;;  %v1380_v61 = vmul.f32 -1.442695, %v163_v59 }
  0xa5   :  { %1423 = vpow2.f32 %v1379_v60 }
  0xa6   :  { %1425 = vpow2.f32 %v1380_v61 }
  0xab   :  { %v1424_v62 = vpop.eup %1423 }
  0xac   :  { %v1426_v63 = vpop.eup %1425  ;;  %v147_v0 = vadd.f32 1.0, %v1424_v62  ;;  %v140_v9 = vpop.f32.mrf.mxu2 }
  0xad   :  { %v167_v1 = vadd.f32 1.0, %v1426_v63  ;;  %v141_v17 = vadd.f32 %v140_v9, %v79_v6 }
  0xae   :  { %1427 = vrcp.f32 %v147_v0  ;;  %v159_v10 = vand.u32 2147483648, %v147_v0  ;;  %v157_v14 = vand.u32 2147483647, %v147_v0  ;;  %vm153_vm1 = vweird.f32 %v147_v0 }
  0xaf   :  { %1429 = vrcp.f32 %v167_v1  ;;  %vm173_vm4 = vweird.f32 %v167_v1  ;;  %v179_v27 = vand.u32 2147483648, %v167_v1  ;;  %v177_v30 = vand.u32 2147483647, %v167_v1 }
  0xb0   :  { %v160_v20 = vor.u32 1.1754944e-38, %v159_v10  ;;  %vm158_vm3 = vcmp.eq.f32.partialorder %v157_v14, 8.507059e+37 }
  0xb1   :  { %v180_v35 = vor.u32 1.1754944e-38, %v179_v27  ;;  %vm178_vm7 = vcmp.eq.f32.partialorder %v177_v30, 8.507059e+37 }
  0xb4   :  { %v1428_v2 = vpop.eup %1427 }
  0xb5   :  { %v1430_v3 = vpop.eup %1429  ;;  %v149_v4 = vmul.f32 %v1428_v2, %v147_v0  ;;  %vm154_vm0 = vweird.f32 %v1428_v2 }
  0xb6   :  { %v169_v5 = vmul.f32 %v1430_v3, %v167_v1  ;;  %vm155_vm2 = vmor %vm153_vm1, %vm154_vm0  ;;  %vm174_vm5 = vweird.f32 %v1430_v3 }
  0xb7   :  { %v150_v7 = vsub.f32 1.0, %v149_v4  ;;  %vm175_vm6 = vmor %vm173_vm4, %vm174_vm5 }
  0xb8   :  { %v170_v8 = vsub.f32 1.0, %v169_v5 }
  0xb9   :  { %v151_v11 = vmul.f32 %v1428_v2, %v150_v7 }
  0xba   :  { %v171_v15 = vmul.f32 %v1430_v3, %v170_v8 }
  0xbb   :  { %v152_v18 = vadd.f32 %v1428_v2, %v151_v11 }
  0xbc   :  { %v172_v26 = vadd.f32 %v1430_v3, %v171_v15 }
  0xbd   :  { %v156_v21 = vsel %vm155_vm2, %v1428_v2, %v152_v18 }
  0xbe   :  { %v161_v24 = vsel %vm158_vm3, %v160_v20, %v156_v21  ;;  %v176_v33 = vsel %vm175_vm6, %v1430_v3, %v172_v26  ;;  %v1383_v3 = vld [vmem:[%s2585_s0 + $0x28] sm:$0xff]  ;;  %v412_v21 = vld [vmem:[%s2584_s3] sm:$0x7]  ;;  %v1387_v26 = vld [vmem:[%s2585_s0 + $0x30] sm:$0xff] }
  0xbf   :  { %v183_v29 = vmul.f32 %v161_v24, %v141_v17  ;;  %v181_v36 = vsel %vm178_vm7, %v180_v35, %v176_v33  ;;  %v415_v24 = vperm.slane %v412_v21, 1 }
  0xc0   :  { %v186_v38 = vsub.f32 1.0, %v181_v36  ;;  %v188_v42 = vmul.f32 %v181_v36, %v1800_v43 }
  0xc1   :  { %v184_v32 = vadd.f32 %v183_v29, %v26_v23  ;;  %v414_v23 = vperm.slane %v412_v21, 0  ;;  %v1388_v29 = vld [vmem:[%s2585_s0 + $0x38] sm:$0xff] }
  0xc3   :  { %1431 = vtanh.f32 %v184_v32 }
  0xc9   :  { %v1432_v39 = vpop.eup %1431 }
  0xca   :  { %v187_v41 = vmul.f32 %v1432_v39, %v186_v38 }
  0xcc   :  { %v1965_v49 = vadd.f32 %v188_v42, %v187_v41 }
  0xce   :  { %190 = vst [vmem:[%s2586_s4] sm:$0xff] %v1965_v49  ;;  %267 = vmatmul.f32.vlgmr.msra.gmra.mxu3 %v1965_v49  ;;  %287 = vmatmul.f32.vlgmr.msrb.gmra.mxu0 %v1965_v49 }
  0xcf   :  { %307 = vmatmul.f32.vlgmr.msrb.gmra.mxu1 %v1965_v49  ;;  %629 = vmatpush.msra.mxu3 %v1602_v12  ;;  %v243_v12 = vld [vmem:[%s2584_s3] sm:$0x7] }
  0xd0   :  { %v247_v57 = vperm.slane %v243_v12, 2 }
  0xd1   :  { %630 = vmatpush.msra.mxu3 %v1610_v13  ;;  %v246_v13 = vperm.slane %v243_v12, 1 }
  0xd3   :  { %631 = vmatpush.msra.mxu3 %v1629_v16  ;;  %v1382_v16 = vld [vmem:[%s2585_s0 + $0x20] sm:$0xff] }
  0xd5   :  { %632 = vmatpush.msra.mxu3 %v1648_v19 }
  0xd7   :  { %633 = vmatpush.msra.mxu3 %v1667_v22 }
  0xd9   :  { %634 = vmatpush.msra.mxu3 %v1686_v25 }
  0xdb   :  { %635 = vmatpush.msra.mxu3 %v1705_v28  ;;  %v245_v28 = vperm.slane %v243_v12, 0 }
  0xdd   :  { %636 = vmatpush.msra.mxu3 %v1724_v31 }
  0xdf   :  { %637 = vmatpush.msra.mxu3 %v1743_v34  ;;  %v1381_v34 = vld [vmem:[%s2585_s0 + $0x18] sm:$0xff] }
  0xe1   :  { %638 = vmatpush.msra.mxu3 %v1762_v37 }
  0xe3   :  { %639 = vmatpush.msra.mxu3 %v1781_v40 }
  0xe5   :  { %640 = vmatpush.msra.mxu3 %v1806_v44 }
  0xe7   :  { %641 = vmatpush.msra.mxu3 %v1816_v45 }
  0xe9   :  { %642 = vmatpush.msra.mxu3 %v1823_v46 }
  0xeb   :  { %643 = vmatpush.msra.mxu3 %v1832_v47 }
  0xed   :  { %644 = vmatpush.msra.mxu3 %v1841_v48 }
 0x14b   :  { %v288_v19 = vpop.f32.mrf.mxu0 }
 0x14c   :  { %v289_v22 = vadd.f32 %v288_v19, %v246_v13  ;;  %v308_v61 = vpop.f32.mrf.mxu1 }
 0x14d   :  { %v309_v0 = vadd.f32 %v308_v61, %v247_v57 }
 0x14e   :  { %v331_v25 = vadd.f32 %v1382_v16, %v289_v22 }
 0x150   :  { %v1385_v31 = vmul.f32 -1.442695, %v331_v25 }
 0x151   :  { %v268_v37 = vpop.f32.mrf.mxu3 }
 0x152   :  { %1433 = vpow2.f32 %v1385_v31  ;;  %v269_v40 = vadd.f32 %v268_v37, %v245_v28 }
 0x154   :  { %v311_v43 = vadd.f32 %v1381_v34, %v269_v40  ;;  %v416_v34 = vperm.slane %v412_v21, 2  ;;  %v2136_v21 = vld [vmem:[%s2582_s2 + $0xf0] sm:$0xff] }
 0x156   :  { %v1384_v44 = vmul.f32 -1.442695, %v311_v43 }
 0x158   :  { %v1434_v45 = vpop.eup %1433  ;;  %1435 = vpow2.f32 %v1384_v44 }
 0x159   :  { %v335_v46 = vadd.f32 1.0, %v1434_v45 }
 0x15b   :  { %1437 = vrcp.f32 %v335_v46  ;;  %v347_v5 = vand.u32 2147483648, %v335_v46  ;;  %vm341_vm13 = vweird.f32 %v335_v46  ;;  %v345_v7 = vand.u32 2147483647, %v335_v46 }
 0x15d   :  { %v348_v10 = vor.u32 1.1754944e-38, %v347_v5  ;;  %vm346_vm15 = vcmp.eq.f32.partialorder %v345_v7, 8.507059e+37  ;;  %v2060_v5 = vld [vmem:[%s2582_s2 + $0x158] sm:$0xff] }
 0x15e   :  { %v1436_v47 = vpop.eup %1435  ;;  %v2074_v7 = vld [vmem:[%s2582_s2 + $0x138] sm:$0xff] }
 0x15f   :  { %v315_v48 = vadd.f32 1.0, %v1436_v47 }
 0x161   :  { %1439 = vrcp.f32 %v315_v48  ;;  %v1438_v50 = vpop.eup %1437  ;;  %v327_v56 = vand.u32 2147483648, %v315_v48  ;;  %v325_v59 = vand.u32 2147483647, %v315_v48  ;;  %vm321_vm9 = vweird.f32 %v315_v48 }
 0x162   :  { %v337_v51 = vmul.f32 %v1438_v50, %v335_v46  ;;  %vm342_vm12 = vweird.f32 %v1438_v50 }
 0x163   :  { %v328_v63 = vor.u32 1.1754944e-38, %v327_v56  ;;  %vm326_vm11 = vcmp.eq.f32.partialorder %v325_v59, 8.507059e+37  ;;  %vm343_vm14 = vmor %vm341_vm13, %vm342_vm12 }
 0x164   :  { %v338_v54 = vsub.f32 1.0, %v337_v51  ;;  %v1389_v51 = vld [vmem:[%s2585_s0 + $0x40] sm:$0xff] }
 0x166   :  { %v339_v60 = vmul.f32 %v1438_v50, %v338_v54 }
 0x167   :  { %v1440_v52 = vpop.eup %1439 }
 0x168   :  { %v317_v53 = vmul.f32 %v1440_v52, %v315_v48  ;;  %vm322_vm8 = vweird.f32 %v1440_v52  ;;  %v340_v4 = vadd.f32 %v1438_v50, %v339_v60 }
 0x169   :  { %vm323_vm10 = vmor %vm321_vm9, %vm322_vm8 }
 0x16a   :  { %v318_v55 = vsub.f32 1.0, %v317_v53  ;;  %v344_v9 = vsel %vm343_vm14, %v1438_v50, %v340_v4  ;;  %v2055_v4 = vld [vmem:[%s2582_s2 + $0x150] sm:$0xff] }
 0x16b   :  { %v349_v11 = vsel %vm346_vm15, %v348_v10, %v344_v9  ;;  %v2084_v9 = vld [vmem:[%s2582_s2 + $0x148] sm:$0xff]  ;;  %v2093_v10 = vld [vmem:[%s2582_s2 + $0x120] sm:$0xff] }
 0x16c   :  { %v319_v58 = vmul.f32 %v1440_v52, %v318_v55  ;;  %v354_v14 = vsub.f32 1.0, %v349_v11  ;;  %v356_v18 = vmul.f32 %v349_v11, %v1965_v49  ;;  %v2098_v11 = vld [vmem:[%s2582_s2 + $0x128] sm:$0xff] }
 0x16e   :  { %v320_v62 = vadd.f32 %v1440_v52, %v319_v58 }
 0x170   :  { %v324_v1 = vsel %vm323_vm10, %v1440_v52, %v320_v62 }
 0x171   :  { %v329_v2 = vsel %vm326_vm11, %v328_v63, %v324_v1  ;;  %v2037_v1 = vld [vmem:[%s2582_s2 + $0x168] sm:$0xff] }
 0x172   :  { %v351_v6 = vmul.f32 %v329_v2, %v309_v0  ;;  %v2042_v2 = vld [vmem:[%s2582_s2 + $0x170] sm:$0xff]  ;;  %758 = vmatpush.msrb.mxu0 %v2037_v1 }
 0x173   :  { %778 = vmatpush.msrb.mxu1 %v2042_v2 }
 0x174   :  { %v352_v8 = vadd.f32 %v1383_v3, %v351_v6  ;;  %v2047_v3 = vld [vmem:[%s2582_s2 + $0x178] sm:$0xff]  ;;  %v2065_v6 = vld [vmem:[%s2582_s2 + $0x160] sm:$0xff]  ;;  %759 = vmatpush.msrb.mxu0 %v2055_v4 }
 0x175   :  { %779 = vmatpush.msrb.mxu1 %v2060_v5 }
 0x176   :  { %1441 = vtanh.f32 %v352_v8  ;;  %v2079_v8 = vld [vmem:[%s2582_s2 + $0x140] sm:$0xff]  ;;  %760 = vmatpush.msrb.mxu0 %v2074_v7 }
 0x177   :  { %780 = vmatpush.msrb.mxu1 %v2079_v8 }
 0x178   :  { %761 = vmatpush.msrb.mxu0 %v2093_v10 }
 0x179   :  { %781 = vmatpush.msrb.mxu1 %v2098_v11 }
 0x17c   :  { %v1442_v15 = vpop.eup %1441 }
 0x17d   :  { %v355_v17 = vmul.f32 %v1442_v15, %v354_v14  ;;  %v2103_v14 = vld [vmem:[%s2582_s2 + $0x130] sm:$0xff]  ;;  %v2112_v15 = vld [vmem:[%s2582_s2 + $0x108] sm:$0xff] }
 0x17e   :  { %762 = vmatpush.msrb.mxu0 %v2112_v15 }
 0x17f   :  { %v2003_v20 = vadd.f32 %v356_v18, %v355_v17  ;;  %v2117_v17 = vld [vmem:[%s2582_s2 + $0x110] sm:$0xff]  ;;  %v2122_v18 = vld [vmem:[%s2582_s2 + $0x118] sm:$0xff] }
 0x180   :  { %782 = vmatpush.msrb.mxu1 %v2117_v17  ;;  %763 = vmatpush.msrb.mxu0 %v2136_v21 }
 0x181   :  { %1386 = vst [vmem:[%s2586_s4 + $0x8] sm:$0xff] %v2003_v20  ;;  %436 = vmatmul.f32.vlgmr.msrb.gmra.mxu2 %v2003_v20  ;;  %456 = vmatmul.f32.vlgmr.msrb.gmra.mxu3 %v2003_v20 }
 0x182   :  { %476 = vmatmul.f32.vlgmr.msra.gmra.mxu0 %v2003_v20  ;;  %798 = vmatpush.msrb.mxu2 %v2047_v3 }
 0x183   :  { %927 = vmatpush.msrb.mxu3 %v2037_v1 }
 0x184   :  { %799 = vmatpush.msrb.mxu2 %v2065_v6 }
 0x185   :  { %928 = vmatpush.msrb.mxu3 %v2055_v4 }
 0x186   :  { %800 = vmatpush.msrb.mxu2 %v2084_v9 }
 0x187   :  { %929 = vmatpush.msrb.mxu3 %v2074_v7 }
 0x188   :  { %801 = vmatpush.msrb.mxu2 %v2103_v14 }
 0x189   :  { %930 = vmatpush.msrb.mxu3 %v2093_v10 }
 0x18a   :  { %802 = vmatpush.msrb.mxu2 %v2122_v18 }
 0x18b   :  { %931 = vmatpush.msrb.mxu3 %v2112_v15 }
 0x18d   :  { %932 = vmatpush.msrb.mxu3 %v2136_v21 }
 0x1ff   :  { %v477_v43 = vpop.f32.mrf.mxu0 }
 0x200   :  { %v478_v47 = vadd.f32 %v477_v43, %v416_v34  ;;  %v2246_v34 = vld [vmem:[%s2582_s2 + $0x88] sm:$0xff] }
 0x204   :  { %v437_v27 = vpop.f32.mrf.mxu2  ;;  %v457_v30 = vpop.f32.mrf.mxu3 }
 0x205   :  { %v438_v32 = vadd.f32 %v437_v27, %v414_v23  ;;  %v458_v33 = vadd.f32 %v457_v30, %v415_v24  ;;  %v2141_v23 = vld [vmem:[%s2582_s2 + $0xf8] sm:$0xff]  ;;  %v2146_v24 = vld [vmem:[%s2582_s2 + $0x100] sm:$0xff]  ;;  %v2166_v30 = vld [vmem:[%s2582_s2 + $0xe8] sm:$0xff] }
 0x206   :  { %783 = vmatpush.msrb.mxu1 %v2141_v23  ;;  %803 = vmatpush.msrb.mxu2 %v2146_v24  ;;  %v2156_v27 = vld [vmem:[%s2582_s2 + $0xd8] sm:$0xff] }
 0x207   :  { %v480_v35 = vadd.f32 %v1387_v26, %v438_v32  ;;  %v500_v36 = vadd.f32 %v1388_v29, %v458_v33  ;;  %v2161_v29 = vld [vmem:[%s2582_s2 + $0xe0] sm:$0xff]  ;;  %764 = vmatpush.msrb.mxu0 %v2156_v27  ;;  %v2180_v33 = vld [vmem:[%s2582_s2 + $0xc8] sm:$0xff]  ;;  %933 = vmatpush.msrb.mxu3 %v2156_v27 }
 0x208   :  { %784 = vmatpush.msrb.mxu1 %v2161_v29  ;;  %804 = vmatpush.msrb.mxu2 %v2166_v30  ;;  %v2175_v32 = vld [vmem:[%s2582_s2 + $0xc0] sm:$0xff] }
 0x209   :  { %v1390_v38 = vmul.f32 -1.442695, %v480_v35  ;;  %v1391_v39 = vmul.f32 -1.442695, %v500_v36  ;;  %v2185_v35 = vld [vmem:[%s2582_s2 + $0xd0] sm:$0xff]  ;;  %v1393_v36 = vld [vmem:[%s2585_s0 + $0x48] sm:$0xff]  ;;  %765 = vmatpush.msrb.mxu0 %v2175_v32  ;;  %934 = vmatpush.msrb.mxu3 %v2175_v32 }
 0x20a   :  { %785 = vmatpush.msrb.mxu1 %v2180_v33  ;;  %805 = vmatpush.msrb.mxu2 %v2185_v35 }
 0x20b   :  { %1443 = vpow2.f32 %v1390_v38 }
 0x20c   :  { %1445 = vpow2.f32 %v1391_v39 }
 0x211   :  { %v1444_v41 = vpop.eup %1443 }
 0x212   :  { %v1446_v42 = vpop.eup %1445  ;;  %v484_v49 = vadd.f32 1.0, %v1444_v41  ;;  %v2197_v41 = vld [vmem:[%s2582_s2 + $0xa8] sm:$0xff] }
 0x213   :  { %v504_v12 = vadd.f32 1.0, %v1446_v42  ;;  %v2202_v42 = vld [vmem:[%s2582_s2 + $0xb0] sm:$0xff]  ;;  %766 = vmatpush.msrb.mxu0 %v2197_v41  ;;  %935 = vmatpush.msrb.mxu3 %v2197_v41 }
 0x214   :  { %1447 = vrcp.f32 %v484_v49  ;;  %v496_v28 = vand.u32 2147483648, %v484_v49  ;;  %v494_v40 = vand.u32 2147483647, %v484_v49  ;;  %vm490_vm1 = vweird.f32 %v484_v49  ;;  %786 = vmatpush.msrb.mxu1 %v2202_v42 }
 0x215   :  { %1449 = vrcp.f32 %v504_v12  ;;  %v516_v54 = vand.u32 2147483648, %v504_v12  ;;  %vm510_vm5 = vweird.f32 %v504_v12  ;;  %v514_v55 = vand.u32 2147483647, %v504_v12 }
 0x216   :  { %v497_v46 = vor.u32 1.1754944e-38, %v496_v28  ;;  %vm495_vm3 = vcmp.eq.f32.partialorder %v494_v40, 8.507059e+37  ;;  %v2236_v28 = vld [vmem:[%s2582_s2 + $0x78] sm:$0xff] }
 0x217   :  { %v517_v58 = vor.u32 1.1754944e-38, %v516_v54  ;;  %vm515_vm7 = vcmp.eq.f32.partialorder %v514_v55, 8.507059e+37  ;;  %v2301_v54 = vld [vmem:[%s2582_s2 + $0x38] sm:$0xff]  ;;  %v2306_v55 = vld [vmem:[%s2582_s2 + $0x40] sm:$0xff] }
 0x21a   :  { %v1448_v13 = vpop.eup %1447 }
 0x21b   :  { %v1450_v16 = vpop.eup %1449  ;;  %v486_v19 = vmul.f32 %v1448_v13, %v484_v49  ;;  %vm491_vm0 = vweird.f32 %v1448_v13  ;;  %v2210_v49 = vld [vmem:[%s2582_s2 + $0xb8] sm:$0xff] }
 0x21c   :  { %v506_v22 = vmul.f32 %v1450_v16, %v504_v12  ;;  %vm492_vm2 = vmor %vm490_vm1, %vm491_vm0  ;;  %vm511_vm4 = vweird.f32 %v1450_v16  ;;  %806 = vmatpush.msrb.mxu2 %v2210_v49 }
 0x21d   :  { %v487_v25 = vsub.f32 1.0, %v486_v19  ;;  %vm512_vm6 = vmor %vm510_vm5, %vm511_vm4  ;;  %v2222_v19 = vld [vmem:[%s2582_s2 + $0x98] sm:$0xff] }
 0x21e   :  { %v507_v31 = vsub.f32 1.0, %v506_v22  ;;  %v2227_v22 = vld [vmem:[%s2582_s2 + $0xa0] sm:$0xff]  ;;  %787 = vmatpush.msrb.mxu1 %v2222_v19 }
 0x21f   :  { %v488_v37 = vmul.f32 %v1448_v13, %v487_v25  ;;  %807 = vmatpush.msrb.mxu2 %v2227_v22 }
 0x220   :  { %v508_v44 = vmul.f32 %v1450_v16, %v507_v31  ;;  %v2241_v31 = vld [vmem:[%s2582_s2 + $0x80] sm:$0xff] }
 0x221   :  { %v489_v45 = vadd.f32 %v1448_v13, %v488_v37  ;;  %v1394_v37 = vld [vmem:[%s2585_s0 + $0x50] sm:$0xff]  ;;  %788 = vmatpush.msrb.mxu1 %v2241_v31  ;;  %808 = vmatpush.msrb.mxu2 %v2246_v34 }
 0x222   :  { %v509_v52 = vadd.f32 %v1450_v16, %v508_v44  ;;  %v2258_v44 = vld [vmem:[%s2582_s2 + $0x60] sm:$0xff] }
 0x223   :  { %v493_v48 = vsel %vm492_vm2, %v1448_v13, %v489_v45  ;;  %v2263_v45 = vld [vmem:[%s2582_s2 + $0x68] sm:$0xff] }
 0x224   :  { %v498_v50 = vsel %vm495_vm3, %v497_v46, %v493_v48  ;;  %v513_v57 = vsel %vm512_vm6, %v1450_v16, %v509_v52  ;;  %v2217_v16 = vld [vmem:[%s2582_s2 + $0x90] sm:$0xff]  ;;  %789 = vmatpush.msrb.mxu1 %v2263_v45  ;;  %v2277_v48 = vld [vmem:[%s2582_s2 + $0x48] sm:$0xff] }
 0x225   :  { %v520_v53 = vmul.f32 %v498_v50, %v478_v47  ;;  %v518_v59 = vsel %vm515_vm7, %v517_v58, %v513_v57  ;;  %767 = vmatpush.msrb.mxu0 %v2217_v16  ;;  %936 = vmatpush.msrb.mxu3 %v2217_v16  ;;  %v2268_v46 = vld [vmem:[%s2582_s2 + $0x70] sm:$0xff]  ;;  %v2319_v57 = vld [vmem:[%s2582_s2 + $0x20] sm:$0xff]  ;;  %v2324_v58 = vld [vmem:[%s2582_s2 + $0x28] sm:$0xff] }
 0x226   :  { %v523_v60 = vsub.f32 1.0, %v518_v59  ;;  %v525_v63 = vmul.f32 %v518_v59, %v2003_v20  ;;  %v2128_v20 = vld [vmem:[%s2584_s3] sm:$0x7]  ;;  %809 = vmatpush.msrb.mxu2 %v2268_v46  ;;  %v2282_v50 = vld [vmem:[%s2582_s2 + $0x50] sm:$0xff] }
 0x227   :  { %v521_v56 = vadd.f32 %v1389_v51, %v520_v53  ;;  %v583_v26 = vperm.slane %v2128_v20, 0  ;;  %v584_v13 = vperm.slane %v2128_v20, 1  ;;  %768 = vmatpush.msrb.mxu0 %v2236_v28  ;;  %937 = vmatpush.msrb.mxu3 %v2236_v28  ;;  %v2287_v51 = vld [vmem:[%s2582_s2 + $0x58] sm:$0xff]  ;;  %v2296_v53 = vld [vmem:[%s2582_s2 + $0x30] sm:$0xff] }
 0x228   :  { %790 = vmatpush.msrb.mxu1 %v2282_v50  ;;  %810 = vmatpush.msrb.mxu2 %v2287_v51 }
 0x229   :  { %1451 = vtanh.f32 %v521_v56  ;;  %769 = vmatpush.msrb.mxu0 %v2258_v44  ;;  %938 = vmatpush.msrb.mxu3 %v2258_v44  ;;  %v2314_v56 = vld [vmem:[%s2582_s2 + $0x18] sm:$0xff] }
 0x22a   :  { %791 = vmatpush.msrb.mxu1 %v2301_v54  ;;  %811 = vmatpush.msrb.mxu2 %v2306_v55 }
 0x22b   :  { %770 = vmatpush.msrb.mxu0 %v2277_v48  ;;  %939 = vmatpush.msrb.mxu3 %v2277_v48 }
 0x22c   :  { %792 = vmatpush.msrb.mxu1 %v2319_v57  ;;  %812 = vmatpush.msrb.mxu2 %v2324_v58 }
 0x22d   :  { %771 = vmatpush.msrb.mxu0 %v2296_v53  ;;  %940 = vmatpush.msrb.mxu3 %v2296_v53 }
 0x22f   :  { %v1452_v61 = vpop.eup %1451  ;;  %772 = vmatpush.msrb.mxu0 %v2314_v56  ;;  %941 = vmatpush.msrb.mxu3 %v2314_v56 }
 0x230   :  { %v524_v62 = vmul.f32 %v1452_v61, %v523_v60  ;;  %v2330_v60 = vld [vmem:[%s2582_s2] sm:$0xff]  ;;  %v2335_v61 = vld [vmem:[%s2582_s2 + $0x8] sm:$0xff] }
 0x231   :  { %773 = vmatpush.msrb.mxu0 %v2330_v60  ;;  %793 = vmatpush.msrb.mxu1 %v2335_v61 }
 0x232   :  { %v2025_v0 = vadd.f32 %v525_v63, %v524_v62  ;;  %v2343_v63 = vld [vmem:[%s2582_s2 + $0x10] sm:$0xff]  ;;  %942 = vmatpush.msrb.mxu3 %v2330_v60 }
 0x233   :  { %813 = vmatpush.msrb.mxu2 %v2343_v63  ;;  %947 = vmatpush.msra.mxu0 %v2042_v2 }
 0x234   :  { %1392 = vst [vmem:[%s2586_s4 + $0x10] sm:$0xff] %v2025_v0  ;;  %605 = vmatmul.f32.vlgmr.msra.gmra.mxu1 %v2025_v0  ;;  %625 = vmatmul.f32.vlgmr.msra.gmra.mxu2 %v2025_v0 }
 0x235   :  { %645 = vmatmul.f32.vlgmr.msra.gmra.mxu3 %v2025_v0  ;;  %967 = vmatpush.msra.mxu1 %v2047_v3 }
 0x236   :  { %948 = vmatpush.msra.mxu0 %v2060_v5  ;;  %1096 = vmatpush.msra.mxu2 %v2037_v1 }
 0x237   :  { %968 = vmatpush.msra.mxu1 %v2065_v6  ;;  %1116 = vmatpush.msra.mxu3 %v2042_v2 }
 0x238   :  { %949 = vmatpush.msra.mxu0 %v2079_v8  ;;  %1097 = vmatpush.msra.mxu2 %v2055_v4 }
 0x239   :  { %969 = vmatpush.msra.mxu1 %v2084_v9  ;;  %1117 = vmatpush.msra.mxu3 %v2060_v5 }
 0x23a   :  { %950 = vmatpush.msra.mxu0 %v2098_v11  ;;  %1098 = vmatpush.msra.mxu2 %v2074_v7 }
 0x23b   :  { %970 = vmatpush.msra.mxu1 %v2103_v14  ;;  %1118 = vmatpush.msra.mxu3 %v2079_v8 }
 0x23c   :  { %951 = vmatpush.msra.mxu0 %v2117_v17  ;;  %1099 = vmatpush.msra.mxu2 %v2093_v10 }
 0x23d   :  { %971 = vmatpush.msra.mxu1 %v2122_v18  ;;  %1119 = vmatpush.msra.mxu3 %v2098_v11 }
 0x23e   :  { %952 = vmatpush.msra.mxu0 %v2141_v23  ;;  %1100 = vmatpush.msra.mxu2 %v2112_v15 }
 0x23f   :  { %972 = vmatpush.msra.mxu1 %v2146_v24  ;;  %1120 = vmatpush.msra.mxu3 %v2117_v17 }
 0x240   :  { %953 = vmatpush.msra.mxu0 %v2161_v29  ;;  %1101 = vmatpush.msra.mxu2 %v2136_v21 }
 0x241   :  { %973 = vmatpush.msra.mxu1 %v2166_v30  ;;  %1121 = vmatpush.msra.mxu3 %v2141_v23 }
 0x242   :  { %954 = vmatpush.msra.mxu0 %v2180_v33  ;;  %1102 = vmatpush.msra.mxu2 %v2156_v27 }
 0x243   :  { %974 = vmatpush.msra.mxu1 %v2185_v35  ;;  %1122 = vmatpush.msra.mxu3 %v2161_v29 }
 0x244   :  { %955 = vmatpush.msra.mxu0 %v2202_v42  ;;  %1103 = vmatpush.msra.mxu2 %v2175_v32 }
 0x245   :  { %975 = vmatpush.msra.mxu1 %v2210_v49  ;;  %1123 = vmatpush.msra.mxu3 %v2180_v33 }
 0x246   :  { %956 = vmatpush.msra.mxu0 %v2222_v19  ;;  %1104 = vmatpush.msra.mxu2 %v2197_v41 }
 0x247   :  { %976 = vmatpush.msra.mxu1 %v2227_v22  ;;  %1124 = vmatpush.msra.mxu3 %v2202_v42 }
 0x248   :  { %957 = vmatpush.msra.mxu0 %v2241_v31  ;;  %1105 = vmatpush.msra.mxu2 %v2217_v16 }
 0x249   :  { %977 = vmatpush.msra.mxu1 %v2246_v34  ;;  %1125 = vmatpush.msra.mxu3 %v2222_v19 }
 0x24a   :  { %958 = vmatpush.msra.mxu0 %v2263_v45  ;;  %1106 = vmatpush.msra.mxu2 %v2236_v28 }
 0x24b   :  { %978 = vmatpush.msra.mxu1 %v2268_v46  ;;  %1126 = vmatpush.msra.mxu3 %v2241_v31 }
 0x24c   :  { %959 = vmatpush.msra.mxu0 %v2282_v50  ;;  %1107 = vmatpush.msra.mxu2 %v2258_v44 }
 0x24d   :  { %979 = vmatpush.msra.mxu1 %v2287_v51  ;;  %1127 = vmatpush.msra.mxu3 %v2263_v45 }
 0x24e   :  { %960 = vmatpush.msra.mxu0 %v2301_v54  ;;  %1108 = vmatpush.msra.mxu2 %v2277_v48 }
 0x24f   :  { %980 = vmatpush.msra.mxu1 %v2306_v55  ;;  %1128 = vmatpush.msra.mxu3 %v2282_v50 }
 0x250   :  { %961 = vmatpush.msra.mxu0 %v2319_v57  ;;  %1109 = vmatpush.msra.mxu2 %v2296_v53 }
 0x251   :  { %981 = vmatpush.msra.mxu1 %v2324_v58  ;;  %1129 = vmatpush.msra.mxu3 %v2301_v54 }
 0x252   :  { %962 = vmatpush.msra.mxu0 %v2335_v61  ;;  %1110 = vmatpush.msra.mxu2 %v2314_v56 }
 0x253   :  { %982 = vmatpush.msra.mxu1 %v2343_v63  ;;  %1130 = vmatpush.msra.mxu3 %v2319_v57 }
 0x254   :  { %1111 = vmatpush.msra.mxu2 %v2330_v60 }
 0x255   :  { %1131 = vmatpush.msra.mxu3 %v2335_v61 }
 0x2b1   :  { %v606_v38 = vpop.f32.mrf.mxu1 }
 0x2b2   :  { %v607_v39 = vadd.f32 %v606_v38, %v583_v26 }
 0x2b4   :  { %v649_v12 = vadd.f32 %v1393_v36, %v607_v39 }
 0x2b6   :  { %v1396_v25 = vmul.f32 -1.442695, %v649_v12 }
 0x2b7   :  { %v626_v40 = vpop.f32.mrf.mxu2 }
 0x2b8   :  { %1453 = vpow2.f32 %v1396_v25  ;;  %v627_v43 = vadd.f32 %v626_v40, %v584_v13  ;;  %v585_v25 = vperm.slane %v2128_v20, 2 }
 0x2ba   :  { %v669_v47 = vadd.f32 %v1394_v37, %v627_v43 }
 0x2bc   :  { %v1397_v52 = vmul.f32 -1.442695, %v669_v47  ;;  %v646_v47 = vpop.f32.mrf.mxu3 }
 0x2be   :  { %v1454_v59 = vpop.eup %1453  ;;  %1455 = vpow2.f32 %v1397_v52 }
 0x2bf   :  { %v653_v62 = vadd.f32 1.0, %v1454_v59 }
 0x2c1   :  { %1457 = vrcp.f32 %v653_v62  ;;  %v665_v13 = vand.u32 2147483648, %v653_v62  ;;  %v663_v40 = vand.u32 2147483647, %v653_v62  ;;  %vm659_vm9 = vweird.f32 %v653_v62 }
 0x2c3   :  { %v666_v20 = vor.u32 1.1754944e-38, %v665_v13  ;;  %vm664_vm11 = vcmp.eq.f32.partialorder %v663_v40, 8.507059e+37 }
 0x2c4   :  { %v1456_v26 = vpop.eup %1455 }
 0x2c5   :  { %v2355_v36 = vadd.f32 1.0, %v1456_v26 }
 0x2c7   :  { %v1458_v38 = vpop.eup %1457  ;;  %1459 = vrcp.f32 %v2355_v36  ;;  %vm679_vm13 = vweird.f32 %v2355_v36 }
 0x2c8   :  { %v655_v39 = vmul.f32 %v1458_v38, %v653_v62  ;;  %vm660_vm8 = vweird.f32 %v1458_v38  ;;  %v1395_v62 = vld [vmem:[%s2585_s0 + $0x58] sm:$0xff] }
 0x2c9   :  { %vm661_vm10 = vmor %vm659_vm9, %vm660_vm8 }
 0x2ca   :  { %v656_v12 = vsub.f32 1.0, %v655_v39  ;;  %v647_v39 = vadd.f32 %v646_v47, %v585_v25 }
 0x2cc   :  { %v657_v37 = vmul.f32 %v1458_v38, %v656_v12 }
 0x2cd   :  { %v1460_v43 = vpop.eup %1459 }
 0x2ce   :  { %v675_v52 = vmul.f32 %v1460_v43, %v2355_v36  ;;  %v658_v59 = vadd.f32 %v1458_v38, %v657_v37  ;;  %vm680_vm12 = vweird.f32 %v1460_v43 }
 0x2cf   :  { %vm681_vm14 = vmor %vm679_vm13, %vm680_vm12 }
 0x2d0   :  { %v676_v26 = vsub.f32 1.0, %v675_v52  ;;  %v662_v12 = vsel %vm661_vm10, %v1458_v38, %v658_v59  ;;  %v685_v52 = vand.u32 2147483648, %v2355_v36  ;;  %v683_v38 = vand.u32 2147483647, %v2355_v36 }
 0x2d1   :  { %v667_v37 = vsel %vm664_vm11, %v666_v20, %v662_v12 }
 0x2d2   :  { %v677_v13 = vmul.f32 %v1460_v43, %v676_v26  ;;  %v689_v25 = vmul.f32 %v667_v37, %v647_v39  ;;  %v686_v59 = vor.u32 1.1754944e-38, %v685_v52  ;;  %vm684_vm15 = vcmp.eq.f32.partialorder %v683_v38, 8.507059e+37  ;;  %v1401_v37 = vld [vmem:[%s2585_s0 + $0x70] sm:$0xff] }
 0x2d4   :  { %v678_v40 = vadd.f32 %v1460_v43, %v677_v13  ;;  %v690_v47 = vadd.f32 %v1395_v62, %v689_v25 }
 0x2d6   :  { %v682_v20 = vsel %vm681_vm14, %v1460_v43, %v678_v40  ;;  %1461 = vtanh.f32 %v690_v47 }
 0x2d7   :  { %v687_v36 = vsel %vm684_vm15, %v686_v59, %v682_v20 }
 0x2d8   :  { %v692_v43 = vsub.f32 1.0, %v687_v36  ;;  %v694_v12 = vmul.f32 %v687_v36, %v2025_v0  ;;  %v750_v0 = vld [vmem:[%s2584_s3] sm:$0x7] }
 0x2dc   :  { %v1462_v26 = vpop.eup %1461 }
 0x2dd   :  { %v693_v39 = vmul.f32 %v1462_v26, %v692_v43 }
 0x2df   :  { %v2419_v62 = vadd.f32 %v694_v12, %v693_v39 }
 0x2e1   :  { %1398 = vst [vmem:[%s2586_s4 + $0x18] sm:$0xff] %v2419_v62  ;;  %774 = vmatmul.f32.vlgmr.msrb.gmra.mxu0 %v2419_v62  ;;  %794 = vmatmul.f32.vlgmr.msrb.gmra.mxu1 %v2419_v62 }
 0x2e2   :  { %814 = vmatmul.f32.vlgmr.msrb.gmra.mxu2 %v2419_v62  ;;  %1136 = vmatpush.msrb.mxu0 %v2047_v3 }
 0x2e3   :  { %1265 = vmatpush.msrb.mxu1 %v2037_v1  ;;  %1285 = vmatpush.msrb.mxu2 %v2042_v2  ;;  %v752_v1 = vperm.slane %v750_v0, 0  ;;  %v753_v2 = vperm.slane %v750_v0, 1 }
 0x2e4   :  { %1137 = vmatpush.msrb.mxu0 %v2065_v6 }
 0x2e5   :  { %1266 = vmatpush.msrb.mxu1 %v2055_v4  ;;  %1286 = vmatpush.msrb.mxu2 %v2060_v5  ;;  %v1399_v4 = vld [vmem:[%s2585_s0 + $0x60] sm:$0xff] }
 0x2e6   :  { %1138 = vmatpush.msrb.mxu0 %v2084_v9 }
 0x2e7   :  { %1267 = vmatpush.msrb.mxu1 %v2074_v7  ;;  %1287 = vmatpush.msrb.mxu2 %v2079_v8  ;;  %v1400_v7 = vld [vmem:[%s2585_s0 + $0x68] sm:$0xff] }
 0x2e8   :  { %1139 = vmatpush.msrb.mxu0 %v2103_v14 }
 0x2e9   :  { %1268 = vmatpush.msrb.mxu1 %v2093_v10  ;;  %1288 = vmatpush.msrb.mxu2 %v2098_v11 }
 0x2ea   :  { %1140 = vmatpush.msrb.mxu0 %v2122_v18 }
 0x2eb   :  { %1269 = vmatpush.msrb.mxu1 %v2112_v15  ;;  %1289 = vmatpush.msrb.mxu2 %v2117_v17 }
 0x2ec   :  { %1141 = vmatpush.msrb.mxu0 %v2146_v24 }
 0x2ed   :  { %1270 = vmatpush.msrb.mxu1 %v2136_v21  ;;  %1290 = vmatpush.msrb.mxu2 %v2141_v23 }
 0x2ee   :  { %1142 = vmatpush.msrb.mxu0 %v2166_v30 }
 0x2ef   :  { %1271 = vmatpush.msrb.mxu1 %v2156_v27  ;;  %1291 = vmatpush.msrb.mxu2 %v2161_v29 }
 0x2f0   :  { %1143 = vmatpush.msrb.mxu0 %v2185_v35 }
 0x2f1   :  { %1272 = vmatpush.msrb.mxu1 %v2175_v32  ;;  %1292 = vmatpush.msrb.mxu2 %v2180_v33 }
 0x2f2   :  { %1144 = vmatpush.msrb.mxu0 %v2210_v49 }
 0x2f3   :  { %1273 = vmatpush.msrb.mxu1 %v2197_v41  ;;  %1293 = vmatpush.msrb.mxu2 %v2202_v42 }
 0x2f4   :  { %1145 = vmatpush.msrb.mxu0 %v2227_v22 }
 0x2f5   :  { %1274 = vmatpush.msrb.mxu1 %v2217_v16  ;;  %1294 = vmatpush.msrb.mxu2 %v2222_v19 }
 0x2f6   :  { %1146 = vmatpush.msrb.mxu0 %v2246_v34 }
 0x2f7   :  { %1275 = vmatpush.msrb.mxu1 %v2236_v28  ;;  %1295 = vmatpush.msrb.mxu2 %v2241_v31 }
 0x2f8   :  { %1147 = vmatpush.msrb.mxu0 %v2268_v46 }
 0x2f9   :  { %1276 = vmatpush.msrb.mxu1 %v2258_v44  ;;  %1296 = vmatpush.msrb.mxu2 %v2263_v45  ;;  %v754_v45 = vperm.slane %v750_v0, 2 }
 0x2fa   :  { %1148 = vmatpush.msrb.mxu0 %v2287_v51 }
 0x2fb   :  { %1277 = vmatpush.msrb.mxu1 %v2277_v48  ;;  %1297 = vmatpush.msrb.mxu2 %v2282_v50 }
 0x2fc   :  { %1149 = vmatpush.msrb.mxu0 %v2306_v55 }
 0x2fd   :  { %1278 = vmatpush.msrb.mxu1 %v2296_v53  ;;  %1298 = vmatpush.msrb.mxu2 %v2301_v54 }
 0x2fe   :  { %1150 = vmatpush.msrb.mxu0 %v2324_v58 }
 0x2ff   :  { %1279 = vmatpush.msrb.mxu1 %v2314_v56  ;;  %1299 = vmatpush.msrb.mxu2 %v2319_v57 }
 0x300   :  { %1151 = vmatpush.msrb.mxu0 %v2343_v63 }
 0x301   :  { %1280 = vmatpush.msrb.mxu1 %v2330_v60  ;;  %1300 = vmatpush.msrb.mxu2 %v2335_v61 }
 0x35e   :  { %v775_v5 = vpop.f32.mrf.mxu0  ;;  %v795_v8 = vpop.f32.mrf.mxu1 }
 0x35f   :  { %v776_v10 = vadd.f32 %v775_v5, %v752_v1  ;;  %v796_v11 = vadd.f32 %v795_v8, %v753_v2 }
 0x361   :  { %v818_v15 = vadd.f32 %v1399_v4, %v776_v10  ;;  %v838_v17 = vadd.f32 %v1400_v7, %v796_v11 }
 0x363   :  { %v1402_v21 = vmul.f32 -1.442695, %v818_v15  ;;  %v1403_v23 = vmul.f32 -1.442695, %v838_v17 }
 0x365   :  { %1463 = vpow2.f32 %v1402_v21  ;;  %v815_v54 = vpop.f32.mrf.mxu2 }
 0x366   :  { %1465 = vpow2.f32 %v1403_v23  ;;  %v816_v60 = vadd.f32 %v815_v54, %v754_v45 }
 0x36b   :  { %v1464_v27 = vpop.eup %1463 }
 0x36c   :  { %v1466_v29 = vpop.eup %1465  ;;  %v822_v32 = vadd.f32 1.0, %v1464_v27 }
 0x36d   :  { %v842_v33 = vadd.f32 1.0, %v1466_v29 }
 0x36e   :  { %1467 = vrcp.f32 %v822_v32  ;;  %v834_v44 = vand.u32 2147483648, %v822_v32  ;;  %v832_v50 = vand.u32 2147483647, %v822_v32  ;;  %vm828_vm1 = vweird.f32 %v822_v32 }
 0x36f   :  { %1469 = vrcp.f32 %v842_v33  ;;  %v854_v25 = vand.u32 2147483648, %v842_v33  ;;  %vm848_vm5 = vweird.f32 %v842_v33  ;;  %v852_v40 = vand.u32 2147483647, %v842_v33 }
 0x370   :  { %v835_v57 = vor.u32 1.1754944e-38, %v834_v44  ;;  %vm833_vm3 = vcmp.eq.f32.partialorder %v832_v50, 8.507059e+37 }
 0x371   :  { %v855_v20 = vor.u32 1.1754944e-38, %v854_v25  ;;  %vm853_vm7 = vcmp.eq.f32.partialorder %v852_v40, 8.507059e+37 }
 0x374   :  { %v1468_v41 = vpop.eup %1467 }
 0x375   :  { %v1470_v42 = vpop.eup %1469  ;;  %v824_v16 = vmul.f32 %v1468_v41, %v822_v32  ;;  %vm829_vm0 = vweird.f32 %v1468_v41 }
 0x376   :  { %v844_v19 = vmul.f32 %v1470_v42, %v842_v33  ;;  %vm830_vm2 = vmor %vm828_vm1, %vm829_vm0  ;;  %vm849_vm4 = vweird.f32 %v1470_v42 }
 0x377   :  { %v825_v28 = vsub.f32 1.0, %v824_v16  ;;  %vm850_vm6 = vmor %vm848_vm5, %vm849_vm4 }
 0x378   :  { %v845_v31 = vsub.f32 1.0, %v844_v19 }
 0x379   :  { %v826_v48 = vmul.f32 %v1468_v41, %v825_v28 }
 0x37a   :  { %v846_v53 = vmul.f32 %v1470_v42, %v845_v31 }
 0x37b   :  { %v827_v56 = vadd.f32 %v1468_v41, %v826_v48 }
 0x37c   :  { %v847_v52 = vadd.f32 %v1470_v42, %v846_v53 }
 0x37d   :  { %v831_v61 = vsel %vm830_vm2, %v1468_v41, %v827_v56 }
 0x37e   :  { %v836_v13 = vsel %vm833_vm3, %v835_v57, %v831_v61  ;;  %v851_v59 = vsel %vm850_vm6, %v1470_v42, %v847_v52  ;;  %v1407_v42 = vld [vmem:[%s2585_s0 + $0x88] sm:$0xff]  ;;  %v1088_v61 = vld [vmem:[%s2584_s3] sm:$0x7]  ;;  %v1411_v52 = vld [vmem:[%s2585_s0 + $0x90] sm:$0xff] }
 0x37f   :  { %v858_v38 = vmul.f32 %v836_v13, %v816_v60  ;;  %v856_v36 = vsel %vm853_vm7, %v855_v20, %v851_v59  ;;  %v1091_v13 = vperm.slane %v1088_v61, 1 }
 0x380   :  { %v861_v43 = vsub.f32 1.0, %v856_v36  ;;  %v863_v12 = vmul.f32 %v856_v36, %v2419_v62 }
 0x381   :  { %v859_v47 = vadd.f32 %v1401_v37, %v858_v38  ;;  %v1090_v37 = vperm.slane %v1088_v61, 0  ;;  %v1412_v38 = vld [vmem:[%s2585_s0 + $0x98] sm:$0xff] }
 0x383   :  { %1471 = vtanh.f32 %v859_v47 }
 0x389   :  { %v1472_v26 = vpop.eup %1471 }
 0x38a   :  { %v862_v39 = vmul.f32 %v1472_v26, %v861_v43 }
 0x38c   :  { %v2497_v0 = vadd.f32 %v863_v12, %v862_v39 }
 0x38e   :  { %1404 = vst [vmem:[%s2586_s4 + $0x20] sm:$0xff] %v2497_v0  ;;  %943 = vmatmul.f32.vlgmr.msrb.gmra.mxu3 %v2497_v0  ;;  %963 = vmatmul.f32.vlgmr.msra.gmra.mxu0 %v2497_v0 }
 0x38f   :  { %983 = vmatmul.f32.vlgmr.msra.gmra.mxu1 %v2497_v0  ;;  %1305 = vmatpush.msrb.mxu3 %v2047_v3  ;;  %v919_v3 = vld [vmem:[%s2584_s3] sm:$0x7] }
 0x390   :  { %v923_v11 = vperm.slane %v919_v3, 2 }
 0x391   :  { %1306 = vmatpush.msrb.mxu3 %v2065_v6  ;;  %v922_v6 = vperm.slane %v919_v3, 1 }
 0x393   :  { %1307 = vmatpush.msrb.mxu3 %v2084_v9  ;;  %v1406_v9 = vld [vmem:[%s2585_s0 + $0x80] sm:$0xff] }
 0x395   :  { %1308 = vmatpush.msrb.mxu3 %v2103_v14 }
 0x397   :  { %1309 = vmatpush.msrb.mxu3 %v2122_v18 }
 0x399   :  { %1310 = vmatpush.msrb.mxu3 %v2146_v24 }
 0x39b   :  { %1311 = vmatpush.msrb.mxu3 %v2166_v30  ;;  %v921_v30 = vperm.slane %v919_v3, 0 }
 0x39d   :  { %1312 = vmatpush.msrb.mxu3 %v2185_v35 }
 0x39f   :  { %1313 = vmatpush.msrb.mxu3 %v2210_v49  ;;  %v1405_v49 = vld [vmem:[%s2585_s0 + $0x78] sm:$0xff] }
 0x3a1   :  { %1314 = vmatpush.msrb.mxu3 %v2227_v22 }
 0x3a3   :  { %1315 = vmatpush.msrb.mxu3 %v2246_v34 }
 0x3a5   :  { %1316 = vmatpush.msrb.mxu3 %v2268_v46 }
 0x3a7   :  { %1317 = vmatpush.msrb.mxu3 %v2287_v51 }
 0x3a9   :  { %1318 = vmatpush.msrb.mxu3 %v2306_v55 }
 0x3ab   :  { %1319 = vmatpush.msrb.mxu3 %v2324_v58 }
 0x3ad   :  { %1320 = vmatpush.msrb.mxu3 %v2343_v63 }
 0x40b   :  { %v964_v14 = vpop.f32.mrf.mxu0 }
 0x40c   :  { %v965_v18 = vadd.f32 %v964_v14, %v922_v6  ;;  %v984_v23 = vpop.f32.mrf.mxu1 }
 0x40d   :  { %v985_v32 = vadd.f32 %v984_v23, %v923_v11 }
 0x40e   :  { %v1007_v24 = vadd.f32 %v1406_v9, %v965_v18 }
 0x410   :  { %v1409_v35 = vmul.f32 -1.442695, %v1007_v24 }
 0x411   :  { %v944_v22 = vpop.f32.mrf.mxu3 }
 0x412   :  { %1473 = vpow2.f32 %v1409_v35  ;;  %v945_v34 = vadd.f32 %v944_v22, %v921_v30 }
 0x414   :  { %v987_v46 = vadd.f32 %v1405_v49, %v945_v34  ;;  %v1092_v49 = vperm.slane %v1088_v61, 2 }
 0x416   :  { %v1408_v51 = vmul.f32 -1.442695, %v987_v46 }
 0x418   :  { %v1474_v55 = vpop.eup %1473  ;;  %1475 = vpow2.f32 %v1408_v51 }
 0x419   :  { %v1011_v58 = vadd.f32 1.0, %v1474_v55 }
 0x41b   :  { %1477 = vrcp.f32 %v1011_v58  ;;  %v1023_v19 = vand.u32 2147483648, %v1011_v58  ;;  %vm1017_vm13 = vweird.f32 %v1011_v58  ;;  %v1021_v31 = vand.u32 2147483647, %v1011_v58 }
 0x41d   :  { %v1024_v48 = vor.u32 1.1754944e-38, %v1023_v19  ;;  %vm1022_vm15 = vcmp.eq.f32.partialorder %v1021_v31, 8.507059e+37 }
 0x41e   :  { %v1476_v63 = vpop.eup %1475 }
 0x41f   :  { %v991_v62 = vadd.f32 1.0, %v1476_v63 }
 0x421   :  { %1479 = vrcp.f32 %v991_v62  ;;  %v1478_v1 = vpop.eup %1477  ;;  %v1003_v10 = vand.u32 2147483648, %v991_v62  ;;  %v1001_v17 = vand.u32 2147483647, %v991_v62  ;;  %vm997_vm9 = vweird.f32 %v991_v62 }
 0x422   :  { %v1013_v2 = vmul.f32 %v1478_v1, %v1011_v58  ;;  %vm1018_vm12 = vweird.f32 %v1478_v1 }
 0x423   :  { %v1004_v29 = vor.u32 1.1754944e-38, %v1003_v10  ;;  %vm1002_vm11 = vcmp.eq.f32.partialorder %v1001_v17, 8.507059e+37  ;;  %vm1019_vm14 = vmor %vm1017_vm13, %vm1018_vm12 }
 0x424   :  { %v1014_v7 = vsub.f32 1.0, %v1013_v2  ;;  %v1413_v2 = vld [vmem:[%s2585_s0 + $0xa0] sm:$0xff] }
 0x426   :  { %v1015_v21 = vmul.f32 %v1478_v1, %v1014_v7 }
 0x427   :  { %v1480_v4 = vpop.eup %1479 }
 0x428   :  { %v993_v5 = vmul.f32 %v1480_v4, %v991_v62  ;;  %vm998_vm8 = vweird.f32 %v1480_v4  ;;  %v1016_v16 = vadd.f32 %v1478_v1, %v1015_v21 }
 0x429   :  { %vm999_vm10 = vmor %vm997_vm9, %vm998_vm8 }
 0x42a   :  { %v994_v8 = vsub.f32 1.0, %v993_v5  ;;  %v1020_v45 = vsel %vm1019_vm14, %v1478_v1, %v1016_v16 }
 0x42b   :  { %v1025_v50 = vsel %vm1022_vm15, %v1024_v48, %v1020_v45  ;;  %v1418_v45 = vld [vmem:[%s2585_s0 + $0xb0] sm:$0xff] }
 0x42c   :  { %v995_v15 = vmul.f32 %v1480_v4, %v994_v8  ;;  %v1030_v53 = vsub.f32 1.0, %v1025_v50  ;;  %v1032_v57 = vmul.f32 %v1025_v50, %v2497_v0 }
 0x42e   :  { %v996_v27 = vadd.f32 %v1480_v4, %v995_v15 }
 0x430   :  { %v1000_v33 = vsel %vm999_vm10, %v1480_v4, %v996_v27 }
 0x431   :  { %v1005_v41 = vsel %vm1002_vm11, %v1004_v29, %v1000_v33  ;;  %v1257_v33 = vld [vmem:[%s2584_s3] sm:$0x7] }
 0x432   :  { %v1027_v28 = vmul.f32 %v1005_v41, %v985_v32  ;;  %v1259_v41 = vperm.slane %v1257_v33, 0  ;;  %v1260_v31 = vperm.slane %v1257_v33, 1 }
 0x434   :  { %v1028_v44 = vadd.f32 %v1407_v42, %v1027_v28  ;;  %v1417_v42 = vld [vmem:[%s2585_s0 + $0xa8] sm:$0xff] }
 0x436   :  { %1481 = vtanh.f32 %v1028_v44 }
 0x43c   :  { %v1482_v54 = vpop.eup %1481 }
 0x43d   :  { %v1031_v56 = vmul.f32 %v1482_v54, %v1030_v53 }
 0x43f   :  { %v2535_v60 = vadd.f32 %v1032_v57, %v1031_v56 }
 0x441   :  { %1410 = vst [vmem:[%s2586_s4 + $0x28] sm:$0xff] %v2535_v60  ;;  %1112 = vmatmul.f32.vlgmr.msra.gmra.mxu2 %v2535_v60  ;;  %1132 = vmatmul.f32.vlgmr.msra.gmra.mxu3 %v2535_v60 }
 0x442   :  { %1152 = vmatmul.f32.vlgmr.msrb.gmra.mxu0 %v2535_v60 }
 0x4bf   :  { %v1153_v46 = vpop.f32.mrf.mxu0 }
 0x4c0   :  { %v1154_v63 = vadd.f32 %v1153_v46, %v1092_v49 }
 0x4c4   :  { %v1113_v25 = vpop.f32.mrf.mxu2  ;;  %v1133_v40 = vpop.f32.mrf.mxu3 }
 0x4c5   :  { %v1114_v47 = vadd.f32 %v1113_v25, %v1090_v37  ;;  %v1134_v59 = vadd.f32 %v1133_v40, %v1091_v13 }
 0x4c7   :  { %v1156_v20 = vadd.f32 %v1411_v52, %v1114_v47  ;;  %v1176_v36 = vadd.f32 %v1412_v38, %v1134_v59  ;;  %v1261_v38 = vperm.slane %v1257_v33, 2 }
 0x4c9   :  { %v1414_v43 = vmul.f32 -1.442695, %v1156_v20  ;;  %v1415_v26 = vmul.f32 -1.442695, %v1176_v36 }
 0x4cb   :  { %1483 = vpow2.f32 %v1414_v43 }
 0x4cc   :  { %1485 = vpow2.f32 %v1415_v26 }
 0x4d1   :  { %v1484_v39 = vpop.eup %1483 }
 0x4d2   :  { %v1486_v12 = vpop.eup %1485  ;;  %v1160_v0 = vadd.f32 1.0, %v1484_v39 }
 0x4d3   :  { %v1180_v3 = vadd.f32 1.0, %v1486_v12 }
 0x4d4   :  { %1487 = vrcp.f32 %v1160_v0  ;;  %v1172_v30 = vand.u32 2147483648, %v1160_v0  ;;  %v1170_v34 = vand.u32 2147483647, %v1160_v0  ;;  %vm1166_vm1 = vweird.f32 %v1160_v0 }
 0x4d5   :  { %1489 = vrcp.f32 %v1180_v3  ;;  %v1192_v7 = vand.u32 2147483648, %v1180_v3  ;;  %vm1186_vm5 = vweird.f32 %v1180_v3  ;;  %v1190_v8 = vand.u32 2147483647, %v1180_v3 }
 0x4d6   :  { %v1173_v58 = vor.u32 1.1754944e-38, %v1172_v30  ;;  %vm1171_vm3 = vcmp.eq.f32.partialorder %v1170_v34, 8.507059e+37 }
 0x4d7   :  { %v1193_v15 = vor.u32 1.1754944e-38, %v1192_v7  ;;  %vm1191_vm7 = vcmp.eq.f32.partialorder %v1190_v8, 8.507059e+37 }
 0x4da   :  { %v1488_v6 = vpop.eup %1487 }
 0x4db   :  { %v1490_v9 = vpop.eup %1489  ;;  %v1162_v14 = vmul.f32 %v1488_v6, %v1160_v0  ;;  %vm1167_vm0 = vweird.f32 %v1488_v6 }
 0x4dc   :  { %v1182_v18 = vmul.f32 %v1490_v9, %v1180_v3  ;;  %vm1168_vm2 = vmor %vm1166_vm1, %vm1167_vm0  ;;  %vm1187_vm4 = vweird.f32 %v1490_v9  ;;  %v1419_v3 = vld [vmem:[%s2585_s0 + $0xb8] sm:$0xff] }
 0x4dd   :  { %v1163_v24 = vsub.f32 1.0, %v1162_v14  ;;  %vm1188_vm6 = vmor %vm1186_vm5, %vm1187_vm4 }
 0x4de   :  { %v1183_v35 = vsub.f32 1.0, %v1182_v18 }
 0x4df   :  { %v1164_v22 = vmul.f32 %v1488_v6, %v1163_v24 }
 0x4e0   :  { %v1184_v51 = vmul.f32 %v1490_v9, %v1183_v35 }
 0x4e1   :  { %v1165_v55 = vadd.f32 %v1488_v6, %v1164_v22 }
 0x4e2   :  { %v1185_v4 = vadd.f32 %v1490_v9, %v1184_v51 }
 0x4e3   :  { %v1169_v62 = vsel %vm1168_vm2, %v1488_v6, %v1165_v55 }
 0x4e4   :  { %v1174_v1 = vsel %vm1171_vm3, %v1173_v58, %v1169_v62  ;;  %v1189_v11 = vsel %vm1188_vm6, %v1490_v9, %v1185_v4 }
 0x4e5   :  { %v1196_v5 = vmul.f32 %v1174_v1, %v1154_v63  ;;  %v1194_v17 = vsel %vm1191_vm7, %v1193_v15, %v1189_v11 }
 0x4e6   :  { %v1199_v21 = vsub.f32 1.0, %v1194_v17  ;;  %v1201_v29 = vmul.f32 %v1194_v17, %v2535_v60 }
 0x4e7   :  { %v1197_v10 = vadd.f32 %v1413_v2, %v1196_v5 }
 0x4e9   :  { %1491 = vtanh.f32 %v1197_v10 }
 0x4ef   :  { %v1492_v23 = vpop.eup %1491 }
 0x4f0   :  { %v1200_v27 = vmul.f32 %v1492_v23, %v1199_v21 }
 0x4f2   :  { %v2557_v32 = vadd.f32 %v1201_v29, %v1200_v27 }
 0x4f4   :  { %1416 = vst [vmem:[%s2586_s4 + $0x30] sm:$0xff] %v2557_v32  ;;  %1281 = vmatmul.f32.vlgmr.msrb.gmra.mxu1 %v2557_v32  ;;  %1301 = vmatmul.f32.vlgmr.msrb.gmra.mxu2 %v2557_v32 }
 0x4f5   :  { %1321 = vmatmul.f32.vlgmr.msrb.gmra.mxu3 %v2557_v32 }
 0x571   :  { %v1282_v16 = vpop.f32.mrf.mxu1 }
 0x572   :  { %v1283_v19 = vadd.f32 %v1282_v16, %v1259_v41 }
 0x574   :  { %v1325_v28 = vadd.f32 %v1417_v42, %v1283_v19 }
 0x576   :  { %v1420_v44 = vmul.f32 -1.442695, %v1325_v28 }
 0x577   :  { %v1302_v48 = vpop.f32.mrf.mxu2 }
 0x578   :  { %1493 = vpow2.f32 %v1420_v44  ;;  %v1303_v50 = vadd.f32 %v1302_v48, %v1260_v31  ;;  %v1322_v20 = vpop.f32.mrf.mxu3 }
 0x579   :  { %v1323_v12 = vadd.f32 %v1322_v20, %v1261_v38 }
 0x57a   :  { %v1345_v53 = vadd.f32 %v1418_v45, %v1303_v50 }
 0x57c   :  { %v1421_v54 = vmul.f32 -1.442695, %v1345_v53 }
 0x57e   :  { %v1494_v56 = vpop.eup %1493  ;;  %1495 = vpow2.f32 %v1421_v54 }
 0x57f   :  { %v1329_v57 = vadd.f32 1.0, %v1494_v56 }
 0x581   :  { %1497 = vrcp.f32 %v1329_v57  ;;  %v1341_v25 = vand.u32 2147483648, %v1329_v57  ;;  %v1339_v47 = vand.u32 2147483647, %v1329_v57  ;;  %vm1335_vm9 = vweird.f32 %v1329_v57 }
 0x583   :  { %v1342_v26 = vor.u32 1.1754944e-38, %v1341_v25  ;;  %vm1340_vm11 = vcmp.eq.f32.partialorder %v1339_v47, 8.507059e+37 }
 0x584   :  { %v1496_v60 = vpop.eup %1495 }
 0x585   :  { %v1349_v61 = vadd.f32 1.0, %v1496_v60 }
 0x587   :  { %v1498_v37 = vpop.eup %1497  ;;  %1499 = vrcp.f32 %v1349_v61  ;;  %v1361_v14 = vand.u32 2147483648, %v1349_v61  ;;  %v1359_v24 = vand.u32 2147483647, %v1349_v61  ;;  %vm1355_vm13 = vweird.f32 %v1349_v61 }
 0x588   :  { %v1331_v13 = vmul.f32 %v1498_v37, %v1329_v57  ;;  %vm1336_vm8 = vweird.f32 %v1498_v37 }
 0x589   :  { %vm1337_vm10 = vmor %vm1335_vm9, %vm1336_vm8  ;;  %v1362_v49 = vor.u32 1.1754944e-38, %v1361_v14  ;;  %vm1360_vm15 = vcmp.eq.f32.partialorder %v1359_v24, 8.507059e+37 }
 0x58a   :  { %v1332_v52 = vsub.f32 1.0, %v1331_v13 }
 0x58c   :  { %v1333_v40 = vmul.f32 %v1498_v37, %v1332_v52 }
 0x58d   :  { %v1500_v59 = vpop.eup %1499 }
 0x58e   :  { %v1351_v36 = vmul.f32 %v1500_v59, %v1349_v61  ;;  %v1334_v43 = vadd.f32 %v1498_v37, %v1333_v40  ;;  %vm1356_vm12 = vweird.f32 %v1500_v59 }
 0x58f   :  { %vm1357_vm14 = vmor %vm1355_vm13, %vm1356_vm12 }
 0x590   :  { %v1352_v39 = vsub.f32 1.0, %v1351_v36  ;;  %v1338_v0 = vsel %vm1337_vm10, %v1498_v37, %v1334_v43 }
 0x591   :  { %v1343_v6 = vsel %vm1340_vm11, %v1342_v26, %v1338_v0 }
 0x592   :  { %v1353_v9 = vmul.f32 %v1500_v59, %v1352_v39  ;;  %v1365_v18 = vmul.f32 %v1343_v6, %v1323_v12 }
 0x594   :  { %v1354_v30 = vadd.f32 %v1500_v59, %v1353_v9  ;;  %v1366_v35 = vadd.f32 %v1419_v3, %v1365_v18 }
 0x596   :  { %v1358_v22 = vsel %vm1357_vm14, %v1500_v59, %v1354_v30  ;;  %1501 = vtanh.f32 %v1366_v35 }
 0x597   :  { %v1363_v34 = vsel %vm1360_vm15, %v1362_v49, %v1358_v22 }
 0x598   :  { %v1368_v46 = vsub.f32 1.0, %v1363_v34  ;;  %v1370_v58 = vmul.f32 %v1363_v34, %v2557_v32 }
 0x59c   :  { %v1502_v51 = vpop.eup %1501 }
 0x59d   :  { %v1369_v55 = vmul.f32 %v1502_v51, %v1368_v46 }
 0x59f   :  { %v1371_v63 = vadd.f32 %v1370_v58, %v1369_v55 }
 0x5a1   :  { %1422 = vst [vmem:[%s2586_s4 + $0x38] sm:$0xff] %v1371_v63 }

</bundles_post_ra>
